<compile_context>
chip_gen: v7x
topology: tpu7x:2x2x1
jax: 0.10.0
libtpu: 0.0.40
codegen_flags: <defaults>
</compile_context>

<pallas_src>
import functools
import math

import numpy as np

import jax
import jax.numpy as jnp
from jax import lax
from jax.experimental import pallas as pl
from jax.experimental.pallas import tpu as pltpu

_LP = 16  # left halo pad = one bf16 sublane tile -> aligned interior copy into scratch


def _round_up(v, m):
    return ((v + m - 1) // m) * m


def _choose_tile_h(H, W, C, r, Wp, budget_bytes=20 << 20, hard_cap=16):
    """Largest divisor of H whose per-step VMEM footprint fits the budget."""
    OC = r * r * C
    per_row = (2 * r * (W * r * C) * 2      # double-buffered bf16 output tile
               + Wp * 9 * C * 2             # im2col patches (bf16)
               + Wp * OC * 4                # f32 matmul accumulator
               + Wp * C * 2)                # halo scratch
    cap = int(max(1, min(hard_cap, budget_bytes // max(per_row, 1), H)))
    for th in range(cap, 0, -1):
        if H % th == 0:
            return th
    return 1


# ------------------------------ Pallas kernel ------------------------------ #
def _conv3x3_ps_kernel(x_ref, w_ref, b_ref, o_ref, xpad_ref, patch_ref,
                       *, W, C, r, TH, Wp, n_h):
    """Fused 3x3 'same' conv (C -> r*r*C) + PixelShuffle(r) for one row-band.

    x_ref   : (1, H, W, C)        bf16 NHWC image (VMEM-resident across h tiles)
    w_ref   : (9*C, r*r*C)        bf16 weights, rows (dy, dx, cin), cols (i, j, c)
    b_ref   : (1, r*r*C)          f32 bias, (i, j, c) order
    o_ref   : (1, TH, r, W*r*C)   bf16; row (y, i) is upsampled row (h*TH+y)*r + i,
                                  lanes ordered (w, j, c)  -> lane-dense writeback
    xpad_ref: (TH+3, Wp, C)       bf16 halo scratch (left pad = _LP columns)
    patch_ref:(TH*Wp, 9*C)        bf16 im2col operand for the single MXU matmul
    """
    h = pl.program_id(1)
    OC = r * r * C
    rC = r * C
    Q = TH * Wp
    LP = _LP
    row0 = pl.multiple_of(h * TH, TH)

    # ---- halo construction: zero only the halo, the interior is overwritten ----
    # Interior rows of this band (store starts at sublane offset LP=16 -> aligned).
    xpad_ref[1:TH + 1, LP:LP + W, :] = x_ref[0, pl.ds(row0, TH), :, :]

    # Top halo row: neighbouring image row, or zeros at the image border.
    @pl.when(h > 0)
    def _():
        xpad_ref[0:1, LP:LP + W, :] = x_ref[0, pl.ds(row0 - 1, 1), :, :]

    @pl.when(h == 0)
    def _():
        xpad_ref[0:1, :, :] = jnp.zeros((1, Wp, C), xpad_ref.dtype)

    # Bottom halo row.
    @pl.when(h < n_h - 1)
    def _():
        xpad_ref[TH + 1:TH + 2, LP:LP + W, :] = x_ref[0, pl.ds(row0 + TH, 1), :, :]

    @pl.when(h == n_h - 1)
    def _():
        xpad_ref[TH + 1:TH + 2, :, :] = jnp.zeros((1, Wp, C), xpad_ref.dtype)

    # Left / right conv zero-padding columns (tiny strips).  Everything outside
    # columns [LP-1, LP+W] only ever feeds junk output columns that are never
    # stored, so it is left uninitialised (no full-scratch memset).
    zcol = jnp.zeros((TH + 2, 1, C), xpad_ref.dtype)
    xpad_ref[0:TH + 2, LP - 1:LP, :] = zcol
    xpad_ref[0:TH + 2, LP + W:LP + W + 1, :] = zcol

    # ---- im2col: 9 sublane-shifted windows of the pixel-major padded view,
    #      packed along lanes -> one (Q, 9C) operand for a single K=9C matmul.
    xcol = xpad_ref[...].reshape((TH + 3) * Wp, C)   # layout-preserving (Wp % 16 == 0)
    for dy in range(3):
        for dx in range(3):
            t = dy * 3 + dx
            off = dy * Wp + (LP - 1) + dx
            patch_ref[:, t * C:(t + 1) * C] = xcol[off:off + Q, :]

    # ---- single MXU matmul with f32 accumulation, f32 bias add ----
    acc = jnp.dot(patch_ref[...], w_ref[...], preferred_element_type=jnp.float32)
    acc = acc + b_ref[...]
    acc3 = acc.reshape(TH, Wp, OC)                   # layout-preserving (Wp % 8 == 0)

    # ---- fused PixelShuffle epilogue (junk columns w >= W are never written) ----
    if rC % 128 == 0:
        # r lane-dense stores: one lane-dim concat (XLU) + one unmasked store per i.
        for i in range(r):
            row = jnp.concatenate(
                [acc3[:, w, i * rC:(i + 1) * rC].astype(o_ref.dtype)
                 for w in range(W)],
                axis=-1)
            o_ref[0, :, i, :] = row
    else:
        # rC not a multiple of 128 (e.g. r=3): per-column stores, still >=128-lane
        # wide at the production channel count.
        # TODO(synk): use a pltpu.einshape 'hwc->h(wc)' merge to make this dense too.
        for i in range(r):
            for w in range(W):
                o_ref[0, :, i, w * rC:(w + 1) * rC] = (
                    acc3[:, w, i * rC:(i + 1) * rC].astype(o_ref.dtype))


def conv3x3_pixel_shuffle(x_nhwc, w_k, b_k, r, *, tile_h=None):
    """One fused stage. x_nhwc: (N, H, W, C) bf16 -> (N, H*r, W*r, C) bf16."""
    N, H, W, C = x_nhwc.shape
    OC = r * r * C
    LP = _LP
    Wp = _round_up(W + LP + 1, 16)          # padded row pitch, bf16-sublane aligned
    TH = tile_h if tile_h is not None else _choose_tile_h(H, W, C, r, Wp)
    assert H % TH == 0
    n_h = H // TH

    # Explicit VMEM budget (review: size against v7x's 64 MiB physical VMEM).
    vmem_need = (2 * H * W * C * 2                   # resident input image (2 bufs)
                 + 2 * 9 * C * OC * 2 + 2 * OC * 4   # weights / bias
                 + 2 * TH * r * W * r * C * 2        # output tile (2 bufs)
                 + (TH + 3) * Wp * C * 2             # halo scratch
                 + TH * Wp * 9 * C * 2               # im2col scratch
                 + TH * Wp * OC * 4                  # f32 accumulator value
                 + 2 * TH * r * W * r * C * 2)       # epilogue temporaries
    vmem_limit = int(min(max(4 * vmem_need, 16 << 20), 48 << 20))

    flops = 2 * N * H * Wp * (9 * C) * OC
    bytes_accessed = (N * H * W * C * 2 + 9 * C * OC * 2 + OC * 4
                      + N * H * r * W * r * C * 2)

    kern = functools.partial(_conv3x3_ps_kernel,
                             W=W, C=C, r=r, TH=TH, Wp=Wp, n_h=n_h)
    out = pl.pallas_call(
        kern,
        out_shape=jax.ShapeDtypeStruct((N, H, r, W * r * C), jnp.bfloat16),
        grid=(N, n_h),
        in_specs=[
            # Whole image per batch element; block index constant over h, so the
            # image is DMA'd once per n and stays resident across its row bands.
            pl.BlockSpec((1, H, W, C), lambda n, h: (n, 0, 0, 0)),
            pl.BlockSpec((9 * C, OC), lambda n, h: (0, 0)),
            pl.BlockSpec((1, OC), lambda n, h: (0, 0)),
        ],
        out_specs=pl.BlockSpec((1, TH, r, W * r * C), lambda n, h: (n, h, 0, 0)),
        scratch_shapes=[
            pltpu.VMEM((TH + 3, Wp, C), jnp.bfloat16),
            pltpu.VMEM((TH * Wp, 9 * C), jnp.bfloat16),
        ],
        compiler_params=pltpu.CompilerParams(
            dimension_semantics=("parallel", "parallel"),
            vmem_limit_bytes=vmem_limit),
        cost_estimate=pl.CostEstimate(flops=flops, transcendentals=0,
                                      bytes_accessed=bytes_accessed),
    )(x_nhwc, w_k, b_k)
    # (N, H, r, W*r*C) is bit-identical to the upsampled NHWC image: free reshape.
    return out.reshape(N, H * r, W * r, C)


# ------------------------------ parameters --------------------------------- #
def _pixel_shuffle_perm(C, r):
    """Map our (i, j, c)-ordered output channel -> PyTorch (c, i, j) channel."""
    perm = np.zeros(C * r * r, dtype=np.int32)
    for i in range(r):
        for j in range(r):
            for c in range(C):
                perm[i * r * C + j * C + c] = c * r * r + i * r + j
    return perm


def _make_stage_params(key, n_channels, r):
    """Conv2d(n_channels, r*r*n_channels, 3) params (HWIO + bias), PyTorch init."""
    k1, k2 = jax.random.split(key)
    oc = r * r * n_channels
    fan_in = n_channels * 9
    bound = 1.0 / math.sqrt(fan_in)
    w = jax.random.uniform(k1, (3, 3, n_channels, oc), jnp.float32, -bound, bound)
    b = jax.random.uniform(k2, (oc,), jnp.float32, -bound, bound)
    return w, b


def _pack_stage_for_kernel(w_hwio, b, C, r):
    """Permute output channels to (i, j, c) order and flatten taps for the kernel."""
    OC = r * r * C
    perm = _pixel_shuffle_perm(C, r)
    w_p = w_hwio[:, :, :, perm]                                   # (3, 3, C, OC')
    w_k = w_p.reshape(9 * C, OC).astype(jnp.bfloat16)             # rows: (dy, dx, cin)
    b_k = b[perm].reshape(1, OC).astype(jnp.float32)
    return w_k, b_k


def _make_upsample_stages(key, n_channels, scale):
    """Mirror _UpsampleBlock.__init__ (group=1)."""
    if scale in (2, 4, 8):
        rs = [2] * int(math.log(scale, 2))
    elif scale == 3:
        rs = [3]
    else:
        rs = []
    stages = []
    for r in rs:
        key, sub = jax.random.split(key)
        w, b = _make_stage_params(sub, n_channels, r)
        w_k, b_k = _pack_stage_for_kernel(w, b, n_channels, r)
        stages.append({"w": w, "b": b, "w_k": w_k, "b_k": b_k, "r": r})
    return stages


class UpsampleBlock:
    """JAX/Pallas port of neosr.archs.hdsrnet_arch.UpsampleBlock (group=1).

    Public interface is NCHW (like PyTorch); between stages activations stay in
    bf16 NHWC so stage chaining is a free reshape (no extra HBM passes).
    """

    def __init__(self, n_channels, scale, multi_scale, group=1, key=None):
        assert group == 1, "only group=1 is implemented"
        if key is None:
            key = jax.random.PRNGKey(0)
        self.n_channels = n_channels
        self.multi_scale = multi_scale
        if multi_scale:
            k2, k3, k4 = jax.random.split(key, 3)
            self.up2 = _make_upsample_stages(k2, n_channels, 2)
            self.up3 = _make_upsample_stages(k3, n_channels, 3)
            self.up4 = _make_upsample_stages(k4, n_channels, 4)
        else:
            self.up = _make_upsample_stages(key, n_channels, scale)

    def _run(self, stages, x_nchw):
        # cast to bf16 *before* the framing transpose (half the HBM traffic)
        x = jnp.transpose(x_nchw.astype(jnp.bfloat16), (0, 2, 3, 1))   # NCHW -> NHWC
        for st in stages:
            x = conv3x3_pixel_shuffle(x, st["w_k"], st["b_k"], st["r"])
        return jnp.transpose(x, (0, 3, 1, 2)).astype(jnp.float32)      # NHWC -> NCHW

    def __call__(self, x, scale):
        if self.multi_scale:
            if scale == 2:
                return self._run(self.up2, x)
            if scale == 3:
                return self._run(self.up3, x)
            if scale == 4:
                return self._run(self.up4, x)
            raise ValueError(f"unsupported scale {scale}")
        return self._run(self.up, x)


# ---------------------------- reference check ------------------------------ #
def pixel_shuffle_nhwc(x, r):
    """PixelShuffle(r) with channels-last layout, matching torch.nn.PixelShuffle."""
    N, H, W, CRR = x.shape
    C = CRR // (r * r)
    x = x.reshape(N, H, W, C, r, r)            # cc = c*r*r + i*r + j -> (c, i, j)
    x = x.transpose(0, 1, 4, 2, 5, 3)          # (N, H, i, W, j, C)
    return x.reshape(N, H * r, W * r, C)


def _reference_run(stages, x_nchw):
    """Pure-JAX reference with the same bf16-in / f32-accumulate / bf16-out numerics."""
    x = jnp.transpose(x_nchw, (0, 2, 3, 1)).astype(jnp.bfloat16)
    for st in stages:
        y = lax.conv_general_dilated(
            x, st["w"].astype(jnp.bfloat16),
            window_strides=(1, 1), padding="SAME",
            dimension_numbers=("NHWC", "HWIO", "NHWC"),
            preferred_element_type=jnp.float32)
        y = y + st["b"]
        x = pixel_shuffle_nhwc(y, st["r"]).astype(jnp.bfloat16)
    return jnp.transpose(x.astype(jnp.float32), (0, 3, 1, 2))


if __name__ == "__main__":
    key = jax.random.PRNGKey(0)
    k_param, k_x = jax.random.split(key)

    # hdsrnet's upsampler runs with 64 feature channels; keep spatial/batch small.
    n_channels = 64
    x = jax.random.normal(k_x, (2, n_channels, 16, 16), jnp.float32)   # NCHW

    block = UpsampleBlock(n_channels, scale=2, multi_scale=True, group=1, key=k_param)

    ok = True
    for scale, stages in ((2, block.up2), (3, block.up3), (4, block.up4)):
        out = jax.block_until_ready(block(x, scale))
        ref = _reference_run(stages, x)
        expected_shape = (2, n_channels, 16 * scale, 16 * scale)
        if out.shape != expected_shape:
            ok = False
            print(f"shape mismatch for scale={scale}: {out.shape} vs {expected_shape}")
            continue
        if not jnp.allclose(out, ref, atol=3e-2, rtol=3e-2):
            ok = False
            print(f"numeric mismatch for scale={scale}: "
                  f"max abs err = {float(jnp.max(jnp.abs(out - ref)))}")

    if ok:
        print("KERNEL_OK")
</pallas_src>

<mosaic_0001>
module attributes {stable_mosaic.version = 11 : i64} {
  func.func @_conv3x3_ps_kernel(%arg0: i32, %arg1: i32, %arg2: memref<1x16x16x64xbf16, #tpu.memory_space<vmem>>, %arg3: memref<576x256xbf16, #tpu.memory_space<vmem>>, %arg4: memref<1x256xf32, #tpu.memory_space<vmem>>, %arg5: memref<1x16x2x2048xbf16, #tpu.memory_space<vmem>>, %arg6: memref<19x48x64xbf16, #tpu.memory_space<vmem>>, %arg7: memref<768x576xbf16, #tpu.memory_space<vmem>>) attributes {dimension_semantics = [#tpu.dimension_semantics<parallel>, #tpu.dimension_semantics<parallel>], iteration_bounds = array<i64: 2, 1>, scalar_prefetch = 0 : i64, scratch_operands = 2 : i64, tpu.core_type = #tpu.core_type<tc>, window_params = [{transform_indices = @transform_0, window_bounds = array<i64: 1, 16, 16, 64>}, {pipeline_mode = #tpu.pipeline_mode<synchronous>, transform_indices = @transform_1, window_bounds = array<i64: 576, 256>}, {pipeline_mode = #tpu.pipeline_mode<synchronous>, transform_indices = @transform_2, window_bounds = array<i64: 1, 256>}, {transform_indices = @transform_3, window_bounds = array<i64: 1, 16, 2, 2048>}]} {
    %c16_i32 = arith.constant 16 : i32
    %0 = arith.muli %arg1, %c16_i32 : i32
    %1 = tpu.assume_multiple %0, 16 : i32
    %c0 = arith.constant 0 : index
    %2 = arith.index_cast %1 : i32 to index
    %c0_0 = arith.constant 0 : index
    %c0_1 = arith.constant 0 : index
    %3 = vector.load %arg2[%c0, %2, %c0_0, %c0_1] : memref<1x16x16x64xbf16, #tpu.memory_space<vmem>>, vector<1x16x16x64xbf16>
    %4 = vector.shape_cast %3 : vector<1x16x16x64xbf16> to vector<16x16x64xbf16>
    %c1 = arith.constant 1 : index
    %c16 = arith.constant 16 : index
    %c0_2 = arith.constant 0 : index
    %5 = vector.load %arg6[%c1, %c16, %c0_2] : memref<19x48x64xbf16, #tpu.memory_space<vmem>>, vector<16x16x64xbf16>
    tpu.vector_store %arg6[%c1, %c16, %c0_2], %4 {strides = array<i32>} : memref<19x48x64xbf16, #tpu.memory_space<vmem>>, vector<16x16x64xbf16>,
    %c0_i32 = arith.constant 0 : i32
    %6 = arith.cmpi sgt, %arg1, %c0_i32 : i32
    %7 = arith.extui %6 : i1 to i32
    %c0_i32_3 = arith.constant 0 : i32
    %8 = arith.cmpi ne, %7, %c0_i32_3 : i32
    scf.if %8 {
      %c1_i32 = arith.constant 1 : i32
      %152 = arith.subi %1, %c1_i32 : i32
      %c0_42 = arith.constant 0 : index
      %153 = arith.index_cast %152 : i32 to index
      %c0_43 = arith.constant 0 : index
      %c0_44 = arith.constant 0 : index
      %154 = vector.load %arg2[%c0_42, %153, %c0_43, %c0_44] : memref<1x16x16x64xbf16, #tpu.memory_space<vmem>>, vector<1x1x16x64xbf16>
      %155 = vector.shape_cast %154 : vector<1x1x16x64xbf16> to vector<1x16x64xbf16>
      %c0_45 = arith.constant 0 : index
      %c16_46 = arith.constant 16 : index
      %c0_47 = arith.constant 0 : index
      %156 = vector.load %arg6[%c0_45, %c16_46, %c0_47] : memref<19x48x64xbf16, #tpu.memory_space<vmem>>, vector<1x16x64xbf16>
      tpu.vector_store %arg6[%c0_45, %c16_46, %c0_47], %155 {strides = array<i32>} : memref<19x48x64xbf16, #tpu.memory_space<vmem>>, vector<1x16x64xbf16>,
    } else {
    }
    %c0_i32_4 = arith.constant 0 : i32
    %9 = arith.cmpi eq, %arg1, %c0_i32_4 : i32
    %10 = arith.extui %9 : i1 to i32
    %c0_i32_5 = arith.constant 0 : i32
    %11 = arith.cmpi ne, %10, %c0_i32_5 : i32
    scf.if %11 {
      %cst_42 = arith.constant 0.000000e+00 : bf16
      %152 = vector.broadcast %cst_42 : bf16 to vector<1x48x64xbf16>
      %c0_43 = arith.constant 0 : index
      %c0_44 = arith.constant 0 : index
      %c0_45 = arith.constant 0 : index
      %153 = vector.load %arg6[%c0_43, %c0_44, %c0_45] : memref<19x48x64xbf16, #tpu.memory_space<vmem>>, vector<1x48x64xbf16>
      tpu.vector_store %arg6[%c0_43, %c0_44, %c0_45], %152 {strides = array<i32>} : memref<19x48x64xbf16, #tpu.memory_space<vmem>>, vector<1x48x64xbf16>,
    } else {
    }
    %c0_i32_6 = arith.constant 0 : i32
    %12 = arith.cmpi slt, %arg1, %c0_i32_6 : i32
    %13 = arith.extui %12 : i1 to i32
    %c0_i32_7 = arith.constant 0 : i32
    %14 = arith.cmpi ne, %13, %c0_i32_7 : i32
    scf.if %14 {
      %c16_i32_42 = arith.constant 16 : i32
      %152 = arith.addi %1, %c16_i32_42 : i32
      %c0_43 = arith.constant 0 : index
      %153 = arith.index_cast %152 : i32 to index
      %c0_44 = arith.constant 0 : index
      %c0_45 = arith.constant 0 : index
      %154 = vector.load %arg2[%c0_43, %153, %c0_44, %c0_45] : memref<1x16x16x64xbf16, #tpu.memory_space<vmem>>, vector<1x1x16x64xbf16>
      %155 = vector.shape_cast %154 : vector<1x1x16x64xbf16> to vector<1x16x64xbf16>
      %c17 = arith.constant 17 : index
      %c16_46 = arith.constant 16 : index
      %c0_47 = arith.constant 0 : index
      %156 = vector.load %arg6[%c17, %c16_46, %c0_47] : memref<19x48x64xbf16, #tpu.memory_space<vmem>>, vector<1x16x64xbf16>
      tpu.vector_store %arg6[%c17, %c16_46, %c0_47], %155 {strides = array<i32>} : memref<19x48x64xbf16, #tpu.memory_space<vmem>>, vector<1x16x64xbf16>,
    } else {
    }
    %c0_i32_8 = arith.constant 0 : i32
    %15 = arith.cmpi eq, %arg1, %c0_i32_8 : i32
    %16 = arith.extui %15 : i1 to i32
    %c0_i32_9 = arith.constant 0 : i32
    %17 = arith.cmpi ne, %16, %c0_i32_9 : i32
    scf.if %17 {
      %cst_42 = arith.constant 0.000000e+00 : bf16
      %152 = vector.broadcast %cst_42 : bf16 to vector<1x48x64xbf16>
      %c17 = arith.constant 17 : index
      %c0_43 = arith.constant 0 : index
      %c0_44 = arith.constant 0 : index
      %153 = vector.load %arg6[%c17, %c0_43, %c0_44] : memref<19x48x64xbf16, #tpu.memory_space<vmem>>, vector<1x48x64xbf16>
      tpu.vector_store %arg6[%c17, %c0_43, %c0_44], %152 {strides = array<i32>} : memref<19x48x64xbf16, #tpu.memory_space<vmem>>, vector<1x48x64xbf16>,
    } else {
    }
    %cst = arith.constant 0.000000e+00 : bf16
    %18 = vector.broadcast %cst : bf16 to vector<18x1x64xbf16>
    %c0_10 = arith.constant 0 : index
    %c15 = arith.constant 15 : index
    %c0_11 = arith.constant 0 : index
    %19 = vector.load %arg6[%c0_10, %c15, %c0_11] : memref<19x48x64xbf16, #tpu.memory_space<vmem>>, vector<18x1x64xbf16>
    tpu.vector_store %arg6[%c0_10, %c15, %c0_11], %18 {strides = array<i32>} : memref<19x48x64xbf16, #tpu.memory_space<vmem>>, vector<18x1x64xbf16>,
    %c0_12 = arith.constant 0 : index
    %c32 = arith.constant 32 : index
    %c0_13 = arith.constant 0 : index
    %20 = vector.load %arg6[%c0_12, %c32, %c0_13] : memref<19x48x64xbf16, #tpu.memory_space<vmem>>, vector<18x1x64xbf16>
    tpu.vector_store %arg6[%c0_12, %c32, %c0_13], %18 {strides = array<i32>} : memref<19x48x64xbf16, #tpu.memory_space<vmem>>, vector<18x1x64xbf16>,
    %c0_14 = arith.constant 0 : index
    %c0_15 = arith.constant 0 : index
    %c0_16 = arith.constant 0 : index
    %21 = vector.load %arg6[%c0_14, %c0_15, %c0_16] : memref<19x48x64xbf16, #tpu.memory_space<vmem>>, vector<19x48x64xbf16>
    %22 = vector.shape_cast %21 : vector<19x48x64xbf16> to vector<912x64xbf16>
    %23 = vector.extract_strided_slice %22 {offsets = [15, 0], sizes = [768, 64], strides = [1, 1]} : vector<912x64xbf16> to vector<768x64xbf16>
    %c0_17 = arith.constant 0 : index
    %c0_18 = arith.constant 0 : index
    %24 = vector.load %arg7[%c0_17, %c0_18] : memref<768x576xbf16, #tpu.memory_space<vmem>>, vector<768x64xbf16>
    tpu.vector_store %arg7[%c0_17, %c0_18], %23 {strides = array<i32>} : memref<768x576xbf16, #tpu.memory_space<vmem>>, vector<768x64xbf16>,
    %25 = vector.extract_strided_slice %22 {offsets = [16, 0], sizes = [768, 64], strides = [1, 1]} : vector<912x64xbf16> to vector<768x64xbf16>
    %c0_19 = arith.constant 0 : index
    %c64 = arith.constant 64 : index
    %26 = vector.load %arg7[%c0_19, %c64] : memref<768x576xbf16, #tpu.memory_space<vmem>>, vector<768x64xbf16>
    tpu.vector_store %arg7[%c0_19, %c64], %25 {strides = array<i32>} : memref<768x576xbf16, #tpu.memory_space<vmem>>, vector<768x64xbf16>,
    %27 = vector.extract_strided_slice %22 {offsets = [17, 0], sizes = [768, 64], strides = [1, 1]} : vector<912x64xbf16> to vector<768x64xbf16>
    %c0_20 = arith.constant 0 : index
    %c128 = arith.constant 128 : index
    %28 = vector.load %arg7[%c0_20, %c128] : memref<768x576xbf16, #tpu.memory_space<vmem>>, vector<768x64xbf16>
    tpu.vector_store %arg7[%c0_20, %c128], %27 {strides = array<i32>} : memref<768x576xbf16, #tpu.memory_space<vmem>>, vector<768x64xbf16>,
    %29 = vector.extract_strided_slice %22 {offsets = [63, 0], sizes = [768, 64], strides = [1, 1]} : vector<912x64xbf16> to vector<768x64xbf16>
    %c0_21 = arith.constant 0 : index
    %c192 = arith.constant 192 : index
    %30 = vector.load %arg7[%c0_21, %c192] : memref<768x576xbf16, #tpu.memory_space<vmem>>, vector<768x64xbf16>
    tpu.vector_store %arg7[%c0_21, %c192], %29 {strides = array<i32>} : memref<768x576xbf16, #tpu.memory_space<vmem>>, vector<768x64xbf16>,
    %31 = vector.extract_strided_slice %22 {offsets = [64, 0], sizes = [768, 64], strides = [1, 1]} : vector<912x64xbf16> to vector<768x64xbf16>
    %c0_22 = arith.constant 0 : index
    %c256 = arith.constant 256 : index
    %32 = vector.load %arg7[%c0_22, %c256] : memref<768x576xbf16, #tpu.memory_space<vmem>>, vector<768x64xbf16>
    tpu.vector_store %arg7[%c0_22, %c256], %31 {strides = array<i32>} : memref<768x576xbf16, #tpu.memory_space<vmem>>, vector<768x64xbf16>,
    %33 = vector.extract_strided_slice %22 {offsets = [65, 0], sizes = [768, 64], strides = [1, 1]} : vector<912x64xbf16> to vector<768x64xbf16>
    %c0_23 = arith.constant 0 : index
    %c320 = arith.constant 320 : index
    %34 = vector.load %arg7[%c0_23, %c320] : memref<768x576xbf16, #tpu.memory_space<vmem>>, vector<768x64xbf16>
    tpu.vector_store %arg7[%c0_23, %c320], %33 {strides = array<i32>} : memref<768x576xbf16, #tpu.memory_space<vmem>>, vector<768x64xbf16>,
    %35 = vector.extract_strided_slice %22 {offsets = [111, 0], sizes = [768, 64], strides = [1, 1]} : vector<912x64xbf16> to vector<768x64xbf16>
    %c0_24 = arith.constant 0 : index
    %c384 = arith.constant 384 : index
    %36 = vector.load %arg7[%c0_24, %c384] : memref<768x576xbf16, #tpu.memory_space<vmem>>, vector<768x64xbf16>
    tpu.vector_store %arg7[%c0_24, %c384], %35 {strides = array<i32>} : memref<768x576xbf16, #tpu.memory_space<vmem>>, vector<768x64xbf16>,
    %37 = vector.extract_strided_slice %22 {offsets = [112, 0], sizes = [768, 64], strides = [1, 1]} : vector<912x64xbf16> to vector<768x64xbf16>
    %c0_25 = arith.constant 0 : index
    %c448 = arith.constant 448 : index
    %38 = vector.load %arg7[%c0_25, %c448] : memref<768x576xbf16, #tpu.memory_space<vmem>>, vector<768x64xbf16>
    tpu.vector_store %arg7[%c0_25, %c448], %37 {strides = array<i32>} : memref<768x576xbf16, #tpu.memory_space<vmem>>, vector<768x64xbf16>,
    %39 = vector.extract_strided_slice %22 {offsets = [113, 0], sizes = [768, 64], strides = [1, 1]} : vector<912x64xbf16> to vector<768x64xbf16>
    %c0_26 = arith.constant 0 : index
    %c512 = arith.constant 512 : index
    %40 = vector.load %arg7[%c0_26, %c512] : memref<768x576xbf16, #tpu.memory_space<vmem>>, vector<768x64xbf16>
    tpu.vector_store %arg7[%c0_26, %c512], %39 {strides = array<i32>} : memref<768x576xbf16, #tpu.memory_space<vmem>>, vector<768x64xbf16>,
    %c0_27 = arith.constant 0 : index
    %c0_28 = arith.constant 0 : index
    %41 = vector.load %arg7[%c0_27, %c0_28] : memref<768x576xbf16, #tpu.memory_space<vmem>>, vector<768x576xbf16>
    %c0_29 = arith.constant 0 : index
    %c0_30 = arith.constant 0 : index
    %42 = vector.load %arg3[%c0_29, %c0_30] : memref<576x256xbf16, #tpu.memory_space<vmem>>, vector<576x256xbf16>
    %cst_31 = arith.constant dense<0.000000e+00> : vector<768x256xf32>
    %43 = tpu.matmul %41, %42, %cst_31 {dimension_numbers = #tpu.dot_dimension_numbers<[1], [0], [0], [1], [0, 0, 1, 1], [], []>} : vector<768x576xbf16>, vector<576x256xbf16>, vector<768x256xf32> -> vector<768x256xf32>
    %c0_32 = arith.constant 0 : index
    %c0_33 = arith.constant 0 : index
    %44 = vector.load %arg4[%c0_32, %c0_33] : memref<1x256xf32, #tpu.memory_space<vmem>>, vector<1x256xf32>
    %45 = vector.broadcast %44 : vector<1x256xf32> to vector<768x256xf32>
    %46 = arith.addf %43, %45 : vector<768x256xf32>
    %47 = vector.shape_cast %46 : vector<768x256xf32> to vector<16x48x256xf32>
    %48 = vector.extract_strided_slice %47 {offsets = [0, 0, 0], sizes = [16, 1, 128], strides = [1, 1, 1]} : vector<16x48x256xf32> to vector<16x1x128xf32>
    %49 = vector.shape_cast %48 : vector<16x1x128xf32> to vector<16x128xf32>
    %50 = arith.truncf %49 : vector<16x128xf32> to vector<16x128xbf16>
    %51 = vector.extract_strided_slice %47 {offsets = [0, 1, 0], sizes = [16, 1, 128], strides = [1, 1, 1]} : vector<16x48x256xf32> to vector<16x1x128xf32>
    %52 = vector.shape_cast %51 : vector<16x1x128xf32> to vector<16x128xf32>
    %53 = arith.truncf %52 : vector<16x128xf32> to vector<16x128xbf16>
    %54 = vector.extract_strided_slice %47 {offsets = [0, 2, 0], sizes = [16, 1, 128], strides = [1, 1, 1]} : vector<16x48x256xf32> to vector<16x1x128xf32>
    %55 = vector.shape_cast %54 : vector<16x1x128xf32> to vector<16x128xf32>
    %56 = arith.truncf %55 : vector<16x128xf32> to vector<16x128xbf16>
    %57 = vector.extract_strided_slice %47 {offsets = [0, 3, 0], sizes = [16, 1, 128], strides = [1, 1, 1]} : vector<16x48x256xf32> to vector<16x1x128xf32>
    %58 = vector.shape_cast %57 : vector<16x1x128xf32> to vector<16x128xf32>
    %59 = arith.truncf %58 : vector<16x128xf32> to vector<16x128xbf16>
    %60 = vector.extract_strided_slice %47 {offsets = [0, 4, 0], sizes = [16, 1, 128], strides = [1, 1, 1]} : vector<16x48x256xf32> to vector<16x1x128xf32>
    %61 = vector.shape_cast %60 : vector<16x1x128xf32> to vector<16x128xf32>
    %62 = arith.truncf %61 : vector<16x128xf32> to vector<16x128xbf16>
    %63 = vector.extract_strided_slice %47 {offsets = [0, 5, 0], sizes = [16, 1, 128], strides = [1, 1, 1]} : vector<16x48x256xf32> to vector<16x1x128xf32>
    %64 = vector.shape_cast %63 : vector<16x1x128xf32> to vector<16x128xf32>
    %65 = arith.truncf %64 : vector<16x128xf32> to vector<16x128xbf16>
    %66 = vector.extract_strided_slice %47 {offsets = [0, 6, 0], sizes = [16, 1, 128], strides = [1, 1, 1]} : vector<16x48x256xf32> to vector<16x1x128xf32>
    %67 = vector.shape_cast %66 : vector<16x1x128xf32> to vector<16x128xf32>
    %68 = arith.truncf %67 : vector<16x128xf32> to vector<16x128xbf16>
    %69 = vector.extract_strided_slice %47 {offsets = [0, 7, 0], sizes = [16, 1, 128], strides = [1, 1, 1]} : vector<16x48x256xf32> to vector<16x1x128xf32>
    %70 = vector.shape_cast %69 : vector<16x1x128xf32> to vector<16x128xf32>
    %71 = arith.truncf %70 : vector<16x128xf32> to vector<16x128xbf16>
    %72 = vector.extract_strided_slice %47 {offsets = [0, 8, 0], sizes = [16, 1, 128], strides = [1, 1, 1]} : vector<16x48x256xf32> to vector<16x1x128xf32>
    %73 = vector.shape_cast %72 : vector<16x1x128xf32> to vector<16x128xf32>
    %74 = arith.truncf %73 : vector<16x128xf32> to vector<16x128xbf16>
    %75 = vector.extract_strided_slice %47 {offsets = [0, 9, 0], sizes = [16, 1, 128], strides = [1, 1, 1]} : vector<16x48x256xf32> to vector<16x1x128xf32>
    %76 = vector.shape_cast %75 : vector<16x1x128xf32> to vector<16x128xf32>
    %77 = arith.truncf %76 : vector<16x128xf32> to vector<16x128xbf16>
    %78 = vector.extract_strided_slice %47 {offsets = [0, 10, 0], sizes = [16, 1, 128], strides = [1, 1, 1]} : vector<16x48x256xf32> to vector<16x1x128xf32>
    %79 = vector.shape_cast %78 : vector<16x1x128xf32> to vector<16x128xf32>
    %80 = arith.truncf %79 : vector<16x128xf32> to vector<16x128xbf16>
    %81 = vector.extract_strided_slice %47 {offsets = [0, 11, 0], sizes = [16, 1, 128], strides = [1, 1, 1]} : vector<16x48x256xf32> to vector<16x1x128xf32>
    %82 = vector.shape_cast %81 : vector<16x1x128xf32> to vector<16x128xf32>
    %83 = arith.truncf %82 : vector<16x128xf32> to vector<16x128xbf16>
    %84 = vector.extract_strided_slice %47 {offsets = [0, 12, 0], sizes = [16, 1, 128], strides = [1, 1, 1]} : vector<16x48x256xf32> to vector<16x1x128xf32>
    %85 = vector.shape_cast %84 : vector<16x1x128xf32> to vector<16x128xf32>
    %86 = arith.truncf %85 : vector<16x128xf32> to vector<16x128xbf16>
    %87 = vector.extract_strided_slice %47 {offsets = [0, 13, 0], sizes = [16, 1, 128], strides = [1, 1, 1]} : vector<16x48x256xf32> to vector<16x1x128xf32>
    %88 = vector.shape_cast %87 : vector<16x1x128xf32> to vector<16x128xf32>
    %89 = arith.truncf %88 : vector<16x128xf32> to vector<16x128xbf16>
    %90 = vector.extract_strided_slice %47 {offsets = [0, 14, 0], sizes = [16, 1, 128], strides = [1, 1, 1]} : vector<16x48x256xf32> to vector<16x1x128xf32>
    %91 = vector.shape_cast %90 : vector<16x1x128xf32> to vector<16x128xf32>
    %92 = arith.truncf %91 : vector<16x128xf32> to vector<16x128xbf16>
    %93 = vector.extract_strided_slice %47 {offsets = [0, 15, 0], sizes = [16, 1, 128], strides = [1, 1, 1]} : vector<16x48x256xf32> to vector<16x1x128xf32>
    %94 = vector.shape_cast %93 : vector<16x1x128xf32> to vector<16x128xf32>
    %95 = arith.truncf %94 : vector<16x128xf32> to vector<16x128xbf16>
    %96 = tpu.concatenate %50, %53, %56, %59, %62, %65, %68, %71, %74, %77, %80, %83, %86, %89, %92, %95 in 1 : vector<16x128xbf16>, vector<16x128xbf16>, vector<16x128xbf16>, vector<16x128xbf16>, vector<16x128xbf16>, vector<16x128xbf16>, vector<16x128xbf16>, vector<16x128xbf16>, vector<16x128xbf16>, vector<16x128xbf16>, vector<16x128xbf16>, vector<16x128xbf16>, vector<16x128xbf16>, vector<16x128xbf16>, vector<16x128xbf16>, vector<16x128xbf16> -> vector<16x2048xbf16>
    %c0_34 = arith.constant 0 : index
    %c0_35 = arith.constant 0 : index
    %c0_36 = arith.constant 0 : index
    %c0_37 = arith.constant 0 : index
    %97 = vector.load %arg5[%c0_34, %c0_35, %c0_36, %c0_37] : memref<1x16x2x2048xbf16, #tpu.memory_space<vmem>>, vector<1x16x1x2048xbf16>
    %98 = vector.shape_cast %97 : vector<1x16x1x2048xbf16> to vector<16x2048xbf16>
    %99 = vector.shape_cast %96 : vector<16x2048xbf16> to vector<1x16x1x2048xbf16>
    tpu.vector_store %arg5[%c0_34, %c0_35, %c0_36, %c0_37], %99 {strides = array<i32>} : memref<1x16x2x2048xbf16, #tpu.memory_space<vmem>>, vector<1x16x1x2048xbf16>,
    %100 = vector.extract_strided_slice %47 {offsets = [0, 0, 128], sizes = [16, 1, 128], strides = [1, 1, 1]} : vector<16x48x256xf32> to vector<16x1x128xf32>
    %101 = vector.shape_cast %100 : vector<16x1x128xf32> to vector<16x128xf32>
    %102 = arith.truncf %101 : vector<16x128xf32> to vector<16x128xbf16>
    %103 = vector.extract_strided_slice %47 {offsets = [0, 1, 128], sizes = [16, 1, 128], strides = [1, 1, 1]} : vector<16x48x256xf32> to vector<16x1x128xf32>
    %104 = vector.shape_cast %103 : vector<16x1x128xf32> to vector<16x128xf32>
    %105 = arith.truncf %104 : vector<16x128xf32> to vector<16x128xbf16>
    %106 = vector.extract_strided_slice %47 {offsets = [0, 2, 128], sizes = [16, 1, 128], strides = [1, 1, 1]} : vector<16x48x256xf32> to vector<16x1x128xf32>
    %107 = vector.shape_cast %106 : vector<16x1x128xf32> to vector<16x128xf32>
    %108 = arith.truncf %107 : vector<16x128xf32> to vector<16x128xbf16>
    %109 = vector.extract_strided_slice %47 {offsets = [0, 3, 128], sizes = [16, 1, 128], strides = [1, 1, 1]} : vector<16x48x256xf32> to vector<16x1x128xf32>
    %110 = vector.shape_cast %109 : vector<16x1x128xf32> to vector<16x128xf32>
    %111 = arith.truncf %110 : vector<16x128xf32> to vector<16x128xbf16>
    %112 = vector.extract_strided_slice %47 {offsets = [0, 4, 128], sizes = [16, 1, 128], strides = [1, 1, 1]} : vector<16x48x256xf32> to vector<16x1x128xf32>
    %113 = vector.shape_cast %112 : vector<16x1x128xf32> to vector<16x128xf32>
    %114 = arith.truncf %113 : vector<16x128xf32> to vector<16x128xbf16>
    %115 = vector.extract_strided_slice %47 {offsets = [0, 5, 128], sizes = [16, 1, 128], strides = [1, 1, 1]} : vector<16x48x256xf32> to vector<16x1x128xf32>
    %116 = vector.shape_cast %115 : vector<16x1x128xf32> to vector<16x128xf32>
    %117 = arith.truncf %116 : vector<16x128xf32> to vector<16x128xbf16>
    %118 = vector.extract_strided_slice %47 {offsets = [0, 6, 128], sizes = [16, 1, 128], strides = [1, 1, 1]} : vector<16x48x256xf32> to vector<16x1x128xf32>
    %119 = vector.shape_cast %118 : vector<16x1x128xf32> to vector<16x128xf32>
    %120 = arith.truncf %119 : vector<16x128xf32> to vector<16x128xbf16>
    %121 = vector.extract_strided_slice %47 {offsets = [0, 7, 128], sizes = [16, 1, 128], strides = [1, 1, 1]} : vector<16x48x256xf32> to vector<16x1x128xf32>
    %122 = vector.shape_cast %121 : vector<16x1x128xf32> to vector<16x128xf32>
    %123 = arith.truncf %122 : vector<16x128xf32> to vector<16x128xbf16>
    %124 = vector.extract_strided_slice %47 {offsets = [0, 8, 128], sizes = [16, 1, 128], strides = [1, 1, 1]} : vector<16x48x256xf32> to vector<16x1x128xf32>
    %125 = vector.shape_cast %124 : vector<16x1x128xf32> to vector<16x128xf32>
    %126 = arith.truncf %125 : vector<16x128xf32> to vector<16x128xbf16>
    %127 = vector.extract_strided_slice %47 {offsets = [0, 9, 128], sizes = [16, 1, 128], strides = [1, 1, 1]} : vector<16x48x256xf32> to vector<16x1x128xf32>
    %128 = vector.shape_cast %127 : vector<16x1x128xf32> to vector<16x128xf32>
    %129 = arith.truncf %128 : vector<16x128xf32> to vector<16x128xbf16>
    %130 = vector.extract_strided_slice %47 {offsets = [0, 10, 128], sizes = [16, 1, 128], strides = [1, 1, 1]} : vector<16x48x256xf32> to vector<16x1x128xf32>
    %131 = vector.shape_cast %130 : vector<16x1x128xf32> to vector<16x128xf32>
    %132 = arith.truncf %131 : vector<16x128xf32> to vector<16x128xbf16>
    %133 = vector.extract_strided_slice %47 {offsets = [0, 11, 128], sizes = [16, 1, 128], strides = [1, 1, 1]} : vector<16x48x256xf32> to vector<16x1x128xf32>
    %134 = vector.shape_cast %133 : vector<16x1x128xf32> to vector<16x128xf32>
    %135 = arith.truncf %134 : vector<16x128xf32> to vector<16x128xbf16>
    %136 = vector.extract_strided_slice %47 {offsets = [0, 12, 128], sizes = [16, 1, 128], strides = [1, 1, 1]} : vector<16x48x256xf32> to vector<16x1x128xf32>
    %137 = vector.shape_cast %136 : vector<16x1x128xf32> to vector<16x128xf32>
    %138 = arith.truncf %137 : vector<16x128xf32> to vector<16x128xbf16>
    %139 = vector.extract_strided_slice %47 {offsets = [0, 13, 128], sizes = [16, 1, 128], strides = [1, 1, 1]} : vector<16x48x256xf32> to vector<16x1x128xf32>
    %140 = vector.shape_cast %139 : vector<16x1x128xf32> to vector<16x128xf32>
    %141 = arith.truncf %140 : vector<16x128xf32> to vector<16x128xbf16>
    %142 = vector.extract_strided_slice %47 {offsets = [0, 14, 128], sizes = [16, 1, 128], strides = [1, 1, 1]} : vector<16x48x256xf32> to vector<16x1x128xf32>
    %143 = vector.shape_cast %142 : vector<16x1x128xf32> to vector<16x128xf32>
    %144 = arith.truncf %143 : vector<16x128xf32> to vector<16x128xbf16>
    %145 = vector.extract_strided_slice %47 {offsets = [0, 15, 128], sizes = [16, 1, 128], strides = [1, 1, 1]} : vector<16x48x256xf32> to vector<16x1x128xf32>
    %146 = vector.shape_cast %145 : vector<16x1x128xf32> to vector<16x128xf32>
    %147 = arith.truncf %146 : vector<16x128xf32> to vector<16x128xbf16>
    %148 = tpu.concatenate %102, %105, %108, %111, %114, %117, %120, %123, %126, %129, %132, %135, %138, %141, %144, %147 in 1 : vector<16x128xbf16>, vector<16x128xbf16>, vector<16x128xbf16>, vector<16x128xbf16>, vector<16x128xbf16>, vector<16x128xbf16>, vector<16x128xbf16>, vector<16x128xbf16>, vector<16x128xbf16>, vector<16x128xbf16>, vector<16x128xbf16>, vector<16x128xbf16>, vector<16x128xbf16>, vector<16x128xbf16>, vector<16x128xbf16>, vector<16x128xbf16> -> vector<16x2048xbf16>
    %c0_38 = arith.constant 0 : index
    %c0_39 = arith.constant 0 : index
    %c1_40 = arith.constant 1 : index
    %c0_41 = arith.constant 0 : index
    %149 = vector.load %arg5[%c0_38, %c0_39, %c1_40, %c0_41] : memref<1x16x2x2048xbf16, #tpu.memory_space<vmem>>, vector<1x16x1x2048xbf16>
    %150 = vector.shape_cast %149 : vector<1x16x1x2048xbf16> to vector<16x2048xbf16>
    %151 = vector.shape_cast %148 : vector<16x2048xbf16> to vector<1x16x1x2048xbf16>
    tpu.vector_store %arg5[%c0_38, %c0_39, %c1_40, %c0_41], %151 {strides = array<i32>} : memref<1x16x2x2048xbf16, #tpu.memory_space<vmem>>, vector<1x16x1x2048xbf16>,
    return
  }
  func.func @transform_0(%arg0: i32, %arg1: i32) -> (i32, i32, i32, i32) {
    %c0_i32 = arith.constant 0 : i32
    %c0_i32_0 = arith.constant 0 : i32
    %c0_i32_1 = arith.constant 0 : i32
    %c0_i32_2 = arith.constant 0 : i32
    return %arg0, %c0_i32, %c0_i32_0, %c0_i32_1 : i32, i32, i32, i32
  }
  func.func @transform_1(%arg0: i32, %arg1: i32) -> (i32, i32) {
    %c0_i32 = arith.constant 0 : i32
    %c0_i32_0 = arith.constant 0 : i32
    %c0_i32_1 = arith.constant 0 : i32
    return %c0_i32, %c0_i32_0 : i32, i32
  }
  func.func @transform_2(%arg0: i32, %arg1: i32) -> (i32, i32) {
    %c0_i32 = arith.constant 0 : i32
    %c0_i32_0 = arith.constant 0 : i32
    %c0_i32_1 = arith.constant 0 : i32
    return %c0_i32, %c0_i32_0 : i32, i32
  }
  func.func @transform_3(%arg0: i32, %arg1: i32) -> (i32, i32, i32, i32) {
    %c0_i32 = arith.constant 0 : i32
    %c0_i32_0 = arith.constant 0 : i32
    %c0_i32_1 = arith.constant 0 : i32
    return %arg0, %arg1, %c0_i32, %c0_i32_0 : i32, i32, i32, i32
  }
}

</mosaic_0001>

<bundles_post_ra>
// kernel: tpu_custom_call.1
= control target key start
LH: loop header
LB: loop body
LE: loop exit
PB: predicated region body
PF: predicated region fallthrough
CT: control target
= control target key end

     0   :  { %8 = vsyncpa [#allocation5], 0  ;;  %s12271_s0 = inlined_call_operand.hbm [shape: bf16[2,16,16,64], index: 0, kind: input, shape index: {}]   ;;  %s12272_s1 = inlined_call_operand.hbm [shape: bf16[576,256], index: 1, kind: input, shape index: {}]   ;;  %s12273_s2 = inlined_call_operand.vmem [shape: f32[1,256], index: 2, kind: input, shape index: {}]   ;;  %s12274_s3 = inlined_call_operand.hbm [shape: bf16[2,16,2,2048], index: 3, kind: output, shape index: {}]  }
   0x1   :  { %10 = vsyncpa [#allocation5 + $0x1], 0 }
   0x2   :  { %11 = vsyncpa [#allocation8], 0 }
   0x3   :  { %12 = vsyncpa [#allocation6], 0 }
   0x4   :  { %14 = vsyncpa [#allocation6 + $0x1], 0  ;;  %s7291_s12 = smov 0   ;;  %s7293_s13 = smov 0  }
   0x5   :  { %s7295_s14 = smov 0   ;;  %s7297_s15 = smov 0  }
   0x6   :  { %s7299_s16 = smov 0   ;;  %s7301_s17 = smov 0  }
   0x7 LB: > { %s6445_s18 = sadd.s32 4294967295, %s7257_s17   ;;  %s6446_s19 = sadd.s32 4294967294, %s7257_s17   ;;  %s7257_s17 = sphi %s7301_s17, %s20_s17   ;;  %s7253_s16 = sphi %s7299_s16, %s12629_s16   ;;  %s7249_s15 = sphi %s7297_s15, %s12628_s15   ;;  %s7245_s14 = sphi %s7295_s14, %s12627_s14   ;;  %s7241_s13 = sphi %s7293_s13, %s12626_s13   ;;  %s7237_s12 = sphi %s7291_s12, %s12625_s12  }
   0x8   : > { %p52_p0 = scmp.ne.s32.totalorder %s7241_s13, %s7237_s12  ;;  %p7325_p1 = scmp.eq.s32.totalorder %s6445_s18, 0 }
   0x9   : > { %p7329_p2 = scmp.eq.s32.totalorder %s6445_s18, 1  ;;  %p126_p3 = scmp.eq.s32.totalorder %s6446_s19, 1 }
   0xa   : > { %s12301_s20 = scalar_select %p7325_p1, 1, 0 }
   0xb   : > { %s12302_s21 = scalar_select %p7329_p2, 1, 0 }
   0xc   : > { %p7335_p4 = por %p7325_p1, %p52_p0  ;;  %p6447_p5 = scmp.ge.s32.totalorder %s7257_s17, 1 }
   0xd   : > { %p7340_p6 = por %p126_p3, %p52_p0  ;;  %p133_p7 = scmp.lt.s32.totalorder %s7257_s17, 3 }
   0xe   : > { %s12303_s22 = scalar_select %p7335_p4, 1, 0 }
   0xf   : > { %s12304_s23 = scalar_select %p7340_p6, 1, 0 }
  0x10   : > { %p7345_p8 = pnand %p6447_p5, %p133_p7  ;;  %s7259_s25 = smov [#allocation7]  }
  0x11   : > { %s145_s26 = sshll.u32 %s7259_s25, 4  ;;  %s32_s28 = sadd.s32 1, %s7253_s16  ;;  %s146_s26 = int_to_ptr.vmem [resolvable:$true] %s145_s26 }
  0x12   : > { %s12305_s24 = scalar_select %p7345_p8, 1, 0 }
  0x13   : > { %p6902_p9 = pneg %p7345_p8  ;;  %s7113_s4 = scalar_lea.hbm %s12272_s1, 9216 }
  0x14   : > { %p7114_p12 = scmp.ne.s32.totalorder %s12272_s1, %s7113_s4  ;;  %p7120_p5 = scmp.lt.u32.totalorder %s7113_s4, %s12272_s1 }
  0x15   : > { %p7354_p11 = pnand %p6902_p9, %p7325_p1 }
  0x17   : > { %p7115_p13 = pneg %p7354_p11 }
  0x19   : > { %p7116_p0 = pnand %p7115_p13, %p7114_p12 }
  0x1b   : > { %p7117_p3 = pneg %p7116_p0 }
  0x1d   : > { %p7122_p7 = pnand %p7120_p5, %p7117_p3 }
  0x1f   : > { %7125 = shalt.err (!%p7122_p7)
}
  0x20   : > { %s7126_s9 = scalar_lea.vmem %s146_s26, 9216  ;;  %p7134_p1 = scmp.lt.s32.totalorder %s146_s26, %s146_s26 }
  0x21   : > { %p7127_p9 = scmp.ne.s32.totalorder %s146_s26, %s7126_s9  ;;  %p7135_p4 = scmp.lt.s32.totalorder %s7126_s9, %s7126_s9 }
  0x23   : > { %p7129_p10 = pnand %p7127_p9, %p7115_p13  ;;  %p7136_p8 = por %p7135_p4, %p7134_p1 }
  0x25   : > { %p7130_p6 = pneg %p7129_p10 }
  0x27   : > { %p7137_p2 = pnand %p7136_p8, %p7130_p6 }
  0x29   : > { %7140 = shalt.err (!%p7137_p2)
}
  0x2a   : > { %s7260_s10 = smov 128   ;;  %s7261_s11 = smov 8  }
  0x2b   : > { %6905 = dma.hbm_to_vmem [thread:$0]  (!%p7354_p11), %s12272_s1, 9216, %s146_s26, [#allocation8], %s7260_s10, %s7260_s10, %s7261_s11  }
  0x2c   : > { %p34_p1 = scmp.ge.s32.totalorder %s32_s28, 2  ;;  %s39_s25 = sadd.s32 1, %s7245_s14 }
  0x2d   : > { %p46_p2 = scmp.ne.s32.totalorder %s7245_s14, %s7241_s13  ;;  %p47_p4 = scmp.eq.s32.totalorder %s7257_s17, 0 }
  0x2e   : > { %s12631_s28 = smov (%p34_p1, %s32_s28), 0  ;;  %p12308_p8 = scmp.ne.s32.totalorder %s12302_s21, 0 }
  0x2f   : > { %p7381_p6 = por %p47_p4, %p46_p2  ;;  %s36_s27 = ssub.s32 %s7253_s16, %s12631_s28 }
  0x30   : > { %p7387_p10 = por %p12308_p8, %p46_p2  ;;  %p6915_p12 = scmp.lt.s32.totalorder %s7257_s17, 2 }
  0x31   : > { %p37_p11 = scmp.eq.s32.totalorder %s36_s27, 0  ;;  %s162_s26 = sand.u32 1, %s7245_s14  }
  0x32   : > { %s6450_s4 = sshll.u32 %s162_s26, 7  ;;  %s6668_s6 = sshll.u32 %s7253_s16, 11 }
  0x33   : > { %s7396_s5 = scalar_select %p37_p11, %s7245_s14, %s39_s25  }
  0x34   : > { %s7402_s9 = scalar_lea.hbm %s12271_s0, %s6668_s6  ;;  %s166_s21 = scalar_lea.vmem [#allocation4], %s6450_s4 }
  0x35   : > { %s173_s10 = sshll.u32 %s166_s21, 4  ;;  %p7408_p13 = pnand %p6915_p12, %p7381_p6  ;;  %s7404_s10 = int_to_ptr.vmem [resolvable:$true] %s173_s10 }
  0x36   : > { %s7412_s18 = scalar_lea.sflag [#allocation5], %s162_s26  ;;  %s7141_s19 = scalar_lea.hbm %s7402_s9, 2048 }
  0x37   : > { %p7142_p0 = scmp.ne.s32.totalorder %s7402_s9, %s7141_s19  ;;  %p7143_p3 = pneg %p7408_p13 }
  0x38   : > { %s7146_s29 = scalar_lea.hbm %s12271_s0, 4096  ;;  %p7147_p9 = scmp.lt.u32.totalorder %s7402_s9, %s12271_s0 }
  0x39   : > { %p7144_p5 = pnand %p7143_p3, %p7142_p0  ;;  %p7148_p1 = scmp.lt.u32.totalorder %s7146_s29, %s7141_s19 }
  0x3a   : > { %p7150_p4 = scmp.lt.u32.totalorder %s7141_s19, %s7402_s9 }
  0x3b   : > { %p7145_p7 = pneg %p7144_p5  ;;  %p7149_p2 = por %p7148_p1, %p7147_p9 }
  0x3d   : > { %p7151_p6 = por %p7150_p4, %p7149_p2 }
  0x3f   : > { %p7152_p8 = pnand %p7151_p6, %p7145_p7 }
  0x41   : > { %7155 = shalt.err (!%p7152_p8)
}
  0x42   : > { %s7156_s26 = scalar_lea.vmem %s7404_s10, 2048  ;;  %s7262_s7 = smov [#allocation4]  }
  0x43   : > { %p7157_p12 = scmp.ne.s32.totalorder %s7404_s10, %s7156_s26  ;;  %s7161_s8 = sshll.u32 %s7262_s7, 4  ;;  %s7162_s8 = int_to_ptr.vmem [resolvable:$false] %s7161_s8 }
  0x44   : > { %s7163_s21 = scalar_lea.vmem %s7162_s8, 4096  ;;  %p7164_p5 = scmp.lt.s32.totalorder %s7404_s10, %s7162_s8 }
  0x45   : > { %p7159_p11 = pnand %p7157_p12, %p7143_p3  ;;  %p7165_p9 = scmp.lt.s32.totalorder %s7163_s21, %s7156_s26 }
  0x47   : > { %p7160_p0 = pneg %p7159_p11  ;;  %p7166_p1 = por %p7165_p9, %p7164_p5 }
  0x49   : > { %p7167_p2 = pnand %p7166_p1, %p7160_p0 }
  0x4b   : > { %7170 = shalt.err (!%p7167_p2)
}
  0x4c   : > { %s7263_s19 = smov 64   ;;  %s7264_s25 = smov 4  }
  0x4d   : > { %6909 = dma.hbm_to_vmem [thread:$0]  (!%p7408_p13), %s7402_s9, 2048, %s7404_s10, %s7412_s18, %s7263_s19, %s7263_s19, %s7264_s25  }
  0x4e   : > { %p12311_p3 = scmp.ne.s32.totalorder %s12305_s24, 0 }
  0x50   : > { %185 = sbr.rel (%p12311_p3) target bundleno = 1128 (0x468), region = 32 }
  0x57   : > { %s7443_s27 = sand.u32 1, %s7241_s13   ;;  %p12312_p7 = scmp.ne.s32.totalorder %s12303_s22, 0 }
  0x58   : > { %s6454_s29 = sshll.u32 %s7443_s27, 7  ;;  %s188_s4 = scalar_lea.sflag [#allocation5], %s7443_s27 }
  0x59   : > { %s7447_s6 = scalar_lea.vmem [#allocation4], %s6454_s29 }
  0x5a   : > { %7224 = dma.done.wait (%p12312_p7), %s188_s4, 2048  }
  0x5b   : > { %7226 = vsyncadd (%p12312_p7), %s188_s4, 4294965248  ;;  %p12313_p13 = scmp.ne.s32.totalorder %s12301_s20, 0 }
  0x5d   : > { %7228 = dma.done.wait (%p12313_p13), [#allocation8], 9216  }
  0x5e   : > { %7230 = vsyncadd (%p12313_p13), [#allocation8], 4294958080  ;;  %vm353_vm0 = vcmask 523264   ;;  %vm419_vm1 = vcmask 523271   ;;  %vm12288_vm2 = vsmask.f32 7966 }
  0x5f   : > { %v12279_v0 = vmov 0   ;;  %vm7470_vm3 = vmand %vm419_vm1, %vm12288_vm2  ;;  %v6976_v2 = vld [vmem:[%s7447_s6] sm:$0xff]   ;;  %v425_v3 = vld [vmem:[#allocation2 + $0x18] sm:$0x80]  ;;  %vm477_vm4 = vsmask.f32 256 }
  0x60   : > { %392 = vst.msk [vmem:[#allocation2 + $0x8] sm:$0xff] %vm353_vm0, %v12279_v0  ;;  %391 = vst.msk [vmem:[#allocation2] sm:$0xff] %vm353_vm0, %v12279_v0  ;;  %v426_v4 = vsel %vm7470_vm3, 0, %v425_v3  ;;  %v6977_v5 = vld [vmem:[%s7447_s6 + $0x8] sm:$0xff]   ;;  %v431_v9 = vld [vmem:[#allocation2 + $0x48] sm:$0x80] }
  0x61   : > { %393 = vst.msk [vmem:[#allocation2 + $0x10] sm:$0xff] %vm353_vm0, %v12279_v0  ;;  %416 = vst.msk [vmem:[#allocation2 + $0x198] sm:$0xff] %vm353_vm0, %v12279_v0  ;;  %v428_v8 = vld [vmem:[#allocation2 + $0x30] sm:$0x80]  ;;  %v432_v11 = vsel %vm7470_vm3, 0, %v431_v9  ;;  %vm476_vm5 = vcmask 516096  }
  0x62   : > { %417 = vst.msk [vmem:[#allocation2 + $0x1a0] sm:$0xff] %vm353_vm0, %v12279_v0  ;;  %418 = vst.msk [vmem:[#allocation2 + $0x1a8] sm:$0xff] %vm353_vm0, %v12279_v0  ;;  %v429_v10 = vsel %vm7470_vm3, 0, %v428_v8  ;;  %v6978_v12 = vld [vmem:[%s7447_s6 + $0x10] sm:$0xff]   ;;  %v482_v13 = vld [vmem:[#allocation2 + $0x28] sm:$0x1] }
  0x63   : > { %354 = vst.msk [vmem:[#allocation2 + $0x20] sm:$0xff] %vm353_vm0, %v6976_v2  ;;  %427 = vst [vmem:[#allocation2 + $0x18] sm:$0x80] %v426_v4  ;;  %v434_v14 = vld [vmem:[#allocation2 + $0x60] sm:$0x80]  ;;  %s7266_s20 = smov 64  }
  0x64   : > { %355 = vst.msk [vmem:[#allocation2 + $0x38] sm:$0xff] %vm353_vm0, %v6977_v5  ;;  %430 = vst [vmem:[#allocation2 + $0x30] sm:$0x80] %v429_v10  ;;  %v435_v17 = vsel %vm7470_vm3, 0, %v434_v14  ;;  %v6979_v23 = vld [vmem:[%s7447_s6 + $0x18] sm:$0xff]   ;;  %vm1265_vm8 = vcmask 1048064  }
  0x65   : > { %433 = vst [vmem:[#allocation2 + $0x48] sm:$0x80] %v432_v11  ;;  %356 = vst.msk [vmem:[#allocation2 + $0x50] sm:$0xff] %vm353_vm0, %v6978_v12  ;;  %v485_v27 = vld [vmem:[#allocation2 + $0x40] sm:$0x1]  ;;  %vm12292_vm9 = vcmask 1041409  }
  0x66   : > { %436 = vst [vmem:[#allocation2 + $0x60] sm:$0x80] %v435_v17  ;;  %vm7511_vm6 = vmand %vm476_vm5, %vm477_vm4  ;;  %vm12289_vm7 = vsmask.f32 7424  ;;  %v488_v37 = vld [vmem:[#allocation2 + $0x58] sm:$0x1] }
  0x67   : > { %v7480_v6 = vld [vmem:[#allocation2 + $0x8] sm:$0xff]  ;;  %357 = vst.msk [vmem:[#allocation2 + $0x68] sm:$0xff] %vm353_vm0, %v6979_v23  ;;  %v483_v35 = vsel %vm7511_vm6, 0, %v482_v13  ;;  %v486_v41 = vsel %vm7511_vm6, 0, %v485_v27  ;;  %v489_v2 = vsel %vm7511_vm6, 0, %v488_v37  ;;  %vm12293_vm10 = vcmask 1042434  }
  0x68   : > { %v597_v7 = vshll.u32 %v7480_v6, 16  ;;  %v479_v16 = vld [vmem:[#allocation2 + $0x10] sm:$0x1]  ;;  %v594_v21 = vshrl.u32 %v7480_v6, 16  ;;  %v6980_v38 = vld [vmem:[#allocation7 + $0x4] ss:$8 sps:$4 sm:$0xff]  }
  0x69   : > { %v480_v36 = vsel %vm7511_vm6, 0, %v479_v16  ;;  %484 = vst [vmem:[#allocation2 + $0x28] sm:$0x1] %v483_v35  ;;  %v6982_v45 = vld [vmem:[#allocation7] ss:$8 sps:$4 sm:$0xff]   ;;  %3065 = vmatprep.subr.bf16.mxu1 %v6980_v38  ;;  %vm4291_vm11 = vcmask 1043459  }
  0x6a   : > { %v7488_v15 = vld [vmem:[#allocation2 + $0x20] sm:$0xff]  ;;  %v7493_v18 = vld [vmem:[#allocation2 + $0x18] sm:$0xff]  ;;  %v1315_v22 = vrot.slane %v597_v7, 1  ;;  %481 = vst [vmem:[#allocation2 + $0x10] sm:$0x1] %v480_v36  ;;  %3066 = vmatpush1.bf16.msra.mxu1 %v6982_v45  ;;  %vm12294_vm12 = vcmask 1044484  }
  0x6b   : > { %v618_v19 = vshrl.u32 %v7488_v15, 16  ;;  %v621_v20 = vshll.u32 %v7488_v15, 16  ;;  %1772 = vst.msk [vmem:[#allocation3 + $0x10] sm:$0xff] %vm353_vm0, %v7488_v15  ;;  %v610_v24 = vshrl.u32 %v7493_v18, 16  ;;  %v613_v25 = vshll.u32 %v7493_v18, 16  ;;  %v540_v26 = vld [vmem:[#allocation2 + $0x38] sm:$0xff] }
  0x6c   : > { %1133 = vrot.lane.b32.xlu1 %v540_v26, %s7266_s20  ;;  %v642_v29 = vshrl.u32 %v540_v26, 16  ;;  %v645_v30 = vshll.u32 %v540_v26, 16  ;;  %1775 = vst.msk [vmem:[#allocation3 + $0x88] sm:$0xff] %vm353_vm0, %v540_v26  ;;  %v7529_v40 = vor.u32 %v1315_v22, %v594_v21  ;;  %v7533_v42 = vld [vmem:[#allocation2 + $0x30] sm:$0xff]  ;;  %v7535_v43 = vld [vmem:[#allocation2 + $0x48] sm:$0xff]  ;;  %vm12291_vm13 = vcmask 1045509  }
  0x6d   : > { %v7505_v28 = vrot.slane %v618_v19, 7  ;;  %v7515_v32 = vrot.slane %v621_v20, 1  ;;  %v612_v33 = vrot.slane %v610_v24, 7  ;;  %v7520_v34 = vrot.slane %v613_v25, 1  ;;  %487 = vst [vmem:[#allocation2 + $0x40] sm:$0x1] %v486_v41 }
  0x6e   : > { %v1332_v44 = vrot.slane %v645_v30, 1  ;;  %v637_v48 = vshll.u32 %v7533_v42, 16  ;;  %1774 = vst.msk [vmem:[#allocation3 + $0x60] sm:$0xff] %vm353_vm0, %v7533_v42  ;;  %v634_v49 = vshrl.u32 %v7533_v42, 16  ;;  %1777 = vst.msk [vmem:[#allocation3 + $0xd8] sm:$0xff] %vm353_vm0, %v7535_v43  ;;  %v658_v52 = vshrl.u32 %v7535_v43, 16 }
  0x6f   : > { %v623_v39 = vor.u32 %v621_v20, %v7505_v28  ;;  %v7537_v46 = vor.u32 %v613_v25, %v612_v33  ;;  %v7540_v47 = vor.u32 %v7515_v32, %v618_v19  ;;  %v6983_v50 = vld [vmem:[#allocation7 + $0x104] ss:$8 sps:$4 sm:$0xff]   ;;  %v661_v53 = vshll.u32 %v7535_v43, 16  ;;  %v6985_v56 = vld [vmem:[#allocation7 + $0x100] ss:$8 sps:$4 sm:$0xff]   ;;  %v7563_v61 = vld [vmem:[#allocation2 + $0x60] sm:$0xff] }
  0x70   : > { %v7551_v54 = vrot.slane %v642_v29, 7  ;;  %v7553_v55 = vld [vmem:[#allocation2 + $0x50] sm:$0xff]  ;;  %v7557_v57 = vrot.slane %v637_v48, 1  ;;  %v636_v58 = vrot.slane %v634_v49, 7  ;;  %3450 = vmatprep.subr.bf16.mxu0 %v6983_v50  ;;  %v7566_v63 = vor.u32 %v1332_v44, %v642_v29  ;;  %1780 = vst.msk [vmem:[#allocation3 + $0x150] sm:$0xff] %vm353_vm0, %v7563_v61  ;;  %v7578_v11 = vld [vmem:[#allocation2 + $0x68] sm:$0xff] }
  0x71   : > { %v624_v51 = vsel %vm477_vm4, %v612_v33, %v623_v39  ;;  %v666_v59 = vshrl.u32 %v7553_v55, 16  ;;  %v669_v60 = vshll.u32 %v7553_v55, 16  ;;  %1778 = vst.msk [vmem:[#allocation3 + $0x100] sm:$0xff] %vm353_vm0, %v7553_v55  ;;  %v7570_v3 = vrot.slane %v661_v53, 1  ;;  %3451 = vmatpush1.bf16.msra.mxu0 %v6985_v56  ;;  %v6986_v4 = vld [vmem:[#allocation7 + $0x14] ss:$8 sps:$4 sm:$0xff]  }
  0x72   : > { %1580 = vrot.lane.b32.xlu0 %v624_v51, %s7266_s20  ;;  %1028 = vst.msk [vmem:[#allocation3 + $0x78] sm:$0xff] %vm353_vm0, %v624_v51  ;;  %v647_v62 = vor.u32 %v645_v30, %v7551_v54  ;;  %v7574_v5 = vor.u32 %v637_v48, %v636_v58  ;;  %v1331_v8 = vor.u32 %v7557_v57, %v634_v49  ;;  %490 = vst [vmem:[#allocation2 + $0x58] sm:$0x1] %v489_v2  ;;  %v6988_v12 = vld [vmem:[#allocation7 + $0x10] ss:$8 sps:$4 sm:$0xff]   ;;  %v7591_v20 = vld [vmem:[#allocation2 + $0x28] sm:$0xff] }
  0x73   : > { %v660_v9 = vrot.slane %v658_v52, 7  ;;  %v682_v10 = vshrl.u32 %v7563_v61, 16  ;;  %v685_v14 = vshll.u32 %v7563_v61, 16  ;;  %v1340_v16 = vor.u32 %v7570_v3, %v658_v52  ;;  %1781 = vst.msk [vmem:[#allocation3 + $0x178] sm:$0xff] %vm353_vm0, %v7578_v11  ;;  %3067 = vmatprep.subr.bf16.mxu1 %v6986_v4  ;;  %v6989_v19 = vld [vmem:[#allocation7 + $0x114] ss:$8 sps:$4 sm:$0xff]  }
  0x74   : > { %v7581_v13 = vsel %vm477_vm4, %v636_v58, %v647_v62  ;;  %v7585_v17 = vrot.slane %v669_v60, 1  ;;  %v7593_v22 = vld [vmem:[#allocation2 + $0x10] sm:$0xff]  ;;  %v7596_v23 = vsel %vm12289_vm7, %v1331_v8, %v1332_v44  ;;  %v7606_v26 = vrot.slane %v666_v59, 7  ;;  %3068 = vmatpush1.bf16.msra.mxu1 %v6988_v12  ;;  %1773 = vst.msk [vmem:[#allocation3 + $0x38] sm:$0xff] %vm353_vm0, %v7591_v20  ;;  %v7615_v36 = vld [vmem:[#allocation2 + $0x40] sm:$0xff]  ;;  %3452 = vmatprep.subr.bf16.mxu0 %v6989_v19  ;;  %s6456_s9 = sshll.u32 %s7443_s27, 8 }
  0x75   : > { %1031 = vst.msk [vmem:[#allocation3 + $0xf0] sm:$0xff] %vm353_vm0, %v7581_v13  ;;  %2051 = vst.msk [vmem:[#allocation3 + $0x18] sm:$0xff] %vm353_vm0, %v7581_v13  ;;  %v7602_v25 = vor.u32 %v661_v53, %v660_v9  ;;  %v690_v27 = vshrl.u32 %v7578_v11, 16  ;;  %v629_v29 = vshll.u32 %v7591_v20, 16  ;;  %v626_v30 = vshrl.u32 %v7591_v20, 16  ;;  %s10596_s10 = scalar_lea.vmem [#allocation9], %s6456_s9 }
  0x76   : > { %1121 = vrot.lane.b32.xlu0 %v7480_v6, %s7266_s20  ;;  %v602_v33 = vshrl.u32 %v7593_v22, 16  ;;  %v605_v35 = vshll.u32 %v7593_v22, 16  ;;  %1516 = vst.msk [vmem:[#allocation3 + $0xd0] sm:$0xff] %vm353_vm0, %v7596_v23  ;;  %v650_v37 = vshrl.u32 %v7615_v36, 16  ;;  %v653_v38 = vshll.u32 %v7615_v36, 16  ;;  %1776 = vst.msk [vmem:[#allocation3 + $0xb0] sm:$0xff] %vm353_vm0, %v7615_v36 }
  0x77   : > { %v7625_v39 = vsel %vm12289_vm7, %v1340_v16, %v7585_v17  ;;  %v671_v41 = vor.u32 %v669_v60, %v7606_v26  ;;  %v6991_v44 = vld [vmem:[#allocation7 + $0x24] ss:$8 sps:$4 sm:$0xff]   ;;  %v6993_v45 = vld [vmem:[#allocation7 + $0x20] ss:$8 sps:$4 sm:$0xff]   ;;  %v1326_v48 = vrot.slane %v629_v29, 1  ;;  %v628_v49 = vrot.slane %v626_v30, 7 }
  0x78   : > { %v7628_v50 = vrot.slane %v602_v33, 7  ;;  %v7630_v51 = vrot.slane %v605_v35, 1  ;;  %1519 = vst.msk [vmem:[#allocation3 + $0x148] sm:$0xff] %vm353_vm0, %v7625_v39  ;;  %2191 = vst.msk [vmem:[#allocation3 + $0x70] sm:$0xff] %vm353_vm0, %v7625_v39  ;;  %v1335_v52 = vrot.slane %v653_v38, 1  ;;  %v652_v53 = vrot.slane %v650_v37, 7  ;;  %3069 = vmatprep.subr.bf16.mxu1 %v6991_v44 }
  0x79   : > { %v7637_v56 = vsel %vm477_vm4, %v660_v9, %v671_v41  ;;  %v693_v58 = vshll.u32 %v7578_v11, 16  ;;  %v491_v60 = vld [vmem:[#allocation2 + $0x70] sm:$0x1]  ;;  %v1327_v62 = vsel %vm12289_vm7, %v7540_v47, %v1326_v48  ;;  %v631_v2 = vor.u32 %v629_v29, %v628_v49  ;;  %v7648_v12 = vld [vmem:[#allocation2 + $0x58] sm:$0xff]  ;;  %3070 = vmatpush1.bf16.msra.mxu1 %v6993_v45  ;;  %v6994_v45 = vld [vmem:[#allocation7 + $0x124] ss:$8 sps:$4 sm:$0xff]  }
  0x7a   : > { %v7643_v4 = vor.u32 %v605_v35, %v7628_v50  ;;  %v7646_v8 = vor.u32 %v7630_v51, %v602_v33  ;;  %1034 = vst.msk [vmem:[#allocation3 + $0x168] sm:$0xff] %vm353_vm0, %v7637_v56  ;;  %2054 = vst.msk [vmem:[#allocation3 + $0x90] sm:$0xff] %vm353_vm0, %v7637_v56  ;;  %v2511_v9 = vld [vmem:[#allocation7 + $0x110] sm:$0xff]  ;;  %1832 = vrot.lane.b32.xlu1 %v1327_v62, %s7266_s20  ;;  %v1328_v47 = vor.u32 %v1326_v48, %v626_v30  ;;  %v7002_v48 = vld [vmem:[%s7447_s6 + $0x20] sm:$0xff]   ;;  %vm12290_vm14 = vcmask 1046534   ;;  %s6669_s11 = sshll.u32 %s7249_s15, 12 }
  0x7b   : > { %1514 = vst.msk [vmem:[#allocation3 + $0x80] sm:$0xff] %vm353_vm0, %v1327_v62  ;;  %v7658_v16 = vsel %vm477_vm4, %v628_v49, %v7574_v5  ;;  %v7662_v19 = vsel %vm12289_vm7, %v7566_v63, %v1335_v52  ;;  %v655_v29 = vor.u32 %v653_v38, %v652_v53  ;;  %1779 = vst.msk [vmem:[#allocation3 + $0x128] sm:$0xff] %vm353_vm0, %v7648_v12  ;;  %v437_v33 = vld [vmem:[#allocation2 + $0x78] sm:$0x80]  ;;  %v6999_v41 = vld [vmem:[#allocation7 + $0x30] ss:$8 sps:$4 sm:$0xff]   ;;  %s12196_s7 = scalar_lea.hbm %s12274_s3, %s6669_s11 }
  0x7c   : > { %v6997_v35 = vld [vmem:[#allocation7 + $0x34] ss:$8 sps:$4 sm:$0xff]   ;;  %v632_v44 = vsel %vm477_vm4, %v7505_v28, %v631_v2  ;;  %1030 = vst.msk [vmem:[#allocation3 + $0xc8] sm:$0xff] %vm353_vm0, %v7658_v16  ;;  %1517 = vst.msk [vmem:[#allocation3 + $0xf8] sm:$0xff] %vm353_vm0, %v7662_v19  ;;  %v674_v63 = vshrl.u32 %v7648_v12, 16  ;;  %v677_v5 = vshll.u32 %v7648_v12, 16  ;;  %v1337_v30 = vor.u32 %v1335_v52, %v650_v37 }
  0x7d   : > { %2189 = vst.msk [vmem:[#allocation3 + $0x20] sm:$0xff] %vm353_vm0, %v7662_v19  ;;  %v2512_v38 = vld [vmem:[#allocation7 + $0x118] sm:$0xff]  ;;  %1029 = vst.msk [vmem:[#allocation3 + $0xa0] sm:$0xff] %vm353_vm0, %v632_v44  ;;  %1582 = vrot.lane.b32.xlu0 %v632_v44, %s7266_s20  ;;  %v1330_v28 = vsel %vm12289_vm7, %v1328_v47, %v7557_v57  ;;  %v7683_v49 = vsel %vm477_vm4, %v7551_v54, %v655_v29  ;;  %v7687_v62 = vsel %vm477_vm4, %v652_v53, %v7602_v25  ;;  %v7003_v25 = vld [vmem:[#allocation7 + $0x44] ss:$8 sps:$4 sm:$0xff]   ;;  %vm5155_vm15 = vcmask 1040384  }
  0x7e   : > { %v1343_v37 = vor.u32 %v7585_v17, %v666_v59  ;;  %1515 = vst.msk [vmem:[#allocation3 + $0xa8] sm:$0xff] %vm353_vm0, %v1330_v28  ;;  %1032 = vst.msk [vmem:[#allocation3 + $0x118] sm:$0xff] %vm353_vm0, %v7683_v49  ;;  %v7699_v54 = vsel %vm12289_vm7, %v1337_v30, %v7570_v3  ;;  %v1344_v57 = vrot.slane %v677_v5, 1  ;;  %v676_v59 = vrot.slane %v674_v63, 7  ;;  %3071 = vmatprep.subr.bf16.mxu1 %v6997_v35  ;;  %v6996_v2 = vld [vmem:[#allocation7 + $0x120] ss:$8 sps:$4 sm:$0xff]  }
  0x7f   : > { %2052 = vst.msk [vmem:[#allocation3 + $0x40] sm:$0xff] %vm353_vm0, %v7683_v49  ;;  %1033 = vst.msk [vmem:[#allocation3 + $0x140] sm:$0xff] %vm353_vm0, %v7687_v62  ;;  %v492_v17 = vsel %vm7511_vm6, 0, %v491_v60  ;;  %1123 = vrot.lane.b32.xlu1 %v7593_v22, %s7266_s20  ;;  %v1347_v3 = vrot.slane %v685_v14, 1  ;;  %v684_v52 = vrot.slane %v682_v10, 7  ;;  %v438_v53 = vsel %vm7470_vm3, 0, %v437_v33  ;;  %3072 = vmatpush1.bf16.msra.mxu1 %v6999_v41 }
  0x80   : > { %2053 = vst.msk [vmem:[#allocation3 + $0x68] sm:$0xff] %vm353_vm0, %v7687_v62  ;;  %358 = vst.msk [vmem:[#allocation2 + $0x80] sm:$0xff] %vm353_vm0, %v7002_v48  ;;  %v7720_v60 = vcombine.low %v2511_v9, %v2512_v38  ;;  %v7005_v22 = vld [vmem:[#allocation7 + $0x40] ss:$8 sps:$4 sm:$0xff]   ;;  %v7723_v47 = vsel %vm12289_vm7, %v1343_v37, %v1344_v57  ;;  %v679_v29 = vor.u32 %v677_v5, %v676_v59  ;;  %v7727_v44 = vrot.slane %v693_v58, 1  ;;  %v2515_v30 = vld [vmem:[#allocation7 + $0x130] sm:$0xff] }
  0x81   : > { %1518 = vst.msk [vmem:[#allocation3 + $0x120] sm:$0xff] %vm353_vm0, %v7699_v54  ;;  %2190 = vst.msk [vmem:[#allocation3 + $0x48] sm:$0xff] %vm353_vm0, %v7699_v54  ;;  %v1346_v35 = vor.u32 %v1344_v57, %v674_v63  ;;  %v2516_v48 = vld [vmem:[#allocation7 + $0x138] sm:$0xff]  ;;  %3073 = vmatprep.subr.bf16.mxu1 %v7003_v25  ;;  %v1322_v9 = vor.u32 %v7520_v34, %v610_v24  ;;  %1135 = vrot.lane.b32.xlu0 %v7615_v36, %s7266_s20  ;;  %v7745_v24 = vrot.slane %v690_v27, 7  ;;  %v7014_v57 = vld [vmem:[#allocation7 + $0x64] ss:$8 sps:$4 sm:$0xff]  }
  0x82   : > { %493 = vst [vmem:[#allocation2 + $0x70] sm:$0x1] %v492_v17  ;;  %439 = vst [vmem:[#allocation2 + $0x78] sm:$0x80] %v438_v53  ;;  %v687_v33 = vor.u32 %v685_v14, %v684_v52  ;;  %3453 = vmatpush1.bf16.msra.mxu0 %v7720_v60  ;;  %v1349_v41 = vor.u32 %v1347_v3, %v682_v10  ;;  %v7009_v63 = vld [vmem:[#allocation7 + $0x54] ss:$8 sps:$4 sm:$0xff]   ;;  %v7753_v5 = vsel %vm477_vm4, %v7606_v26, %v679_v29 }
  0x83   : > { %1520 = vst.msk [vmem:[#allocation3 + $0x170] sm:$0xff] %vm353_vm0, %v7723_v47  ;;  %2192 = vst.msk [vmem:[#allocation3 + $0x98] sm:$0xff] %vm353_vm0, %v7723_v47  ;;  %v7749_v36 = vrot.slane %v594_v21, 7  ;;  %v7756_v14 = vsel %vm12289_vm7, %v1346_v35, %v1347_v3  ;;  %3454 = vmatprep.subr.bf16.mxu0 %v6994_v45  ;;  %v7000_v38 = vld [vmem:[#allocation7 + $0x134] ss:$8 sps:$4 sm:$0xff]   ;;  %v1318_v10 = vsel %vm12289_vm7, %v7529_v40, %v7630_v51  ;;  %1834 = vrot.lane.b32.xlu1 %v1330_v28, %s7266_s20  ;;  %s6343_s18 = sshll.u32 %s10596_s10, 4  ;;  %s12198_s18 = int_to_ptr.vmem [resolvable:$true] %s6343_s18 }
  0x84   : > { %1035 = vst.msk [vmem:[#allocation3 + $0x190] sm:$0xff] %vm353_vm0, %v7753_v5  ;;  %2055 = vst.msk [vmem:[#allocation3 + $0xb8] sm:$0xff] %vm353_vm0, %v7753_v5  ;;  %v7771_v21 = vsel %vm477_vm4, %v676_v59, %v687_v33  ;;  %v7775_v40 = vsel %vm12289_vm7, %v1349_v41, %v7727_v44  ;;  %v695_v26 = vor.u32 %v693_v58, %v7745_v24  ;;  %3074 = vmatpush1.bf16.msra.mxu1 %v7005_v22  ;;  %v7011_v51 = vld [vmem:[#allocation7 + $0x50] ss:$8 sps:$4 sm:$0xff]   ;;  %v494_v45 = vld [vmem:[#allocation2 + $0x88] sm:$0x1] }
  0x85   : > { %1521 = vst.msk [vmem:[#allocation3 + $0x198] sm:$0xff] %vm353_vm0, %v7756_v14  ;;  %2193 = vst.msk [vmem:[#allocation3 + $0xc0] sm:$0xff] %vm353_vm0, %v7756_v14  ;;  %v7789_v28 = vcombine.low %v2515_v30, %v2516_v48  ;;  %v7006_v58 = vld [vmem:[#allocation7 + $0x144] ss:$8 sps:$4 sm:$0xff]   ;;  %3075 = vmatprep.subr.bf16.mxu1 %v7009_v63  ;;  %v495_v37 = vsel %vm7511_vm6, 0, %v494_v45  ;;  %v1321_v59 = vsel %vm12289_vm7, %v7646_v8, %v7520_v34  ;;  %1584 = vrot.lane.b32.xlu0 %v7658_v16, %s7266_s20  ;;  %v2519_v53 = vld [vmem:[#allocation7 + $0x150] sm:$0xff] }
  0x86   : > { %1511 = vst.msk [vmem:[#allocation3 + $0x8] sm:$0xff] %vm353_vm0, %v1318_v10  ;;  %1036 = vst.msk [vmem:[#allocation3 + $0x1b8] sm:$0xff] %vm353_vm0, %v7771_v21  ;;  %v608_v17 = vsel %vm477_vm4, %v7749_v36, %v7643_v4  ;;  %3455 = vmatpush1.bf16.msra.mxu0 %v6996_v2  ;;  %v7802_v25 = vsel %vm477_vm4, %v684_v52, %v695_v26  ;;  %v1324_v34 = vsel %vm12289_vm7, %v1322_v9, %v7515_v32  ;;  %v2520_v52 = vld [vmem:[#allocation7 + $0x158] sm:$0xff]  ;;  %v7016_v22 = vld [vmem:[#allocation7 + $0x60] ss:$8 sps:$4 sm:$0xff]   ;;  %s6327_s8 = scalar_lea.sflag [#allocation6], %s7443_s27 }
  0x87   : > { %2056 = vst.msk [vmem:[#allocation3 + $0xe0] sm:$0xff] %vm353_vm0, %v7771_v21  ;;  %1522 = vst.msk [vmem:[#allocation3 + $0x1c0] sm:$0xff] %vm353_vm0, %v7775_v40  ;;  %v7804_v3 = vld [vmem:[#allocation2 + $0x80] sm:$0xff]  ;;  %v616_v4 = vsel %vm477_vm4, %v7628_v50, %v7537_v46  ;;  %3456 = vmatprep.subr.bf16.mxu0 %v7000_v38  ;;  %1125 = vrot.lane.b32.xlu1 %v7493_v18, %s7266_s20  ;;  %v1352_v2 = vor.u32 %v7727_v44, %v690_v27  ;;  %v7008_v27 = vld [vmem:[#allocation7 + $0x140] ss:$8 sps:$4 sm:$0xff]   ;;  %s7171_s21 = scalar_lea.vmem %s12198_s18, 4096 }
  0x88   : > { %2194 = vst.msk [vmem:[#allocation3 + $0xe8] sm:$0xff] %vm353_vm0, %v7775_v40  ;;  %496 = vst [vmem:[#allocation2 + $0x88] sm:$0x1] %v495_v37  ;;  %v717_v16 = vshll.u32 %v7804_v3, 16  ;;  %3076 = vmatpush1.bf16.msra.mxu1 %v7011_v51  ;;  %v714_v18 = vshrl.u32 %v7804_v3, 16  ;;  %v7843_v33 = vcombine.low %v2519_v53, %v2520_v52  ;;  %p7172_p4 = scmp.ne.s32.totalorder %s12198_s18, %s7171_s21  ;;  %s7268_s19 = smov [#allocation9]  }
  0x89   : > { %1512 = vst.msk [vmem:[#allocation3 + $0x30] sm:$0xff] %vm353_vm0, %v1321_v59  ;;  %1026 = vst.msk [vmem:[#allocation3 + $0x28] sm:$0xff] %vm353_vm0, %v608_v17  ;;  %v7813_v8 = vld [vmem:[#allocation2 + $0x70] sm:$0xff]  ;;  %v7830_v50 = vld [vmem:[#allocation2 + $0x78] sm:$0xff]  ;;  %3077 = vmatprep.subr.bf16.mxu1 %v7014_v57  ;;  %1137 = vrot.lane.b32.xlu0 %v7535_v43, %s7266_s20  ;;  %vm5158_vm1 = vsmask.f32 1280 }
  0x8a   : > { %1037 = vst.msk [vmem:[#allocation3 + $0x1e0] sm:$0xff] %vm353_vm0, %v7802_v25  ;;  %2057 = vst.msk [vmem:[#allocation3 + $0x108] sm:$0xff] %vm353_vm0, %v7802_v25  ;;  %v698_v32 = vshrl.u32 %v7813_v8, 16  ;;  %v701_v46 = vshll.u32 %v7813_v8, 16  ;;  %v706_v29 = vshrl.u32 %v7830_v50, 16  ;;  %v709_v35 = vshll.u32 %v7830_v50, 16  ;;  %3457 = vmatpush1.bf16.msra.mxu0 %v7789_v28  ;;  %p7173_p6 = pnand %p7172_p4, %p7387_p10 }
  0x8b   : > { %1784 = vst.msk [vmem:[#allocation3 + $0x1f0] sm:$0xff] %vm353_vm0, %v7804_v3  ;;  %1513 = vst.msk [vmem:[#allocation3 + $0x58] sm:$0xff] %vm353_vm0, %v1324_v34  ;;  %v7020_v30 = vld [vmem:[#allocation7 + $0x74] ss:$8 sps:$4 sm:$0xff]   ;;  %3458 = vmatprep.subr.bf16.mxu0 %v7006_v58  ;;  %v440_v38 = vld [vmem:[#allocation2 + $0x90] sm:$0x80]  ;;  %1836 = vrot.lane.b32.xlu1 %v7596_v23, %s7266_s20 }
  0x8c   : > { %1027 = vst.msk [vmem:[#allocation3 + $0x50] sm:$0xff] %vm353_vm0, %v616_v4  ;;  %1782 = vst.msk [vmem:[#allocation3 + $0x1a0] sm:$0xff] %vm353_vm0, %v7813_v8  ;;  %v1353_v48 = vrot.slane %v701_v46, 1  ;;  %v700_v44 = vrot.slane %v698_v32, 7  ;;  %v7012_v9 = vld [vmem:[#allocation7 + $0x154] ss:$8 sps:$4 sm:$0xff]   ;;  %3078 = vmatpush1.bf16.msra.mxu1 %v7016_v22  ;;  %p7174_p8 = pneg %p7173_p6 }
  0x8d   : > { %1783 = vst.msk [vmem:[#allocation3 + $0x1c8] sm:$0xff] %vm353_vm0, %v7830_v50  ;;  %12318 = vst [vmem:[#allocation13_spill] sm:$0xff] %v7843_v33  ;;  %v1356_v41 = vrot.slane %v709_v35, 1  ;;  %v708_v63 = vrot.slane %v706_v29, 7  ;;  %v1359_v10 = vrot.slane %v717_v16, 1  ;;  %v441_v58 = vsel %vm7470_vm3, 0, %v440_v38  ;;  %3079 = vmatprep.subr.bf16.mxu1 %v7020_v30  ;;  %1586 = vrot.lane.b32.xlu0 %v7581_v13, %s7266_s20 }
  0x8e   : > { %v7850_v43 = vsel %vm12289_vm7, %v1352_v2, %v1353_v48  ;;  %v703_v26 = vor.u32 %v701_v46, %v700_v44  ;;  %v1355_v51 = vor.u32 %v1353_v48, %v698_v32  ;;  %v7022_v45 = vld [vmem:[#allocation7 + $0x70] ss:$8 sps:$4 sm:$0xff]   ;;  %v7025_v37 = vld [vmem:[#allocation7 + $0x84] ss:$8 sps:$4 sm:$0xff]   ;;  %442 = vst [vmem:[#allocation2 + $0x90] sm:$0x80] %v441_v58  ;;  %3459 = vmatpush1.bf16.msra.mxu0 %v7008_v27  ;;  %vm10341_vm5 = vmand %vm5155_vm15, %vm477_vm4 }
  0x8f   : > { %1523 = vst.msk [vmem:[#allocation3 + $0x1e8] sm:$0xff] %vm353_vm0, %v7850_v43  ;;  %2195 = vst.msk [vmem:[#allocation3 + $0x110] sm:$0xff] %vm353_vm0, %v7850_v43  ;;  %v7858_v57 = vld [vmem:[#allocation2 + $0x88] sm:$0xff]  ;;  %v711_v23 = vor.u32 %v709_v35, %v708_v63  ;;  %v1358_v59 = vor.u32 %v1356_v41, %v706_v29  ;;  %v716_v17 = vrot.slane %v714_v18, 7  ;;  %v1361_v53 = vor.u32 %v1359_v10, %v714_v18  ;;  %v7031_v30 = vld [vmem:[#allocation7 + $0x94] ss:$8 sps:$4 sm:$0xff]  }
  0x90   : > { %v7864_v34 = vsel %vm477_vm4, %v7745_v24, %v703_v26  ;;  %v722_v4 = vshrl.u32 %v7858_v57, 16  ;;  %v725_v52 = vshll.u32 %v7858_v57, 16  ;;  %1785 = vst.msk [vmem:[#allocation3 + $0x218] sm:$0xff] %vm353_vm0, %v7858_v57  ;;  %v7871_v32 = vsel %vm12289_vm7, %v1355_v51, %v1356_v41  ;;  %3460 = vmatprep.subr.bf16.mxu0 %v7012_v9  ;;  %v7017_v13 = vld [vmem:[#allocation7 + $0x164] ss:$8 sps:$4 sm:$0xff]   ;;  %1127 = vrot.lane.b32.xlu1 %v7488_v15, %s7266_s20  ;;  %v2523_v15 = vld [vmem:[#allocation7 + $0x170] sm:$0xff] }
  0x91   : > { %1038 = vst.msk [vmem:[#allocation3 + $0x208] sm:$0xff] %vm353_vm0, %v7864_v34  ;;  %2058 = vst.msk [vmem:[#allocation3 + $0x130] sm:$0xff] %vm353_vm0, %v7864_v34  ;;  %v7882_v24 = vsel %vm477_vm4, %v700_v44, %v711_v23  ;;  %v7885_v46 = vsel %vm12289_vm7, %v1358_v59, %v1359_v10  ;;  %v719_v2 = vor.u32 %v717_v16, %v716_v17  ;;  %v7019_v22 = vld [vmem:[#allocation7 + $0x160] ss:$8 sps:$4 sm:$0xff]   ;;  %3080 = vmatpush1.bf16.msra.mxu1 %v7022_v45  ;;  %v2524_v9 = vld [vmem:[#allocation7 + $0x178] sm:$0xff]  ;;  %s7175_s25 = sshll.u32 %s7268_s19, 4  ;;  %s7176_s25 = int_to_ptr.vmem [resolvable:$false] %s7175_s25 }
  0x92   : > { %1524 = vst.msk [vmem:[#allocation3 + $0x210] sm:$0xff] %vm353_vm0, %v7871_v32  ;;  %2196 = vst.msk [vmem:[#allocation3 + $0x138] sm:$0xff] %vm353_vm0, %v7871_v32  ;;  %v7027_v29 = vld [vmem:[#allocation7 + $0x80] ss:$8 sps:$4 sm:$0xff]   ;;  %v1362_v16 = vrot.slane %v725_v52, 1  ;;  %v7899_v35 = vrot.slane %v722_v4, 7  ;;  %3081 = vmatprep.subr.bf16.mxu1 %v7025_v37  ;;  %1139 = vrot.lane.b32.xlu0 %v7553_v55, %s7266_s20  ;;  %v7938_v45 = vcombine.low %v2523_v15, %v2524_v9  ;;  %p7178_p12 = scmp.lt.s32.totalorder %s12198_s18, %s7176_s25 }
  0x93   : > { %1039 = vst.msk [vmem:[#allocation3 + $0x230] sm:$0xff] %vm353_vm0, %v7882_v24  ;;  %2059 = vst.msk [vmem:[#allocation3 + $0x158] sm:$0xff] %vm353_vm0, %v7882_v24  ;;  %v7902_v18 = vsel %vm477_vm4, %v708_v63, %v719_v2  ;;  %3461 = vmatpush1.bf16.msra.mxu0 %v7843_v33  ;;  %v7036_v48 = vld [vmem:[%s7447_s6 + $0x28] sm:$0xff]   ;;  %v7023_v41 = vld [vmem:[#allocation7 + $0x174] ss:$8 sps:$4 sm:$0xff]   ;;  %s7177_s29 = scalar_lea.vmem %s7176_s25, 8192 }
  0x94   : > { %1525 = vst.msk [vmem:[#allocation3 + $0x238] sm:$0xff] %vm353_vm0, %v7885_v46  ;;  %2197 = vst.msk [vmem:[#allocation3 + $0x160] sm:$0xff] %vm353_vm0, %v7885_v46  ;;  %v7913_v27 = vsel %vm12289_vm7, %v1361_v53, %v1362_v16  ;;  %v727_v44 = vor.u32 %v725_v52, %v7899_v35  ;;  %3462 = vmatprep.subr.bf16.mxu0 %v7017_v13  ;;  %1838 = vrot.lane.b32.xlu1 %v7662_v19, %s7266_s20  ;;  %v7033_v63 = vld [vmem:[#allocation7 + $0x90] ss:$8 sps:$4 sm:$0xff]   ;;  %v7037_v51 = vld [vmem:[#allocation7 + $0xa4] ss:$8 sps:$4 sm:$0xff]   ;;  %p7179_p11 = scmp.lt.s32.totalorder %s7177_s29, %s7171_s21 }
  0x95   : > { %1040 = vst.msk [vmem:[#allocation3 + $0x258] sm:$0xff] %vm353_vm0, %v7902_v18  ;;  %2060 = vst.msk [vmem:[#allocation3 + $0x180] sm:$0xff] %vm353_vm0, %v7902_v18  ;;  %v7922_v55 = vld [vmem:[#allocation2 + $0x90] sm:$0xff]  ;;  %3082 = vmatpush1.bf16.msra.mxu1 %v7027_v29  ;;  %v1364_v19 = vor.u32 %v1362_v16, %v722_v4  ;;  %v497_v37 = vld [vmem:[#allocation2 + $0xa0] sm:$0x1] }
  0x96   : > { %1526 = vst.msk [vmem:[#allocation3 + $0x260] sm:$0xff] %vm353_vm0, %v7913_v27  ;;  %2198 = vst.msk [vmem:[#allocation3 + $0x188] sm:$0xff] %vm353_vm0, %v7913_v27  ;;  %v7926_v38 = vsel %vm477_vm4, %v716_v17, %v727_v44  ;;  %v730_v10 = vshrl.u32 %v7922_v55, 16  ;;  %v733_v26 = vshll.u32 %v7922_v55, 16  ;;  %3083 = vmatprep.subr.bf16.mxu1 %v7031_v30  ;;  %1588 = vrot.lane.b32.xlu0 %v7683_v49, %s7266_s20  ;;  %v7028_v58 = vld [vmem:[#allocation7 + $0x184] ss:$8 sps:$4 sm:$0xff]   ;;  %p7180_p0 = por %p7179_p11, %p7178_p12 }
  0x97   : > { %359 = vst.msk [vmem:[#allocation2 + $0x98] sm:$0xff] %vm353_vm0, %v7036_v48  ;;  %1786 = vst.msk [vmem:[#allocation3 + $0x240] sm:$0xff] %vm353_vm0, %v7922_v55  ;;  %3463 = vmatpush1.bf16.msra.mxu0 %v7019_v22  ;;  %v7039_v59 = vld [vmem:[#allocation7 + $0xa0] ss:$8 sps:$4 sm:$0xff]   ;;  %v498_v17 = vsel %vm7511_vm6, 0, %v497_v37  ;;  %v2528_v2 = vld [vmem:[#allocation7 + $0x198] sm:$0xff] }
  0x98   : > { %1041 = vst.msk [vmem:[#allocation3 + $0x280] sm:$0xff] %vm353_vm0, %v7926_v38  ;;  %2061 = vst.msk [vmem:[#allocation3 + $0x1a8] sm:$0xff] %vm353_vm0, %v7926_v38  ;;  %3464 = vmatprep.subr.bf16.mxu0 %v7023_v41  ;;  %v1365_v23 = vrot.slane %v733_v26, 1  ;;  %1129 = vrot.lane.b32.xlu1 %v7591_v20, %s7266_s20  ;;  %v7944_v53 = vrot.slane %v730_v10, 7  ;;  %v7043_v4 = vld [vmem:[#allocation7 + $0xb4] ss:$8 sps:$4 sm:$0xff]   ;;  %p7181_p5 = pnand %p7180_p0, %p7174_p8 }
  0x99   : > { %12319 = vst [vmem:[#allocation14_spill] sm:$0xff] %v7938_v45  ;;  %3084 = vmatpush1.bf16.msra.mxu1 %v7033_v63  ;;  %499 = vst [vmem:[#allocation2 + $0xa0] sm:$0x1] %v498_v17  ;;  %v7030_v52 = vld [vmem:[#allocation7 + $0x180] ss:$8 sps:$4 sm:$0xff]   ;;  %v2527_v20 = vld [vmem:[#allocation7 + $0x190] sm:$0xff] }
  0x9a   : > { %3085 = vmatprep.subr.bf16.mxu1 %v7037_v51  ;;  %v7947_v49 = vsel %vm12289_vm7, %v1364_v19, %v1365_v23  ;;  %1141 = vrot.lane.b32.xlu0 %v7648_v12, %s7266_s20  ;;  %v735_v13 = vor.u32 %v733_v26, %v7944_v53  ;;  %v7034_v22 = vld [vmem:[#allocation7 + $0x194] ss:$8 sps:$4 sm:$0xff]   ;;  %v7045_v15 = vld [vmem:[#allocation7 + $0xb0] ss:$8 sps:$4 sm:$0xff]   ;;  %v1367_v48 = vor.u32 %v1365_v23, %v730_v10  ;;  %v7048_v44 = vld [vmem:[#allocation7 + $0xc4] ss:$8 sps:$4 sm:$0xff]  }
  0x9b   : > { %3465 = vmatpush1.bf16.msra.mxu0 %v7938_v45  ;;  %1527 = vst.msk [vmem:[#allocation3 + $0x288] sm:$0xff] %vm353_vm0, %v7947_v49  ;;  %2199 = vst.msk [vmem:[#allocation3 + $0x1b0] sm:$0xff] %vm353_vm0, %v7947_v49  ;;  %v7975_v9 = vcombine.low %v2527_v20, %v2528_v2  ;;  %v422_v63 = vld [vmem:[#allocation2] sm:$0x80]  ;;  %v7040_v10 = vld [vmem:[#allocation7 + $0x1a4] ss:$8 sps:$4 sm:$0xff]  }
  0x9c   : > { %3466 = vmatprep.subr.bf16.mxu0 %v7028_v58  ;;  %1840 = vrot.lane.b32.xlu1 %v7699_v54, %s7266_s20  ;;  %v7967_v30 = vsel %vm477_vm4, %v7899_v35, %v735_v13  ;;  %v443_v54 = vld [vmem:[#allocation2 + $0xa8] sm:$0x80]  ;;  %v423_v26 = vsel %vm7470_vm3, 0, %v422_v63  ;;  %v7042_v19 = vld [vmem:[#allocation7 + $0x1a0] ss:$8 sps:$4 sm:$0xff]   ;;  %v2531_v23 = vld [vmem:[#allocation7 + $0x1b0] sm:$0xff] }
  0x9d   : > { %3086 = vmatpush1.bf16.msra.mxu1 %v7039_v59  ;;  %1042 = vst.msk [vmem:[#allocation3 + $0x2a8] sm:$0xff] %vm353_vm0, %v7967_v30  ;;  %2062 = vst.msk [vmem:[#allocation3 + $0x1d0] sm:$0xff] %vm353_vm0, %v7967_v30  ;;  %v444_v35 = vsel %vm7470_vm3, 0, %v443_v54  ;;  %v7050_v58 = vld [vmem:[#allocation7 + $0xc0] ss:$8 sps:$4 sm:$0xff]   ;;  %v2532_v2 = vld [vmem:[#allocation7 + $0x1b8] sm:$0xff] }
  0x9e   : > { %v7957_v29 = vld [vmem:[#allocation2 + $0x98] sm:$0xff]  ;;  %3087 = vmatprep.subr.bf16.mxu1 %v7043_v4  ;;  %1590 = vrot.lane.b32.xlu0 %v7687_v62, %s7266_s20  ;;  %12320 = vst [vmem:[#allocation15_spill] sm:$0xff] %v7975_v9  ;;  %445 = vst [vmem:[#allocation2 + $0xa8] sm:$0x80] %v444_v35  ;;  %v2504_v4 = vld [vmem:[#allocation7 + $0xd8] sm:$0xff] }
  0x9f   : > { %v738_v12 = vshrl.u32 %v7957_v29, 16  ;;  %v741_v16 = vshll.u32 %v7957_v29, 16  ;;  %1787 = vst.msk [vmem:[#allocation3 + $0x268] sm:$0xff] %vm353_vm0, %v7957_v29  ;;  %3467 = vmatpush1.bf16.msra.mxu0 %v7030_v52  ;;  %424 = vst [vmem:[#allocation2] sm:$0x80] %v423_v26  ;;  %v8023_v26 = vcombine.low %v2531_v23, %v2532_v2 }
  0xa0   : > { %3468 = vmatprep.subr.bf16.mxu0 %v7034_v22  ;;  %1131 = vrot.lane.b32.xlu1 %v7533_v42, %s7266_s20  ;;  %v7983_v62 = vld [vmem:[#allocation2 + $0xa0] sm:$0xff]  ;;  %v2503_v42 = vld [vmem:[#allocation7 + $0xd0] sm:$0xff]  ;;  %v7053_v0 = vld [vmem:[#allocation7 + $0x1c0] ss:$8 sps:$4 sm:$0xff]  }
  0xa1   : > { %v1368_v41 = vrot.slane %v741_v16, 1  ;;  %v740_v51 = vrot.slane %v738_v12, 7  ;;  %3088 = vmatpush1.bf16.msra.mxu1 %v7045_v15  ;;  %v746_v59 = vshrl.u32 %v7983_v62, 16  ;;  %v749_v17 = vshll.u32 %v7983_v62, 16  ;;  %1788 = vst.msk [vmem:[#allocation3 + $0x290] sm:$0xff] %vm353_vm0, %v7983_v62  ;;  %v7999_v15 = vld [vmem:[#allocation7 + $0xe0] sm:$0xff] }
  0xa2   : > { %3089 = vmatprep.subr.bf16.mxu1 %v7048_v44  ;;  %v7054_v52 = vld [vmem:[#allocation7 + $0xd4] ss:$8 sps:$4 sm:$0xff]   ;;  %1143 = vrot.lane.b32.xlu0 %v7563_v61, %s7266_s20  ;;  %v6505_v61 = vcombine.low %v2503_v42, %v2504_v4  ;;  %v500_v63 = vld [vmem:[#allocation2 + $0xb8] sm:$0x1]  ;;  %12321 = vst [vmem:[#allocation16_spill] sm:$0xff] %v8023_v26 }
  0xa3   : > { %v7986_v37 = vsel %vm12289_vm7, %v1367_v48, %v1368_v41  ;;  %v743_v20 = vor.u32 %v741_v16, %v740_v51  ;;  %v1370_v13 = vor.u32 %v1368_v41, %v738_v12  ;;  %3469 = vmatpush1.bf16.msra.mxu0 %v7975_v9  ;;  %v7046_v22 = vld [vmem:[#allocation7 + $0x1b4] ss:$8 sps:$4 sm:$0xff]   ;;  %v1371_v54 = vrot.slane %v749_v17, 1  ;;  %v8010_v12 = vld [vmem:[#allocation7 + $0xe8] sm:$0xff] }
  0xa4   : > { %1528 = vst.msk [vmem:[#allocation3 + $0x2b0] sm:$0xff] %vm353_vm0, %v7986_v37  ;;  %2200 = vst.msk [vmem:[#allocation3 + $0x1d8] sm:$0xff] %vm353_vm0, %v7986_v37  ;;  %3470 = vmatprep.subr.bf16.mxu0 %v7040_v10  ;;  %v7067_v44 = vld [vmem:[%s7447_s6 + $0x30] sm:$0xff]   ;;  %v8006_v35 = vrot.slane %v746_v59, 7  ;;  %1842 = vrot.lane.b32.xlu1 %v7625_v39, %s7266_s20  ;;  %v7058_v16 = vld [vmem:[#allocation7 + $0xe4] ss:$8 sps:$4 sm:$0xff]   ;;  %v6507_v9 = vcombine.low %v7999_v15, %v8010_v12 }
  0xa5   : > { %v8003_v48 = vsel %vm477_vm4, %v7944_v53, %v743_v20  ;;  %3090 = vmatpush1.bf16.msra.mxu1 %v7050_v58  ;;  %v7051_v53 = vld [vmem:[#allocation7 + $0x1c4] ss:$8 sps:$4 sm:$0xff]   ;;  %360 = vst.msk [vmem:[#allocation2 + $0xb0] sm:$0xff] %vm353_vm0, %v7067_v44  ;;  %v8018_v41 = vsel %vm12289_vm7, %v1370_v13, %v1371_v54  ;;  %v446_v10 = vld [vmem:[#allocation2 + $0xc0] sm:$0x80]  ;;  %v501_v42 = vsel %vm7511_vm6, 0, %v500_v63  ;;  %v1373_v44 = vor.u32 %v1371_v54, %v746_v59 }
  0xa6   : > { %1043 = vst.msk [vmem:[#allocation3 + $0x2d0] sm:$0xff] %vm353_vm0, %v8003_v48  ;;  %2063 = vst.msk [vmem:[#allocation3 + $0x1f8] sm:$0xff] %vm353_vm0, %v8003_v48  ;;  %3091 = vmatprep.subr.bf16.mxu1 %v7054_v52  ;;  %v751_v39 = vor.u32 %v749_v17, %v8006_v35  ;;  %1592 = vrot.lane.b32.xlu0 %v7637_v56, %s7266_s20  ;;  %v8025_v58 = vld [vmem:[#allocation2 + $0xa8] sm:$0xff]  ;;  %v447_v17 = vsel %vm7470_vm3, 0, %v446_v10  ;;  %v7071_v4 = vld [vmem:[%s7447_s6 + $0x38] sm:$0xff]   ;;  %v599_v10 = vor.u32 %v597_v7, %v7749_v36 }
  0xa7   : > { %3471 = vmatpush1.bf16.msra.mxu0 %v7042_v19  ;;  %1529 = vst.msk [vmem:[#allocation3 + $0x2d8] sm:$0xff] %vm353_vm0, %v8018_v41  ;;  %2201 = vst.msk [vmem:[#allocation3 + $0x200] sm:$0xff] %vm353_vm0, %v8018_v41  ;;  %v757_v19 = vshll.u32 %v8025_v58, 16  ;;  %v533_v23 = vld [vmem:[#allocation2] sm:$0xff]  ;;  %v8040_v52 = vld [vmem:[#allocation7 + $0xf0] sm:$0xff]  ;;  %v12322_v54 = vshrl.u32 %v8025_v58, 16 }
  0xa8   : > { %3472 = vmatprep.subr.bf16.mxu0 %v7046_v22  ;;  %1789 = vst.msk [vmem:[#allocation3 + $0x2b8] sm:$0xff] %vm353_vm0, %v8025_v58  ;;  %v8042_v20 = vld [vmem:[#allocation7 + $0xf8] sm:$0xff]  ;;  %v8045_v2 = vsel %vm477_vm4, %v740_v51, %v751_v39  ;;  %502 = vst [vmem:[#allocation2 + $0xb8] sm:$0x1] %v501_v42  ;;  %v503_v22 = vld [vmem:[#allocation2 + $0xd0] sm:$0x1]  ;;  %1145 = vrot.lane.b32.xlu1 %v7578_v11, %s7266_s20 }
  0xa9   : > { %v7063_v13 = vld [vmem:[#allocation7 + $0xf4] ss:$8 sps:$4 sm:$0xff]   ;;  %448 = vst [vmem:[#allocation2 + $0xc0] sm:$0x80] %v447_v17  ;;  %v7072_v63 = vld [vmem:[%s7447_s6 + $0x40] sm:$0xff]   ;;  %3092 = vmatpush1.bf16.msra.mxu1 %v6505_v61  ;;  %v590_v56 = vshrl.u32 %v533_v23, 16 }
  0xaa   : > { %1044 = vst.msk [vmem:[#allocation3 + $0x2f8] sm:$0xff] %vm353_vm0, %v8045_v2  ;;  %2064 = vst.msk [vmem:[#allocation3 + $0x220] sm:$0xff] %vm353_vm0, %v8045_v2  ;;  %v504_v6 = vsel %vm7511_vm6, 0, %v503_v22  ;;  %v449_v7 = vld [vmem:[#allocation2 + $0xd8] sm:$0x80]  ;;  %v2536_v11 = vld [vmem:[#allocation7 + $0x1d8] sm:$0xff]  ;;  %3093 = vmatprep.subr.bf16.mxu1 %v7058_v16  ;;  %1844 = vrot.lane.b32.xlu0 %v7723_v47, %s7266_s20  ;;  %v6509_v47 = vcombine.low %v8040_v52, %v8042_v20 }
  0xab   : > { %361 = vst.msk [vmem:[#allocation2 + $0xc8] sm:$0xff] %vm353_vm0, %v7071_v4  ;;  %v2535_v36 = vld [vmem:[#allocation7 + $0x1d0] sm:$0xff]  ;;  %v1374_v59 = vrot.slane %v757_v19, 1  ;;  %v8064_v15 = vrot.slane %v12322_v54, 7  ;;  %505 = vst [vmem:[#allocation2 + $0xd0] sm:$0x1] %v504_v6  ;;  %3473 = vmatpush1.bf16.msra.mxu0 %v8023_v26 }
  0xac   : > { %v7056_v51 = vld [vmem:[#allocation7 + $0x1d4] ss:$8 sps:$4 sm:$0xff]   ;;  %v450_v61 = vsel %vm7470_vm3, 0, %v449_v7  ;;  %362 = vst.msk [vmem:[#allocation2 + $0xe0] sm:$0xff] %vm353_vm0, %v7072_v63  ;;  %v592_v12 = vrot.slane %v590_v56, 7  ;;  %3474 = vmatprep.subr.bf16.mxu0 %v7051_v53  ;;  %1594 = vrot.lane.b32.xlu1 %v7753_v5, %s7266_s20  ;;  %v8081_v56 = vld [vmem:[#allocation2 + $0xb0] sm:$0xff] }
  0xad   : > { %v2539_v39 = vld [vmem:[#allocation7 + $0x1f0] sm:$0xff]  ;;  %v2540_v42 = vld [vmem:[#allocation7 + $0x1f8] sm:$0xff]  ;;  %451 = vst [vmem:[#allocation2 + $0xd8] sm:$0x80] %v450_v61  ;;  %v8073_v16 = vsel %vm12289_vm7, %v1373_v44, %v1374_v59  ;;  %v759_v17 = vor.u32 %v757_v19, %v8064_v15  ;;  %v506_v4 = vld [vmem:[#allocation2 + $0xe8] sm:$0x1]  ;;  %3094 = vmatpush1.bf16.msra.mxu1 %v6507_v9  ;;  %v8102_v44 = vcombine.low %v2535_v36, %v2536_v11 }
  0xae   : > { %v452_v23 = vld [vmem:[#allocation2 + $0xf0] sm:$0x80]  ;;  %v600_v22 = vsel %vm477_vm4, %v592_v12, %v599_v10  ;;  %1530 = vst.msk [vmem:[#allocation3 + $0x300] sm:$0xff] %vm353_vm0, %v8073_v16  ;;  %2202 = vst.msk [vmem:[#allocation3 + $0x228] sm:$0xff] %vm353_vm0, %v8073_v16  ;;  %v507_v53 = vsel %vm7511_vm6, 0, %v506_v4  ;;  %3095 = vmatprep.subr.bf16.mxu1 %v7063_v13  ;;  %v762_v19 = vshrl.u32 %v8081_v56, 16  ;;  %1147 = vrot.lane.b32.xlu0 %v7813_v8, %s7266_s20  ;;  %v12324_v10 = vmov %v12322_v54 }
  0xaf   : > { %v453_v5 = vsel %vm7470_vm3, 0, %v452_v23  ;;  %1025 = vst.msk [vmem:[#allocation3] sm:$0xff] %vm353_vm0, %v600_v22  ;;  %v7060_v9 = vld [vmem:[#allocation7 + $0x1e4] ss:$8 sps:$4 sm:$0xff]   ;;  %v765_v52 = vshll.u32 %v8081_v56, 16  ;;  %1790 = vst.msk [vmem:[#allocation3 + $0x2e0] sm:$0xff] %vm353_vm0, %v8081_v56  ;;  %v8098_v20 = vsel %vm477_vm4, %v8006_v35, %v759_v17  ;;  %3475 = vmatpush1.bf16.msra.mxu0 %v7053_v0  ;;  %v8104_v13 = vcombine.low %v2539_v39, %v2540_v42 }
  0xb0   : > { %508 = vst [vmem:[#allocation2 + $0xe8] sm:$0x1] %v507_v53  ;;  %454 = vst [vmem:[#allocation2 + $0xf0] sm:$0x80] %v453_v5  ;;  %v8106_v63 = vld [vmem:[#allocation2 + $0xb8] sm:$0xff]  ;;  %v8112_v35 = vld [vmem:[#allocation2 + $0xc0] sm:$0xff]  ;;  %v1376_v6 = vor.u32 %v1374_v59, %v12324_v10  ;;  %3476 = vmatprep.subr.bf16.mxu0 %v7056_v51  ;;  %1846 = vrot.lane.b32.xlu1 %v7756_v14, %s7266_s20 }
  0xb1   : > { %12323 = vst [vmem:[#allocation17_spill] sm:$0xff] %v8102_v44  ;;  %1045 = vst.msk [vmem:[#allocation3 + $0x320] sm:$0xff] %vm353_vm0, %v8098_v20  ;;  %v770_v0 = vshrl.u32 %v8106_v63, 16  ;;  %v773_v8 = vshll.u32 %v8106_v63, 16  ;;  %v778_v7 = vshrl.u32 %v8112_v35, 16  ;;  %v781_v36 = vshll.u32 %v8112_v35, 16  ;;  %3096 = vmatpush1.bf16.msra.mxu1 %v6509_v47 }
  0xb2   : > { %2065 = vst.msk [vmem:[#allocation3 + $0x248] sm:$0xff] %vm353_vm0, %v8098_v20  ;;  %1791 = vst.msk [vmem:[#allocation3 + $0x308] sm:$0xff] %vm353_vm0, %v8106_v63  ;;  %v8124_v11 = vld [vmem:[#allocation2 + $0xc8] sm:$0xff]  ;;  %v1377_v59 = vrot.slane %v765_v52, 1  ;;  %v764_v54 = vrot.slane %v762_v19, 7  ;;  %v8132_v39 = vld [vmem:[#allocation2 + $0xd0] sm:$0xff]  ;;  %1596 = vrot.lane.b32.xlu0 %v7771_v21, %s7266_s20 }
  0xb3   : > { %1792 = vst.msk [vmem:[#allocation3 + $0x330] sm:$0xff] %vm353_vm0, %v8112_v35  ;;  %v7062_v51 = vld [vmem:[#allocation7 + $0x1e0] ss:$8 sps:$4 sm:$0xff]   ;;  %v786_v61 = vshrl.u32 %v8124_v11, 16  ;;  %1793 = vst.msk [vmem:[#allocation3 + $0x358] sm:$0xff] %vm353_vm0, %v8124_v11  ;;  %v8134_v42 = vld [vmem:[#allocation2 + $0xe0] sm:$0xff]  ;;  %3477 = vmatpush1.bf16.msra.mxu0 %v8102_v44 }
  0xb4   : > { %12325 = vst [vmem:[#allocation18_spill] sm:$0xff] %v8134_v42  ;;  %v7065_v17 = vld [vmem:[#allocation7 + $0x1f4] ss:$8 sps:$4 sm:$0xff]   ;;  %v7089_v4 = vld [vmem:[#allocation7 + $0x104] ss:$8 sps:$4 sm:$0xff]   ;;  %v1380_v23 = vrot.slane %v773_v8, 1  ;;  %v8148_v5 = vsel %vm12289_vm7, %v1376_v6, %v1377_v59  ;;  %v767_v10 = vor.u32 %v765_v52, %v764_v54  ;;  %3478 = vmatprep.subr.bf16.mxu0 %v7060_v9  ;;  %1149 = vrot.lane.b32.xlu1 %v7830_v50, %s7266_s20 }
  0xb5   : > { %6670 = vmatprep.subr.bf16.mxu1 %v7089_v4  ;;  %v772_v14 = vrot.slane %v770_v0, 7  ;;  %v794_v22 = vshrl.u32 %v8132_v39, 16  ;;  %v797_v47 = vshll.u32 %v8132_v39, 16  ;;  %1794 = vst.msk [vmem:[#allocation3 + $0x380] sm:$0xff] %vm353_vm0, %v8132_v39  ;;  %v8140_v53 = vld [vmem:[#allocation2 + $0xd8] sm:$0xff]  ;;  %1796 = vst.msk [vmem:[#allocation3 + $0x3d0] sm:$0xff] %vm353_vm0, %v8134_v42  ;;  %v1379_v4 = vor.u32 %v1377_v59, %v762_v19 }
  0xb6   : > { %v1383_v12 = vrot.slane %v781_v36, 1  ;;  %1795 = vst.msk [vmem:[#allocation3 + $0x3a8] sm:$0xff] %vm353_vm0, %v8140_v53  ;;  %1531 = vst.msk [vmem:[#allocation3 + $0x328] sm:$0xff] %vm353_vm0, %v8148_v5  ;;  %v1382_v21 = vor.u32 %v1380_v23, %v770_v0  ;;  %v780_v45 = vrot.slane %v778_v7, 7  ;;  %v802_v44 = vshrl.u32 %v8140_v53, 16  ;;  %1848 = vrot.lane.b32.xlu0 %v7775_v40, %s7266_s20 }
  0xb7   : > { %2203 = vst.msk [vmem:[#allocation3 + $0x250] sm:$0xff] %vm353_vm0, %v8148_v5  ;;  %v775_v26 = vor.u32 %v773_v8, %v772_v14  ;;  %v8161_v19 = vsel %vm477_vm4, %v8064_v15, %v767_v10  ;;  %v8164_v9 = vsel %vm12289_vm7, %v1379_v4, %v1380_v23  ;;  %v805_v52 = vshll.u32 %v8140_v53, 16  ;;  %v8167_v59 = vld [vmem:[#allocation2 + $0xe8] sm:$0xff]  ;;  %v8169_v8 = vld [vmem:[#allocation2 + $0xf0] sm:$0xff]  ;;  %3479 = vmatpush1.bf16.msra.mxu0 %v7062_v51 }
  0xb8   : > { %v1385_v6 = vor.u32 %v1383_v12, %v778_v7  ;;  %v7070_v0 = vld [vmem:[#allocation7 + $0x204] ss:$8 sps:$4 sm:$0xff]   ;;  %1046 = vst.msk [vmem:[#allocation3 + $0x348] sm:$0xff] %vm353_vm0, %v8161_v19  ;;  %2066 = vst.msk [vmem:[#allocation3 + $0x270] sm:$0xff] %vm353_vm0, %v8161_v19  ;;  %v8183_v15 = vsel %vm12289_vm7, %v1382_v21, %v1383_v12  ;;  %v783_v7 = vor.u32 %v781_v36, %v780_v45  ;;  %v12326_v23 = vshll.u32 %v8124_v11, 16 }
  0xb9   : > { %1532 = vst.msk [vmem:[#allocation3 + $0x350] sm:$0xff] %vm353_vm0, %v8164_v9  ;;  %2204 = vst.msk [vmem:[#allocation3 + $0x278] sm:$0xff] %vm353_vm0, %v8164_v9  ;;  %v8180_v50 = vsel %vm477_vm4, %v764_v54, %v775_v26  ;;  %v788_v26 = vrot.slane %v786_v61, 7  ;;  %v810_v36 = vshrl.u32 %v8134_v42, 16  ;;  %v813_v54 = vshll.u32 %v8134_v42, 16  ;;  %3480 = vmatprep.subr.bf16.mxu0 %v7065_v17  ;;  %1598 = vrot.lane.b32.xlu1 %v7802_v25, %s7266_s20 }
  0xba   : > { %v1386_v10 = vrot.slane %v12326_v23, 1  ;;  %1797 = vst.msk [vmem:[#allocation3 + $0x3f8] sm:$0xff] %vm353_vm0, %v8167_v59  ;;  %1798 = vst.msk [vmem:[#allocation3 + $0x420] sm:$0xff] %vm353_vm0, %v8169_v8  ;;  %v1389_v12 = vrot.slane %v797_v47, 1  ;;  %v8204_v40 = vsel %vm477_vm4, %v772_v14, %v783_v7  ;;  %v796_v21 = vrot.slane %v794_v22, 7  ;;  %1151 = vrot.lane.b32.xlu0 %v7804_v3, %s7266_s20 }
  0xbb   : > { %1047 = vst.msk [vmem:[#allocation3 + $0x370] sm:$0xff] %vm353_vm0, %v8180_v50  ;;  %2067 = vst.msk [vmem:[#allocation3 + $0x298] sm:$0xff] %vm353_vm0, %v8180_v50  ;;  %v12327_v17 = vmov %v12326_v23  ;;  %v804_v33 = vrot.slane %v802_v44, 7  ;;  %3481 = vmatpush1.bf16.msra.mxu0 %v8104_v13 }
  0xbc   : > { %1533 = vst.msk [vmem:[#allocation3 + $0x378] sm:$0xff] %vm353_vm0, %v8183_v15  ;;  %2205 = vst.msk [vmem:[#allocation3 + $0x2a0] sm:$0xff] %vm353_vm0, %v8183_v15  ;;  %v8207_v51 = vsel %vm12289_vm7, %v1385_v6, %v1386_v10  ;;  %v1388_v4 = vor.u32 %v1386_v10, %v786_v61  ;;  %v791_v14 = vor.u32 %v12327_v17, %v788_v26  ;;  %v818_v61 = vshrl.u32 %v8167_v59, 16 }
  0xbd   : > { %1048 = vst.msk [vmem:[#allocation3 + $0x398] sm:$0xff] %vm353_vm0, %v8204_v40  ;;  %2068 = vst.msk [vmem:[#allocation3 + $0x2c0] sm:$0xff] %vm353_vm0, %v8204_v40  ;;  %v821_v6 = vshll.u32 %v8167_v59, 16  ;;  %v1391_v25 = vor.u32 %v1389_v12, %v794_v22  ;;  %v799_v23 = vor.u32 %v797_v47, %v796_v21  ;;  %v1392_v10 = vrot.slane %v805_v52, 1  ;;  %3835 = vmatprep.subr.bf16.mxu0 %v7070_v0 }
  0xbe   : > { %1534 = vst.msk [vmem:[#allocation3 + $0x3a0] sm:$0xff] %vm353_vm0, %v8207_v51  ;;  %2206 = vst.msk [vmem:[#allocation3 + $0x2c8] sm:$0xff] %vm353_vm0, %v8207_v51  ;;  %v8224_v7 = vsel %vm12289_vm7, %v1388_v4, %v1389_v12  ;;  %v8230_v42 = vsel %vm477_vm4, %v780_v45, %v791_v14  ;;  %v826_v47 = vshrl.u32 %v8169_v8, 16  ;;  %v829_v12 = vshll.u32 %v8169_v8, 16  ;;  %1850 = vrot.lane.b32.xlu1 %v7850_v43, %s7266_s20 }
  0xbf   : > { %1535 = vst.msk [vmem:[#allocation3 + $0x3c8] sm:$0xff] %vm353_vm0, %v8224_v7  ;;  %2207 = vst.msk [vmem:[#allocation3 + $0x2f0] sm:$0xff] %vm353_vm0, %v8224_v7  ;;  %v8236_v22 = vrot.slane %v821_v6, 1  ;;  %v8245_v3 = vsel %vm477_vm4, %v788_v26, %v799_v23  ;;  %v8248_v45 = vsel %vm12289_vm7, %v1391_v25, %v1392_v10  ;;  %v807_v4 = vor.u32 %v805_v52, %v804_v33 }
  0xc0   : > { %1049 = vst.msk [vmem:[#allocation3 + $0x3c0] sm:$0xff] %vm353_vm0, %v8230_v42  ;;  %2069 = vst.msk [vmem:[#allocation3 + $0x2e8] sm:$0xff] %vm353_vm0, %v8230_v42  ;;  %v1394_v17 = vor.u32 %v1392_v10, %v802_v44  ;;  %v8263_v52 = vrot.slane %v829_v12, 1  ;;  %v1395_v44 = vrot.slane %v813_v54, 1  ;;  %v812_v26 = vrot.slane %v810_v36, 7  ;;  %1600 = vrot.lane.b32.xlu0 %v7864_v34, %s7266_s20 }
  0xc1   : > { %1050 = vst.msk [vmem:[#allocation3 + $0x3e8] sm:$0xff] %vm353_vm0, %v8245_v3  ;;  %2070 = vst.msk [vmem:[#allocation3 + $0x310] sm:$0xff] %vm353_vm0, %v8245_v3  ;;  %v8257_v0 = vor.u32 %v8236_v22, %v818_v61  ;;  %v8266_v43 = vsel %vm477_vm4, %v796_v21, %v807_v4  ;;  %v820_v14 = vrot.slane %v818_v61, 7 }
  0xc2   : > { %1536 = vst.msk [vmem:[#allocation3 + $0x3f0] sm:$0xff] %vm353_vm0, %v8248_v45  ;;  %2208 = vst.msk [vmem:[#allocation3 + $0x318] sm:$0xff] %vm353_vm0, %v8248_v45  ;;  %v8275_v25 = vor.u32 %v8263_v52, %v826_v47  ;;  %v8278_v23 = vsel %vm12289_vm7, %v1394_v17, %v1395_v44  ;;  %v8280_v10 = vor.u32 %v1395_v44, %v810_v36  ;;  %1153 = vrot.lane.b32.xlu1 %v7858_v57, %s7266_s20 }
  0xc3   : > { %1051 = vst.msk [vmem:[#allocation3 + $0x410] sm:$0xff] %vm353_vm0, %v8266_v43  ;;  %2071 = vst.msk [vmem:[#allocation3 + $0x338] sm:$0xff] %vm353_vm0, %v8266_v43  ;;  %v815_v21 = vor.u32 %v813_v54, %v812_v26  ;;  %v823_v34 = vor.u32 %v821_v6, %v820_v14  ;;  %v7076_v54 = vld [vmem:[%s7447_s6 + $0x48] sm:$0xff]   ;;  %v509_v6 = vld [vmem:[#allocation2 + $0x100] sm:$0x1] }
  0xc4   : > { %1537 = vst.msk [vmem:[#allocation3 + $0x418] sm:$0xff] %vm353_vm0, %v8278_v23  ;;  %2209 = vst.msk [vmem:[#allocation3 + $0x340] sm:$0xff] %vm353_vm0, %v8278_v23  ;;  %1852 = vrot.lane.b32.xlu0 %v7871_v32, %s7266_s20 }
  0xc5   : > { %v8289_v61 = vsel %vm477_vm4, %v804_v33, %v815_v21  ;;  %v8296_v36 = vsel %vm477_vm4, %v812_v26, %v823_v34  ;;  %363 = vst.msk [vmem:[#allocation2 + $0xf8] sm:$0xff] %vm353_vm0, %v7076_v54  ;;  %v828_v33 = vrot.slane %v826_v47, 7  ;;  %v455_v26 = vld [vmem:[#allocation2 + $0x108] sm:$0x80] }
  0xc6   : > { %1052 = vst.msk [vmem:[#allocation3 + $0x438] sm:$0xff] %vm353_vm0, %v8289_v61  ;;  %2072 = vst.msk [vmem:[#allocation3 + $0x360] sm:$0xff] %vm353_vm0, %v8289_v61  ;;  %1602 = vrot.lane.b32.xlu1 %v7882_v24, %s7266_s20 }
  0xc7   : > { %1053 = vst.msk [vmem:[#allocation3 + $0x460] sm:$0xff] %vm353_vm0, %v8296_v36  ;;  %2073 = vst.msk [vmem:[#allocation3 + $0x388] sm:$0xff] %vm353_vm0, %v8296_v36  ;;  %v831_v57 = vor.u32 %v829_v12, %v828_v33 }
  0xc8   : > { %1155 = vrot.lane.b32.xlu0 %v7922_v55, %s7266_s20  ;;  %v510_v55 = vsel %vm7511_vm6, 0, %v509_v6 }
  0xc9   : > { %v8313_v32 = vsel %vm477_vm4, %v820_v14, %v831_v57  ;;  %511 = vst [vmem:[#allocation2 + $0x100] sm:$0x1] %v510_v55  ;;  %v7080_v57 = vld [vmem:[%s7447_s6 + $0x50] sm:$0xff]  }
  0xca   : > { %1854 = vrot.lane.b32.xlu1 %v7885_v46, %s7266_s20  ;;  %1054 = vst.msk [vmem:[#allocation3 + $0x488] sm:$0xff] %vm353_vm0, %v8313_v32  ;;  %2074 = vst.msk [vmem:[#allocation3 + $0x3b0] sm:$0xff] %vm353_vm0, %v8313_v32 }
  0xcb   : > { %364 = vst.msk [vmem:[#allocation2 + $0x110] sm:$0xff] %vm353_vm0, %v7080_v57 }
  0xcc   : > { %1604 = vrot.lane.b32.xlu0 %v7902_v18, %s7266_s20  ;;  %v8321_v24 = vld [vmem:[#allocation2 + $0xf8] sm:$0xff] }
  0xcd   : > { %v834_v46 = vshrl.u32 %v8321_v24, 16  ;;  %1799 = vst.msk [vmem:[#allocation3 + $0x448] sm:$0xff] %vm353_vm0, %v8321_v24  ;;  %v837_v47 = vshll.u32 %v8321_v24, 16 }
  0xce   : > { %1157 = vrot.lane.b32.xlu1 %v7957_v29, %s7266_s20 }
  0xcf   : > { %v836_v18 = vrot.slane %v834_v46, 7  ;;  %v8333_v4 = vrot.slane %v837_v47, 1 }
  0xd0   : > { %1856 = vrot.lane.b32.xlu0 %v7913_v27, %s7266_s20  ;;  %v8349_v27 = vld [vmem:[#allocation2 + $0x100] sm:$0xff] }
  0xd1   : > { %v839_v12 = vor.u32 %v837_v47, %v836_v18  ;;  %v8341_v44 = vor.u32 %v8333_v4, %v834_v46  ;;  %v842_v29 = vshrl.u32 %v8349_v27, 16  ;;  %1800 = vst.msk [vmem:[#allocation3 + $0x470] sm:$0xff] %vm353_vm0, %v8349_v27  ;;  %v845_v14 = vshll.u32 %v8349_v27, 16  ;;  %v512_v47 = vld [vmem:[#allocation2 + $0x118] sm:$0x1] }
  0xd2   : > { %1606 = vrot.lane.b32.xlu1 %v7926_v38, %s7266_s20  ;;  %v456_v38 = vsel %vm7470_vm3, 0, %v455_v26 }
  0xd3   : > { %v8338_v17 = vsel %vm477_vm4, %v828_v33, %v839_v12  ;;  %457 = vst [vmem:[#allocation2 + $0x108] sm:$0x80] %v456_v38  ;;  %v8361_v34 = vrot.slane %v845_v14, 1 }
  0xd4   : > { %1159 = vrot.lane.b32.xlu0 %v7983_v62, %s7266_s20  ;;  %1055 = vst.msk [vmem:[#allocation3 + $0x4b0] sm:$0xff] %vm353_vm0, %v8338_v17  ;;  %2075 = vst.msk [vmem:[#allocation3 + $0x3d8] sm:$0xff] %vm353_vm0, %v8338_v17  ;;  %v844_v62 = vrot.slane %v842_v29, 7 }
  0xd5   : > { %v8369_v33 = vor.u32 %v8361_v34, %v842_v29 }
  0xd6   : > { %1858 = vrot.lane.b32.xlu1 %v7947_v49, %s7266_s20  ;;  %v847_v21 = vor.u32 %v845_v14, %v844_v62 }
  0xd8   : > { %1608 = vrot.lane.b32.xlu0 %v7967_v30, %s7266_s20  ;;  %v8366_v54 = vsel %vm477_vm4, %v836_v18, %v847_v21 }
  0xd9   : > { %1056 = vst.msk [vmem:[#allocation3 + $0x4d8] sm:$0xff] %vm353_vm0, %v8366_v54  ;;  %2076 = vst.msk [vmem:[#allocation3 + $0x400] sm:$0xff] %vm353_vm0, %v8366_v54 }
  0xda   : > { %1161 = vrot.lane.b32.xlu1 %v8025_v58, %s7266_s20  ;;  %v8378_v49 = vld [vmem:[#allocation2 + $0x108] sm:$0xff] }
  0xdb   : > { %v850_v30 = vshrl.u32 %v8378_v49, 16  ;;  %1801 = vst.msk [vmem:[#allocation3 + $0x498] sm:$0xff] %vm353_vm0, %v8378_v49 }
  0xdc   : > { %1860 = vrot.lane.b32.xlu0 %v7986_v37, %s7266_s20  ;;  %v853_v37 = vshll.u32 %v8378_v49, 16 }
  0xdd   : > { %v852_v58 = vrot.slane %v850_v30, 7 }
  0xde   : > { %1610 = vrot.lane.b32.xlu1 %v8003_v48, %s7266_s20  ;;  %v1134_v6 = vpop.permute.xlu1 %1133  ;;  %v8389_v46 = vrot.slane %v853_v37, 1 }
  0xdf   : > { %v855_v55 = vor.u32 %v853_v37, %v852_v58  ;;  %1272 = vst.msk [vmem:[#allocation3 + $0xf0] sm:$0xff] %vm1265_vm8, %v1134_v6  ;;  %2123 = vst.msk [vmem:[#allocation3 + $0x18] sm:$0xff] %vm1265_vm8, %v1134_v6 }
  0xe0   : > { %1163 = vrot.lane.b32.xlu0 %v8081_v56, %s7266_s20  ;;  %v8399_v18 = vor.u32 %v8389_v46, %v850_v30  ;;  %v8407_v56 = vld [vmem:[#allocation2 + $0x110] sm:$0xff]  ;;  %v458_v30 = vld [vmem:[#allocation2 + $0x120] sm:$0x80] }
  0xe1   : > { %v8396_v48 = vsel %vm477_vm4, %v844_v62, %v855_v55  ;;  %v858_v12 = vshrl.u32 %v8407_v56, 16  ;;  %1802 = vst.msk [vmem:[#allocation3 + $0x4c0] sm:$0xff] %vm353_vm0, %v8407_v56  ;;  %v861_v38 = vshll.u32 %v8407_v56, 16 }
  0xe2   : > { %1862 = vrot.lane.b32.xlu1 %v8018_v41, %s7266_s20  ;;  %1057 = vst.msk [vmem:[#allocation3 + $0x500] sm:$0xff] %vm353_vm0, %v8396_v48  ;;  %2077 = vst.msk [vmem:[#allocation3 + $0x428] sm:$0xff] %vm353_vm0, %v8396_v48  ;;  %v513_v41 = vsel %vm7511_vm6, 0, %v512_v47 }
  0xe3   : > { %514 = vst [vmem:[#allocation2 + $0x118] sm:$0x1] %v513_v41  ;;  %v8420_v14 = vrot.slane %v861_v38, 1 }
  0xe4   : > { %1612 = vrot.lane.b32.xlu0 %v8045_v2, %s7266_s20  ;;  %v1581_v26 = vpop.permute.xlu0 %1580  ;;  %v860_v2 = vrot.slane %v858_v12, 7 }
  0xe5   : > { %1724 = vst.msk [vmem:[#allocation3 + $0x8] sm:$0xff] %vm1265_vm8, %v1581_v26  ;;  %v8429_v57 = vor.u32 %v8420_v14, %v858_v12 }
  0xe6   : > { %1165 = vrot.lane.b32.xlu1 %v8106_v63, %s7266_s20  ;;  %v2240_v29 = vld [vmem:[#allocation3 + $0x18] sm:$0xff]  ;;  %v863_v62 = vor.u32 %v861_v38, %v860_v2 }
  0xe7   : > { %3482 = vmatprep.mubr.bf16.mxu0 %v2240_v29 }
  0xe8   : > { %1864 = vrot.lane.b32.xlu0 %v8073_v16, %s7266_s20  ;;  %v1122_v21 = vpop.permute.xlu0 %1121  ;;  %v8426_v63 = vsel %vm477_vm4, %v852_v58, %v863_v62  ;;  %v7090_v62 = vld [vmem:[#allocation7 + $0x100] ss:$8 sps:$4 sm:$0xff]  }
  0xe9   : > { %1266 = vst.msk [vmem:[#allocation3] sm:$0xff] %vm1265_vm8, %v1122_v21 }
  0xea   : > { %1614 = vrot.lane.b32.xlu1 %v8098_v20, %s7266_s20  ;;  %1058 = vst.msk [vmem:[#allocation3 + $0x528] sm:$0xff] %vm353_vm0, %v8426_v63  ;;  %2078 = vst.msk [vmem:[#allocation3 + $0x450] sm:$0xff] %vm353_vm0, %v8426_v63  ;;  %v8437_v16 = vld [vmem:[#allocation2 + $0x118] sm:$0xff]  ;;  %v459_v20 = vsel %vm7470_vm3, 0, %v458_v30  ;;  %v7068_v30 = vld [vmem:[#allocation7 + $0x200] ss:$8 sps:$4 sm:$0xff]  }
  0xeb   : > { %v866_v58 = vshrl.u32 %v8437_v16, 16  ;;  %1803 = vst.msk [vmem:[#allocation3 + $0x4e8] sm:$0xff] %vm353_vm0, %v8437_v16  ;;  %460 = vst [vmem:[#allocation2 + $0x120] sm:$0x80] %v459_v20  ;;  %v869_v6 = vshll.u32 %v8437_v16, 16 }
  0xec   : > { %1167 = vrot.lane.b32.xlu0 %v8112_v35, %s7266_s20  ;;  %v2238_v37 = vld [vmem:[#allocation3 + $0x8] sm:$0xff]  ;;  %v1833_v55 = vpop.permute.xlu1 %1832  ;;  %v7075_v20 = vld [vmem:[#allocation7 + $0x214] ss:$8 sps:$4 sm:$0xff]  }
  0xed   : > { %3097 = vmatprep.mubr.bf16.mxu1 %v2238_v37  ;;  %v868_v35 = vrot.slane %v866_v58, 7  ;;  %1976 = vst.msk [vmem:[#allocation3 + $0x10] sm:$0xff] %vm1265_vm8, %v1833_v55  ;;  %v8450_v41 = vrot.slane %v869_v6, 1 }
  0xee   : > { %1866 = vrot.lane.b32.xlu1 %v8148_v5, %s7266_s20 }
  0xef   : > { %v871_v47 = vor.u32 %v869_v6, %v868_v35  ;;  %v1583_v12 = vpop.permute.xlu0 %1582  ;;  %v8459_v38 = vor.u32 %v8450_v41, %v866_v58 }
  0xf0   : > { %1616 = vrot.lane.b32.xlu0 %v8161_v19, %s7266_s20  ;;  %v2237_v26 = vld [vmem:[#allocation3] sm:$0xff]  ;;  %1725 = vst.msk [vmem:[#allocation3 + $0x30] sm:$0xff] %vm1265_vm8, %v1583_v12  ;;  %v7081_v19 = vld [vmem:[%s7447_s6 + $0x58] sm:$0xff]  }
  0xf1   : > { %3098 = vmatmul.mubr.bf16.vlgmr.msra.gmra.mrb[0].mxu1 %v2237_v26  ;;  %v8456_v5 = vsel %vm477_vm4, %v860_v2, %v871_v47  ;;  %v1124_v29 = vpop.permute.xlu1 %1123  ;;  %v7091_v2 = vld [vmem:[#allocation7 + $0x114] ss:$8 sps:$4 sm:$0xff]   ;;  %365 = vst.msk [vmem:[#allocation2 + $0x128] sm:$0xff] %vm353_vm0, %v7081_v19 }
  0xf2   : > { %1169 = vrot.lane.b32.xlu1 %v8124_v11, %s7266_s20  ;;  %6686 = vmatpush1.bf16.msra.mxu1 %v7090_v62  ;;  %1059 = vst.msk [vmem:[#allocation3 + $0x550] sm:$0xff] %vm353_vm0, %v8456_v5  ;;  %2079 = vst.msk [vmem:[#allocation3 + $0x478] sm:$0xff] %vm353_vm0, %v8456_v5  ;;  %v8468_v11 = vld [vmem:[#allocation2 + $0x120] sm:$0xff] }
  0xf3   : > { %1267 = vst.msk [vmem:[#allocation3 + $0x28] sm:$0xff] %vm1265_vm8, %v1124_v29  ;;  %6671 = vmatprep.subr.bf16.mxu1 %v7091_v2  ;;  %v874_v21 = vshrl.u32 %v8468_v11, 16  ;;  %v877_v37 = vshll.u32 %v8468_v11, 16  ;;  %v7073_v29 = vld [vmem:[#allocation7 + $0x210] ss:$8 sps:$4 sm:$0xff]  }
  0xf4   : > { %1868 = vrot.lane.b32.xlu0 %v8164_v9, %s7266_s20  ;;  %1804 = vst.msk [vmem:[#allocation3 + $0x510] sm:$0xff] %vm353_vm0, %v8468_v11  ;;  %v1136_v9 = vpop.permute.xlu0 %1135  ;;  %v2239_v55 = vld [vmem:[#allocation3 + $0x10] sm:$0xff]  ;;  %v515_v2 = vld [vmem:[#allocation2 + $0x130] sm:$0x1] }
  0xf5   : > { %1273 = vst.msk [vmem:[#allocation3 + $0x118] sm:$0xff] %vm1265_vm8, %v1136_v9  ;;  %2124 = vst.msk [vmem:[#allocation3 + $0x40] sm:$0xff] %vm1265_vm8, %v1136_v9  ;;  %v8479_v58 = vrot.slane %v874_v21, 7  ;;  %v1835_v6 = vpop.permute.xlu1 %1834  ;;  %3483 = vmatmul.mubr.bf16.vlgmr.msra.gmra.mrb[0].mxu0 %v2239_v55  ;;  %v8487_v12 = vrot.slane %v877_v37, 1  ;;  %v7077_v55 = vld [vmem:[#allocation7 + $0x220] ss:$8 sps:$4 sm:$0xff]  }
  0xf6   : > { %1618 = vrot.lane.b32.xlu1 %v8180_v50, %s7266_s20  ;;  %6687 = vmatpush1.bf16.msra.mxu1 %v7720_v60  ;;  %1977 = vst.msk [vmem:[#allocation3 + $0x38] sm:$0xff] %vm1265_vm8, %v1835_v6  ;;  %v7092_v50 = vld [vmem:[#allocation7 + $0x124] ss:$8 sps:$4 sm:$0xff]  }
  0xf7   : > { %6672 = vmatprep.subr.bf16.mxu1 %v7092_v50  ;;  %v879_v47 = vor.u32 %v877_v37, %v8479_v58  ;;  %3836 = vmatpush1.bf16.msra.mxu0 %v7068_v30  ;;  %v2243_v19 = vld [vmem:[#allocation3 + $0x30] sm:$0xff]  ;;  %v7079_v60 = vld [vmem:[#allocation7 + $0x224] ss:$8 sps:$4 sm:$0xff]   ;;  %v8496_v62 = vor.u32 %v8487_v12, %v874_v21  ;;  %v7093_v37 = vld [vmem:[#allocation7 + $0x120] ss:$8 sps:$4 sm:$0xff]  }
  0xf8   : > { %1171 = vrot.lane.b32.xlu0 %v8132_v39, %s7266_s20  ;;  %v1585_v26 = vpop.permute.xlu0 %1584  ;;  %3107 = vmatprep.mubr.bf16.mxu1 %v2243_v19  ;;  %v7094_v21 = vld [vmem:[#allocation7 + $0x134] ss:$8 sps:$4 sm:$0xff]  }
  0xf9   : > { %1726 = vst.msk [vmem:[#allocation3 + $0x58] sm:$0xff] %vm1265_vm8, %v1585_v26  ;;  %3837 = vmatprep.subr.bf16.mxu0 %v7075_v20  ;;  %v8493_v39 = vsel %vm477_vm4, %v868_v35, %v879_v47  ;;  %v1126_v9 = vpop.permute.xlu1 %1125  ;;  %v516_v35 = vsel %vm7511_vm6, 0, %v515_v2 }
  0xfa   : > { %1870 = vrot.lane.b32.xlu1 %v8183_v15, %s7266_s20  ;;  %v2242_v30 = vld [vmem:[#allocation3 + $0x28] sm:$0xff]  ;;  %6688 = vmatpush1.bf16.msra.mxu1 %v7093_v37  ;;  %1060 = vst.msk [vmem:[#allocation3 + $0x578] sm:$0xff] %vm353_vm0, %v8493_v39  ;;  %2080 = vst.msk [vmem:[#allocation3 + $0x4a0] sm:$0xff] %vm353_vm0, %v8493_v39  ;;  %v8504_v15 = vld [vmem:[#allocation2 + $0x128] sm:$0xff] }
  0xfb   : > { %1268 = vst.msk [vmem:[#allocation3 + $0x50] sm:$0xff] %vm1265_vm8, %v1126_v9  ;;  %3108 = vmatmul.mubr.bf16.gmra.mrb[4].mxu1 %v2242_v30  ;;  %6673 = vmatprep.subr.bf16.mxu1 %v7094_v21  ;;  %517 = vst [vmem:[#allocation2 + $0x130] sm:$0x1] %v516_v35  ;;  %v885_v47 = vshll.u32 %v8504_v15, 16  ;;  %v461_v30 = vld [vmem:[#allocation2 + $0x138] sm:$0x80] }
  0xfc   : > { %1620 = vrot.lane.b32.xlu0 %v8204_v40, %s7266_s20  ;;  %v882_v40 = vshrl.u32 %v8504_v15, 16  ;;  %1805 = vst.msk [vmem:[#allocation3 + $0x538] sm:$0xff] %vm353_vm0, %v8504_v15  ;;  %v1138_v20 = vpop.permute.xlu0 %1137  ;;  %v2245_v6 = vld [vmem:[#allocation3 + $0x40] sm:$0xff]  ;;  %3838 = vmatpush1.bf16.msra.mxu0 %v7073_v29  ;;  %v12328_v21 = vld [vmem:[#allocation18_spill] sm:$0xff] }
  0xfd   : > { %1274 = vst.msk [vmem:[#allocation3 + $0x140] sm:$0xff] %vm1265_vm8, %v1138_v20  ;;  %2125 = vst.msk [vmem:[#allocation3 + $0x68] sm:$0xff] %vm1265_vm8, %v1138_v20  ;;  %3492 = vmatprep.mubr.bf16.mxu0 %v2245_v6  ;;  %3839 = vmatprep.subr.bf16.mxu0 %v7079_v60  ;;  %v1837_v26 = vpop.permute.xlu1 %1836  ;;  %v2244_v19 = vld [vmem:[#allocation3 + $0x38] sm:$0xff]  ;;  %v8524_v2 = vrot.slane %v885_v47, 1  ;;  %v7096_v20 = vld [vmem:[#allocation7 + $0x140] ss:$8 sps:$4 sm:$0xff]  }
  0xfe   : > { %1173 = vrot.lane.b32.xlu1 %v8140_v53, %s7266_s20  ;;  %v8516_v50 = vrot.slane %v882_v40, 7  ;;  %6689 = vmatpush1.bf16.msra.mxu1 %v7789_v28  ;;  %1978 = vst.msk [vmem:[#allocation3 + $0x60] sm:$0xff] %vm1265_vm8, %v1837_v26  ;;  %v7095_v53 = vld [vmem:[#allocation7 + $0x144] ss:$8 sps:$4 sm:$0xff]  }
  0xff   : > { %3493 = vmatmul.mubr.bf16.gmra.mrb[4].mxu0 %v2244_v19  ;;  %6674 = vmatprep.subr.bf16.mxu1 %v7095_v53 }
 0x100   : > { %1872 = vrot.lane.b32.xlu0 %v8207_v51, %s7266_s20  ;;  %v887_v29 = vor.u32 %v885_v47, %v8516_v50  ;;  %v1587_v60 = vpop.permute.xlu0 %1586  ;;  %v2248_v9 = vld [vmem:[#allocation3 + $0x58] sm:$0xff]  ;;  %3840 = vmatpush1.bf16.msra.mxu0 %v7077_v55  ;;  %v8534_v51 = vor.u32 %v8524_v2, %v882_v40 }
 0x101   : > { %1727 = vst.msk [vmem:[#allocation3 + $0x80] sm:$0xff] %vm1265_vm8, %v1587_v60  ;;  %3113 = vmatprep.mubr.bf16.mxu1 %v2248_v9  ;;  %v7097_v40 = vld [vmem:[#allocation7 + $0x154] ss:$8 sps:$4 sm:$0xff]   ;;  %v12329_v60 = vld [vmem:[#allocation13_spill] sm:$0xff]  ;;  %v7082_v9 = vld [vmem:[#allocation7 + $0x230] ss:$8 sps:$4 sm:$0xff]  }
 0x102   : > { %1622 = vrot.lane.b32.xlu1 %v8230_v42, %s7266_s20  ;;  %v8531_v28 = vsel %vm477_vm4, %v8479_v58, %v887_v29  ;;  %v1128_v37 = vpop.permute.xlu1 %1127  ;;  %v2247_v35 = vld [vmem:[#allocation3 + $0x50] sm:$0xff]  ;;  %6690 = vmatpush1.bf16.msra.mxu1 %v7096_v20  ;;  %v8542_v42 = vld [vmem:[#allocation2 + $0x130] sm:$0xff]  ;;  %v462_v58 = vsel %vm7470_vm3, 0, %v461_v30 }
 0x103   : > { %1061 = vst.msk [vmem:[#allocation3 + $0x5a0] sm:$0xff] %vm353_vm0, %v8531_v28  ;;  %2081 = vst.msk [vmem:[#allocation3 + $0x4c8] sm:$0xff] %vm353_vm0, %v8531_v28  ;;  %3114 = vmatmul.mubr.bf16.gmra.mrb[8].mxu1 %v2247_v35  ;;  %6675 = vmatprep.subr.bf16.mxu1 %v7097_v40  ;;  %v890_v6 = vshrl.u32 %v8542_v42, 16  ;;  %v893_v19 = vshll.u32 %v8542_v42, 16  ;;  %v7084_v30 = vld [vmem:[#allocation7 + $0x234] ss:$8 sps:$4 sm:$0xff]  }
 0x104   : > { %1175 = vrot.lane.b32.xlu0 %v12328_v21, %s7266_s20  ;;  %1269 = vst.msk [vmem:[#allocation3 + $0x78] sm:$0xff] %vm1265_vm8, %v1128_v37  ;;  %463 = vst [vmem:[#allocation2 + $0x138] sm:$0x80] %v462_v58  ;;  %v1140_v55 = vpop.permute.xlu0 %1139  ;;  %v2250_v47 = vld [vmem:[#allocation3 + $0x68] sm:$0xff]  ;;  %3841 = vmatprep.subr.bf16.mxu0 %v7084_v30  ;;  %v7085_v40 = vld [vmem:[%s7447_s6 + $0x60] sm:$0xff]  }
 0x105   : > { %1806 = vst.msk [vmem:[#allocation3 + $0x560] sm:$0xff] %vm353_vm0, %v8542_v42  ;;  %3498 = vmatprep.mubr.bf16.mxu0 %v2250_v47  ;;  %v8554_v26 = vrot.slane %v890_v6, 7  ;;  %v2249_v29 = vld [vmem:[#allocation3 + $0x60] sm:$0xff]  ;;  %v8562_v35 = vrot.slane %v893_v19, 1  ;;  %3842 = vmatpush1.bf16.msra.mxu0 %v7082_v9  ;;  %366 = vst.msk [vmem:[#allocation2 + $0x140] sm:$0xff] %vm353_vm0, %v7085_v40  ;;  %v12330_v30 = vld [vmem:[#allocation14_spill] sm:$0xff] }
 0x106   : > { %1874 = vrot.lane.b32.xlu1 %v8224_v7, %s7266_s20  ;;  %1275 = vst.msk [vmem:[#allocation3 + $0x168] sm:$0xff] %vm1265_vm8, %v1140_v55  ;;  %2126 = vst.msk [vmem:[#allocation3 + $0x90] sm:$0xff] %vm1265_vm8, %v1140_v55  ;;  %v1839_v53 = vpop.permute.xlu1 %1838  ;;  %6691 = vmatpush1.bf16.msra.mxu1 %v12329_v60  ;;  %v7098_v7 = vld [vmem:[#allocation7 + $0x164] ss:$8 sps:$4 sm:$0xff]  }
 0x107   : > { %1979 = vst.msk [vmem:[#allocation3 + $0x88] sm:$0xff] %vm1265_vm8, %v1839_v53  ;;  %3499 = vmatmul.mubr.bf16.gmra.mrb[8].mxu0 %v2249_v29  ;;  %6676 = vmatprep.subr.bf16.mxu1 %v7098_v7  ;;  %v895_v37 = vor.u32 %v893_v19, %v8554_v26  ;;  %v8572_v58 = vor.u32 %v8562_v35, %v890_v6  ;;  %v7099_v19 = vld [vmem:[#allocation7 + $0x160] ss:$8 sps:$4 sm:$0xff]   ;;  %v7100_v53 = vld [vmem:[#allocation7 + $0x174] ss:$8 sps:$4 sm:$0xff]  }
 0x108   : > { %1624 = vrot.lane.b32.xlu0 %v8245_v3, %s7266_s20  ;;  %v1589_v21 = vpop.permute.xlu0 %1588  ;;  %v2253_v20 = vld [vmem:[#allocation3 + $0x80] sm:$0xff] }
 0x109   : > { %1728 = vst.msk [vmem:[#allocation3 + $0xa8] sm:$0xff] %vm1265_vm8, %v1589_v21  ;;  %3119 = vmatprep.mubr.bf16.mxu1 %v2253_v20  ;;  %v8569_v3 = vsel %vm477_vm4, %v8516_v50, %v895_v37  ;;  %v7101_v21 = vld [vmem:[#allocation7 + $0x184] ss:$8 sps:$4 sm:$0xff]  }
 0x10a   : > { %1177 = vrot.lane.b32.xlu1 %v8167_v59, %s7266_s20  ;;  %v1130_v55 = vpop.permute.xlu1 %1129  ;;  %6692 = vmatpush1.bf16.msra.mxu1 %v7099_v19  ;;  %1062 = vst.msk [vmem:[#allocation3 + $0x5c8] sm:$0xff] %vm353_vm0, %v8569_v3  ;;  %2082 = vst.msk [vmem:[#allocation3 + $0x4f0] sm:$0xff] %vm353_vm0, %v8569_v3 }
 0x10b   : > { %v2252_v47 = vld [vmem:[#allocation3 + $0x78] sm:$0xff]  ;;  %v8581_v59 = vld [vmem:[#allocation2 + $0x138] sm:$0xff]  ;;  %1270 = vst.msk [vmem:[#allocation3 + $0xa0] sm:$0xff] %vm1265_vm8, %v1130_v55  ;;  %6677 = vmatprep.subr.bf16.mxu1 %v7100_v53 }
 0x10c   : > { %1876 = vrot.lane.b32.xlu0 %v8248_v45, %s7266_s20  ;;  %3120 = vmatmul.mubr.bf16.gmra.mrb[12].mxu1 %v2252_v47  ;;  %v898_v50 = vshrl.u32 %v8581_v59, 16  ;;  %1807 = vst.msk [vmem:[#allocation3 + $0x588] sm:$0xff] %vm353_vm0, %v8581_v59  ;;  %v1142_v45 = vpop.permute.xlu0 %1141  ;;  %v901_v60 = vshll.u32 %v8581_v59, 16  ;;  %v518_v47 = vld [vmem:[#allocation2 + $0x148] sm:$0x1] }
 0x10d   : > { %v2255_v6 = vld [vmem:[#allocation3 + $0x90] sm:$0xff]  ;;  %1276 = vst.msk [vmem:[#allocation3 + $0x190] sm:$0xff] %vm1265_vm8, %v1142_v45  ;;  %2127 = vst.msk [vmem:[#allocation3 + $0xb8] sm:$0xff] %vm1265_vm8, %v1142_v45 }
 0x10e   : > { %1626 = vrot.lane.b32.xlu1 %v8266_v43, %s7266_s20  ;;  %3504 = vmatprep.mubr.bf16.mxu0 %v2255_v6  ;;  %v900_v29 = vrot.slane %v898_v50, 7  ;;  %v1841_v7 = vpop.permute.xlu1 %1840  ;;  %v2254_v9 = vld [vmem:[#allocation3 + $0x88] sm:$0xff]  ;;  %v8597_v37 = vrot.slane %v901_v60, 1 }
 0x10f   : > { %6693 = vmatpush1.bf16.msra.mxu1 %v12330_v30  ;;  %1980 = vst.msk [vmem:[#allocation3 + $0xb0] sm:$0xff] %vm1265_vm8, %v1841_v7  ;;  %3505 = vmatmul.mubr.bf16.gmra.mrb[12].mxu0 %v2254_v9  ;;  %v7102_v6 = vld [vmem:[#allocation7 + $0x180] ss:$8 sps:$4 sm:$0xff]  }
 0x110   : > { %1179 = vrot.lane.b32.xlu0 %v8169_v8, %s7266_s20  ;;  %v903_v43 = vor.u32 %v901_v60, %v900_v29  ;;  %6678 = vmatprep.subr.bf16.mxu1 %v7101_v21  ;;  %v1591_v20 = vpop.permute.xlu0 %1590  ;;  %v2258_v40 = vld [vmem:[#allocation3 + $0xa8] sm:$0xff]  ;;  %v8607_v55 = vor.u32 %v8597_v37, %v898_v50  ;;  %v12331_v21 = vld [vmem:[#allocation15_spill] sm:$0xff] }
 0x111   : > { %1729 = vst.msk [vmem:[#allocation3 + $0xd0] sm:$0xff] %vm1265_vm8, %v1591_v20  ;;  %3129 = vmatprep.mubr.bf16.mxu1 %v2258_v40  ;;  %v7104_v40 = vld [vmem:[#allocation7 + $0x1a4] ss:$8 sps:$4 sm:$0xff]  }
 0x112   : > { %1878 = vrot.lane.b32.xlu1 %v8278_v23, %s7266_s20  ;;  %v8604_v8 = vsel %vm477_vm4, %v8554_v26, %v903_v43  ;;  %v1132_v19 = vpop.permute.xlu1 %1131  ;;  %v2257_v45 = vld [vmem:[#allocation3 + $0xa0] sm:$0xff]  ;;  %v8615_v23 = vld [vmem:[#allocation2 + $0x140] sm:$0xff]  ;;  %v519_v26 = vsel %vm7511_vm6, 0, %v518_v47 }
 0x113   : > { %1063 = vst.msk [vmem:[#allocation3 + $0x5f0] sm:$0xff] %vm353_vm0, %v8604_v8  ;;  %2083 = vst.msk [vmem:[#allocation3 + $0x518] sm:$0xff] %vm353_vm0, %v8604_v8  ;;  %6694 = vmatpush1.bf16.msra.mxu1 %v7102_v6  ;;  %v906_v50 = vshrl.u32 %v8615_v23, 16  ;;  %v909_v9 = vshll.u32 %v8615_v23, 16 }
 0x114   : > { %1628 = vrot.lane.b32.xlu0 %v8289_v61, %s7266_s20  ;;  %1271 = vst.msk [vmem:[#allocation3 + $0xc8] sm:$0xff] %vm1265_vm8, %v1132_v19  ;;  %3130 = vmatmul.mubr.bf16.gmra.mrb[16].mxu1 %v2257_v45  ;;  %520 = vst [vmem:[#allocation2 + $0x148] sm:$0x1] %v519_v26  ;;  %v7103_v61 = vld [vmem:[#allocation7 + $0x194] ss:$8 sps:$4 sm:$0xff]   ;;  %v1144_v53 = vpop.permute.xlu0 %1143 }
 0x115   : > { %1808 = vst.msk [vmem:[#allocation3 + $0x5b0] sm:$0xff] %vm353_vm0, %v8615_v23  ;;  %6679 = vmatprep.subr.bf16.mxu1 %v7103_v61  ;;  %v2260_v60 = vld [vmem:[#allocation3 + $0xb8] sm:$0xff]  ;;  %v908_v7 = vrot.slane %v906_v50, 7  ;;  %v464_v26 = vld [vmem:[#allocation2 + $0x150] sm:$0x80] }
 0x116   : > { %1630 = vrot.lane.b32.xlu1 %v8296_v36, %s7266_s20  ;;  %1277 = vst.msk [vmem:[#allocation3 + $0x1b8] sm:$0xff] %vm1265_vm8, %v1144_v53  ;;  %2128 = vst.msk [vmem:[#allocation3 + $0xe0] sm:$0xff] %vm1265_vm8, %v1144_v53  ;;  %3514 = vmatprep.mubr.bf16.mxu0 %v2260_v60  ;;  %v1843_v30 = vpop.permute.xlu1 %1842  ;;  %v2259_v43 = vld [vmem:[#allocation3 + $0xb0] sm:$0xff]  ;;  %v8632_v36 = vrot.slane %v909_v9, 1  ;;  %v7105_v53 = vld [vmem:[#allocation7 + $0x1a0] ss:$8 sps:$4 sm:$0xff]  }
 0x117   : > { %6695 = vmatpush1.bf16.msra.mxu1 %v12331_v21  ;;  %1981 = vst.msk [vmem:[#allocation3 + $0xd8] sm:$0xff] %vm1265_vm8, %v1843_v30  ;;  %3515 = vmatmul.mubr.bf16.gmra.mrb[16].mxu0 %v2259_v43  ;;  %v911_v20 = vor.u32 %v909_v9, %v908_v7 }
 0x118   : > { %1632 = vrot.lane.b32.xlu0 %v8313_v32, %s7266_s20  ;;  %6680 = vmatprep.subr.bf16.mxu1 %v7104_v40  ;;  %v1593_v47 = vpop.permute.xlu0 %1592  ;;  %v2263_v19 = vld [vmem:[#allocation3 + $0xd0] sm:$0xff]  ;;  %v8641_v45 = vor.u32 %v8632_v36, %v906_v50  ;;  %v12332_v40 = vld [vmem:[#allocation16_spill] sm:$0xff] }
 0x119   : > { %1730 = vst.msk [vmem:[#allocation3 + $0xf8] sm:$0xff] %vm1265_vm8, %v1593_v47  ;;  %3135 = vmatprep.mubr.bf16.mxu1 %v2263_v19  ;;  %v8638_v32 = vsel %vm477_vm4, %v900_v29, %v911_v20  ;;  %v465_v29 = vsel %vm7470_vm3, 0, %v464_v26  ;;  %v7106_v50 = vld [vmem:[#allocation7 + $0x1b4] ss:$8 sps:$4 sm:$0xff]  }
 0x11a   : > { %1634 = vrot.lane.b32.xlu1 %v8338_v17, %s7266_s20  ;;  %v1146_v6 = vpop.permute.xlu1 %1145  ;;  %1064 = vst.msk [vmem:[#allocation3 + $0x618] sm:$0xff] %vm353_vm0, %v8638_v32  ;;  %2084 = vst.msk [vmem:[#allocation3 + $0x540] sm:$0xff] %vm353_vm0, %v8638_v32 }
 0x11b   : > { %v2262_v61 = vld [vmem:[#allocation3 + $0xc8] sm:$0xff]  ;;  %v8649_v17 = vld [vmem:[#allocation2 + $0x148] sm:$0xff]  ;;  %6696 = vmatpush1.bf16.msra.mxu1 %v7105_v53  ;;  %1278 = vst.msk [vmem:[#allocation3 + $0x1e0] sm:$0xff] %vm1265_vm8, %v1146_v6  ;;  %2129 = vst.msk [vmem:[#allocation3 + $0x108] sm:$0xff] %vm1265_vm8, %v1146_v6 }
 0x11c   : > { %1636 = vrot.lane.b32.xlu0 %v8366_v54, %s7266_s20  ;;  %3136 = vmatmul.mubr.bf16.gmra.mrb[20].mxu1 %v2262_v61  ;;  %v914_v54 = vshrl.u32 %v8649_v17, 16  ;;  %1809 = vst.msk [vmem:[#allocation3 + $0x5d8] sm:$0xff] %vm353_vm0, %v8649_v17  ;;  %466 = vst [vmem:[#allocation2 + $0x150] sm:$0x80] %v465_v29  ;;  %v1845_v9 = vpop.permute.xlu0 %1844  ;;  %v917_v43 = vshll.u32 %v8649_v17, 16  ;;  %v7086_v29 = vld [vmem:[%s7447_s6 + $0x68] sm:$0xff]  }
 0x11d   : > { %6681 = vmatprep.subr.bf16.mxu1 %v7106_v50  ;;  %v2265_v60 = vld [vmem:[#allocation3 + $0xe0] sm:$0xff]  ;;  %1982 = vst.msk [vmem:[#allocation3 + $0x100] sm:$0xff] %vm1265_vm8, %v1845_v9  ;;  %v2267_v50 = vld [vmem:[#allocation3 + $0xf0] sm:$0xff] }
 0x11e   : > { %1638 = vrot.lane.b32.xlu1 %v8396_v48, %s7266_s20  ;;  %3520 = vmatprep.mubr.bf16.mxu0 %v2265_v60  ;;  %v916_v30 = vrot.slane %v914_v54, 7  ;;  %v2264_v21 = vld [vmem:[#allocation3 + $0xd8] sm:$0xff]  ;;  %v1595_v20 = vpop.permute.xlu1 %1594  ;;  %v8666_v19 = vrot.slane %v917_v43, 1  ;;  %v7107_v48 = vld [vmem:[#allocation7 + $0x1c4] ss:$8 sps:$4 sm:$0xff]   ;;  %367 = vst.msk [vmem:[#allocation2 + $0x158] sm:$0xff] %vm353_vm0, %v7086_v29 }
 0x11f   : > { %6697 = vmatpush1.bf16.msra.mxu1 %v12332_v40  ;;  %3521 = vmatmul.mubr.bf16.gmra.mrb[20].mxu0 %v2264_v21  ;;  %1731 = vst.msk [vmem:[#allocation3 + $0x120] sm:$0xff] %vm1265_vm8, %v1595_v20 }
 0x120   : > { %1640 = vrot.lane.b32.xlu0 %v8426_v63, %s7266_s20  ;;  %v919_v47 = vor.u32 %v917_v43, %v916_v30  ;;  %6682 = vmatprep.subr.bf16.mxu1 %v7107_v48  ;;  %v2268_v26 = vld [vmem:[#allocation3 + $0xf8] sm:$0xff]  ;;  %v1148_v6 = vpop.permute.xlu0 %1147  ;;  %v8676_v61 = vor.u32 %v8666_v19, %v914_v54  ;;  %v12333_v48 = vld [vmem:[#allocation17_spill] sm:$0xff] }
 0x121   : > { %3141 = vmatprep.mubr.bf16.mxu1 %v2268_v26  ;;  %1279 = vst.msk [vmem:[#allocation3 + $0x208] sm:$0xff] %vm1265_vm8, %v1148_v6  ;;  %2130 = vst.msk [vmem:[#allocation3 + $0x130] sm:$0xff] %vm1265_vm8, %v1148_v6  ;;  %v7109_v43 = vld [vmem:[#allocation7 + $0x1d4] ss:$8 sps:$4 sm:$0xff]  }
 0x122   : > { %1181 = vrot.lane.b32.xlu1 %v8321_v24, %s7266_s20  ;;  %v8673_v63 = vsel %vm477_vm4, %v908_v7, %v919_v47  ;;  %v1847_v53 = vpop.permute.xlu1 %1846  ;;  %v2270_v60 = vld [vmem:[#allocation3 + $0x108] sm:$0xff] }
 0x123   : > { %1065 = vst.msk [vmem:[#allocation3 + $0x640] sm:$0xff] %vm353_vm0, %v8673_v63  ;;  %2085 = vst.msk [vmem:[#allocation3 + $0x568] sm:$0xff] %vm353_vm0, %v8673_v63  ;;  %v8685_v24 = vld [vmem:[#allocation2 + $0x150] sm:$0xff]  ;;  %3526 = vmatprep.mubr.bf16.mxu0 %v2270_v60  ;;  %v521_v60 = vld [vmem:[#allocation2 + $0x160] sm:$0x1] }
 0x124   : > { %1642 = vrot.lane.b32.xlu0 %v8456_v5, %s7266_s20  ;;  %v7108_v7 = vld [vmem:[#allocation7 + $0x1c0] ss:$8 sps:$4 sm:$0xff]   ;;  %1983 = vst.msk [vmem:[#allocation3 + $0x128] sm:$0xff] %vm1265_vm8, %v1847_v53  ;;  %3142 = vmatmul.mubr.bf16.gmra.mrb[24].mxu1 %v2267_v50  ;;  %v922_v54 = vshrl.u32 %v8685_v24, 16  ;;  %v1597_v9 = vpop.permute.xlu0 %1596  ;;  %v925_v20 = vshll.u32 %v8685_v24, 16 }
 0x125   : > { %6698 = vmatpush1.bf16.msra.mxu1 %v7108_v7  ;;  %1810 = vst.msk [vmem:[#allocation3 + $0x600] sm:$0xff] %vm353_vm0, %v8685_v24  ;;  %v2269_v5 = vld [vmem:[#allocation3 + $0x100] sm:$0xff]  ;;  %v2272_v7 = vld [vmem:[#allocation3 + $0x118] sm:$0xff] }
 0x126   : > { %1183 = vrot.lane.b32.xlu1 %v8349_v27, %s7266_s20  ;;  %6683 = vmatprep.subr.bf16.mxu1 %v7109_v43  ;;  %1732 = vst.msk [vmem:[#allocation3 + $0x148] sm:$0xff] %vm1265_vm8, %v1597_v9  ;;  %v924_v21 = vrot.slane %v922_v54, 7  ;;  %v2273_v40 = vld [vmem:[#allocation3 + $0x120] sm:$0xff]  ;;  %v1150_v47 = vpop.permute.xlu1 %1149  ;;  %v8701_v26 = vrot.slane %v925_v20, 1 }
 0x127   : > { %3527 = vmatmul.mubr.bf16.gmra.mrb[24].mxu0 %v2269_v5  ;;  %3151 = vmatprep.mubr.bf16.mxu1 %v2273_v40  ;;  %1280 = vst.msk [vmem:[#allocation3 + $0x230] sm:$0xff] %vm1265_vm8, %v1150_v47  ;;  %2131 = vst.msk [vmem:[#allocation3 + $0x158] sm:$0xff] %vm1265_vm8, %v1150_v47  ;;  %v7110_v53 = vld [vmem:[#allocation7 + $0x1e4] ss:$8 sps:$4 sm:$0xff]   ;;  %v7111_v9 = vld [vmem:[#allocation7 + $0x1e0] ss:$8 sps:$4 sm:$0xff]  }
 0x128   : > { %1644 = vrot.lane.b32.xlu0 %v8493_v39, %s7266_s20  ;;  %v927_v27 = vor.u32 %v925_v20, %v924_v21  ;;  %v2275_v6 = vld [vmem:[#allocation3 + $0x130] sm:$0xff]  ;;  %v1849_v29 = vpop.permute.xlu0 %1848  ;;  %v8710_v50 = vor.u32 %v8701_v26, %v922_v54 }
 0x129   : > { %6699 = vmatpush1.bf16.msra.mxu1 %v12333_v48  ;;  %3536 = vmatprep.mubr.bf16.mxu0 %v2275_v6  ;;  %1984 = vst.msk [vmem:[#allocation3 + $0x150] sm:$0xff] %vm1265_vm8, %v1849_v29 }
 0x12a   : > { %1185 = vrot.lane.b32.xlu1 %v8378_v49, %s7266_s20  ;;  %6684 = vmatprep.subr.bf16.mxu1 %v7110_v53  ;;  %v8707_v39 = vsel %vm477_vm4, %v916_v30, %v927_v27  ;;  %v8718_v49 = vld [vmem:[#allocation2 + $0x158] sm:$0xff]  ;;  %v522_v30 = vsel %vm7511_vm6, 0, %v521_v60 }
 0x12b   : > { %v1599_v5 = vpop.permute.xlu1 %1598  ;;  %1066 = vst.msk [vmem:[#allocation3 + $0x668] sm:$0xff] %vm353_vm0, %v8707_v39  ;;  %2086 = vst.msk [vmem:[#allocation3 + $0x590] sm:$0xff] %vm353_vm0, %v8707_v39  ;;  %v930_v54 = vshrl.u32 %v8718_v49, 16  ;;  %v2274_v43 = vld [vmem:[#allocation3 + $0x128] sm:$0xff]  ;;  %v933_v48 = vshll.u32 %v8718_v49, 16 }
 0x12c   : > { %1646 = vrot.lane.b32.xlu0 %v8531_v28, %s7266_s20  ;;  %3152 = vmatmul.mubr.bf16.gmra.mrb[28].mxu1 %v2272_v7  ;;  %1733 = vst.msk [vmem:[#allocation3 + $0x170] sm:$0xff] %vm1265_vm8, %v1599_v5  ;;  %523 = vst [vmem:[#allocation2 + $0x160] sm:$0x1] %v522_v30  ;;  %v7112_v28 = vld [vmem:[#allocation7 + $0x1f4] ss:$8 sps:$4 sm:$0xff]   ;;  %v1152_v40 = vpop.permute.xlu0 %1151  ;;  %v2277_v7 = vld [vmem:[#allocation3 + $0x140] sm:$0xff] }
 0x12d   : > { %6700 = vmatpush1.bf16.msra.mxu1 %v7111_v9  ;;  %1811 = vst.msk [vmem:[#allocation3 + $0x628] sm:$0xff] %vm353_vm0, %v8718_v49  ;;  %v2278_v20 = vld [vmem:[#allocation3 + $0x148] sm:$0xff]  ;;  %v932_v47 = vrot.slane %v930_v54, 7 }
 0x12e   : > { %6685 = vmatprep.subr.bf16.mxu1 %v7112_v28  ;;  %1187 = vrot.lane.b32.xlu1 %v8407_v56, %s7266_s20  ;;  %1281 = vst.msk [vmem:[#allocation3 + $0x258] sm:$0xff] %vm1265_vm8, %v1152_v40  ;;  %2132 = vst.msk [vmem:[#allocation3 + $0x180] sm:$0xff] %vm1265_vm8, %v1152_v40  ;;  %v2280_v6 = vld [vmem:[#allocation3 + $0x158] sm:$0xff]  ;;  %v8735_v56 = vrot.slane %v933_v48, 1 }
 0x12f   : > { %3157 = vmatprep.mubr.bf16.mxu1 %v2278_v20  ;;  %3537 = vmatmul.mubr.bf16.gmra.mrb[28].mxu0 %v2274_v43  ;;  %v935_v29 = vor.u32 %v933_v48, %v932_v47 }
 0x130   : > { %v1851_v27 = vpop.permute.xlu1 %1850  ;;  %1648 = vrot.lane.b32.xlu0 %v8569_v3, %s7266_s20  ;;  %3542 = vmatprep.mubr.bf16.mxu0 %v2280_v6  ;;  %v8744_v3 = vor.u32 %v8735_v56, %v930_v54 }
 0x131   : > { %6701 = vmatpush1.bf16.msra.mxu1 %v8104_v13  ;;  %1985 = vst.msk [vmem:[#allocation3 + $0x178] sm:$0xff] %vm1265_vm8, %v1851_v27  ;;  %v8741_v60 = vsel %vm477_vm4, %v924_v21, %v935_v29  ;;  %v467_v13 = vld [vmem:[#allocation2 + $0x168] sm:$0x80] }
 0x132   : > { %v1601_v53 = vpop.permute.xlu0 %1600  ;;  %1189 = vrot.lane.b32.xlu1 %v8437_v16, %s7266_s20  ;;  %1067 = vst.msk [vmem:[#allocation3 + $0x690] sm:$0xff] %vm353_vm0, %v8741_v60  ;;  %2087 = vst.msk [vmem:[#allocation3 + $0x5b8] sm:$0xff] %vm353_vm0, %v8741_v60  ;;  %v468_v21 = vsel %vm7470_vm3, 0, %v467_v13  ;;  %v2282_v13 = vld [vmem:[#allocation3 + $0x168] sm:$0xff] }
 0x133   : > { %1734 = vst.msk [vmem:[#allocation3 + $0x198] sm:$0xff] %vm1265_vm8, %v1601_v53  ;;  %v2283_v5 = vld [vmem:[#allocation3 + $0x170] sm:$0xff]  ;;  %v8752_v16 = vld [vmem:[#allocation2 + $0x160] sm:$0xff]  ;;  %469 = vst [vmem:[#allocation2 + $0x168] sm:$0x80] %v468_v21 }
 0x134   : > { %v1154_v30 = vpop.permute.xlu1 %1153  ;;  %1650 = vrot.lane.b32.xlu0 %v8604_v8, %s7266_s20  ;;  %3158 = vmatmul.mubr.bf16.gmra.mrb[32].mxu1 %v2277_v7  ;;  %v938_v9 = vshrl.u32 %v8752_v16, 16  ;;  %1812 = vst.msk [vmem:[#allocation3 + $0x650] sm:$0xff] %vm353_vm0, %v8752_v16  ;;  %v2279_v8 = vld [vmem:[#allocation3 + $0x150] sm:$0xff]  ;;  %v941_v20 = vshll.u32 %v8752_v16, 16 }
 0x135   : > { %1282 = vst.msk [vmem:[#allocation3 + $0x280] sm:$0xff] %vm1265_vm8, %v1154_v30  ;;  %2133 = vst.msk [vmem:[#allocation3 + $0x1a8] sm:$0xff] %vm1265_vm8, %v1154_v30  ;;  %3163 = vmatprep.mubr.bf16.mxu1 %v2283_v5  ;;  %v2285_v28 = vld [vmem:[#allocation3 + $0x180] sm:$0xff]  ;;  %v7087_v53 = vld [vmem:[%s7447_s6 + $0x70] sm:$0xff]  }
 0x136   : > { %v1853_v54 = vpop.permute.xlu0 %1852  ;;  %1191 = vrot.lane.b32.xlu1 %v8468_v11, %s7266_s20  ;;  %v940_v43 = vrot.slane %v938_v9, 7  ;;  %v8768_v27 = vrot.slane %v941_v20, 1  ;;  %368 = vst.msk [vmem:[#allocation2 + $0x170] sm:$0xff] %vm353_vm0, %v7087_v53 }
 0x137   : > { %1986 = vst.msk [vmem:[#allocation3 + $0x1a0] sm:$0xff] %vm1265_vm8, %v1853_v54  ;;  %3543 = vmatmul.mubr.bf16.gmra.mrb[32].mxu0 %v2279_v8 }
 0x138   : > { %v1603_v40 = vpop.permute.xlu1 %1602  ;;  %1652 = vrot.lane.b32.xlu0 %v8638_v32, %s7266_s20  ;;  %v943_v48 = vor.u32 %v941_v20, %v940_v43  ;;  %3548 = vmatprep.mubr.bf16.mxu0 %v2285_v28  ;;  %v8776_v32 = vor.u32 %v8768_v27, %v938_v9  ;;  %v2284_v5 = vld [vmem:[#allocation3 + $0x178] sm:$0xff] }
 0x139   : > { %1735 = vst.msk [vmem:[#allocation3 + $0x1c0] sm:$0xff] %vm1265_vm8, %v1603_v40 }
 0x13a   : > { %v1156_v6 = vpop.permute.xlu0 %1155  ;;  %1193 = vrot.lane.b32.xlu1 %v8504_v15, %s7266_s20  ;;  %v2288_v11 = vld [vmem:[#allocation3 + $0x198] sm:$0xff]  ;;  %v944_v29 = vsel %vm477_vm4, %v932_v47, %v943_v48  ;;  %v8783_v15 = vld [vmem:[#allocation2 + $0x168] sm:$0xff] }
 0x13b   : > { %1283 = vst.msk [vmem:[#allocation3 + $0x2a8] sm:$0xff] %vm1265_vm8, %v1156_v6  ;;  %2134 = vst.msk [vmem:[#allocation3 + $0x1d0] sm:$0xff] %vm1265_vm8, %v1156_v6  ;;  %v946_v47 = vshrl.u32 %v8783_v15, 16  ;;  %v949_v9 = vshll.u32 %v8783_v15, 16 }
 0x13c   : > { %v1855_v7 = vpop.permute.xlu1 %1854  ;;  %1654 = vrot.lane.b32.xlu0 %v8673_v63, %s7266_s20  ;;  %1068 = vst.msk [vmem:[#allocation3 + $0x6b8] sm:$0xff] %vm353_vm0, %v944_v29  ;;  %2088 = vst.msk [vmem:[#allocation3 + $0x5e0] sm:$0xff] %vm353_vm0, %v944_v29  ;;  %3164 = vmatmul.mubr.bf16.gmra.mrb[36].mxu1 %v2282_v13  ;;  %v2290_v63 = vld [vmem:[#allocation3 + $0x1a8] sm:$0xff] }
 0x13d   : > { %1987 = vst.msk [vmem:[#allocation3 + $0x1c8] sm:$0xff] %vm1265_vm8, %v1855_v7  ;;  %3173 = vmatprep.mubr.bf16.mxu1 %v2288_v11  ;;  %v948_v21 = vrot.slane %v946_v47, 7  ;;  %v8798_v28 = vrot.slane %v949_v9, 1 }
 0x13e   : > { %1813 = vst.msk [vmem:[#allocation3 + $0x678] sm:$0xff] %vm353_vm0, %v8783_v15  ;;  %v1605_v30 = vpop.permute.xlu0 %1604  ;;  %1195 = vrot.lane.b32.xlu1 %v8542_v42, %s7266_s20  ;;  %v8803_v42 = vsel %vm12289_vm7, %v8280_v10, %v8236_v22  ;;  %v524_v22 = vld [vmem:[#allocation2 + $0x178] sm:$0x1]  ;;  %v2289_v53 = vld [vmem:[#allocation3 + $0x1a0] sm:$0xff] }
 0x13f   : > { %1736 = vst.msk [vmem:[#allocation3 + $0x1e8] sm:$0xff] %vm1265_vm8, %v1605_v30  ;;  %3549 = vmatmul.mubr.bf16.gmra.mrb[36].mxu0 %v2284_v5  ;;  %v951_v54 = vor.u32 %v949_v9, %v948_v21  ;;  %v8814_v48 = vor.u32 %v8798_v28, %v946_v47  ;;  %v2287_v10 = vld [vmem:[#allocation3 + $0x190] sm:$0xff]  ;;  %v525_v11 = vsel %vm7511_vm6, 0, %v524_v22 }
 0x140   : > { %v1158_v8 = vpop.permute.xlu1 %1157  ;;  %1656 = vrot.lane.b32.xlu0 %v8707_v39, %s7266_s20  ;;  %3558 = vmatprep.mubr.bf16.mxu0 %v2290_v63  ;;  %1538 = vst.msk [vmem:[#allocation3 + $0x440] sm:$0xff] %vm353_vm0, %v8803_v42  ;;  %2210 = vst.msk [vmem:[#allocation3 + $0x368] sm:$0xff] %vm353_vm0, %v8803_v42  ;;  %v2293_v39 = vld [vmem:[#allocation3 + $0x1c0] sm:$0xff] }
 0x141   : > { %1284 = vst.msk [vmem:[#allocation3 + $0x2d0] sm:$0xff] %vm1265_vm8, %v1158_v8  ;;  %2135 = vst.msk [vmem:[#allocation3 + $0x1f8] sm:$0xff] %vm1265_vm8, %v1158_v8  ;;  %v952_v40 = vsel %vm477_vm4, %v940_v43, %v951_v54 }
 0x142   : > { %v1857_v20 = vpop.permute.xlu0 %1856  ;;  %1197 = vrot.lane.b32.xlu1 %v8581_v59, %s7266_s20  ;;  %1069 = vst.msk [vmem:[#allocation3 + $0x6e0] sm:$0xff] %vm353_vm0, %v952_v40  ;;  %2089 = vst.msk [vmem:[#allocation3 + $0x608] sm:$0xff] %vm353_vm0, %v952_v40  ;;  %v8820_v59 = vld [vmem:[#allocation2 + $0x170] sm:$0xff]  ;;  %v2295_v13 = vld [vmem:[#allocation3 + $0x1d0] sm:$0xff] }
 0x143   : > { %1988 = vst.msk [vmem:[#allocation3 + $0x1f0] sm:$0xff] %vm1265_vm8, %v1857_v20  ;;  %v954_v43 = vshrl.u32 %v8820_v59, 16  ;;  %526 = vst [vmem:[#allocation2 + $0x178] sm:$0x1] %v525_v11  ;;  %v957_v47 = vshll.u32 %v8820_v59, 16  ;;  %v2292_v20 = vld [vmem:[#allocation3 + $0x1b8] sm:$0xff] }
 0x144   : > { %v1607_v6 = vpop.permute.xlu1 %1606  ;;  %1658 = vrot.lane.b32.xlu0 %v8741_v60, %s7266_s20  ;;  %3174 = vmatmul.mubr.bf16.gmra.mrb[40].mxu1 %v2287_v10  ;;  %1814 = vst.msk [vmem:[#allocation3 + $0x6a0] sm:$0xff] %vm353_vm0, %v8820_v59 }
 0x145   : > { %1737 = vst.msk [vmem:[#allocation3 + $0x210] sm:$0xff] %vm1265_vm8, %v1607_v6  ;;  %3179 = vmatprep.mubr.bf16.mxu1 %v2293_v39  ;;  %v956_v7 = vrot.slane %v954_v43, 7  ;;  %v8835_v63 = vrot.slane %v957_v47, 1 }
 0x146   : > { %v1160_v60 = vpop.permute.xlu0 %1159  ;;  %1199 = vrot.lane.b32.xlu1 %v8615_v23, %s7266_s20  ;;  %v8842_v23 = vsel %vm12289_vm7, %v8257_v0, %v8263_v52  ;;  %v2298_v8 = vld [vmem:[#allocation3 + $0x1e8] sm:$0xff] }
 0x147   : > { %1285 = vst.msk [vmem:[#allocation3 + $0x2f8] sm:$0xff] %vm1265_vm8, %v1160_v60  ;;  %2136 = vst.msk [vmem:[#allocation3 + $0x220] sm:$0xff] %vm1265_vm8, %v1160_v60  ;;  %3559 = vmatmul.mubr.bf16.gmra.mrb[40].mxu0 %v2289_v53  ;;  %v959_v30 = vor.u32 %v957_v47, %v956_v7  ;;  %v8847_v54 = vor.u32 %v8835_v63, %v954_v43  ;;  %v7088_v47 = vld [vmem:[%s7447_s6 + $0x78] sm:$0xff]  }
 0x148   : > { %v1859_v5 = vpop.permute.xlu1 %1858  ;;  %1660 = vrot.lane.b32.xlu0 %v944_v29, %s7266_s20  ;;  %3564 = vmatprep.mubr.bf16.mxu0 %v2295_v13  ;;  %1539 = vst.msk [vmem:[#allocation3 + $0x468] sm:$0xff] %vm353_vm0, %v8842_v23  ;;  %2211 = vst.msk [vmem:[#allocation3 + $0x390] sm:$0xff] %vm353_vm0, %v8842_v23  ;;  %v2300_v10 = vld [vmem:[#allocation3 + $0x1f8] sm:$0xff] }
 0x149   : > { %1989 = vst.msk [vmem:[#allocation3 + $0x218] sm:$0xff] %vm1265_vm8, %v1859_v5  ;;  %v960_v29 = vsel %vm477_vm4, %v948_v21, %v959_v30  ;;  %v2297_v5 = vld [vmem:[#allocation3 + $0x1e0] sm:$0xff] }
 0x14a   : > { %v1609_v9 = vpop.permute.xlu0 %1608  ;;  %1201 = vrot.lane.b32.xlu1 %v8649_v17, %s7266_s20  ;;  %v470_v17 = vld [vmem:[#allocation2 + $0x180] sm:$0x80]  ;;  %1070 = vst.msk [vmem:[#allocation3 + $0x708] sm:$0xff] %vm353_vm0, %v960_v29  ;;  %2090 = vst.msk [vmem:[#allocation3 + $0x630] sm:$0xff] %vm353_vm0, %v960_v29  ;;  %v8856_v0 = vld [vmem:[#allocation2 + $0x178] sm:$0xff] }
 0x14b   : > { %1738 = vst.msk [vmem:[#allocation3 + $0x238] sm:$0xff] %vm1265_vm8, %v1609_v9  ;;  %v471_v52 = vsel %vm7470_vm3, 0, %v470_v17  ;;  %v962_v21 = vshrl.u32 %v8856_v0, 16  ;;  %v965_v11 = vshll.u32 %v8856_v0, 16 }
 0x14c   : > { %v1162_v39 = vpop.permute.xlu1 %1161  ;;  %1662 = vrot.lane.b32.xlu0 %v952_v40, %s7266_s20  ;;  %3180 = vmatmul.mubr.bf16.gmra.mrb[44].mxu1 %v2292_v20  ;;  %1815 = vst.msk [vmem:[#allocation3 + $0x6c8] sm:$0xff] %vm353_vm0, %v8856_v0  ;;  %472 = vst [vmem:[#allocation2 + $0x180] sm:$0x80] %v471_v52  ;;  %v2294_v40 = vld [vmem:[#allocation3 + $0x1c8] sm:$0xff] }
 0x14d   : > { %1286 = vst.msk [vmem:[#allocation3 + $0x320] sm:$0xff] %vm1265_vm8, %v1162_v39  ;;  %2137 = vst.msk [vmem:[#allocation3 + $0x248] sm:$0xff] %vm1265_vm8, %v1162_v39  ;;  %3185 = vmatprep.mubr.bf16.mxu1 %v2298_v8  ;;  %v964_v6 = vrot.slane %v962_v21, 7  ;;  %v8878_v9 = vrot.slane %v965_v11, 1 }
 0x14e   : > { %v1861_v22 = vpop.permute.xlu0 %1860  ;;  %1203 = vrot.lane.b32.xlu1 %v8685_v24, %s7266_s20  ;;  %v2303_v24 = vld [vmem:[#allocation3 + $0x210] sm:$0xff]  ;;  %369 = vst.msk [vmem:[#allocation2 + $0x188] sm:$0xff] %vm353_vm0, %v7088_v47 }
 0x14f   : > { %1990 = vst.msk [vmem:[#allocation3 + $0x240] sm:$0xff] %vm1265_vm8, %v1861_v22  ;;  %3565 = vmatmul.mubr.bf16.gmra.mrb[44].mxu0 %v2294_v40  ;;  %v967_v53 = vor.u32 %v965_v11, %v964_v6  ;;  %v8895_v20 = vor.u32 %v8878_v9, %v962_v21  ;;  %v2302_v11 = vld [vmem:[#allocation3 + $0x208] sm:$0xff] }
 0x150   : > { %v1611_v43 = vpop.permute.xlu1 %1610  ;;  %1664 = vrot.lane.b32.xlu0 %v960_v29, %s7266_s20  ;;  %3570 = vmatprep.mubr.bf16.mxu0 %v2300_v10  ;;  %v2299_v29 = vld [vmem:[#allocation3 + $0x1f0] sm:$0xff]  ;;  %v527_v10 = vld [vmem:[#allocation2 + $0x190] sm:$0x1] }
 0x151   : > { %1739 = vst.msk [vmem:[#allocation3 + $0x260] sm:$0xff] %vm1265_vm8, %v1611_v43  ;;  %v968_v13 = vsel %vm477_vm4, %v956_v7, %v967_v53 }
 0x152   : > { %v1164_v60 = vpop.permute.xlu0 %1163  ;;  %1205 = vrot.lane.b32.xlu1 %v8718_v49, %s7266_s20  ;;  %1071 = vst.msk [vmem:[#allocation3 + $0x730] sm:$0xff] %vm353_vm0, %v968_v13  ;;  %2091 = vst.msk [vmem:[#allocation3 + $0x658] sm:$0xff] %vm353_vm0, %v968_v13  ;;  %v8888_v49 = vsel %vm12289_vm7, %v8275_v25, %v8333_v4  ;;  %v2305_v25 = vld [vmem:[#allocation3 + $0x220] sm:$0xff]  ;;  %v2308_v40 = vld [vmem:[#allocation3 + $0x238] sm:$0xff] }
 0x153   : > { %1287 = vst.msk [vmem:[#allocation3 + $0x348] sm:$0xff] %vm1265_vm8, %v1164_v60  ;;  %2138 = vst.msk [vmem:[#allocation3 + $0x270] sm:$0xff] %vm1265_vm8, %v1164_v60  ;;  %v8882_v8 = vld [vmem:[#allocation2 + $0x180] sm:$0xff] }
 0x154   : > { %v1863_v30 = vpop.permute.xlu1 %1862  ;;  %1666 = vrot.lane.b32.xlu0 %v968_v13, %s7266_s20  ;;  %3186 = vmatmul.mubr.bf16.gmra.mrb[48].mxu1 %v2297_v5  ;;  %v970_v7 = vshrl.u32 %v8882_v8, 16  ;;  %1816 = vst.msk [vmem:[#allocation3 + $0x6f0] sm:$0xff] %vm353_vm0, %v8882_v8  ;;  %1540 = vst.msk [vmem:[#allocation3 + $0x490] sm:$0xff] %vm353_vm0, %v8888_v49  ;;  %v973_v39 = vshll.u32 %v8882_v8, 16  ;;  %v2304_v13 = vld [vmem:[#allocation3 + $0x218] sm:$0xff] }
 0x155   : > { %1991 = vst.msk [vmem:[#allocation3 + $0x268] sm:$0xff] %vm1265_vm8, %v1863_v30  ;;  %3195 = vmatprep.mubr.bf16.mxu1 %v2303_v24  ;;  %v8916_v60 = vld [vmem:[#allocation2 + $0x188] sm:$0xff] }
 0x156   : > { %v1613_v17 = vpop.permute.xlu0 %1612  ;;  %1207 = vrot.lane.b32.xlu1 %v8752_v16, %s7266_s20  ;;  %2212 = vst.msk [vmem:[#allocation3 + $0x3b8] sm:$0xff] %vm353_vm0, %v8888_v49  ;;  %v972_v4 = vrot.slane %v970_v7, 7  ;;  %v8912_v53 = vrot.slane %v973_v39, 1  ;;  %v1559_v24 = vshrl.u32 %v8916_v60, 16  ;;  %1817 = vst.msk [vmem:[#allocation3 + $0x718] sm:$0xff] %vm353_vm0, %v8916_v60 }
 0x157   : > { %1740 = vst.msk [vmem:[#allocation3 + $0x288] sm:$0xff] %vm1265_vm8, %v1613_v17  ;;  %3571 = vmatmul.mubr.bf16.gmra.mrb[48].mxu0 %v2299_v29 }
 0x158   : > { %v1166_v52 = vpop.permute.xlu1 %1165  ;;  %v975_v21 = vor.u32 %v973_v39, %v972_v4  ;;  %3580 = vmatprep.mubr.bf16.mxu0 %v2305_v25  ;;  %v8930_v5 = vor.u32 %v8912_v53, %v970_v7  ;;  %v1561_v30 = vrot.slane %v1559_v24, 7  ;;  %v8953_v39 = vsel %vm12289_vm7, %v8369_v33, %v8389_v46  ;;  %v2309_v46 = vld [vmem:[#allocation3 + $0x240] sm:$0xff] }
 0x159   : > { %1288 = vst.msk [vmem:[#allocation3 + $0x370] sm:$0xff] %vm1265_vm8, %v1166_v52  ;;  %2139 = vst.msk [vmem:[#allocation3 + $0x298] sm:$0xff] %vm1265_vm8, %v1166_v52  ;;  %v473_v52 = vld [vmem:[#allocation2 + $0x198] sm:$0x80] }
 0x15a   : > { %v1865_v16 = vpop.permute.xlu0 %1864  ;;  %1209 = vrot.lane.b32.xlu1 %v8783_v15, %s7266_s20  ;;  %v976_v22 = vsel %vm477_vm4, %v964_v6, %v975_v21  ;;  %v528_v15 = vsel %vm7511_vm6, 0, %v527_v10  ;;  %v8924_v6 = vsel %vm12289_vm7, %v8341_v44, %v8361_v34  ;;  %v2310_v44 = vld [vmem:[#allocation3 + $0x248] sm:$0xff]  ;;  %v1459_v34 = vshll.u32 %v8916_v60, 16  ;;  %v2307_v21 = vld [vmem:[#allocation3 + $0x230] sm:$0xff]  ;;  %1542 = vst.msk [vmem:[#allocation3 + $0x4e0] sm:$0xff] %vm353_vm0, %v8953_v39  ;;  %2214 = vst.msk [vmem:[#allocation3 + $0x408] sm:$0xff] %vm353_vm0, %v8953_v39 }
 0x15b   : > { %1992 = vst.msk [vmem:[#allocation3 + $0x290] sm:$0xff] %vm1265_vm8, %v1865_v16  ;;  %1668 = vrot.lane.b32.xlu0 %v976_v22, %s7266_s20  ;;  %529 = vst [vmem:[#allocation2 + $0x190] sm:$0x1] %v528_v15 }
 0x15c   : > { %v1615_v43 = vpop.permute.xlu1 %1614  ;;  %1072 = vst.msk [vmem:[#allocation3 + $0x758] sm:$0xff] %vm353_vm0, %v976_v22  ;;  %2092 = vst.msk [vmem:[#allocation3 + $0x680] sm:$0xff] %vm353_vm0, %v976_v22  ;;  %3196 = vmatmul.mubr.bf16.gmra.mrb[52].mxu1 %v2302_v11  ;;  %v1562_v29 = vor.u32 %v1561_v30, %v1459_v34  ;;  %v2315_v22 = vld [vmem:[#allocation3 + $0x270] sm:$0xff] }
 0x15d   : > { %1741 = vst.msk [vmem:[#allocation3 + $0x2b0] sm:$0xff] %vm1265_vm8, %v1615_v43  ;;  %3201 = vmatprep.mubr.bf16.mxu1 %v2308_v40 }
 0x15e   : > { %v1168_v47 = vpop.permute.xlu0 %1167  ;;  %1541 = vst.msk [vmem:[#allocation3 + $0x4b8] sm:$0xff] %vm353_vm0, %v8924_v6  ;;  %2213 = vst.msk [vmem:[#allocation3 + $0x3e0] sm:$0xff] %vm353_vm0, %v8924_v6  ;;  %1211 = vrot.lane.b32.xlu1 %v8820_v59, %s7266_s20  ;;  %v2313_v59 = vld [vmem:[#allocation3 + $0x260] sm:$0xff]  ;;  %v1563_v25 = vsel %vm477_vm4, %v972_v4, %v1562_v29  ;;  %v474_v4 = vsel %vm7470_vm3, 0, %v473_v52  ;;  %vm5162_vm3 = vsmask.f32 2304 }
 0x15f   : > { %1289 = vst.msk [vmem:[#allocation3 + $0x398] sm:$0xff] %vm1265_vm8, %v1168_v47  ;;  %2140 = vst.msk [vmem:[#allocation3 + $0x2c0] sm:$0xff] %vm1265_vm8, %v1168_v47  ;;  %3581 = vmatmul.mubr.bf16.gmra.mrb[52].mxu0 %v2304_v13  ;;  %1670 = vrot.lane.b32.xlu0 %v1563_v25, %s7266_s20  ;;  %v2312_v47 = vld [vmem:[#allocation3 + $0x258] sm:$0xff] }
 0x160   : > { %v1867_v7 = vpop.permute.xlu1 %1866  ;;  %3586 = vmatprep.mubr.bf16.mxu0 %v2310_v44  ;;  %2093 = vst.msk [vmem:[#allocation3 + $0x6a8] sm:$0xff] %vm353_vm0, %v1563_v25  ;;  %475 = vst [vmem:[#allocation2 + $0x198] sm:$0x80] %v474_v4  ;;  %v2317_v4 = vld [vmem:[#allocation3 + $0x280] sm:$0xff] }
 0x161   : > { %1993 = vst.msk [vmem:[#allocation3 + $0x2b8] sm:$0xff] %vm1265_vm8, %v1867_v7 }
 0x162   : > { %v1617_v17 = vpop.permute.xlu0 %1616  ;;  %1213 = vrot.lane.b32.xlu1 %v8856_v0, %s7266_s20  ;;  %v8961_v0 = vld [vmem:[#allocation2 + $0x190] sm:$0xff] }
 0x163   : > { %1742 = vst.msk [vmem:[#allocation3 + $0x2d8] sm:$0xff] %vm1265_vm8, %v1617_v17  ;;  %v1565_v33 = vshrl.u32 %v8961_v0, 16  ;;  %v1568_v10 = vshll.u32 %v8961_v0, 16 }
 0x164   : > { %v1170_v16 = vpop.permute.xlu1 %1169  ;;  %3202 = vmatmul.mubr.bf16.gmra.mrb[56].mxu1 %v2307_v21  ;;  %1818 = vst.msk [vmem:[#allocation3 + $0x740] sm:$0xff] %vm353_vm0, %v8961_v0  ;;  %v2323_v21 = vld [vmem:[#allocation3 + $0x2b0] sm:$0xff] }
 0x165   : > { %1290 = vst.msk [vmem:[#allocation3 + $0x3c0] sm:$0xff] %vm1265_vm8, %v1170_v16  ;;  %2141 = vst.msk [vmem:[#allocation3 + $0x2e8] sm:$0xff] %vm1265_vm8, %v1170_v16  ;;  %3207 = vmatprep.mubr.bf16.mxu1 %v2313_v59  ;;  %v1567_v1 = vrot.slane %v1565_v33, 7  ;;  %v2320_v59 = vld [vmem:[#allocation3 + $0x298] sm:$0xff] }
 0x166   : > { %v1869_v40 = vpop.permute.xlu0 %1868  ;;  %1215 = vrot.lane.b32.xlu1 %v8882_v8, %s7266_s20  ;;  %v2318_v8 = vld [vmem:[#allocation3 + $0x288] sm:$0xff] }
 0x167   : > { %1994 = vst.msk [vmem:[#allocation3 + $0x2e0] sm:$0xff] %vm1265_vm8, %v1869_v40  ;;  %3587 = vmatmul.mubr.bf16.gmra.mrb[56].mxu0 %v2309_v46  ;;  %v1570_v43 = vor.u32 %v1568_v10, %v1567_v1  ;;  %v8986_v7 = vld [vmem:[#allocation2 + $0x198] sm:$0xff]  ;;  %v1417_v40 = vsel %vm12289_vm7, %v8429_v57, %v8450_v41 }
 0x168   : > { %v1619_v11 = vpop.permute.xlu1 %1618  ;;  %3592 = vmatprep.mubr.bf16.mxu0 %v2315_v22  ;;  %v1573_v29 = vshrl.u32 %v8986_v7, 16  ;;  %1819 = vst.msk [vmem:[#allocation3 + $0x768] sm:$0xff] %vm353_vm0, %v8986_v7  ;;  %v2319_v22 = vld [vmem:[#allocation3 + $0x290] sm:$0xff]  ;;  %1544 = vst.msk [vmem:[#allocation3 + $0x530] sm:$0xff] %vm353_vm0, %v1417_v40 }
 0x169   : > { %1743 = vst.msk [vmem:[#allocation3 + $0x300] sm:$0xff] %vm1265_vm8, %v1619_v11  ;;  %v1571_v13 = vsel %vm477_vm4, %v1561_v30, %v1570_v43  ;;  %v2314_v30 = vld [vmem:[#allocation3 + $0x268] sm:$0xff] }
 0x16a   : > { %v1172_v15 = vpop.permute.xlu0 %1171  ;;  %1882 = vrot.lane.b32.xlu1 %v8842_v23, %s7266_s20  ;;  %2094 = vst.msk [vmem:[#allocation3 + $0x6d0] sm:$0xff] %vm353_vm0, %v1571_v13  ;;  %1672 = vrot.lane.b32.xlu0 %v1571_v13, %s7266_s20  ;;  %v1414_v23 = vsel %vm12289_vm7, %v8399_v18, %v8420_v14  ;;  %v9002_v18 = vrot.slane %v1573_v29, 7  ;;  %v1576_v14 = vshll.u32 %v8986_v7, 16  ;;  %2216 = vst.msk [vmem:[#allocation3 + $0x458] sm:$0xff] %vm353_vm0, %v1417_v40  ;;  %v2328_v41 = vld [vmem:[#allocation3 + $0x2d8] sm:$0xff] }
 0x16b   : > { %1291 = vst.msk [vmem:[#allocation3 + $0x3e8] sm:$0xff] %vm1265_vm8, %v1172_v15  ;;  %2142 = vst.msk [vmem:[#allocation3 + $0x310] sm:$0xff] %vm1265_vm8, %v1172_v15  ;;  %v1420_v15 = vsel %vm12289_vm7, %v8459_v38, %v8487_v12 }
 0x16c   : > { %v1871_v44 = vpop.permute.xlu1 %1870  ;;  %3208 = vmatmul.mubr.bf16.gmra.mrb[60].mxu1 %v2312_v47  ;;  %1543 = vst.msk [vmem:[#allocation3 + $0x508] sm:$0xff] %vm353_vm0, %v1414_v23  ;;  %2215 = vst.msk [vmem:[#allocation3 + $0x430] sm:$0xff] %vm353_vm0, %v1414_v23  ;;  %v1578_v52 = vor.u32 %v1576_v14, %v9002_v18  ;;  %v2330_v38 = vld [vmem:[#allocation3 + $0x2e8] sm:$0xff] }
 0x16d   : > { %1995 = vst.msk [vmem:[#allocation3 + $0x308] sm:$0xff] %vm1265_vm8, %v1871_v44  ;;  %3217 = vmatprep.mubr.bf16.mxu1 %v2318_v8  ;;  %v2322_v8 = vld [vmem:[#allocation3 + $0x2a8] sm:$0xff] }
 0x16e   : > { %v1621_v17 = vpop.permute.xlu0 %1620  ;;  %1886 = vrot.lane.b32.xlu1 %v8924_v6, %s7266_s20  ;;  %v1579_v16 = vsel %vm477_vm4, %v1567_v1, %v1578_v52  ;;  %v2325_v1 = vld [vmem:[#allocation3 + $0x2c0] sm:$0xff]  ;;  %1545 = vst.msk [vmem:[#allocation3 + $0x558] sm:$0xff] %vm353_vm0, %v1420_v15  ;;  %2217 = vst.msk [vmem:[#allocation3 + $0x480] sm:$0xff] %vm353_vm0, %v1420_v15 }
 0x16f   : > { %1744 = vst.msk [vmem:[#allocation3 + $0x328] sm:$0xff] %vm1265_vm8, %v1621_v17  ;;  %3593 = vmatmul.mubr.bf16.gmra.mrb[60].mxu0 %v2314_v30  ;;  %1674 = vrot.lane.b32.xlu0 %v1579_v16, %s7266_s20  ;;  %v2329_v17 = vld [vmem:[#allocation3 + $0x2e0] sm:$0xff] }
 0x170   : > { %v1174_v25 = vpop.permute.xlu1 %1173  ;;  %3602 = vmatprep.mubr.bf16.mxu0 %v2320_v59  ;;  %2095 = vst.msk [vmem:[#allocation3 + $0x6f8] sm:$0xff] %vm353_vm0, %v1579_v16  ;;  %v2333_v44 = vld [vmem:[#allocation3 + $0x300] sm:$0xff]  ;;  %v1426_v16 = vsel %vm12289_vm7, %v8534_v51, %v8562_v35  ;;  %v1429_v51 = vsel %vm12289_vm7, %v8572_v58, %v8597_v37 }
 0x171   : > { %1292 = vst.msk [vmem:[#allocation3 + $0x410] sm:$0xff] %vm1265_vm8, %v1174_v25  ;;  %2143 = vst.msk [vmem:[#allocation3 + $0x338] sm:$0xff] %vm1265_vm8, %v1174_v25  ;;  %v2337_v35 = vld [vmem:[#allocation3 + $0x320] sm:$0xff] }
 0x172   : > { %v1873_v6 = vpop.permute.xlu0 %1872  ;;  %1890 = vrot.lane.b32.xlu1 %v1414_v23, %s7266_s20  ;;  %v2327_v23 = vld [vmem:[#allocation3 + $0x2d0] sm:$0xff]  ;;  %1547 = vst.msk [vmem:[#allocation3 + $0x5a8] sm:$0xff] %vm353_vm0, %v1426_v16  ;;  %2219 = vst.msk [vmem:[#allocation3 + $0x4d0] sm:$0xff] %vm353_vm0, %v1426_v16 }
 0x173   : > { %1996 = vst.msk [vmem:[#allocation3 + $0x330] sm:$0xff] %vm1265_vm8, %v1873_v6  ;;  %1880 = vrot.lane.b32.xlu0 %v8803_v42, %s7266_s20  ;;  %v2324_v42 = vld [vmem:[#allocation3 + $0x2b8] sm:$0xff]  ;;  %v2335_v25 = vld [vmem:[#allocation3 + $0x310] sm:$0xff] }
 0x174   : > { %v1623_v46 = vpop.permute.xlu1 %1622  ;;  %3218 = vmatmul.mubr.bf16.gmra.mrb[64].mxu1 %v2317_v4  ;;  %v2334_v4 = vld [vmem:[#allocation3 + $0x308] sm:$0xff]  ;;  %1548 = vst.msk [vmem:[#allocation3 + $0x5d0] sm:$0xff] %vm353_vm0, %v1429_v51  ;;  %2220 = vst.msk [vmem:[#allocation3 + $0x4f8] sm:$0xff] %vm353_vm0, %v1429_v51 }
 0x175   : > { %1745 = vst.msk [vmem:[#allocation3 + $0x350] sm:$0xff] %vm1265_vm8, %v1623_v46  ;;  %3223 = vmatprep.mubr.bf16.mxu1 %v2323_v21 }
 0x176   : > { %v1176_v11 = vpop.permute.xlu0 %1175  ;;  %1894 = vrot.lane.b32.xlu1 %v1420_v15, %s7266_s20  ;;  %v2338_v21 = vld [vmem:[#allocation3 + $0x328] sm:$0xff] }
 0x177   : > { %1293 = vst.msk [vmem:[#allocation3 + $0x438] sm:$0xff] %vm1265_vm8, %v1176_v11  ;;  %2144 = vst.msk [vmem:[#allocation3 + $0x360] sm:$0xff] %vm1265_vm8, %v1176_v11  ;;  %3603 = vmatmul.mubr.bf16.gmra.mrb[64].mxu0 %v2319_v22  ;;  %1884 = vrot.lane.b32.xlu0 %v8888_v49, %s7266_s20 }
 0x178   : > { %v1875_v43 = vpop.permute.xlu1 %1874  ;;  %3608 = vmatprep.mubr.bf16.mxu0 %v2325_v1 }
 0x179   : > { %1997 = vst.msk [vmem:[#allocation3 + $0x358] sm:$0xff] %vm1265_vm8, %v1875_v43 }
 0x17a   : > { %v1625_v57 = vpop.permute.xlu0 %1624  ;;  %1898 = vrot.lane.b32.xlu1 %v1426_v16, %s7266_s20 }
 0x17b   : > { %1746 = vst.msk [vmem:[#allocation3 + $0x378] sm:$0xff] %vm1265_vm8, %v1625_v57  ;;  %1888 = vrot.lane.b32.xlu0 %v8953_v39, %s7266_s20  ;;  %v1423_v39 = vsel %vm12289_vm7, %v8496_v62, %v8524_v2  ;;  %v2332_v62 = vld [vmem:[#allocation3 + $0x2f8] sm:$0xff]  ;;  %v2339_v57 = vld [vmem:[#allocation3 + $0x330] sm:$0xff] }
 0x17c   : > { %v1178_v13 = vpop.permute.xlu1 %1177  ;;  %3224 = vmatmul.mubr.bf16.gmra.mrb[68].mxu1 %v2322_v8  ;;  %1546 = vst.msk [vmem:[#allocation3 + $0x580] sm:$0xff] %vm353_vm0, %v1423_v39  ;;  %2218 = vst.msk [vmem:[#allocation3 + $0x4a8] sm:$0xff] %vm353_vm0, %v1423_v39  ;;  %v2343_v1 = vld [vmem:[#allocation3 + $0x350] sm:$0xff] }
 0x17d   : > { %1294 = vst.msk [vmem:[#allocation3 + $0x460] sm:$0xff] %vm1265_vm8, %v1178_v13  ;;  %2145 = vst.msk [vmem:[#allocation3 + $0x388] sm:$0xff] %vm1265_vm8, %v1178_v13  ;;  %3229 = vmatprep.mubr.bf16.mxu1 %v2328_v41  ;;  %v2342_v13 = vld [vmem:[#allocation3 + $0x348] sm:$0xff] }
 0x17e   : > { %v1877_v47 = vpop.permute.xlu0 %1876  ;;  %v2345_v15 = vld [vmem:[#allocation3 + $0x360] sm:$0xff] }
 0x17f   : > { %1998 = vst.msk [vmem:[#allocation3 + $0x380] sm:$0xff] %vm1265_vm8, %v1877_v47  ;;  %3609 = vmatmul.mubr.bf16.gmra.mrb[68].mxu0 %v2324_v42  ;;  %1892 = vrot.lane.b32.xlu0 %v1417_v40, %s7266_s20  ;;  %v2340_v40 = vld [vmem:[#allocation3 + $0x338] sm:$0xff]  ;;  %v1432_v47 = vsel %vm12289_vm7, %v8607_v55, %v8632_v36 }
 0x180   : > { %v1627_v12 = vpop.permute.xlu1 %1626  ;;  %3614 = vmatprep.mubr.bf16.mxu0 %v2330_v38  ;;  %v2344_v38 = vld [vmem:[#allocation3 + $0x358] sm:$0xff]  ;;  %1549 = vst.msk [vmem:[#allocation3 + $0x5f8] sm:$0xff] %vm353_vm0, %v1432_v47  ;;  %2221 = vst.msk [vmem:[#allocation3 + $0x520] sm:$0xff] %vm353_vm0, %v1432_v47  ;;  %1902 = vrot.lane.b32.xlu1 %v1432_v47, %s7266_s20  ;;  %v2251_v47 = vld [vmem:[#allocation3 + $0x70] sm:$0xff] }
 0x181   : > { %1747 = vst.msk [vmem:[#allocation3 + $0x3a0] sm:$0xff] %vm1265_vm8, %v1627_v12 }
 0x182   : > { %v1180_v49 = vpop.permute.xlu0 %1179  ;;  %v2348_v8 = vld [vmem:[#allocation3 + $0x378] sm:$0xff] }
 0x183   : > { %1295 = vst.msk [vmem:[#allocation3 + $0x488] sm:$0xff] %vm1265_vm8, %v1180_v49  ;;  %2146 = vst.msk [vmem:[#allocation3 + $0x3b0] sm:$0xff] %vm1265_vm8, %v1180_v49  ;;  %1896 = vrot.lane.b32.xlu0 %v1423_v39, %s7266_s20  ;;  %v1435_v39 = vsel %vm12289_vm7, %v8641_v45, %v8666_v19 }
 0x184   : > { %v1879_v30 = vpop.permute.xlu1 %1878  ;;  %3230 = vmatmul.mubr.bf16.gmra.mrb[72].mxu1 %v2327_v23  ;;  %v2350_v49 = vld [vmem:[#allocation3 + $0x388] sm:$0xff]  ;;  %v2347_v23 = vld [vmem:[#allocation3 + $0x370] sm:$0xff]  ;;  %1550 = vst.msk [vmem:[#allocation3 + $0x620] sm:$0xff] %vm353_vm0, %v1435_v39  ;;  %2222 = vst.msk [vmem:[#allocation3 + $0x548] sm:$0xff] %vm353_vm0, %v1435_v39 }
 0x185   : > { %1999 = vst.msk [vmem:[#allocation3 + $0x3a8] sm:$0xff] %vm1265_vm8, %v1879_v30  ;;  %3239 = vmatprep.mubr.bf16.mxu1 %v2333_v44 }
 0x186   : > { %v1629_v59 = vpop.permute.xlu0 %1628 }
 0x187   : > { %1748 = vst.msk [vmem:[#allocation3 + $0x3c8] sm:$0xff] %vm1265_vm8, %v1629_v59  ;;  %3615 = vmatmul.mubr.bf16.gmra.mrb[72].mxu0 %v2329_v17  ;;  %1900 = vrot.lane.b32.xlu0 %v1429_v51, %s7266_s20  ;;  %v2349_v17 = vld [vmem:[#allocation3 + $0x380] sm:$0xff] }
 0x188   : > { %v1631_v52 = vpop.permute.xlu1 %1630  ;;  %3624 = vmatprep.mubr.bf16.mxu0 %v2335_v25  ;;  %v2353_v36 = vld [vmem:[#allocation3 + $0x3a0] sm:$0xff] }
 0x189   : > { %1749 = vst.msk [vmem:[#allocation3 + $0x3f0] sm:$0xff] %vm1265_vm8, %v1631_v52 }
 0x18a   : > { %v1633_v6 = vpop.permute.xlu0 %1632  ;;  %v2355_v25 = vld [vmem:[#allocation3 + $0x3b0] sm:$0xff] }
 0x18b   : > { %1750 = vst.msk [vmem:[#allocation3 + $0x418] sm:$0xff] %vm1265_vm8, %v1633_v6  ;;  %1904 = vrot.lane.b32.xlu0 %v1435_v39, %s7266_s20  ;;  %v1438_v6 = vsel %vm12289_vm7, %v8676_v61, %v8701_v26  ;;  %v12334_v61 = vmov 0  }
 0x18c   : > { %v1635_v2 = vpop.permute.xlu1 %1634  ;;  %3240 = vmatmul.mubr.bf16.gmra.mrb[76].mxu1 %v2332_v62  ;;  %1551 = vst.msk [vmem:[#allocation3 + $0x648] sm:$0xff] %vm353_vm0, %v1438_v6  ;;  %2223 = vst.msk [vmem:[#allocation3 + $0x570] sm:$0xff] %vm353_vm0, %v1438_v6  ;;  %1906 = vrot.lane.b32.xlu1 %v1438_v6, %s7266_s20 }
 0x18d   : > { %1751 = vst.msk [vmem:[#allocation3 + $0x440] sm:$0xff] %vm1265_vm8, %v1635_v2  ;;  %3245 = vmatprep.mubr.bf16.mxu1 %v2338_v21  ;;  %v2352_v21 = vld [vmem:[#allocation3 + $0x398] sm:$0xff]  ;;  %v2354_v2 = vld [vmem:[#allocation3 + $0x3a8] sm:$0xff] }
 0x18e   : > { %v1637_v46 = vpop.permute.xlu0 %1636  ;;  %v2358_v19 = vld [vmem:[#allocation3 + $0x3c8] sm:$0xff] }
 0x18f   : > { %1752 = vst.msk [vmem:[#allocation3 + $0x468] sm:$0xff] %vm1265_vm8, %v1637_v46  ;;  %3625 = vmatmul.mubr.bf16.gmra.mrb[76].mxu0 %v2334_v4 }
 0x190   : > { %v1639_v22 = vpop.permute.xlu1 %1638  ;;  %3630 = vmatprep.mubr.bf16.mxu0 %v2340_v40  ;;  %v2363_v46 = vld [vmem:[#allocation3 + $0x3f0] sm:$0xff]  ;;  %v2357_v40 = vld [vmem:[#allocation3 + $0x3c0] sm:$0xff] }
 0x191   : > { %1753 = vst.msk [vmem:[#allocation3 + $0x490] sm:$0xff] %vm1265_vm8, %v1639_v22 }
 0x192   : > { %v1641_v11 = vpop.permute.xlu0 %1640 }
 0x193   : > { %1754 = vst.msk [vmem:[#allocation3 + $0x4b8] sm:$0xff] %vm1265_vm8, %v1641_v11  ;;  %v1441_v11 = vsel %vm12289_vm7, %v8710_v50, %v8735_v56  ;;  %v2368_v56 = vld [vmem:[#allocation3 + $0x418] sm:$0xff] }
 0x194   : > { %v1182_v43 = vpop.permute.xlu1 %1181  ;;  %3246 = vmatmul.mubr.bf16.gmra.mrb[80].mxu1 %v2337_v35  ;;  %1552 = vst.msk [vmem:[#allocation3 + $0x670] sm:$0xff] %vm353_vm0, %v1441_v11  ;;  %2224 = vst.msk [vmem:[#allocation3 + $0x598] sm:$0xff] %vm353_vm0, %v1441_v11  ;;  %1908 = vrot.lane.b32.xlu0 %v1441_v11, %s7266_s20  ;;  %v1456_v11 = vsel %vm12289_vm7, %v8895_v20, %v8912_v53 }
 0x195   : > { %1296 = vst.msk [vmem:[#allocation3 + $0x4b0] sm:$0xff] %vm1265_vm8, %v1182_v43  ;;  %2147 = vst.msk [vmem:[#allocation3 + $0x3d8] sm:$0xff] %vm1265_vm8, %v1182_v43  ;;  %3251 = vmatprep.mubr.bf16.mxu1 %v2343_v1  ;;  %v2241_v1 = vld [vmem:[#allocation3 + $0x20] sm:$0xff]  ;;  %v2362_v43 = vld [vmem:[#allocation3 + $0x3e8] sm:$0xff] }
 0x196   : > { %v1643_v41 = vpop.permute.xlu0 %1642  ;;  %1557 = vst.msk [vmem:[#allocation3 + $0x738] sm:$0xff] %vm353_vm0, %v1456_v11  ;;  %2229 = vst.msk [vmem:[#allocation3 + $0x660] sm:$0xff] %vm353_vm0, %v1456_v11 }
 0x197   : > { %1755 = vst.msk [vmem:[#allocation3 + $0x4e0] sm:$0xff] %vm1265_vm8, %v1643_v41  ;;  %3631 = vmatmul.mubr.bf16.gmra.mrb[80].mxu0 %v2339_v57  ;;  %v1444_v41 = vsel %vm12289_vm7, %v8744_v3, %v8768_v27  ;;  %v2373_v27 = vld [vmem:[#allocation3 + $0x440] sm:$0xff] }
 0x198   : > { %v1184_v58 = vpop.permute.xlu1 %1183  ;;  %3636 = vmatprep.mubr.bf16.mxu0 %v2345_v15  ;;  %v2246_v15 = vld [vmem:[#allocation3 + $0x48] sm:$0xff]  ;;  %1553 = vst.msk [vmem:[#allocation3 + $0x698] sm:$0xff] %vm353_vm0, %v1444_v41  ;;  %2225 = vst.msk [vmem:[#allocation3 + $0x5c0] sm:$0xff] %vm353_vm0, %v1444_v41  ;;  %1910 = vrot.lane.b32.xlu1 %v1444_v41, %s7266_s20  ;;  %v9204_v41 = vrot.slane %v1459_v34, 1 }
 0x199   : > { %1297 = vst.msk [vmem:[#allocation3 + $0x4d8] sm:$0xff] %vm1265_vm8, %v1184_v58  ;;  %2148 = vst.msk [vmem:[#allocation3 + $0x400] sm:$0xff] %vm1265_vm8, %v1184_v58 }
 0x19a   : > { %v1645_v37 = vpop.permute.xlu0 %1644 }
 0x19b   : > { %1756 = vst.msk [vmem:[#allocation3 + $0x508] sm:$0xff] %vm1265_vm8, %v1645_v37 }
 0x19c   : > { %v1186_v42 = vpop.permute.xlu1 %1185  ;;  %3252 = vmatmul.mubr.bf16.gmra.mrb[84].mxu1 %v2342_v13  ;;  %v2367_v13 = vld [vmem:[#allocation3 + $0x410] sm:$0xff] }
 0x19d   : > { %1298 = vst.msk [vmem:[#allocation3 + $0x500] sm:$0xff] %vm1265_vm8, %v1186_v42  ;;  %2149 = vst.msk [vmem:[#allocation3 + $0x428] sm:$0xff] %vm1265_vm8, %v1186_v42  ;;  %3261 = vmatprep.mubr.bf16.mxu1 %v2348_v8  ;;  %v1447_v8 = vsel %vm12289_vm7, %v8776_v32, %v8798_v28 }
 0x19e   : > { %v1647_v12 = vpop.permute.xlu0 %1646  ;;  %1554 = vst.msk [vmem:[#allocation3 + $0x6c0] sm:$0xff] %vm353_vm0, %v1447_v8  ;;  %2226 = vst.msk [vmem:[#allocation3 + $0x5e8] sm:$0xff] %vm353_vm0, %v1447_v8  ;;  %1912 = vrot.lane.b32.xlu0 %v1447_v8, %s7266_s20  ;;  %v1462_v8 = vsel %vm12289_vm7, %v8930_v5, %v9204_v41 }
 0x19f   : > { %1757 = vst.msk [vmem:[#allocation3 + $0x530] sm:$0xff] %vm1265_vm8, %v1647_v12  ;;  %3637 = vmatmul.mubr.bf16.gmra.mrb[84].mxu0 %v2344_v38 }
 0x1a0   : > { %v1188_v44 = vpop.permute.xlu1 %1187  ;;  %3646 = vmatprep.mubr.bf16.mxu0 %v2350_v49  ;;  %1558 = vst.msk [vmem:[#allocation3 + $0x760] sm:$0xff] %vm353_vm0, %v1462_v8  ;;  %2230 = vst.msk [vmem:[#allocation3 + $0x688] sm:$0xff] %vm353_vm0, %v1462_v8 }
 0x1a1   : > { %1299 = vst.msk [vmem:[#allocation3 + $0x528] sm:$0xff] %vm1265_vm8, %v1188_v44  ;;  %2150 = vst.msk [vmem:[#allocation3 + $0x450] sm:$0xff] %vm1265_vm8, %v1188_v44 }
 0x1a2   : > { %v1649_v55 = vpop.permute.xlu0 %1648  ;;  %2105 = vrot.lane.b32.xlu0 %v8916_v60, %s7266_s20 }
 0x1a3   : > { %1758 = vst.msk [vmem:[#allocation3 + $0x558] sm:$0xff] %vm1265_vm8, %v1649_v55  ;;  %v2378_v55 = vld [vmem:[#allocation3 + $0x468] sm:$0xff] }
 0x1a4   : > { %v1190_v30 = vpop.permute.xlu1 %1189  ;;  %3262 = vmatmul.mubr.bf16.gmra.mrb[88].mxu1 %v2347_v23  ;;  %v1450_v23 = vsel %vm12289_vm7, %v8814_v48, %v8835_v63 }
 0x1a5   : > { %1300 = vst.msk [vmem:[#allocation3 + $0x550] sm:$0xff] %vm1265_vm8, %v1190_v30  ;;  %2151 = vst.msk [vmem:[#allocation3 + $0x478] sm:$0xff] %vm1265_vm8, %v1190_v30  ;;  %3267 = vmatprep.mubr.bf16.mxu1 %v2353_v36  ;;  %v2372_v36 = vld [vmem:[#allocation3 + $0x438] sm:$0xff]  ;;  %1914 = vrot.lane.b32.xlu1 %v1450_v23, %s7266_s20 }
 0x1a6   : > { %v1651_v59 = vpop.permute.xlu0 %1650  ;;  %2107 = vrot.lane.b32.xlu0 %v8961_v0, %s7266_s20  ;;  %v2256_v30 = vld [vmem:[#allocation3 + $0x98] sm:$0xff]  ;;  %1555 = vst.msk [vmem:[#allocation3 + $0x6e8] sm:$0xff] %vm353_vm0, %v1450_v23  ;;  %2227 = vst.msk [vmem:[#allocation3 + $0x610] sm:$0xff] %vm353_vm0, %v1450_v23 }
 0x1a7   : > { %1759 = vst.msk [vmem:[#allocation3 + $0x580] sm:$0xff] %vm1265_vm8, %v1651_v59  ;;  %3647 = vmatmul.mubr.bf16.gmra.mrb[88].mxu0 %v2349_v17 }
 0x1a8   : > { %v1192_v52 = vpop.permute.xlu1 %1191  ;;  %3652 = vmatprep.mubr.bf16.mxu0 %v2355_v25 }
 0x1a9   : > { %1301 = vst.msk [vmem:[#allocation3 + $0x578] sm:$0xff] %vm1265_vm8, %v1192_v52  ;;  %2152 = vst.msk [vmem:[#allocation3 + $0x4a0] sm:$0xff] %vm1265_vm8, %v1192_v52  ;;  %v2383_v52 = vld [vmem:[#allocation3 + $0x490] sm:$0xff] }
 0x1aa   : > { %v1653_v45 = vpop.permute.xlu0 %1652  ;;  %2109 = vrot.lane.b32.xlu0 %v8986_v7, %s7266_s20 }
 0x1ab   : > { %1760 = vst.msk [vmem:[#allocation3 + $0x5a8] sm:$0xff] %vm1265_vm8, %v1653_v45 }
 0x1ac   : > { %v1194_v62 = vpop.permute.xlu1 %1193  ;;  %3268 = vmatmul.mubr.bf16.gmra.mrb[92].mxu1 %v2352_v21  ;;  %v1453_v21 = vsel %vm12289_vm7, %v8847_v54, %v8878_v9 }
 0x1ad   : > { %1302 = vst.msk [vmem:[#allocation3 + $0x5a0] sm:$0xff] %vm1265_vm8, %v1194_v62  ;;  %2153 = vst.msk [vmem:[#allocation3 + $0x4c8] sm:$0xff] %vm1265_vm8, %v1194_v62  ;;  %3273 = vmatprep.mubr.bf16.mxu1 %v2358_v19  ;;  %v2377_v19 = vld [vmem:[#allocation3 + $0x460] sm:$0xff]  ;;  %1916 = vrot.lane.b32.xlu1 %v1453_v21, %s7266_s20 }
 0x1ae   : > { %v1655_v16 = vpop.permute.xlu0 %1654  ;;  %1556 = vst.msk [vmem:[#allocation3 + $0x710] sm:$0xff] %vm353_vm0, %v1453_v21  ;;  %2228 = vst.msk [vmem:[#allocation3 + $0x638] sm:$0xff] %vm353_vm0, %v1453_v21 }
 0x1af   : > { %1761 = vst.msk [vmem:[#allocation3 + $0x5d0] sm:$0xff] %vm1265_vm8, %v1655_v16  ;;  %3653 = vmatmul.mubr.bf16.gmra.mrb[92].mxu0 %v2354_v2  ;;  %v2261_v2 = vld [vmem:[#allocation3 + $0xc0] sm:$0xff] }
 0x1b0   : > { %v1196_v4 = vpop.permute.xlu1 %1195  ;;  %3867 = vmatprep.mubr.bf16.mxu0 %v12334_v61 }
 0x1b1   : > { %1303 = vst.msk [vmem:[#allocation3 + $0x5c8] sm:$0xff] %vm1265_vm8, %v1196_v4  ;;  %2154 = vst.msk [vmem:[#allocation3 + $0x4f0] sm:$0xff] %vm1265_vm8, %v1196_v4  ;;  %1918 = vrot.lane.b32.xlu1 %v1456_v11, %s7266_s20  ;;  %v2408_v11 = vld [vmem:[#allocation3 + $0x558] sm:$0xff] }
 0x1b2   : > { %v1657_v26 = vpop.permute.xlu0 %1656 }
 0x1b3   : > { %1762 = vst.msk [vmem:[#allocation3 + $0x5f8] sm:$0xff] %vm1265_vm8, %v1657_v26 }
 0x1b4   : > { %v1198_v22 = vpop.permute.xlu1 %1197  ;;  %3274 = vmatmul.mubr.bf16.gmra.mrb[96].mxu1 %v2357_v40 }
 0x1b5   : > { %1304 = vst.msk [vmem:[#allocation3 + $0x5f0] sm:$0xff] %vm1265_vm8, %v1198_v22  ;;  %2155 = vst.msk [vmem:[#allocation3 + $0x518] sm:$0xff] %vm1265_vm8, %v1198_v22  ;;  %3283 = vmatprep.mubr.bf16.mxu1 %v2363_v46  ;;  %v2388_v22 = vld [vmem:[#allocation3 + $0x4b8] sm:$0xff]  ;;  %1920 = vrot.lane.b32.xlu1 %v1462_v8, %s7266_s20 }
 0x1b6   : > { %v1659_v51 = vpop.permute.xlu0 %1658 }
 0x1b7   : > { %1763 = vst.msk [vmem:[#allocation3 + $0x620] sm:$0xff] %vm1265_vm8, %v1659_v51  ;;  %6551 = vmatmul.mubr.msk.bf16.vlgmr.msra.gmra.mrb[0].mxu0 %vm353_vm0, %v2241_v1  ;;  %v2382_v51 = vld [vmem:[#allocation3 + $0x488] sm:$0xff] }
 0x1b8   : > { %v1200_v35 = vpop.permute.xlu1 %1199  ;;  %3877 = vmatprep.mubr.bf16.mxu0 %v12334_v61 }
 0x1b9   : > { %1305 = vst.msk [vmem:[#allocation3 + $0x618] sm:$0xff] %vm1265_vm8, %v1200_v35  ;;  %2156 = vst.msk [vmem:[#allocation3 + $0x540] sm:$0xff] %vm1265_vm8, %v1200_v35 }
 0x1ba   : > { %v1661_v50 = vpop.permute.xlu0 %1660 }
 0x1bb   : > { %1764 = vst.msk [vmem:[#allocation3 + $0x648] sm:$0xff] %vm1265_vm8, %v1661_v50 }
 0x1bc   : > { %v1202_v57 = vpop.permute.xlu1 %1201  ;;  %3284 = vmatmul.mubr.bf16.gmra.mrb[100].mxu1 %v2362_v43  ;;  %v2266_v43 = vld [vmem:[#allocation3 + $0xe8] sm:$0xff] }
 0x1bd   : > { %1306 = vst.msk [vmem:[#allocation3 + $0x640] sm:$0xff] %vm1265_vm8, %v1202_v57  ;;  %2157 = vst.msk [vmem:[#allocation3 + $0x568] sm:$0xff] %vm1265_vm8, %v1202_v57  ;;  %3289 = vmatprep.mubr.bf16.mxu1 %v2368_v56 }
 0x1be   : > { %v1663_v58 = vpop.permute.xlu0 %1662 }
 0x1bf   : > { %1765 = vst.msk [vmem:[#allocation3 + $0x670] sm:$0xff] %vm1265_vm8, %v1663_v58  ;;  %6552 = vmatmul.mubr.msk.bf16.gmra.mrb[96].mxu0 %vm353_vm0, %v2246_v15 }
 0x1c0   : > { %v1204_v37 = vpop.permute.xlu1 %1203  ;;  %3883 = vmatprep.mubr.bf16.mxu0 %v12334_v61 }
 0x1c1   : > { %1307 = vst.msk [vmem:[#allocation3 + $0x668] sm:$0xff] %vm1265_vm8, %v1204_v37  ;;  %2158 = vst.msk [vmem:[#allocation3 + $0x590] sm:$0xff] %vm1265_vm8, %v1204_v37  ;;  %v2387_v37 = vld [vmem:[#allocation3 + $0x4b0] sm:$0xff] }
 0x1c2   : > { %v1665_v3 = vpop.permute.xlu0 %1664 }
 0x1c3   : > { %1766 = vst.msk [vmem:[#allocation3 + $0x698] sm:$0xff] %vm1265_vm8, %v1665_v3 }
 0x1c4   : > { %v1206_v42 = vpop.permute.xlu1 %1205  ;;  %3290 = vmatmul.mubr.bf16.gmra.mrb[104].mxu1 %v2367_v13  ;;  %v9149_v38 = vpop.f32.mrb[0].mxu1  ;;  %v2271_v13 = vld [vmem:[#allocation3 + $0x110] sm:$0xff] }
 0x1c5   : > { %1308 = vst.msk [vmem:[#allocation3 + $0x690] sm:$0xff] %vm1265_vm8, %v1206_v42  ;;  %2159 = vst.msk [vmem:[#allocation3 + $0x5b8] sm:$0xff] %vm1265_vm8, %v1206_v42  ;;  %3295 = vmatprep.mubr.bf16.mxu1 %v2373_v27  ;;  %v9151_v49 = vpop.f32.mrb[1].mxu1  ;;  %v2393_v27 = vld [vmem:[#allocation3 + $0x4e0] sm:$0xff] }
 0x1c6   : > { %v1667_v12 = vpop.permute.xlu0 %1666  ;;  %v9154_v32 = vpop.f32.mrb[2].mxu1 }
 0x1c7   : > { %1767 = vst.msk [vmem:[#allocation3 + $0x6c0] sm:$0xff] %vm1265_vm8, %v1667_v12  ;;  %6553 = vmatmul.mubr.msk.bf16.gmra.mrb[100].mxu0 %vm353_vm0, %v2251_v47  ;;  %v9159_v44 = vpop.f32.mrb[3].mxu1 }
 0x1c8   : > { %v1208_v28 = vpop.permute.xlu1 %1207  ;;  %3889 = vmatprep.mubr.bf16.mxu0 %v12334_v61 }
 0x1c9   : > { %1309 = vst.msk [vmem:[#allocation3 + $0x6b8] sm:$0xff] %vm1265_vm8, %v1208_v28  ;;  %2160 = vst.msk [vmem:[#allocation3 + $0x5e0] sm:$0xff] %vm1265_vm8, %v1208_v28  ;;  %v2392_v28 = vld [vmem:[#allocation3 + $0x4d8] sm:$0xff] }
 0x1cc   : > { %3296 = vmatmul.mubr.bf16.gmra.mrb[108].mxu1 %v2372_v36  ;;  %v1210_v17 = vpop.permute.xlu1 %1209  ;;  %v2398_v36 = vld [vmem:[#allocation3 + $0x508] sm:$0xff] }
 0x1cd   : > { %3305 = vmatprep.mubr.bf16.mxu1 %v2378_v55  ;;  %v1669_v39 = vpop.permute.xlu0 %1668  ;;  %1310 = vst.msk [vmem:[#allocation3 + $0x6e0] sm:$0xff] %vm1265_vm8, %v1210_v17  ;;  %2161 = vst.msk [vmem:[#allocation3 + $0x608] sm:$0xff] %vm1265_vm8, %v1210_v17  ;;  %v2276_v17 = vld [vmem:[#allocation3 + $0x138] sm:$0xff] }
 0x1ce   : > { %1768 = vst.msk [vmem:[#allocation3 + $0x6e8] sm:$0xff] %vm1265_vm8, %v1669_v39  ;;  %v3109_v59 = vpop.f32.mrb[4].mxu1 }
 0x1cf   : > { %6554 = vmatmul.mubr.msk.bf16.gmra.mrb[12].mxu0 %vm353_vm0, %v2256_v30  ;;  %v3110_v48 = vpop.f32.mrb[5].mxu1 }
 0x1d0   : > { %v3111_v63 = vpop.f32.mrb[6].mxu1  ;;  %3899 = vmatprep.mubr.bf16.mxu0 %v12334_v61  ;;  %v1212_v26 = vpop.permute.xlu1 %1211 }
 0x1d1   : > { %v3112_v25 = vpop.f32.mrb[7].mxu1  ;;  %v1671_v16 = vpop.permute.xlu0 %1670  ;;  %1311 = vst.msk [vmem:[#allocation3 + $0x708] sm:$0xff] %vm1265_vm8, %v1212_v26  ;;  %2162 = vst.msk [vmem:[#allocation3 + $0x630] sm:$0xff] %vm1265_vm8, %v1212_v26 }
 0x1d2   : > { %v3494_v45 = vpop.f32.mrb[4].mxu0  ;;  %1769 = vst.msk [vmem:[#allocation3 + $0x710] sm:$0xff] %vm1265_vm8, %v1671_v16 }
 0x1d3   : > { %v3495_v6 = vpop.f32.mrb[5].mxu0  ;;  %v2397_v45 = vld [vmem:[#allocation3 + $0x500] sm:$0xff] }
 0x1d4   : > { %3306 = vmatmul.mubr.bf16.gmra.mrb[112].mxu1 %v2377_v19  ;;  %v3496_v62 = vpop.f32.mrb[6].mxu0  ;;  %v1214_v35 = vpop.permute.xlu1 %1213  ;;  %v2403_v6 = vld [vmem:[#allocation3 + $0x530] sm:$0xff] }
 0x1d5   : > { %3311 = vmatprep.mubr.bf16.mxu1 %v2383_v52  ;;  %v3497_v4 = vpop.f32.mrb[7].mxu0  ;;  %1312 = vst.msk [vmem:[#allocation3 + $0x730] sm:$0xff] %vm1265_vm8, %v1214_v35  ;;  %2163 = vst.msk [vmem:[#allocation3 + $0x658] sm:$0xff] %vm1265_vm8, %v1214_v35 }
 0x1d6   : > { %v3115_v46 = vpop.f32.mrb[8].mxu1  ;;  %v2281_v4 = vld [vmem:[#allocation3 + $0x160] sm:$0xff] }
 0x1d7   : > { %6555 = vmatmul.mubr.msk.bf16.gmra.mrb[104].mxu0 %vm353_vm0, %v2261_v2  ;;  %v3116_v54 = vpop.f32.mrb[9].mxu1 }
 0x1d8   : > { %v3117_v9 = vpop.f32.mrb[10].mxu1  ;;  %3905 = vmatprep.mubr.bf16.mxu0 %v12334_v61  ;;  %v1216_v42 = vpop.permute.xlu1 %1215 }
 0x1d9   : > { %v3118_v40 = vpop.f32.mrb[11].mxu1  ;;  %1313 = vst.msk [vmem:[#allocation3 + $0x758] sm:$0xff] %vm1265_vm8, %v1216_v42  ;;  %2164 = vst.msk [vmem:[#allocation3 + $0x680] sm:$0xff] %vm1265_vm8, %v1216_v42 }
 0x1da   : > { %v3500_v1 = vpop.f32.mrb[8].mxu0  ;;  %v2402_v40 = vld [vmem:[#allocation3 + $0x528] sm:$0xff] }
 0x1db   : > { %v3501_v50 = vpop.f32.mrb[9].mxu0  ;;  %v2286_v1 = vld [vmem:[#allocation3 + $0x188] sm:$0xff] }
 0x1dc   : > { %3312 = vmatmul.mubr.bf16.gmra.mrb[116].mxu1 %v2382_v51  ;;  %v3502_v56 = vpop.f32.mrb[10].mxu0  ;;  %v1673_v57 = vpop.permute.xlu0 %1672 }
 0x1dd   : > { %3317 = vmatprep.mubr.bf16.mxu1 %v2388_v22  ;;  %v3503_v20 = vpop.f32.mrb[11].mxu0  ;;  %1770 = vst.msk [vmem:[#allocation3 + $0x738] sm:$0xff] %vm1265_vm8, %v1673_v57  ;;  %v1883_v62 = vpop.permute.xlu1 %1882 }
 0x1de   : > { %2001 = vst.msk [vmem:[#allocation3 + $0x3f8] sm:$0xff] %vm1265_vm8, %v1883_v62  ;;  %v2413_v20 = vld [vmem:[#allocation3 + $0x580] sm:$0xff] }
 0x1df   : > { %v9199_v53 = vpop.f32.mrb[12].mxu1  ;;  %6556 = vmatmul.mubr.msk.bf16.gmra.mrb[108].mxu0 %vm353_vm0, %v2266_v43  ;;  %v2407_v43 = vld [vmem:[#allocation3 + $0x550] sm:$0xff] }
 0x1e0   : > { %v9206_v15 = vpop.f32.mrb[13].mxu1  ;;  %3911 = vmatprep.mubr.bf16.mxu0 %v12334_v61 }
 0x1e1   : > { %v9208_v58 = vpop.f32.mrb[14].mxu1  ;;  %v1675_v34 = vpop.permute.xlu0 %1674 }
 0x1e2   : > { %v9211_v3 = vpop.f32.mrb[15].mxu1  ;;  %1771 = vst.msk [vmem:[#allocation3 + $0x760] sm:$0xff] %vm1265_vm8, %v1675_v34  ;;  %v1887_v34 = vpop.permute.xlu1 %1886 }
 0x1e3   : > { %2003 = vst.msk [vmem:[#allocation3 + $0x448] sm:$0xff] %vm1265_vm8, %v1887_v34 }
 0x1e4   : > { %3318 = vmatmul.mubr.bf16.gmra.mrb[120].mxu1 %v2387_v37 }
 0x1e5   : > { %3327 = vmatprep.mubr.bf16.mxu1 %v2393_v27  ;;  %v1881_v48 = vpop.permute.xlu0 %1880 }
 0x1e6   : > { %2000 = vst.msk [vmem:[#allocation3 + $0x3d0] sm:$0xff] %vm1265_vm8, %v1881_v48 }
 0x1e7   : > { %v3131_v47 = vpop.f32.mrb[16].mxu1  ;;  %6557 = vmatmul.mubr.msk.bf16.gmra.mrb[24].mxu0 %vm353_vm0, %v2271_v13  ;;  %v2291_v13 = vld [vmem:[#allocation3 + $0x1b0] sm:$0xff] }
 0x1e8   : > { %v3132_v5 = vpop.f32.mrb[17].mxu1  ;;  %3921 = vmatprep.mubr.bf16.mxu0 %v12334_v61 }
 0x1e9   : > { %v3133_v12 = vpop.f32.mrb[18].mxu1  ;;  %v1885_v51 = vpop.permute.xlu0 %1884 }
 0x1ea   : > { %v3134_v55 = vpop.f32.mrb[19].mxu1  ;;  %v3516_v23 = vpop.f32.mrb[16].mxu0  ;;  %2002 = vst.msk [vmem:[#allocation3 + $0x420] sm:$0xff] %vm1265_vm8, %v1885_v51 }
 0x1eb   : > { %v3517_v30 = vpop.f32.mrb[17].mxu0 }
 0x1ec   : > { %3328 = vmatmul.mubr.bf16.gmra.mrb[124].mxu1 %v2392_v28  ;;  %v3518_v39 = vpop.f32.mrb[18].mxu0  ;;  %v2412_v28 = vld [vmem:[#allocation3 + $0x578] sm:$0xff] }
 0x1ed   : > { %3333 = vmatprep.mubr.bf16.mxu1 %v2398_v36  ;;  %v3519_v59 = vpop.f32.mrb[19].mxu0  ;;  %v2418_v36 = vld [vmem:[#allocation3 + $0x5a8] sm:$0xff] }
 0x1ef   : > { %v3137_v63 = vpop.f32.mrb[20].mxu1  ;;  %6558 = vmatmul.mubr.msk.bf16.gmra.mrb[112].mxu0 %vm353_vm0, %v2276_v17  ;;  %v2296_v17 = vld [vmem:[#allocation3 + $0x1d8] sm:$0xff] }
 0x1f0   : > { %v3138_v25 = vpop.f32.mrb[21].mxu1  ;;  %3927 = vmatprep.mubr.bf16.mxu0 %v12334_v61 }
 0x1f1   : > { %v3139_v52 = vpop.f32.mrb[22].mxu1 }
 0x1f2   : > { %v3140_v19 = vpop.f32.mrb[23].mxu1  ;;  %v3522_v21 = vpop.f32.mrb[20].mxu0  ;;  %v2417_v52 = vld [vmem:[#allocation3 + $0x5a0] sm:$0xff] }
 0x1f3   : > { %v3523_v2 = vpop.f32.mrb[21].mxu0  ;;  %v2423_v19 = vld [vmem:[#allocation3 + $0x5d0] sm:$0xff]  ;;  %v2301_v21 = vld [vmem:[#allocation3 + $0x200] sm:$0xff] }
 0x1f4   : > { %3334 = vmatmul.mubr.bf16.gmra.mrb[128].mxu1 %v2397_v45  ;;  %v3524_v16 = vpop.f32.mrb[22].mxu0 }
 0x1f5   : > { %3339 = vmatprep.mubr.bf16.mxu1 %v2403_v6  ;;  %v3525_v26 = vpop.f32.mrb[23].mxu0  ;;  %v1889_v6 = vpop.permute.xlu0 %1888 }
 0x1f6   : > { %2004 = vst.msk [vmem:[#allocation3 + $0x470] sm:$0xff] %vm1265_vm8, %v1889_v6 }
 0x1f7   : > { %v9228_v46 = vpop.f32.mrb[24].mxu1  ;;  %6559 = vmatmul.mubr.msk.bf16.gmra.mrb[116].mxu0 %vm353_vm0, %v2281_v4  ;;  %v2422_v4 = vld [vmem:[#allocation3 + $0x5c8] sm:$0xff] }
 0x1f8   : > { %v9231_v54 = vpop.f32.mrb[25].mxu1  ;;  %3933 = vmatprep.mubr.bf16.mxu0 %v12334_v61 }
 0x1f9   : > { %v9233_v9 = vpop.f32.mrb[26].mxu1 }
 0x1fa   : > { %v9236_v22 = vpop.f32.mrb[27].mxu1 }
 0x1fc   : > { %3340 = vmatmul.mubr.bf16.gmra.mrb[132].mxu1 %v2402_v40  ;;  %v2428_v40 = vld [vmem:[#allocation3 + $0x5f8] sm:$0xff] }
 0x1fd   : > { %3349 = vmatprep.mubr.bf16.mxu1 %v2408_v11  ;;  %v1891_v11 = vpop.permute.xlu1 %1890 }
 0x1fe   : > { %2005 = vst.msk [vmem:[#allocation3 + $0x498] sm:$0xff] %vm1265_vm8, %v1891_v11 }
 0x1ff   : > { %v3153_v35 = vpop.f32.mrb[28].mxu1  ;;  %6560 = vmatmul.mubr.msk.bf16.gmra.mrb[36].mxu0 %vm353_vm0, %v2286_v1 }
 0x200   : > { %v3154_v50 = vpop.f32.mrb[29].mxu1  ;;  %3943 = vmatprep.mubr.bf16.mxu0 %v12334_v61 }
 0x201   : > { %v3155_v56 = vpop.f32.mrb[30].mxu1  ;;  %v2306_v50 = vld [vmem:[#allocation3 + $0x228] sm:$0xff] }
 0x202   : > { %v3156_v57 = vpop.f32.mrb[31].mxu1  ;;  %v3538_v37 = vpop.f32.mrb[28].mxu0 }
 0x203   : > { %v3539_v27 = vpop.f32.mrb[29].mxu0  ;;  %v9260_v37 = vld [vmem:[#allocation2 + $0x1a0] sm:$0xff] }
 0x204   : > { %3350 = vmatmul.mubr.bf16.gmra.mrb[136].mxu1 %v2407_v43  ;;  %v3540_v8 = vpop.f32.mrb[30].mxu0  ;;  %v1893_v43 = vpop.permute.xlu0 %1892  ;;  %2111 = vrot.lane.b32.xlu0 %v9260_v37, %s7266_s20 }
 0x205   : > { %3355 = vmatprep.mubr.bf16.mxu1 %v2413_v20  ;;  %v3541_v42 = vpop.f32.mrb[31].mxu0  ;;  %2006 = vst.msk [vmem:[#allocation3 + $0x4c0] sm:$0xff] %vm1265_vm8, %v1893_v43  ;;  %v2427_v8 = vld [vmem:[#allocation3 + $0x5f0] sm:$0xff] }
 0x206   : > { %v2433_v42 = vld [vmem:[#allocation3 + $0x620] sm:$0xff] }
 0x207   : > { %v3159_v47 = vpop.f32.mrb[32].mxu1  ;;  %6561 = vmatmul.mubr.msk.bf16.gmra.mrb[120].mxu0 %vm353_vm0, %v2291_v13  ;;  %v2024_v13 = vshrl.u32 %v9260_v37, 16 }
 0x208   : > { %v3160_v5 = vpop.f32.mrb[33].mxu1  ;;  %3949 = vmatprep.mubr.bf16.mxu0 %v12334_v61 }
 0x209   : > { %v3161_v12 = vpop.f32.mrb[34].mxu1  ;;  %v1828_v5 = vshll.u32 %v9260_v37, 16 }
 0x20a   : > { %v3162_v55 = vpop.f32.mrb[35].mxu1  ;;  %v3544_v23 = vpop.f32.mrb[32].mxu0  ;;  %v9269_v12 = vrot.slane %v2024_v13, 7 }
 0x20b   : > { %v3545_v30 = vpop.f32.mrb[33].mxu0 }
 0x20c   : > { %3356 = vmatmul.mubr.bf16.gmra.mrb[140].mxu1 %v2412_v28  ;;  %v3546_v39 = vpop.f32.mrb[34].mxu0  ;;  %v9274_v23 = vor.u32 %v9269_v12, %v1828_v5 }
 0x20d   : > { %3361 = vmatprep.mubr.bf16.mxu1 %v2418_v36  ;;  %v3547_v59 = vpop.f32.mrb[35].mxu0  ;;  %v2311_v36 = vld [vmem:[#allocation3 + $0x250] sm:$0xff]  ;;  %v1820_v39 = vor.u32 %v1559_v24, %v9204_v41  ;;  %v2438_v24 = vld [vmem:[#allocation3 + $0x648] sm:$0xff]  ;;  %v1895_v41 = vpop.permute.xlu1 %1894 }
 0x20e   : > { %2007 = vst.msk [vmem:[#allocation3 + $0x4e8] sm:$0xff] %vm1265_vm8, %v1895_v41 }
 0x20f   : > { %v9244_v48 = vpop.f32.mrb[36].mxu1  ;;  %6562 = vmatmul.mubr.msk.bf16.gmra.mrb[124].mxu0 %vm353_vm0, %v2296_v17  ;;  %v1821_v17 = vrot.slane %v1568_v10, 1  ;;  %v2316_v10 = vld [vmem:[#allocation3 + $0x278] sm:$0xff] }
 0x210   : > { %v9247_v63 = vpop.f32.mrb[37].mxu1  ;;  %3955 = vmatprep.mubr.bf16.mxu0 %v12334_v61 }
 0x211   : > { %v9249_v25 = vpop.f32.mrb[38].mxu1 }
 0x212   : > { %v9252_v45 = vpop.f32.mrb[39].mxu1 }
 0x214   : > { %3362 = vmatmul.mubr.bf16.gmra.mrb[144].mxu1 %v2417_v52 }
 0x215   : > { %3371 = vmatprep.mubr.bf16.mxu1 %v2423_v19  ;;  %v1822_v19 = vsel %vm12289_vm7, %v1820_v39, %v1821_v17 }
 0x216   : > { %2231 = vst.msk [vmem:[#allocation3 + $0x6b0] sm:$0xff] %vm353_vm0, %v1822_v19  ;;  %1922 = vrot.lane.b32.xlu1 %v1822_v19, %s7266_s20 }
 0x217   : > { %v3175_v62 = vpop.f32.mrb[40].mxu1  ;;  %6563 = vmatmul.mubr.msk.bf16.gmra.mrb[48].mxu0 %vm353_vm0, %v2301_v21  ;;  %v2432_v21 = vld [vmem:[#allocation3 + $0x618] sm:$0xff] }
 0x218   : > { %v3176_v2 = vpop.f32.mrb[41].mxu1  ;;  %3965 = vmatprep.mubr.bf16.mxu0 %v12334_v61 }
 0x219   : > { %v3177_v16 = vpop.f32.mrb[42].mxu1 }
 0x21a   : > { %v3178_v26 = vpop.f32.mrb[43].mxu1  ;;  %v3560_v1 = vpop.f32.mrb[40].mxu0 }
 0x21b   : > { %v3561_v51 = vpop.f32.mrb[41].mxu0  ;;  %v530_v1 = vld [vmem:[#allocation2 + $0x1a8] sm:$0x1] }
 0x21c   : > { %3372 = vmatmul.mubr.bf16.gmra.mrb[148].mxu1 %v2422_v4  ;;  %v3562_v35 = vpop.f32.mrb[42].mxu0  ;;  %v2437_v4 = vld [vmem:[#allocation3 + $0x640] sm:$0xff] }
 0x21d   : > { %3377 = vmatprep.mubr.bf16.mxu1 %v2428_v40  ;;  %v3563_v56 = vpop.f32.mrb[43].mxu0  ;;  %v2443_v40 = vld [vmem:[#allocation3 + $0x670] sm:$0xff]  ;;  %v531_v35 = vsel %vm7511_vm6, 0, %v530_v1  ;;  %v587_v1 = vld [vmem:[#allocation2 + $0x1b0] sm:$0xff]  ;;  %vm10355_vm6 = vmand %vm12292_vm9, %vm5158_vm1  ;;  %vm6208_vm1 = vsmask.f32 7938 }
 0x21e   : > { %v2321_v56 = vld [vmem:[#allocation3 + $0x2a0] sm:$0xff]  ;;  %532 = vst [vmem:[#allocation2 + $0x1a8] sm:$0x1] %v531_v35 }
 0x21f   : > { %v3181_v57 = vpop.f32.mrb[44].mxu1  ;;  %6564 = vmatmul.mubr.msk.bf16.gmra.mrb[128].mxu0 %vm353_vm0, %v2306_v50 }
 0x220   : > { %v3182_v20 = vpop.f32.mrb[45].mxu1  ;;  %3971 = vmatprep.mubr.bf16.mxu0 %v12334_v61 }
 0x221   : > { %v3183_v27 = vpop.f32.mrb[46].mxu1  ;;  %v1897_v20 = vpop.permute.xlu0 %1896 }
 0x222   : > { %v3184_v34 = vpop.f32.mrb[47].mxu1  ;;  %v3566_v47 = vpop.f32.mrb[44].mxu0  ;;  %2008 = vst.msk [vmem:[#allocation3 + $0x510] sm:$0xff] %vm1265_vm8, %v1897_v20  ;;  %v2458_v20 = vld [vmem:[#allocation3 + $0x6e8] sm:$0xff] }
 0x223   : > { %v3567_v28 = vpop.f32.mrb[45].mxu0  ;;  %v2448_v47 = vld [vmem:[#allocation3 + $0x698] sm:$0xff] }
 0x224   : > { %3378 = vmatmul.mubr.bf16.gmra.mrb[152].mxu1 %v2427_v8  ;;  %v3568_v55 = vpop.f32.mrb[46].mxu0  ;;  %v1899_v8 = vpop.permute.xlu1 %1898 }
 0x225   : > { %3383 = vmatprep.mubr.bf16.mxu1 %v2433_v42  ;;  %v3569_v30 = vpop.f32.mrb[47].mxu0  ;;  %v2442_v42 = vld [vmem:[#allocation3 + $0x668] sm:$0xff]  ;;  %2009 = vst.msk [vmem:[#allocation3 + $0x538] sm:$0xff] %vm1265_vm8, %v1899_v8  ;;  %v1823_v55 = vor.u32 %v1821_v17, %v1565_v33  ;;  %v586_v39 = vld [vmem:[#allocation2 + $0x1a8] sm:$0xff]  ;;  %v2447_v17 = vld [vmem:[#allocation3 + $0x690] sm:$0xff] }
 0x226   : > { %2113 = vrot.lane.b32.xlu0 %v586_v39, %s7266_s20 }
 0x227   : > { %v9281_v59 = vpop.f32.mrb[48].mxu1  ;;  %6565 = vmatmul.mubr.msk.bf16.gmra.mrb[132].mxu0 %vm353_vm0, %v2311_v36  ;;  %v1824_v36 = vrot.slane %v1576_v14, 1 }
 0x228   : > { %v9284_v52 = vpop.f32.mrb[49].mxu1  ;;  %3977 = vmatprep.mubr.bf16.mxu0 %v12334_v61 }
 0x229   : > { %v9287_v6 = vpop.f32.mrb[50].mxu1 }
 0x22a   : > { %12335 = vst [vmem:[#allocation18_spill] sm:$0xff] %v9287_v6  ;;  %v9292_v60 = vpop.f32.mrb[51].mxu1  ;;  %2115 = vrot.lane.b32.xlu0 %v587_v1, %s7266_s20 }
 0x22b   : > { %12336 = vst [vmem:[#allocation13_spill] sm:$0xff] %v9292_v60 }
 0x22c   : > { %3384 = vmatmul.mubr.bf16.gmra.mrb[156].mxu1 %v2432_v21  ;;  %v2326_v21 = vld [vmem:[#allocation3 + $0x2c8] sm:$0xff] }
 0x22d   : > { %3393 = vmatprep.mubr.bf16.mxu1 %v2438_v24  ;;  %v1825_v24 = vsel %vm12289_vm7, %v1823_v55, %v1824_v36  ;;  %v1903_v55 = vpop.permute.xlu1 %1902 }
 0x22e   : > { %2232 = vst.msk [vmem:[#allocation3 + $0x6d8] sm:$0xff] %vm353_vm0, %v1825_v24  ;;  %1924 = vrot.lane.b32.xlu1 %v1825_v24, %s7266_s20  ;;  %v2041_v24 = vshll.u32 %v587_v1, 16 }
 0x22f   : > { %v3197_v62 = vpop.f32.mrb[52].mxu1  ;;  %6566 = vmatmul.mubr.msk.bf16.gmra.mrb[60].mxu0 %vm353_vm0, %v2316_v10  ;;  %2011 = vst.msk [vmem:[#allocation3 + $0x588] sm:$0xff] %vm1265_vm8, %v1903_v55 }
 0x230   : > { %v3198_v2 = vpop.f32.mrb[53].mxu1  ;;  %3987 = vmatprep.mubr.bf16.mxu0 %v12334_v61  ;;  %v2453_v62 = vld [vmem:[#allocation3 + $0x6c0] sm:$0xff] }
 0x231   : > { %v3199_v16 = vpop.f32.mrb[54].mxu1  ;;  %v1830_v2 = vrot.slane %v1828_v5, 1  ;;  %v1907_v55 = vpop.permute.xlu1 %1906 }
 0x232   : > { %v3200_v26 = vpop.f32.mrb[55].mxu1  ;;  %v3582_v11 = vpop.f32.mrb[52].mxu0  ;;  %v1826_v16 = vor.u32 %v1824_v36, %v1573_v29  ;;  %2013 = vst.msk [vmem:[#allocation3 + $0x5d8] sm:$0xff] %vm1265_vm8, %v1907_v55 }
 0x233   : > { %v3583_v51 = vpop.f32.mrb[53].mxu0  ;;  %v2171_v26 = vor.u32 %v2024_v13, %v1830_v2  ;;  %v2033_v11 = vshll.u32 %v586_v39, 16  ;;  %v1901_v29 = vpop.permute.xlu0 %1900  ;;  %v2452_v13 = vld [vmem:[#allocation3 + $0x6b8] sm:$0xff] }
 0x234   : > { %3394 = vmatmul.mubr.bf16.gmra.mrb[160].mxu1 %v2437_v4  ;;  %v3584_v50 = vpop.f32.mrb[54].mxu0  ;;  %v2331_v4 = vld [vmem:[#allocation3 + $0x2f0] sm:$0xff]  ;;  %v1831_v51 = vsel %vm12289_vm7, %v1826_v16, %v1830_v2  ;;  %2010 = vst.msk [vmem:[#allocation3 + $0x560] sm:$0xff] %vm1265_vm8, %v1901_v29 }
 0x235   : > { %3399 = vmatprep.mubr.bf16.mxu1 %v2443_v40  ;;  %v3585_v43 = vpop.f32.mrb[55].mxu0  ;;  %v2030_v40 = vshrl.u32 %v586_v39, 16  ;;  %v2172_v5 = vrot.slane %v2033_v11, 1  ;;  %2233 = vst.msk [vmem:[#allocation3 + $0x700] sm:$0xff] %vm353_vm0, %v1831_v51  ;;  %1926 = vrot.lane.b32.xlu1 %v1831_v51, %s7266_s20 }
 0x237   : > { %v3203_v57 = vpop.f32.mrb[56].mxu1  ;;  %6567 = vmatmul.mubr.msk.bf16.gmra.mrb[136].mxu0 %vm353_vm0, %v2321_v56  ;;  %v9329_v50 = vrot.slane %v2030_v40, 7  ;;  %v2173_v43 = vsel %vm12289_vm7, %v2171_v26, %v2172_v5  ;;  %v2174_v39 = vor.u32 %v2172_v5, %v2030_v40  ;;  %v2175_v26 = vrot.slane %v2041_v24, 1 }
 0x238   : > { %v3204_v27 = vpop.f32.mrb[57].mxu1  ;;  %3993 = vmatprep.mubr.bf16.mxu0 %v12334_v61  ;;  %2234 = vst.msk [vmem:[#allocation3 + $0x728] sm:$0xff] %vm353_vm0, %v2173_v43 }
 0x239   : > { %v3205_v34 = vpop.f32.mrb[58].mxu1  ;;  %v9336_v56 = vor.u32 %v2033_v11, %v9329_v50 }
 0x23a   : > { %v3206_v31 = vpop.f32.mrb[59].mxu1  ;;  %v3588_v28 = vpop.f32.mrb[56].mxu0 }
 0x23b   : > { %v3589_v30 = vpop.f32.mrb[57].mxu0 }
 0x23c   : > { %3400 = vmatmul.mubr.bf16.gmra.mrb[164].mxu1 %v2442_v42  ;;  %v3590_v19 = vpop.f32.mrb[58].mxu0  ;;  %v2336_v42 = vld [vmem:[#allocation3 + $0x318] sm:$0xff]  ;;  %v2457_v30 = vld [vmem:[#allocation3 + $0x6e0] sm:$0xff] }
 0x23d   : > { %3405 = vmatprep.mubr.bf16.mxu1 %v2448_v47  ;;  %v3591_v10 = vpop.f32.mrb[59].mxu0  ;;  %v588_v19 = vld [vmem:[#allocation2 + $0x1b8] sm:$0xff] }
 0x23e   : > { %v1905_v10 = vpop.permute.xlu0 %1904  ;;  %v2179_v2 = vshll.u32 %v588_v19, 16 }
 0x23f   : > { %v9311_v0 = vpop.f32.mrb[60].mxu1  ;;  %6568 = vmatmul.mubr.msk.bf16.gmra.mrb[140].mxu0 %vm353_vm0, %v2326_v21  ;;  %v2038_v21 = vshrl.u32 %v587_v1, 16  ;;  %2012 = vst.msk [vmem:[#allocation3 + $0x5b0] sm:$0xff] %vm1265_vm8, %v1905_v10  ;;  %v2176_v1 = vsel %vm12289_vm7, %v2174_v39, %v2175_v26 }
 0x240   : > { %12337 = vst [vmem:[#allocation14_spill] sm:$0xff] %v9311_v0  ;;  %v9314_v33 = vpop.f32.mrb[61].mxu1  ;;  %3999 = vmatprep.mubr.bf16.mxu0 %v12334_v61  ;;  %v2181_v51 = vrot.slane %v2179_v2, 1  ;;  %2235 = vst.msk [vmem:[#allocation3 + $0x750] sm:$0xff] %vm353_vm0, %v2176_v1 }
 0x241   : > { %12338 = vst [vmem:[#allocation15_spill] sm:$0xff] %v9314_v33  ;;  %v9316_v14 = vpop.f32.mrb[62].mxu1  ;;  %v2177_v5 = vor.u32 %v2175_v26, %v2038_v21 }
 0x242   : > { %12339 = vst [vmem:[#allocation16_spill] sm:$0xff] %v9316_v14  ;;  %v9319_v41 = vpop.f32.mrb[63].mxu1 }
 0x243   : > { %12340 = vst [vmem:[#allocation17_spill] sm:$0xff] %v9319_v41 }
 0x244   : > { %3406 = vmatmul.mubr.bf16.gmra.mrb[168].mxu1 %v2447_v17 }
 0x245   : > { %3415 = vmatprep.mubr.bf16.mxu1 %v2453_v62  ;;  %v2463_v62 = vld [vmem:[#allocation3 + $0x710] sm:$0xff] }
 0x247   : > { %v3219_v35 = vpop.f32.mrb[64].mxu1  ;;  %6569 = vmatmul.mubr.msk.bf16.gmra.mrb[72].mxu0 %vm353_vm0, %v2331_v4  ;;  %v2040_v4 = vrot.slane %v2038_v21, 7 }
 0x248   : > { %v3220_v7 = vpop.f32.mrb[65].mxu1  ;;  %4009 = vmatprep.mubr.bf16.mxu0 %v12334_v61 }
 0x249   : > { %v3221_v37 = vpop.f32.mrb[66].mxu1  ;;  %v2341_v7 = vld [vmem:[#allocation3 + $0x340] sm:$0xff]  ;;  %v9345_v40 = vor.u32 %v2041_v24, %v2040_v4  ;;  %v2351_v24 = vld [vmem:[#allocation3 + $0x390] sm:$0xff]  ;;  %v1909_v4 = vpop.permute.xlu0 %1908 }
 0x24a   : > { %v3222_v57 = vpop.f32.mrb[67].mxu1  ;;  %v3604_v27 = vpop.f32.mrb[64].mxu0  ;;  %2014 = vst.msk [vmem:[#allocation3 + $0x600] sm:$0xff] %vm1265_vm8, %v1909_v4 }
 0x24b   : > { %v3605_v8 = vpop.f32.mrb[65].mxu0 }
 0x24c   : > { %3416 = vmatmul.mubr.bf16.gmra.mrb[172].mxu1 %v2452_v13  ;;  %v3606_v34 = vpop.f32.mrb[66].mxu0  ;;  %v2182_v13 = vsel %vm12289_vm7, %v2177_v5, %v2181_v51  ;;  %v2468_v8 = vld [vmem:[#allocation3 + $0x738] sm:$0xff]  ;;  %vm4303_vm7 = vcmask 1047559  }
 0x24d   : > { %3421 = vmatprep.mubr.bf16.mxu1 %v2458_v20  ;;  %v3607_v31 = vpop.f32.mrb[67].mxu0  ;;  %2236 = vst.msk [vmem:[#allocation3 + $0x778] sm:$0xff] %vm353_vm0, %v2182_v13  ;;  %v2462_v20 = vld [vmem:[#allocation3 + $0x708] sm:$0xff]  ;;  %v2356_v5 = vld [vmem:[#allocation3 + $0x3b8] sm:$0xff] }
 0x24e   : > { %v2346_v34 = vld [vmem:[#allocation3 + $0x368] sm:$0xff] }
 0x24f   : > { %v3225_v47 = vpop.f32.mrb[68].mxu1  ;;  %6570 = vmatmul.mubr.msk.bf16.gmra.mrb[144].mxu0 %vm353_vm0, %v2336_v42 }
 0x250   : > { %v3226_v28 = vpop.f32.mrb[69].mxu1  ;;  %4015 = vmatprep.mubr.bf16.mxu0 %v12334_v61 }
 0x251   : > { %v3227_v36 = vpop.f32.mrb[70].mxu1  ;;  %v2467_v28 = vld [vmem:[#allocation3 + $0x730] sm:$0xff] }
 0x252   : > { %v3228_v17 = vpop.f32.mrb[71].mxu1  ;;  %v3610_v16 = vpop.f32.mrb[68].mxu0 }
 0x253   : > { %v3611_v11 = vpop.f32.mrb[69].mxu0  ;;  %v2472_v16 = vld [vmem:[#allocation3 + $0x758] sm:$0xff] }
 0x254   : > { %3422 = vmatmul.mubr.bf16.gmra.mrb[176].mxu1 %v2457_v30  ;;  %v3612_v35 = vpop.f32.mrb[70].mxu0  ;;  %v2473_v30 = vld [vmem:[#allocation3 + $0x760] sm:$0xff]  ;;  %v1911_v11 = vpop.permute.xlu1 %1910 }
 0x255   : > { %3427 = vmatprep.mubr.bf16.mxu1 %v2463_v62  ;;  %v3613_v29 = vpop.f32.mrb[71].mxu0  ;;  %2015 = vst.msk [vmem:[#allocation3 + $0x628] sm:$0xff] %vm1265_vm8, %v1911_v11 }
 0x257   : > { %v9349_v37 = vpop.f32.mrb[72].mxu1  ;;  %6571 = vmatmul.mubr.msk.bf16.gmra.mrb[148].mxu0 %vm353_vm0, %v2341_v7  ;;  %v2360_v7 = vld [vmem:[#allocation3 + $0x3d8] sm:$0xff] }
 0x258   : > { %12341 = vst [vmem:[#allocation19_spill] sm:$0xff] %v9349_v37  ;;  %v9353_v43 = vpop.f32.mrb[73].mxu1  ;;  %4021 = vmatprep.mubr.bf16.mxu0 %v12334_v61 }
 0x259   : > { %12342 = vst [vmem:[#allocation20_spill] sm:$0xff] %v9353_v43  ;;  %v9356_v57 = vpop.f32.mrb[74].mxu1 }
 0x25a   : > { %12343 = vst [vmem:[#allocation21_spill] sm:$0xff] %v9356_v57  ;;  %v9359_v27 = vpop.f32.mrb[75].mxu1 }
 0x25b   : > { %12344 = vst [vmem:[#allocation22_spill] sm:$0xff] %v9359_v27 }
 0x25c   : > { %3428 = vmatmul.mubr.bf16.gmra.mrb[180].mxu1 %v2462_v20 }
 0x25d   : > { %3437 = vmatprep.mubr.bf16.mxu1 %v2468_v8 }
 0x25f   : > { %v3241_v42 = vpop.f32.mrb[76].mxu1  ;;  %6572 = vmatmul.mubr.msk.bf16.gmra.mrb[84].mxu0 %vm353_vm0, %v2346_v34  ;;  %v2359_v34 = vld [vmem:[#allocation3 + $0x3d0] sm:$0xff] }
 0x260   : > { %v3242_v31 = vpop.f32.mrb[77].mxu1  ;;  %4031 = vmatprep.mubr.bf16.mxu0 %v12334_v61 }
 0x261   : > { %v3243_v47 = vpop.f32.mrb[78].mxu1  ;;  %v2365_v31 = vld [vmem:[#allocation3 + $0x400] sm:$0xff] }
 0x262   : > { %v3244_v36 = vpop.f32.mrb[79].mxu1  ;;  %v3626_v39 = vpop.f32.mrb[76].mxu0  ;;  %v2361_v47 = vld [vmem:[#allocation3 + $0x3e0] sm:$0xff] }
 0x263   : > { %v3627_v19 = vpop.f32.mrb[77].mxu0  ;;  %v1913_v39 = vpop.permute.xlu0 %1912 }
 0x264   : > { %3438 = vmatmul.mubr.bf16.gmra.mrb[184].mxu1 %v2467_v28  ;;  %v3628_v21 = vpop.f32.mrb[78].mxu0  ;;  %v2551_v19 = vlaneseq  ;;  %2016 = vst.msk [vmem:[#allocation3 + $0x650] sm:$0xff] %vm1265_vm8, %v1913_v39 }
 0x265   : > { %3443 = vmatprep.mubr.bf16.mxu1 %v2473_v30  ;;  %v3629_v10 = vpop.f32.mrb[79].mxu0  ;;  %v2364_v30 = vld [vmem:[#allocation3 + $0x3f8] sm:$0xff] }
 0x267   : > { %v3247_v17 = vpop.f32.mrb[80].mxu1  ;;  %6573 = vmatmul.mubr.msk.bf16.gmra.mrb[152].mxu0 %vm353_vm0, %v2351_v24 }
 0x268   : > { %v3248_v62 = vpop.f32.mrb[81].mxu1  ;;  %4037 = vmatprep.mubr.bf16.mxu0 %v12334_v61  ;;  %v2370_v17 = vld [vmem:[#allocation3 + $0x428] sm:$0xff] }
 0x269   : > { %v3249_v2 = vpop.f32.mrb[82].mxu1 }
 0x26a   : > { %v3250_v26 = vpop.f32.mrb[83].mxu1  ;;  %v3632_v51 = vpop.f32.mrb[80].mxu0  ;;  %v2366_v2 = vld [vmem:[#allocation3 + $0x408] sm:$0xff] }
 0x26b   : > { %v3633_v35 = vpop.f32.mrb[81].mxu0 }
 0x26c   : > { %3444 = vmatmul.mubr.bf16.gmra.mrb[188].mxu1 %v2472_v16  ;;  %v3634_v1 = vpop.f32.mrb[82].mxu0  ;;  %v9381_v16 = vshrl.u32 %v2551_v19, 7  ;;  %v2369_v35 = vld [vmem:[#allocation3 + $0x420] sm:$0xff] }
 0x26d   : > { %3658 = vmatprep.mubr.bf16.mxu1 %v2360_v7  ;;  %v3635_v29 = vpop.f32.mrb[83].mxu0  ;;  %v1915_v7 = vpop.permute.xlu1 %1914 }
 0x26e   : > { %12349 = vst [vmem:[#allocation27_spill] sm:$0xff] %v9381_v16  ;;  %v2553_v1 = vsub.s32 0, %v9381_v16  ;;  %2017 = vst.msk [vmem:[#allocation3 + $0x678] sm:$0xff] %vm1265_vm8, %v1915_v7  ;;  %v2106_v29 = vpop.permute.xlu0 %2105 }
 0x26f   : > { %v9368_v13 = vpop.f32.mrb[84].mxu1  ;;  %6574 = vmatmul.mubr.msk.bf16.gmra.mrb[156].mxu0 %vm353_vm0, %v2356_v5  ;;  %2165 = vst.msk [vmem:[#allocation3 + $0x6a8] sm:$0xff] %vm1265_vm8, %v2106_v29 }
 0x270   : > { %12345 = vst [vmem:[#allocation23_spill] sm:$0xff] %v9368_v13  ;;  %v9371_v20 = vpop.f32.mrb[85].mxu1  ;;  %4043 = vmatprep.mubr.bf16.mxu0 %v12334_v61 }
 0x271   : > { %12346 = vst [vmem:[#allocation24_spill] sm:$0xff] %v9371_v20  ;;  %v9373_v8 = vpop.f32.mrb[86].mxu1  ;;  %v1917_v39 = vpop.permute.xlu1 %1916 }
 0x272   : > { %12347 = vst [vmem:[#allocation25_spill] sm:$0xff] %v9373_v8  ;;  %v9376_v42 = vpop.f32.mrb[87].mxu1  ;;  %2018 = vst.msk [vmem:[#allocation3 + $0x6a0] sm:$0xff] %vm1265_vm8, %v1917_v39  ;;  %v2385_v39 = vld [vmem:[#allocation3 + $0x4a0] sm:$0xff] }
 0x273   : > { %12348 = vst [vmem:[#allocation26_spill] sm:$0xff] %v9376_v42 }
 0x274   : > { %3659 = vmatmul.mubr.bf16.vlgmr.msra.gmra.mrb[96].mxu1 %v2359_v34  ;;  %v2549_v34 = vld [vmem:[%s12273_s2] sm:$0x3] }
 0x275   : > { %3668 = vmatprep.mubr.bf16.mxu1 %v2365_v31  ;;  %v2557_v31 = vsub.s32 1, %v9381_v16  ;;  %v9392_v19 = vrot.slane %v2549_v34, %v2553_v1 }
 0x277   : > { %v3263_v28 = vpop.f32.mrb[88].mxu1  ;;  %6575 = vmatmul.mubr.msk.bf16.gmra.mrb[160].mxu0 %vm353_vm0, %v2361_v47 }
 0x278   : > { %v3264_v55 = vpop.f32.mrb[89].mxu1  ;;  %4053 = vmatprep.mubr.bf16.mxu0 %v12334_v61 }
 0x279   : > { %v3265_v36 = vpop.f32.mrb[90].mxu1  ;;  %v2375_v55 = vld [vmem:[#allocation3 + $0x450] sm:$0xff] }
 0x27a   : > { %v3266_v21 = vpop.f32.mrb[91].mxu1  ;;  %v3648_v24 = vpop.f32.mrb[88].mxu0 }
 0x27b   : > { %v3649_v10 = vpop.f32.mrb[89].mxu0  ;;  %v9395_v24 = vrot.slane %v2549_v34, %v2557_v31 }
 0x27c   : > { %3669 = vmatmul.mubr.bf16.gmra.mrb[192].mxu1 %v2364_v30  ;;  %v3650_v62 = vpop.f32.mrb[90].mxu0  ;;  %v2371_v30 = vld [vmem:[#allocation3 + $0x430] sm:$0xff]  ;;  %v2374_v10 = vld [vmem:[#allocation3 + $0x448] sm:$0xff] }
 0x27d   : > { %3674 = vmatprep.mubr.bf16.mxu1 %v2370_v17  ;;  %v3651_v4 = vpop.f32.mrb[91].mxu0  ;;  %v3100_v17 = vadd.f32 %v9149_v38, %v9392_v19  ;;  %v3102_v62 = vadd.f32 %v9151_v49, %v9395_v24 }
 0x27e   : > { %v3104_v4 = vadd.f32 %v9154_v32, %v9392_v19  ;;  %v2108_v32 = vpop.permute.xlu0 %2107 }
 0x27f   : > { %v3269_v26 = vpop.f32.mrb[92].mxu1  ;;  %6576 = vmatmul.mubr.msk.bf16.gmra.mrb[164].mxu0 %vm353_vm0, %v2366_v2  ;;  %2166 = vst.msk [vmem:[#allocation3 + $0x6d0] sm:$0xff] %vm1265_vm8, %v2108_v32 }
 0x280   : > { %v3270_v11 = vpop.f32.mrb[93].mxu1  ;;  %4059 = vmatprep.mubr.bf16.mxu0 %v12334_v61 }
 0x281   : > { %v3271_v51 = vpop.f32.mrb[94].mxu1 }
 0x282   : > { %v3272_v5 = vpop.f32.mrb[95].mxu1  ;;  %v3654_v47 = vpop.f32.mrb[92].mxu0  ;;  %v2380_v51 = vld [vmem:[#allocation3 + $0x478] sm:$0xff] }
 0x283   : > { %v3655_v28 = vpop.f32.mrb[93].mxu0  ;;  %v2376_v5 = vld [vmem:[#allocation3 + $0x458] sm:$0xff] }
 0x284   : > { %3675 = vmatmul.mubr.bf16.gmra.mrb[196].mxu1 %v2369_v35  ;;  %v3656_v36 = vpop.f32.mrb[94].mxu0  ;;  %v3106_v35 = vadd.f32 %v9159_v44, %v9395_v24  ;;  %v2379_v28 = vld [vmem:[#allocation3 + $0x470] sm:$0xff]  ;;  %v1919_v44 = vpop.permute.xlu1 %1918 }
 0x285   : > { %3680 = vmatprep.mubr.bf16.mxu1 %v2375_v55  ;;  %v3657_v21 = vpop.f32.mrb[95].mxu0  ;;  %2019 = vst.msk [vmem:[#allocation3 + $0x6c8] sm:$0xff] %vm1265_vm8, %v1919_v44 }
 0x287   : > { %6577 = vmatmul.mubr.msk.bf16.gmra.mrb[168].mxu0 %vm353_vm0, %v2371_v30 }
 0x288   : > { %4065 = vmatprep.mubr.bf16.mxu0 %v12334_v61 }
 0x28a   : > { %v3869_v2 = vpop.f32.mrb[0].mxu0 }
 0x28b   : > { %v6703_v26 = vadd.f32 %v3869_v2, %v3100_v17  ;;  %v3871_v11 = vpop.f32.mrb[1].mxu0 }
 0x28c   : > { %3681 = vmatmul.mubr.bf16.gmra.mrb[108].mxu1 %v2374_v10  ;;  %v6705_v7 = vadd.f32 %v3871_v11, %v3102_v62  ;;  %v3873_v1 = vpop.f32.mrb[2].mxu0  ;;  %v2381_v10 = vld [vmem:[#allocation3 + $0x480] sm:$0xff]  ;;  %v2110_v11 = vpop.permute.xlu0 %2109 }
 0x28d   : > { %3690 = vmatprep.mubr.bf16.mxu1 %v2380_v51  ;;  %v6707_v29 = vadd.f32 %v3873_v1, %v3104_v4  ;;  %v3875_v38 = vpop.f32.mrb[3].mxu0  ;;  %v4220_v2 = vpack.c.bf16 %v6703_v26, %v6703_v26  ;;  %2167 = vst.msk [vmem:[#allocation3 + $0x6f8] sm:$0xff] %vm1265_vm8, %v2110_v11  ;;  %v1921_v1 = vpop.permute.xlu1 %1920  ;;  %v2389_v11 = vld [vmem:[#allocation3 + $0x4c0] sm:$0xff] }
 0x28e   : > { %v9407_v34 = vadd.f32 %v3875_v38, %v3106_v35  ;;  %v2384_v35 = vld [vmem:[#allocation3 + $0x498] sm:$0xff]  ;;  %2020 = vst.msk [vmem:[#allocation3 + $0x6f0] sm:$0xff] %vm1265_vm8, %v1921_v1 }
 0x28f   : > { %v3285_v49 = vpop.f32.mrb[100].mxu1  ;;  %6578 = vmatmul.mubr.msk.bf16.gmra.mrb[172].mxu0 %vm353_vm0, %v2376_v5  ;;  %v5280_v5 = vpack.c.bf16 %v6705_v7, %v6705_v7  ;;  %v4236_v32 = vpack.c.bf16 %v6707_v29, %v6707_v29  ;;  %v2386_v7 = vld [vmem:[#allocation3 + $0x4a8] sm:$0xff]  ;;  %v3122_v29 = vadd.f32 %v9199_v53, %v9392_v19 }
 0x290   : > { %v3286_v31 = vpop.f32.mrb[101].mxu1  ;;  %4075 = vmatprep.mubr.bf16.mxu0 %v12334_v61  ;;  %v2028_v49 = vsel %vm477_vm4, %v9002_v18, %v9274_v23  ;;  %v2112_v44 = vpop.permute.xlu0 %2111  ;;  %v5296_v18 = vpack.c.bf16 %v9407_v34, %v9407_v34 }
 0x291   : > { %v3287_v47 = vpop.f32.mrb[102].mxu1  ;;  %2096 = vst.msk [vmem:[#allocation3 + $0x720] sm:$0xff] %vm353_vm0, %v2028_v49  ;;  %v9421_v31 = vunpack.c.l.b16 %v4220_v2  ;;  %v9440_v2 = vunpack.c.l.b16 %v4236_v32 }
 0x292   : > { %v3288_v55 = vpop.f32.mrb[103].mxu1  ;;  %v3879_v36 = vpop.f32.mrb[96].mxu0  ;;  %2168 = vst.msk [vmem:[#allocation3 + $0x720] sm:$0xff] %vm1265_vm8, %v2112_v44  ;;  %v9451_v1 = vunpack.c.l.b16 %v5296_v18 }
 0x293   : > { %v3880_v30 = vpop.f32.mrb[97].mxu0  ;;  %v1923_v36 = vpop.permute.xlu1 %1922  ;;  %v4407_v53 = vrot.slane %v9421_v31, 4  ;;  %v12350_v16 = vrot.slane %v9421_v31, 2  ;;  %v12356_v57 = vrot.slane %v9440_v2, 5 }
 0x294   : > { %3691 = vmatmul.mubr.bf16.gmra.mrb[200].mxu1 %v2379_v28  ;;  %v3881_v21 = vpop.f32.mrb[98].mxu0  ;;  %v2390_v28 = vld [vmem:[#allocation3 + $0x4c8] sm:$0xff]  ;;  %v9424_v30 = vunpack.c.l.b16 %v5280_v5  ;;  %2021 = vst.msk [vmem:[#allocation3 + $0x718] sm:$0xff] %vm1265_vm8, %v1923_v36  ;;  %v2395_v36 = vld [vmem:[#allocation3 + $0x4f0] sm:$0xff]  ;;  %v12357_v43 = vrot.slane %v9451_v1, 1 }
 0x295   : > { %3696 = vmatprep.mubr.bf16.mxu1 %v2385_v39  ;;  %v3882_v17 = vpop.f32.mrb[99].mxu0  ;;  %v3124_v39 = vadd.f32 %v9206_v15, %v9395_v24  ;;  %v3126_v21 = vadd.f32 %v9208_v58, %v9392_v19  ;;  %v4436_v15 = vrot.slane %v9421_v31, 5  ;;  %v4494_v58 = vrot.slane %v9421_v31, 7 }
 0x296   : > { %v4320_v17 = vrot.slane %v9421_v31, 1  ;;  %v5460_v5 = vrot.slane %v9424_v30, 4 }
 0x297   : > { %v3291_v62 = vpop.f32.mrb[104].mxu1  ;;  %6579 = vmatmul.mubr.msk.bf16.gmra.mrb[176].mxu0 %vm353_vm0, %v2381_v10  ;;  %v3128_v10 = vadd.f32 %v9211_v3, %v9395_v24  ;;  %v5373_v3 = vrot.slane %v9424_v30, 1 }
 0x298   : > { %v3292_v4 = vpop.f32.mrb[105].mxu1  ;;  %4081 = vmatprep.mubr.bf16.mxu0 %v12334_v61 }
 0x299   : > { %v3293_v51 = vpop.f32.mrb[106].mxu1  ;;  %v4465_v4 = vrot.slane %v9421_v31, 6 }
 0x29a   : > { %v3294_v38 = vpop.f32.mrb[107].mxu1  ;;  %v3885_v26 = vpop.f32.mrb[100].mxu0 }
 0x29b   : > { %v3886_v47 = vpop.f32.mrb[101].mxu0  ;;  %v5489_v38 = vrot.slane %v9424_v30, 5  ;;  %v2391_v26 = vld [vmem:[#allocation3 + $0x4d0] sm:$0xff] }
 0x29c   : > { %3697 = vmatmul.mubr.bf16.gmra.mrb[204].mxu1 %v2384_v35  ;;  %v3887_v55 = vpop.f32.mrb[102].mxu0 }
 0x29d   : > { %3702 = vmatprep.mubr.bf16.mxu1 %v2390_v28  ;;  %v3888_v23 = vpop.f32.mrb[103].mxu0 }
 0x29f   : > { %6580 = vmatmul.mubr.msk.bf16.gmra.mrb[180].mxu0 %vm353_vm0, %v2386_v7 }
 0x2a0   : > { %4087 = vmatprep.mubr.bf16.mxu0 %v12334_v61  ;;  %v1925_v8 = vpop.permute.xlu1 %1924 }
 0x2a1   : > { %2022 = vst.msk [vmem:[#allocation3 + $0x740] sm:$0xff] %vm1265_vm8, %v1925_v8  ;;  %v12358_v8 = vrot.slane %v9440_v2, 6 }
 0x2a2   : > { %v3891_v32 = vpop.f32.mrb[12].mxu0 }
 0x2a3   : > { %v6711_v55 = vadd.f32 %v3891_v32, %v3122_v29  ;;  %v3893_v7 = vpop.f32.mrb[13].mxu0 }
 0x2a4   : > { %3703 = vmatmul.mubr.bf16.gmra.mrb[120].mxu1 %v2389_v11  ;;  %v6713_v62 = vadd.f32 %v3893_v7, %v3124_v39  ;;  %v3895_v49 = vpop.f32.mrb[14].mxu0 }
 0x2a5   : > { %3712 = vmatprep.mubr.bf16.mxu1 %v2395_v36  ;;  %v4221_v51 = vpack.c.bf16 %v6711_v55, %v6711_v55  ;;  %v6715_v44 = vadd.f32 %v3895_v49, %v3126_v21  ;;  %v3897_v29 = vpop.f32.mrb[15].mxu0 }
 0x2a6   : > { %v5281_v18 = vpack.c.bf16 %v6713_v62, %v6713_v62  ;;  %v6717_v34 = vadd.f32 %v3897_v29, %v3128_v10  ;;  %v2394_v10 = vld [vmem:[#allocation3 + $0x4e8] sm:$0xff] }
 0x2a7   : > { %v3307_v23 = vpop.f32.mrb[112].mxu1  ;;  %v9470_v36 = vunpack.c.l.b16 %v4221_v51  ;;  %6581 = vmatmul.mubr.msk.bf16.gmra.mrb[184].mxu0 %vm353_vm0, %v2391_v26  ;;  %v4237_v11 = vpack.c.bf16 %v6715_v44, %v6715_v44  ;;  %v2400_v26 = vld [vmem:[#allocation3 + $0x518] sm:$0xff] }
 0x2a8   : > { %v3308_v55 = vpop.f32.mrb[113].mxu1  ;;  %v9474_v49 = vunpack.c.l.b16 %v5281_v18  ;;  %v5297_v32 = vpack.c.bf16 %v6717_v34, %v6717_v34  ;;  %4097 = vmatprep.mubr.bf16.mxu0 %v12334_v61 }
 0x2a9   : > { %v3309_v62 = vpop.f32.mrb[114].mxu1  ;;  %v4284_v23 = vrot.slane %v9470_v36, 7  ;;  %v9480_v29 = vsel %vm12292_vm9, %v9470_v36, %v4320_v17  ;;  %v4350_v51 = vrot.slane %v9470_v36, 1  ;;  %v4408_v18 = vrot.slane %v9470_v36, 3 }
 0x2aa   : > { %v3310_v55 = vpop.f32.mrb[115].mxu1  ;;  %v4437_v44 = vrot.slane %v9470_v36, 4  ;;  %v4466_v34 = vrot.slane %v9470_v36, 5  ;;  %v4495_v62 = vrot.slane %v9470_v36, 6  ;;  %v3901_v21 = vpop.f32.mrb[104].mxu0  ;;  %v5344_v17 = vrot.slane %v9474_v49, 7 }
 0x2ab   : > { %v9490_v7 = vsel %vm12292_vm9, %v4284_v23, %v9421_v31  ;;  %v9495_v39 = vsel %vm12292_vm9, %v9474_v49, %v5373_v3  ;;  %v5403_v55 = vrot.slane %v9474_v49, 1  ;;  %v3902_v35 = vpop.f32.mrb[105].mxu0  ;;  %v9501_v47 = vsel %vm12292_vm9, %v4408_v18, %v4407_v53  ;;  %v2396_v23 = vld [vmem:[#allocation3 + $0x4f8] sm:$0xff] }
 0x2ac   : > { %3713 = vmatmul.mubr.bf16.gmra.mrb[208].mxu1 %v2394_v10  ;;  %v9506_v21 = vsel %vm12292_vm9, %v4437_v44, %v4436_v15  ;;  %v9511_v3 = vsel %vm12292_vm9, %v4466_v34, %v4465_v4  ;;  %v9516_v35 = vsel %vm12292_vm9, %v4495_v62, %v4494_v58  ;;  %v3903_v10 = vpop.f32.mrb[106].mxu0  ;;  %v9520_v53 = vsel %vm12292_vm9, %v5344_v17, %v9424_v30 }
 0x2ad   : > { %3718 = vmatprep.mubr.bf16.mxu1 %v2400_v26  ;;  %v5432_v15 = vrot.slane %v9474_v49, 2  ;;  %v5461_v18 = vrot.slane %v9474_v49, 3  ;;  %v5490_v44 = vrot.slane %v9474_v49, 4  ;;  %v3904_v4 = vpop.f32.mrb[107].mxu0  ;;  %v5519_v34 = vrot.slane %v9474_v49, 5 }
 0x2ae   : > { %v5548_v28 = vrot.slane %v9474_v49, 6  ;;  %v4540_v58 = vunpack.c.l.b16 %v4237_v11  ;;  %v5593_v62 = vunpack.c.l.b16 %v5297_v32  ;;  %v9541_v49 = vsel %vm12292_vm9, %v4350_v51, %v12350_v16 }
 0x2af   : > { %v3313_v10 = vpop.f32.mrb[116].mxu1  ;;  %v9530_v26 = vsel %vm12292_vm9, %v5461_v18, %v5460_v5  ;;  %v9535_v17 = vsel %vm12292_vm9, %v5490_v44, %v5489_v38  ;;  %6582 = vmatmul.mubr.msk.bf16.gmra.mrb[188].mxu0 %vm353_vm0, %v2396_v23  ;;  %v12351_v11 = vrot.slane %v9424_v30, 2  ;;  %v12352_v5 = vrot.slane %v9424_v30, 6 }
 0x2b0   : > { %v3314_v4 = vpop.f32.mrb[117].mxu1  ;;  %v12353_v38 = vrot.slane %v9424_v30, 7  ;;  %v4555_v44 = vrot.slane %v4540_v58, 7  ;;  %v12354_v10 = vrot.slane %v9440_v2, 1  ;;  %4103 = vmatprep.mubr.bf16.mxu0 %v12334_v61  ;;  %v4672_v42 = vrot.slane %v4540_v58, 3 }
 0x2b1   : > { %v9546_v32 = vsel %vm12292_vm9, %v5403_v55, %v12351_v11  ;;  %v9551_v18 = vsel %vm12292_vm9, %v5519_v34, %v12352_v5  ;;  %v3315_v51 = vpop.f32.mrb[118].mxu1  ;;  %v2399_v4 = vld [vmem:[#allocation3 + $0x510] sm:$0xff]  ;;  %v4614_v55 = vrot.slane %v4540_v58, 1  ;;  %v4643_v11 = vrot.slane %v4540_v58, 2 }
 0x2b2   : > { %v9556_v23 = vsel %vm12292_vm9, %v5548_v28, %v12353_v38  ;;  %v9561_v16 = vsel %vm12292_vm9, %v4540_v58, %v12354_v10  ;;  %v4701_v34 = vrot.slane %v4540_v58, 4  ;;  %v3316_v5 = vpop.f32.mrb[119].mxu1  ;;  %v9566_v28 = vsel %vm12292_vm9, %v4555_v44, %v9440_v2  ;;  %v3907_v27 = vpop.f32.mrb[108].mxu0 }
 0x2b3   : > { %v4730_v38 = vrot.slane %v4540_v58, 5  ;;  %v4759_v20 = vrot.slane %v4540_v58, 6  ;;  %v5608_v13 = vrot.slane %v5593_v62, 7  ;;  %v12355_v10 = vrot.slane %v9440_v2, 4  ;;  %v3908_v37 = vpop.f32.mrb[109].mxu0  ;;  %v2405_v27 = vld [vmem:[#allocation3 + $0x540] sm:$0xff] }
 0x2b4   : > { %v9577_v5 = vsel %vm12292_vm9, %v4701_v34, %v12356_v57  ;;  %v9582_v44 = vsel %vm12292_vm9, %v5593_v62, %v12357_v43  ;;  %v5667_v58 = vrot.slane %v5593_v62, 1  ;;  %3719 = vmatmul.mubr.bf16.gmra.mrb[212].mxu1 %v2399_v4  ;;  %v5696_v43 = vrot.slane %v5593_v62, 2  ;;  %v3909_v34 = vpop.f32.mrb[110].mxu0  ;;  %v2401_v37 = vld [vmem:[#allocation3 + $0x520] sm:$0xff] }
 0x2b5   : > { %v9572_v51 = vsel %vm12292_vm9, %v4672_v42, %v12355_v10  ;;  %v9587_v41 = vsel %vm12292_vm9, %v4730_v38, %v12358_v8  ;;  %v12359_v42 = vrot.slane %v9440_v2, 7  ;;  %v9596_v57 = vsel %vm12292_vm9, %v5608_v13, %v9451_v1  ;;  %3724 = vmatprep.mubr.bf16.mxu1 %v2405_v27  ;;  %v3910_v60 = vpop.f32.mrb[111].mxu0 }
 0x2b6   : > { %v5725_v4 = vrot.slane %v5593_v62, 3  ;;  %v5754_v14 = vrot.slane %v5593_v62, 4  ;;  %v5783_v33 = vrot.slane %v5593_v62, 5  ;;  %v5812_v0 = vrot.slane %v5593_v62, 6 }
 0x2b7   : > { %v9592_v10 = vsel %vm12292_vm9, %v4759_v20, %v12359_v42  ;;  %v12360_v38 = vrot.slane %v9440_v2, 2  ;;  %v12361_v20 = vrot.slane %v9451_v1, 2  ;;  %v12362_v13 = vrot.slane %v9421_v31, 3  ;;  %6583 = vmatmul.mubr.msk.bf16.gmra.mrb[192].mxu0 %vm353_vm0, %v2401_v37 }
 0x2b8   : > { %v12363_v27 = vrot.slane %v9470_v36, 2  ;;  %v12364_v62 = vrot.slane %v9424_v30, 3  ;;  %v12367_v31 = vrot.slane %v9451_v1, 6  ;;  %v12368_v30 = vrot.slane %v9451_v1, 7  ;;  %4109 = vmatprep.mubr.bf16.mxu0 %v12334_v61 }
 0x2b9   : > { %v9601_v8 = vsel %vm12292_vm9, %v4614_v55, %v12360_v38  ;;  %v9606_v42 = vsel %vm12292_vm9, %v5667_v58, %v12361_v20  ;;  %v12365_v55 = vrot.slane %v9451_v1, 4  ;;  %v12366_v58 = vrot.slane %v9451_v1, 5 }
 0x2ba   : > { %v9613_v34 = vsel %vm12292_vm9, %v12363_v27, %v12362_v13  ;;  %v9618_v60 = vsel %vm12292_vm9, %v5432_v15, %v12364_v62  ;;  %v9633_v36 = vsel %vm12292_vm9, %v5783_v33, %v12367_v31  ;;  %v9638_v15 = vsel %vm12292_vm9, %v5812_v0, %v12368_v30  ;;  %v2114_v13 = vpop.permute.xlu0 %2113  ;;  %v2406_v31 = vld [vmem:[#allocation3 + $0x548] sm:$0xff] }
 0x2bb   : > { %v9623_v38 = vsel %vm12292_vm9, %v5725_v4, %v12365_v55  ;;  %v9628_v20 = vsel %vm12292_vm9, %v5754_v14, %v12366_v58  ;;  %v2404_v4 = vld [vmem:[#allocation3 + $0x538] sm:$0xff]  ;;  %v12369_v27 = vrot.slane %v9440_v2, 3  ;;  %v12370_v62 = vrot.slane %v9451_v1, 3  ;;  %v3913_v55 = vpop.f32.mrb[24].mxu0  ;;  %v2410_v58 = vld [vmem:[#allocation3 + $0x568] sm:$0xff] }
 0x2bc   : > { %v2036_v0 = vsel %vm477_vm4, %v9269_v12, %v9336_v56  ;;  %v3144_v37 = vadd.f32 %v9228_v46, %v9392_v19  ;;  %v3146_v2 = vadd.f32 %v9231_v54, %v9395_v24  ;;  %v3148_v1 = vadd.f32 %v9233_v9, %v9392_v19  ;;  %3725 = vmatmul.mubr.bf16.gmra.mrb[132].mxu1 %v2404_v4 }
 0x2bd   : > { %v9645_v14 = vsel %vm12292_vm9, %v4643_v11, %v12369_v27  ;;  %v9650_v33 = vsel %vm12292_vm9, %v5696_v43, %v12370_v62  ;;  %2097 = vst.msk [vmem:[#allocation3 + $0x748] sm:$0xff] %vm353_vm0, %v2036_v0  ;;  %v3915_v43 = vpop.f32.mrb[25].mxu0  ;;  %v3150_v12 = vadd.f32 %v9236_v22, %v9395_v24  ;;  %3734 = vmatprep.mubr.bf16.mxu1 %v2410_v58 }
 0x2be   : > { %2169 = vst.msk [vmem:[#allocation3 + $0x748] sm:$0xff] %vm1265_vm8, %v2114_v13  ;;  %v6719_v11 = vadd.f32 %v3913_v55, %v3144_v37  ;;  %v6721_v56 = vadd.f32 %v3915_v43, %v3146_v2  ;;  %v3917_v46 = vpop.f32.mrb[26].mxu0  ;;  %v2409_v2 = vld [vmem:[#allocation3 + $0x560] sm:$0xff] }
 0x2bf   : > { %v6723_v27 = vadd.f32 %v3917_v46, %v3148_v1  ;;  %v3919_v54 = vpop.f32.mrb[27].mxu0  ;;  %v3329_v0 = vpop.f32.mrb[124].mxu1  ;;  %6584 = vmatmul.mubr.msk.bf16.gmra.mrb[196].mxu0 %vm353_vm0, %v2406_v31 }
 0x2c0   : > { %v4222_v30 = vpack.c.bf16 %v6719_v11, %v6719_v11  ;;  %v5282_v62 = vpack.c.bf16 %v6721_v56, %v6721_v56  ;;  %v6725_v13 = vadd.f32 %v3919_v54, %v3150_v12  ;;  %v3330_v9 = vpop.f32.mrb[125].mxu1  ;;  %4119 = vmatprep.mubr.bf16.mxu0 %v12334_v61 }
 0x2c1   : > { %v4238_v37 = vpack.c.bf16 %v6723_v27, %v6723_v27  ;;  %v3331_v22 = vpop.f32.mrb[126].mxu1  ;;  %v2415_v9 = vld [vmem:[#allocation3 + $0x590] sm:$0xff] }
 0x2c2   : > { %v4270_v6 = vunpack.c.l.b16 %v4222_v30  ;;  %v9666_v4 = vunpack.c.l.b16 %v5282_v62  ;;  %v5298_v55 = vpack.c.bf16 %v6725_v13, %v6725_v13  ;;  %v3332_v12 = vpop.f32.mrb[127].mxu1  ;;  %v3923_v54 = vpop.f32.mrb[112].mxu0 }
 0x2c3   : > { %v3924_v0 = vpop.f32.mrb[113].mxu0 }
 0x2c4   : > { %v4287_v43 = vrot.slane %v4270_v6, 6  ;;  %v4322_v11 = vrot.slane %v4270_v6, 7  ;;  %v9671_v1 = vsel %vm12293_vm10, %v4270_v6, %v9541_v49  ;;  %v4381_v58 = vrot.slane %v4270_v6, 1  ;;  %3735 = vmatmul.mubr.bf16.gmra.mrb[216].mxu1 %v2409_v2  ;;  %v2411_v2 = vld [vmem:[#allocation3 + $0x570] sm:$0xff] }
 0x2c5   : > { %v4410_v56 = vrot.slane %v4270_v6, 2  ;;  %v4439_v46 = vrot.slane %v4270_v6, 3  ;;  %v4468_v31 = vrot.slane %v4270_v6, 4  ;;  %v4497_v30 = vrot.slane %v4270_v6, 5  ;;  %3740 = vmatprep.mubr.bf16.mxu1 %v2415_v9 }
 0x2c6   : > { %v9675_v27 = vsel %vm12293_vm10, %v4287_v43, %v9490_v7  ;;  %v9679_v62 = vsel %vm12293_vm10, %v4322_v11, %v9480_v29  ;;  %v5346_v13 = vrot.slane %v9666_v4, 6  ;;  %v5375_v49 = vrot.slane %v9666_v4, 7  ;;  %v3925_v43 = vpop.f32.mrb[114].mxu0 }
 0x2c7   : > { %v9685_v22 = vsel %vm12293_vm10, %v4439_v46, %v9506_v21  ;;  %v9689_v6 = vsel %vm12293_vm10, %v4468_v31, %v9511_v3  ;;  %v9693_v7 = vsel %vm12293_vm10, %v4497_v30, %v9516_v35  ;;  %v9698_v29 = vsel %vm12293_vm10, %v9666_v4, %v9546_v32  ;;  %v3926_v12 = vpop.f32.mrb[115].mxu0  ;;  %v3335_v54 = vpop.f32.mrb[128].mxu1  ;;  %6585 = vmatmul.mubr.msk.bf16.gmra.mrb[200].mxu0 %vm353_vm0, %v2411_v2 }
 0x2c8   : > { %v9702_v21 = vsel %vm12293_vm10, %v5346_v13, %v9520_v53  ;;  %v9706_v3 = vsel %vm12293_vm10, %v5375_v49, %v9495_v39  ;;  %v5434_v11 = vrot.slane %v9666_v4, 1  ;;  %v5463_v35 = vrot.slane %v9666_v4, 2  ;;  %v3336_v53 = vpop.f32.mrb[129].mxu1  ;;  %4125 = vmatprep.mubr.bf16.mxu0 %v12334_v61 }
 0x2c9   : > { %v5492_v46 = vrot.slane %v9666_v4, 3  ;;  %v5521_v32 = vrot.slane %v9666_v4, 4  ;;  %v5550_v31 = vrot.slane %v9666_v4, 5  ;;  %v4541_v30 = vunpack.c.l.b16 %v4238_v37  ;;  %v2420_v53 = vld [vmem:[#allocation3 + $0x5b8] sm:$0xff] }
 0x2ca   : > { %v5594_v0 = vunpack.c.l.b16 %v5298_v55  ;;  %v9716_v39 = vsel %vm12293_vm10, %v4381_v58, %v9613_v34  ;;  %v9720_v13 = vsel %vm12293_vm10, %v5434_v11, %v9618_v60  ;;  %v9724_v49 = vsel %vm12293_vm10, %v4410_v56, %v9501_v47  ;;  %v3337_v58 = vpop.f32.mrb[130].mxu1  ;;  %v2414_v60 = vld [vmem:[#allocation3 + $0x588] sm:$0xff]  ;;  %v3929_v12 = vpop.f32.mrb[116].mxu0 }
 0x2cb   : > { %v9728_v4 = vsel %vm12293_vm10, %v5492_v46, %v9535_v17  ;;  %v9732_v37 = vsel %vm12293_vm10, %v5521_v32, %v9551_v18  ;;  %v9736_v34 = vsel %vm12293_vm10, %v5550_v31, %v9556_v23  ;;  %v4557_v55 = vrot.slane %v4541_v30, 6  ;;  %v3338_v43 = vpop.f32.mrb[131].mxu1  ;;  %v3930_v54 = vpop.f32.mrb[117].mxu0  ;;  %v2425_v12 = vld [vmem:[#allocation3 + $0x5e0] sm:$0xff] }
 0x2cc   : > { %v4586_v9 = vrot.slane %v4541_v30, 7  ;;  %v9741_v47 = vsel %vm12293_vm10, %v4541_v30, %v9601_v8  ;;  %v4645_v17 = vrot.slane %v4541_v30, 1  ;;  %v4674_v56 = vrot.slane %v4541_v30, 2  ;;  %3741 = vmatmul.mubr.bf16.gmra.mrb[220].mxu1 %v2414_v60  ;;  %v3931_v58 = vpop.f32.mrb[118].mxu0  ;;  %v2421_v54 = vld [vmem:[#allocation3 + $0x5c0] sm:$0xff] }
 0x2cd   : > { %v9745_v18 = vsel %vm12293_vm10, %v4557_v55, %v9566_v28  ;;  %v4703_v2 = vrot.slane %v4541_v30, 3  ;;  %v4732_v23 = vrot.slane %v4541_v30, 4  ;;  %v4761_v11 = vrot.slane %v4541_v30, 5  ;;  %3746 = vmatprep.mubr.bf16.mxu1 %v2420_v53  ;;  %v1927_v58 = vpop.permute.xlu1 %1926 }
 0x2ce   : > { %v9749_v46 = vsel %vm12293_vm10, %v4586_v9, %v9561_v16  ;;  %v5610_v32 = vrot.slane %v5594_v0, 6  ;;  %v5639_v31 = vrot.slane %v5594_v0, 7  ;;  %v9753_v8 = vsel %vm12293_vm10, %v5594_v0, %v9606_v42  ;;  %v2416_v42 = vld [vmem:[#allocation3 + $0x598] sm:$0xff]  ;;  %2023 = vst.msk [vmem:[#allocation3 + $0x768] sm:$0xff] %vm1265_vm8, %v1927_v58 }
 0x2cf   : > { %v9757_v28 = vsel %vm12293_vm10, %v4703_v2, %v9577_v5  ;;  %v9761_v30 = vsel %vm12293_vm10, %v4732_v23, %v9587_v41  ;;  %v9765_v16 = vsel %vm12293_vm10, %v4761_v11, %v9592_v10  ;;  %v5698_v55 = vrot.slane %v5594_v0, 1  ;;  %v3932_v41 = vpop.f32.mrb[119].mxu0  ;;  %6586 = vmatmul.mubr.msk.bf16.gmra.mrb[204].mxu0 %vm353_vm0, %v2416_v42 }
 0x2d0   : > { %v9769_v60 = vsel %vm12293_vm10, %v5610_v32, %v9596_v57  ;;  %v9773_v5 = vsel %vm12293_vm10, %v5639_v31, %v9582_v44  ;;  %v5727_v9 = vrot.slane %v5594_v0, 2  ;;  %v5756_v43 = vrot.slane %v5594_v0, 3  ;;  %4131 = vmatprep.mubr.bf16.mxu0 %v12334_v61 }
 0x2d1   : > { %v5785_v2 = vrot.slane %v5594_v0, 4  ;;  %v5814_v23 = vrot.slane %v5594_v0, 5  ;;  %v9777_v10 = vsel %vm12293_vm10, %v4645_v17, %v9645_v14  ;;  %v9781_v11 = vsel %vm12293_vm10, %v5698_v55, %v9650_v33  ;;  %v2419_v17 = vld [vmem:[#allocation3 + $0x5b0] sm:$0xff] }
 0x2d2   : > { %v9785_v57 = vsel %vm12293_vm10, %v5756_v43, %v9628_v20  ;;  %v9790_v44 = vsel %vm12293_vm10, %v5463_v35, %v9530_v26  ;;  %v9794_v0 = vsel %vm12293_vm10, %v4674_v56, %v9572_v51  ;;  %v9798_v14 = vsel %vm12293_vm10, %v5727_v9, %v9623_v38  ;;  %v3935_v35 = vpop.f32.mrb[36].mxu0 }
 0x2d3   : > { %v9802_v33 = vsel %vm12293_vm10, %v5785_v2, %v9633_v36  ;;  %v9806_v20 = vsel %vm12293_vm10, %v5814_v23, %v9638_v15  ;;  %v3166_v26 = vadd.f32 %v9244_v48, %v9392_v19  ;;  %v3168_v51 = vadd.f32 %v9247_v63, %v9395_v24  ;;  %v3937_v36 = vpop.f32.mrb[37].mxu0  ;;  %v2116_v63 = vpop.permute.xlu0 %2115 }
 0x2d4   : > { %v3170_v38 = vadd.f32 %v9249_v25, %v9392_v19  ;;  %3747 = vmatmul.mubr.bf16.gmra.mrb[144].mxu1 %v2419_v17  ;;  %v2044_v15 = vsel %vm477_vm4, %v9329_v50, %v9345_v40  ;;  %v3172_v32 = vadd.f32 %v9252_v45, %v9395_v24  ;;  %v3939_v48 = vpop.f32.mrb[38].mxu0  ;;  %v2424_v17 = vld [vmem:[#allocation3 + $0x5d8] sm:$0xff]  ;;  %vm5163_vm4 = vmand %vm12293_vm10, %vm5162_vm3  ;;  %vm6210_vm3 = vsmask.f32 7942 }
 0x2d5   : > { %v6727_v56 = vadd.f32 %v3935_v35, %v3166_v26  ;;  %v6729_v31 = vadd.f32 %v3937_v36, %v3168_v51  ;;  %3756 = vmatprep.mubr.bf16.mxu1 %v2425_v12  ;;  %2098 = vst.msk [vmem:[#allocation3 + $0x770] sm:$0xff] %vm353_vm0, %v2044_v15  ;;  %v3941_v55 = vpop.f32.mrb[39].mxu0 }
 0x2d6   : > { %v6731_v25 = vadd.f32 %v3939_v48, %v3170_v38  ;;  %2170 = vst.msk [vmem:[#allocation3 + $0x770] sm:$0xff] %vm1265_vm8, %v2116_v63  ;;  %v6733_v9 = vadd.f32 %v3941_v55, %v3172_v32  ;;  %vm5166_vm8 = vsmask.f32 3328 }
 0x2d7   : > { %v4223_v53 = vpack.c.bf16 %v6727_v56, %v6727_v56  ;;  %v5283_v42 = vpack.c.bf16 %v6729_v31, %v6729_v31  ;;  %v3351_v50 = vpop.f32.mrb[136].mxu1  ;;  %6587 = vmatmul.mubr.msk.bf16.gmra.mrb[208].mxu0 %vm353_vm0, %v2421_v54 }
 0x2d8   : > { %v3352_v40 = vpop.f32.mrb[137].mxu1  ;;  %v4239_v41 = vpack.c.bf16 %v6731_v25, %v6731_v25  ;;  %v5299_v2 = vpack.c.bf16 %v6733_v9, %v6733_v9  ;;  %4141 = vmatprep.mubr.bf16.mxu0 %v12334_v61  ;;  %v2430_v25 = vld [vmem:[#allocation3 + $0x608] sm:$0xff] }
 0x2d9   : > { %v4271_v45 = vunpack.c.l.b16 %v4223_v53  ;;  %v5331_v43 = vunpack.c.l.b16 %v5283_v42  ;;  %v3353_v23 = vpop.f32.mrb[138].mxu1  ;;  %v2426_v9 = vld [vmem:[#allocation3 + $0x5e8] sm:$0xff] }
 0x2da   : > { %v3354_v56 = vpop.f32.mrb[139].mxu1  ;;  %v3945_v31 = vpop.f32.mrb[120].mxu0 }
 0x2db   : > { %v4290_v26 = vrot.slane %v4271_v45, 5  ;;  %v4324_v51 = vrot.slane %v4271_v45, 6  ;;  %v4353_v35 = vrot.slane %v4271_v45, 7  ;;  %v9827_v38 = vsel %vm4291_vm11, %v4271_v45, %v9716_v39  ;;  %v3946_v53 = vpop.f32.mrb[121].mxu0 }
 0x2dc   : > { %v4412_v36 = vrot.slane %v4271_v45, 1  ;;  %v4441_v12 = vrot.slane %v4271_v45, 2  ;;  %v4470_v15 = vrot.slane %v4271_v45, 3  ;;  %v4499_v32 = vrot.slane %v4271_v45, 4  ;;  %3757 = vmatmul.mubr.bf16.gmra.mrb[224].mxu1 %v2424_v17 }
 0x2dd   : > { %v9831_v48 = vsel %vm4291_vm11, %v4290_v26, %v9675_v27  ;;  %v9835_v54 = vsel %vm4291_vm11, %v4324_v51, %v9679_v62  ;;  %v9839_v63 = vsel %vm4291_vm11, %v4353_v35, %v9671_v1  ;;  %v5348_v39 = vrot.slane %v5331_v43, 5  ;;  %v3947_v62 = vpop.f32.mrb[122].mxu0  ;;  %3762 = vmatprep.mubr.bf16.mxu1 %v2430_v25 }
 0x2de   : > { %v9843_v55 = vsel %vm4291_vm11, %v4470_v15, %v9689_v6  ;;  %v9847_v27 = vsel %vm4291_vm11, %v4499_v32, %v9693_v7  ;;  %v5377_v58 = vrot.slane %v5331_v43, 6  ;;  %v5406_v42 = vrot.slane %v5331_v43, 7  ;;  %v3948_v40 = vpop.f32.mrb[123].mxu0  ;;  %v2435_v62 = vld [vmem:[#allocation3 + $0x630] sm:$0xff] }
 0x2df   : > { %v9851_v1 = vsel %vm4291_vm11, %v5348_v39, %v9702_v21  ;;  %v9855_v50 = vsel %vm4291_vm11, %v5331_v43, %v9720_v13  ;;  %v5465_v45 = vrot.slane %v5331_v43, 1  ;;  %v5494_v6 = vrot.slane %v5331_v43, 2  ;;  %v3357_v51 = vpop.f32.mrb[140].mxu1  ;;  %6588 = vmatmul.mubr.msk.bf16.gmra.mrb[212].mxu0 %vm353_vm0, %v2426_v9  ;;  %v2431_v40 = vld [vmem:[#allocation3 + $0x610] sm:$0xff] }
 0x2e0   : > { %v9859_v7 = vsel %vm4291_vm11, %v5377_v58, %v9706_v3  ;;  %v9863_v23 = vsel %vm4291_vm11, %v5406_v42, %v9698_v29  ;;  %v5523_v17 = vrot.slane %v5331_v43, 3  ;;  %v5552_v26 = vrot.slane %v5331_v43, 4  ;;  %v3358_v13 = vpop.f32.mrb[141].mxu1  ;;  %4147 = vmatprep.mubr.bf16.mxu0 %v12334_v61 }
 0x2e1   : > { %v4542_v21 = vunpack.c.l.b16 %v4239_v41  ;;  %v5595_v35 = vunpack.c.l.b16 %v5299_v2  ;;  %v9868_v56 = vsel %vm4291_vm11, %v4412_v36, %v9724_v49  ;;  %v9872_v3 = vsel %vm4291_vm11, %v5465_v45, %v9790_v44  ;;  %v3359_v41 = vpop.f32.mrb[142].mxu1  ;;  %v2429_v2 = vld [vmem:[#allocation3 + $0x600] sm:$0xff] }
 0x2e2   : > { %v9876_v29 = vsel %vm4291_vm11, %v5523_v17, %v9732_v37  ;;  %v9880_v43 = vsel %vm4291_vm11, %v5552_v26, %v9736_v34  ;;  %v9885_v49 = vsel %vm4291_vm11, %v4441_v12, %v9685_v22  ;;  %v9889_v44 = vsel %vm4291_vm11, %v5494_v6, %v9728_v4  ;;  %v3360_v34 = vpop.f32.mrb[143].mxu1  ;;  %v3951_v58 = vpop.f32.mrb[124].mxu0 }
 0x2e3   : > { %v4559_v36 = vrot.slane %v4542_v21, 5  ;;  %v4588_v15 = vrot.slane %v4542_v21, 6  ;;  %v4617_v37 = vrot.slane %v4542_v21, 7  ;;  %v9893_v32 = vsel %vm4291_vm11, %v4542_v21, %v9777_v10  ;;  %v3952_v42 = vpop.f32.mrb[125].mxu0  ;;  %v2440_v34 = vld [vmem:[#allocation3 + $0x658] sm:$0xff] }
 0x2e4   : > { %v4676_v31 = vrot.slane %v4542_v21, 1  ;;  %v4705_v39 = vrot.slane %v4542_v21, 2  ;;  %v4734_v53 = vrot.slane %v4542_v21, 3  ;;  %v4763_v25 = vrot.slane %v4542_v21, 4  ;;  %3763 = vmatmul.mubr.bf16.gmra.mrb[228].mxu1 %v2429_v2  ;;  %v2434_v2 = vld [vmem:[#allocation3 + $0x628] sm:$0xff] }
 0x2e5   : > { %v9897_v22 = vsel %vm4291_vm11, %v4559_v36, %v9745_v18  ;;  %v9901_v4 = vsel %vm4291_vm11, %v4588_v15, %v9749_v46  ;;  %v9905_v12 = vsel %vm4291_vm11, %v4617_v37, %v9741_v47  ;;  %v5612_v10 = vrot.slane %v5595_v35, 5  ;;  %v3953_v46 = vpop.f32.mrb[126].mxu0  ;;  %3768 = vmatprep.mubr.bf16.mxu1 %v2435_v62 }
 0x2e6   : > { %v9909_v9 = vsel %vm4291_vm11, %v4734_v53, %v9761_v30  ;;  %v9913_v18 = vsel %vm4291_vm11, %v4763_v25, %v9765_v16  ;;  %v5641_v45 = vrot.slane %v5595_v35, 6  ;;  %v5670_v6 = vrot.slane %v5595_v35, 7  ;;  %v3954_v51 = vpop.f32.mrb[127].mxu0  ;;  %v2436_v25 = vld [vmem:[#allocation3 + $0x638] sm:$0xff] }
 0x2e7   : > { %v9917_v47 = vsel %vm4291_vm11, %v5612_v10, %v9769_v60  ;;  %v9921_v17 = vsel %vm4291_vm11, %v5595_v35, %v9781_v11  ;;  %v5729_v26 = vrot.slane %v5595_v35, 1  ;;  %v5758_v30 = vrot.slane %v5595_v35, 2  ;;  %6589 = vmatmul.mubr.msk.bf16.gmra.mrb[216].mxu0 %vm353_vm0, %v2431_v40  ;;  %v2439_v51 = vld [vmem:[#allocation3 + $0x650] sm:$0xff] }
 0x2e8   : > { %v9925_v16 = vsel %vm4291_vm11, %v5641_v45, %v9773_v5  ;;  %v9929_v21 = vsel %vm4291_vm11, %v5670_v6, %v9753_v8  ;;  %v5787_v13 = vrot.slane %v5595_v35, 3  ;;  %v5816_v41 = vrot.slane %v5595_v35, 4  ;;  %4153 = vmatprep.mubr.bf16.mxu0 %v12334_v61 }
 0x2e9   : > { %v9934_v60 = vsel %vm4291_vm11, %v4676_v31, %v9794_v0  ;;  %v9938_v11 = vsel %vm4291_vm11, %v5729_v26, %v9798_v14  ;;  %v9942_v5 = vsel %vm4291_vm11, %v4705_v39, %v9757_v28  ;;  %v9946_v8 = vsel %vm4291_vm11, %v5758_v30, %v9785_v57  ;;  %v12371_v57 = vld [vmem:[#allocation18_spill] sm:$0xff] }
 0x2ea   : > { %v9950_v35 = vsel %vm4291_vm11, %v5787_v13, %v9802_v33  ;;  %v9954_v0 = vsel %vm4291_vm11, %v5816_v41, %v9806_v20  ;;  %v3188_v14 = vadd.f32 %v9281_v59, %v9392_v19  ;;  %v3190_v28 = vadd.f32 %v9284_v52, %v9395_v24  ;;  %v3957_v36 = vpop.f32.mrb[48].mxu0  ;;  %v12372_v20 = vld [vmem:[#allocation13_spill] sm:$0xff] }
 0x2eb   : > { %v3192_v15 = vadd.f32 %v12371_v57, %v9392_v19  ;;  %v3959_v33 = vpop.f32.mrb[49].mxu0  ;;  %v3194_v31 = vadd.f32 %v12372_v20, %v9395_v24 }
 0x2ec   : > { %v6735_v37 = vadd.f32 %v3957_v36, %v3188_v14  ;;  %3769 = vmatmul.mubr.bf16.gmra.mrb[156].mxu1 %v2434_v2  ;;  %v6737_v39 = vadd.f32 %v3959_v33, %v3190_v28  ;;  %v3961_v53 = vpop.f32.mrb[50].mxu0 }
 0x2ed   : > { %3778 = vmatprep.mubr.bf16.mxu1 %v2440_v34  ;;  %v6739_v59 = vadd.f32 %v3961_v53, %v3192_v15  ;;  %v3963_v10 = vpop.f32.mrb[51].mxu0  ;;  %v2445_v53 = vld [vmem:[#allocation3 + $0x680] sm:$0xff] }
 0x2ee   : > { %v4224_v58 = vpack.c.bf16 %v6735_v37, %v6735_v37  ;;  %v5284_v42 = vpack.c.bf16 %v6737_v39, %v6737_v39  ;;  %v6741_v52 = vadd.f32 %v3963_v10, %v3194_v31  ;;  %v2441_v10 = vld [vmem:[#allocation3 + $0x660] sm:$0xff] }
 0x2ef   : > { %v3373_v62 = vpop.f32.mrb[148].mxu1  ;;  %6590 = vmatmul.mubr.msk.bf16.gmra.mrb[220].mxu0 %vm353_vm0, %v2436_v25  ;;  %v4240_v40 = vpack.c.bf16 %v6739_v59, %v6739_v59 }
 0x2f0   : > { %v4272_v45 = vunpack.c.l.b16 %v4224_v58  ;;  %v3374_v6 = vpop.f32.mrb[149].mxu1  ;;  %v5332_v46 = vunpack.c.l.b16 %v5284_v42  ;;  %v5300_v26 = vpack.c.bf16 %v6741_v52, %v6741_v52  ;;  %4163 = vmatprep.mubr.bf16.mxu0 %v12334_v61 }
 0x2f1   : > { %v3375_v30 = vpop.f32.mrb[150].mxu1 }
 0x2f2   : > { %v4293_v13 = vrot.slane %v4272_v45, 4  ;;  %v4326_v41 = vrot.slane %v4272_v45, 5  ;;  %v4355_v2 = vrot.slane %v4272_v45, 6  ;;  %v4384_v14 = vrot.slane %v4272_v45, 7  ;;  %v3376_v28 = vpop.f32.mrb[151].mxu1  ;;  %v3967_v33 = vpop.f32.mrb[128].mxu0 }
 0x2f3   : > { %v9969_v36 = vsel %vm12294_vm12, %v4272_v45, %v9868_v56  ;;  %v4443_v57 = vrot.slane %v4272_v45, 1  ;;  %v4472_v15 = vrot.slane %v4272_v45, 2  ;;  %v4501_v37 = vrot.slane %v4272_v45, 3  ;;  %v3968_v39 = vpop.f32.mrb[129].mxu0 }
 0x2f4   : > { %v9973_v34 = vsel %vm12294_vm12, %v4293_v13, %v9831_v48  ;;  %v9977_v20 = vsel %vm12294_vm12, %v4326_v41, %v9835_v54  ;;  %v9981_v31 = vsel %vm12294_vm12, %v4355_v2, %v9839_v63  ;;  %v9985_v56 = vsel %vm12294_vm12, %v4384_v14, %v9827_v38  ;;  %3779 = vmatmul.mubr.bf16.gmra.mrb[232].mxu1 %v2439_v51  ;;  %v3969_v54 = vpop.f32.mrb[130].mxu0 }
 0x2f5   : > { %v9989_v25 = vsel %vm12294_vm12, %v4501_v37, %v9847_v27  ;;  %v5350_v48 = vrot.slane %v5332_v46, 4  ;;  %v5379_v58 = vrot.slane %v5332_v46, 5  ;;  %v5408_v59 = vrot.slane %v5332_v46, 6  ;;  %3784 = vmatprep.mubr.bf16.mxu1 %v2445_v53  ;;  %v3970_v62 = vpop.f32.mrb[131].mxu0  ;;  %v2450_v37 = vld [vmem:[#allocation3 + $0x6a8] sm:$0xff] }
 0x2f6   : > { %v5437_v42 = vrot.slane %v5332_v46, 7  ;;  %v9993_v63 = vsel %vm12294_vm12, %v5332_v46, %v9872_v3  ;;  %v5496_v38 = vrot.slane %v5332_v46, 1  ;;  %v5525_v52 = vrot.slane %v5332_v46, 2 }
 0x2f7   : > { %v9997_v45 = vsel %vm12294_vm12, %v5350_v48, %v9851_v1  ;;  %v10001_v27 = vsel %vm12294_vm12, %v5379_v58, %v9859_v7  ;;  %v10005_v6 = vsel %vm12294_vm12, %v5408_v59, %v9863_v23  ;;  %v5554_v30 = vrot.slane %v5332_v46, 3  ;;  %v3379_v51 = vpop.f32.mrb[152].mxu1  ;;  %6591 = vmatmul.mubr.msk.bf16.gmra.mrb[224].mxu0 %vm353_vm0, %v2441_v10  ;;  %v2444_v46 = vld [vmem:[#allocation3 + $0x678] sm:$0xff] }
 0x2f8   : > { %v10009_v3 = vsel %vm12294_vm12, %v5437_v42, %v9855_v50  ;;  %v4543_v13 = vunpack.c.l.b16 %v4240_v40  ;;  %v5596_v41 = vunpack.c.l.b16 %v5300_v26  ;;  %v3380_v1 = vpop.f32.mrb[153].mxu1  ;;  %v10014_v2 = vsel %vm12294_vm12, %v4443_v57, %v9885_v49  ;;  %4169 = vmatprep.mubr.bf16.mxu0 %v12334_v61 }
 0x2f9   : > { %v10018_v7 = vsel %vm12294_vm12, %v5554_v30, %v9880_v43  ;;  %v3381_v23 = vpop.f32.mrb[154].mxu1  ;;  %v10023_v50 = vsel %vm12294_vm12, %v5496_v38, %v9889_v44  ;;  %v10027_v40 = vsel %vm12294_vm12, %v4472_v15, %v9843_v55  ;;  %v10031_v49 = vsel %vm12294_vm12, %v5525_v52, %v9876_v29 }
 0x2fa   : > { %v4561_v26 = vrot.slane %v4543_v13, 4  ;;  %v4590_v14 = vrot.slane %v4543_v13, 5  ;;  %v4619_v43 = vrot.slane %v4543_v13, 6  ;;  %v4648_v28 = vrot.slane %v4543_v13, 7  ;;  %v3382_v57 = vpop.f32.mrb[155].mxu1  ;;  %v3973_v48 = vpop.f32.mrb[132].mxu0 }
 0x2fb   : > { %v10035_v33 = vsel %vm12294_vm12, %v4543_v13, %v9934_v60  ;;  %v4707_v44 = vrot.slane %v4543_v13, 1  ;;  %v4736_v39 = vrot.slane %v4543_v13, 2  ;;  %v4765_v53 = vrot.slane %v4543_v13, 3  ;;  %v3974_v58 = vpop.f32.mrb[133].mxu0  ;;  %v12376_v57 = vld [vmem:[#allocation17_spill] sm:$0xff] }
 0x2fc   : > { %v10039_v55 = vsel %vm12294_vm12, %v4561_v26, %v9897_v22  ;;  %v10043_v29 = vsel %vm12294_vm12, %v4590_v14, %v9901_v4  ;;  %v10047_v15 = vsel %vm12294_vm12, %v4619_v43, %v9905_v12  ;;  %v10051_v60 = vsel %vm12294_vm12, %v4648_v28, %v9893_v32  ;;  %3785 = vmatmul.mubr.bf16.gmra.mrb[236].mxu1 %v2444_v46  ;;  %v3975_v42 = vpop.f32.mrb[134].mxu0  ;;  %v2446_v4 = vld [vmem:[#allocation3 + $0x688] sm:$0xff]  ;;  %v12374_v46 = vld [vmem:[#allocation15_spill] sm:$0xff]  ;;  %v12375_v14 = vld [vmem:[#allocation16_spill] sm:$0xff] }
 0x2fd   : > { %v10055_v59 = vsel %vm12294_vm12, %v4765_v53, %v9913_v18  ;;  %v5614_v22 = vrot.slane %v5596_v41, 4  ;;  %v5643_v54 = vrot.slane %v5596_v41, 5  ;;  %v5672_v10 = vrot.slane %v5596_v41, 6  ;;  %3790 = vmatprep.mubr.bf16.mxu1 %v2450_v37  ;;  %v3976_v62 = vpop.f32.mrb[135].mxu0 }
 0x2fe   : > { %v5701_v38 = vrot.slane %v5596_v41, 7  ;;  %v10059_v12 = vsel %vm12294_vm12, %v5596_v41, %v9938_v11  ;;  %v5760_v52 = vrot.slane %v5596_v41, 1  ;;  %v5789_v32 = vrot.slane %v5596_v41, 2 }
 0x2ff   : > { %v10063_v30 = vsel %vm12294_vm12, %v5614_v22, %v9917_v47  ;;  %v10067_v18 = vsel %vm12294_vm12, %v5643_v54, %v9925_v16  ;;  %v10071_v51 = vsel %vm12294_vm12, %v5672_v10, %v9929_v21  ;;  %v5818_v13 = vrot.slane %v5596_v41, 3  ;;  %6592 = vmatmul.mubr.msk.bf16.gmra.mrb[228].mxu0 %vm353_vm0, %v2446_v4 }
 0x300   : > { %v10075_v11 = vsel %vm12294_vm12, %v5701_v38, %v9921_v17  ;;  %v10080_v1 = vsel %vm12294_vm12, %v4707_v44, %v9942_v5  ;;  %v10084_v47 = vsel %vm12294_vm12, %v5760_v52, %v9946_v8  ;;  %v10088_v16 = vsel %vm12294_vm12, %v4736_v39, %v9909_v9  ;;  %v2449_v17 = vld [vmem:[#allocation3 + $0x6a0] sm:$0xff]  ;;  %4175 = vmatprep.mubr.bf16.mxu0 %v12334_v61  ;;  %v12373_v5 = vld [vmem:[#allocation14_spill] sm:$0xff]  ;;  %v2455_v8 = vld [vmem:[#allocation3 + $0x6d0] sm:$0xff] }
 0x301   : > { %v10092_v21 = vsel %vm12294_vm12, %v5818_v13, %v9954_v0  ;;  %v10097_v41 = vsel %vm12294_vm12, %v5789_v32, %v9950_v35  ;;  %v3210_v23 = vadd.f32 %v12373_v5, %v9392_v19  ;;  %v3212_v26 = vadd.f32 %v12374_v46, %v9395_v24  ;;  %v2451_v39 = vld [vmem:[#allocation3 + $0x6b0] sm:$0xff]  ;;  %v2454_v13 = vld [vmem:[#allocation3 + $0x6c8] sm:$0xff] }
 0x302   : > { %v3979_v9 = vpop.f32.mrb[60].mxu0  ;;  %v3214_v43 = vadd.f32 %v12375_v14, %v9392_v19  ;;  %v3216_v37 = vadd.f32 %v12376_v57, %v9395_v24 }
 0x303   : > { %v6743_v0 = vadd.f32 %v3979_v9, %v3210_v23  ;;  %v3981_v28 = vpop.f32.mrb[61].mxu0 }
 0x304   : > { %3791 = vmatmul.mubr.bf16.gmra.mrb[168].mxu1 %v2449_v17  ;;  %v6745_v44 = vadd.f32 %v3981_v28, %v3212_v26  ;;  %v3983_v35 = vpop.f32.mrb[62].mxu0  ;;  %v2460_v26 = vld [vmem:[#allocation3 + $0x6f8] sm:$0xff] }
 0x305   : > { %3800 = vmatprep.mubr.bf16.mxu1 %v2455_v8  ;;  %v4225_v53 = vpack.c.bf16 %v6743_v0, %v6743_v0  ;;  %v6747_v48 = vadd.f32 %v3983_v35, %v3214_v43  ;;  %v3985_v58 = vpop.f32.mrb[63].mxu0 }
 0x306   : > { %v5285_v22 = vpack.c.bf16 %v6745_v44, %v6745_v44  ;;  %v6749_v54 = vadd.f32 %v3985_v58, %v3216_v37 }
 0x307   : > { %v3395_v10 = vpop.f32.mrb[160].mxu1  ;;  %v4273_v42 = vunpack.c.l.b16 %v4225_v53  ;;  %6593 = vmatmul.mubr.msk.bf16.gmra.mrb[232].mxu0 %vm353_vm0, %v2451_v39  ;;  %v4241_v52 = vpack.c.bf16 %v6747_v48, %v6747_v48 }
 0x308   : > { %v3396_v4 = vpop.f32.mrb[161].mxu1  ;;  %v5333_v38 = vunpack.c.l.b16 %v5285_v22  ;;  %v5301_v32 = vpack.c.bf16 %v6749_v54, %v6749_v54  ;;  %4185 = vmatprep.mubr.bf16.mxu0 %v12334_v61 }
 0x309   : > { %v3397_v62 = vpop.f32.mrb[162].mxu1  ;;  %v4296_v17 = vrot.slane %v4273_v42, 3  ;;  %v4328_v5 = vrot.slane %v4273_v42, 4  ;;  %v4357_v23 = vrot.slane %v4273_v42, 5  ;;  %v4386_v8 = vrot.slane %v4273_v42, 6 }
 0x30a   : > { %v3398_v46 = vpop.f32.mrb[163].mxu1  ;;  %v4415_v9 = vrot.slane %v4273_v42, 7  ;;  %v10111_v14 = vsel %vm12291_vm13, %v4273_v42, %v10014_v2  ;;  %v4474_v43 = vrot.slane %v4273_v42, 1  ;;  %v4503_v0 = vrot.slane %v4273_v42, 2  ;;  %v3989_v28 = vpop.f32.mrb[136].mxu0 }
 0x30b   : > { %v10115_v57 = vsel %vm12291_vm13, %v4296_v17, %v9973_v34  ;;  %v10119_v37 = vsel %vm12291_vm13, %v4328_v5, %v9977_v20  ;;  %v10123_v44 = vsel %vm12291_vm13, %v4357_v23, %v9981_v31  ;;  %v10127_v35 = vsel %vm12291_vm13, %v4386_v8, %v9985_v56  ;;  %v3990_v2 = vpop.f32.mrb[137].mxu0  ;;  %v2456_v20 = vld [vmem:[#allocation3 + $0x6d8] sm:$0xff]  ;;  %v2459_v8 = vld [vmem:[#allocation3 + $0x6f0] sm:$0xff]  ;;  %v2465_v28 = vld [vmem:[#allocation3 + $0x720] sm:$0xff] }
 0x30c   : > { %3801 = vmatmul.mubr.bf16.gmra.mrb[240].mxu1 %v2454_v13  ;;  %v10131_v39 = vsel %vm12291_vm13, %v4415_v9, %v9969_v36  ;;  %v5352_v34 = vrot.slane %v5333_v38, 3  ;;  %v5381_v53 = vrot.slane %v5333_v38, 4  ;;  %v5410_v48 = vrot.slane %v5333_v38, 5  ;;  %v3991_v58 = vpop.f32.mrb[138].mxu0 }
 0x30d   : > { %3806 = vmatprep.mubr.bf16.mxu1 %v2460_v26  ;;  %v5439_v22 = vrot.slane %v5333_v38, 6  ;;  %v5468_v54 = vrot.slane %v5333_v38, 7  ;;  %v10135_v31 = vsel %vm12291_vm13, %v5333_v38, %v10023_v50  ;;  %v5527_v56 = vrot.slane %v5333_v38, 1  ;;  %v3992_v10 = vpop.f32.mrb[139].mxu0 }
 0x30e   : > { %v10139_v42 = vsel %vm12291_vm13, %v5352_v34, %v9997_v45  ;;  %v10143_v36 = vsel %vm12291_vm13, %v5381_v53, %v10001_v27  ;;  %v10147_v4 = vsel %vm12291_vm13, %v5410_v48, %v10005_v6  ;;  %v5556_v62 = vrot.slane %v5333_v38, 2 }
 0x30f   : > { %v3401_v13 = vpop.f32.mrb[164].mxu1  ;;  %v10151_v50 = vsel %vm12291_vm13, %v5439_v22, %v10009_v3  ;;  %v10155_v17 = vsel %vm12291_vm13, %v5468_v54, %v9993_v63  ;;  %v4544_v45 = vunpack.c.l.b16 %v4241_v52  ;;  %v5597_v5 = vunpack.c.l.b16 %v5301_v32  ;;  %6594 = vmatmul.mubr.msk.bf16.gmra.mrb[236].mxu0 %vm353_vm0, %v2456_v20 }
 0x310   : > { %v3402_v27 = vpop.f32.mrb[165].mxu1  ;;  %4191 = vmatprep.mubr.bf16.mxu0 %v12334_v61  ;;  %v10161_v6 = vsel %vm12291_vm13, %v4474_v43, %v10027_v40  ;;  %v10165_v3 = vsel %vm12291_vm13, %v5527_v56, %v10031_v49  ;;  %v10169_v63 = vsel %vm12291_vm13, %v4503_v0, %v9989_v25  ;;  %v10173_v38 = vsel %vm12291_vm13, %v5556_v62, %v10018_v7 }
 0x311   : > { %v3403_v23 = vpop.f32.mrb[166].mxu1  ;;  %v4563_v52 = vrot.slane %v4544_v45, 3  ;;  %v4592_v32 = vrot.slane %v4544_v45, 4  ;;  %v4621_v46 = vrot.slane %v4544_v45, 5  ;;  %v4650_v26 = vrot.slane %v4544_v45, 6 }
 0x312   : > { %v3404_v9 = vpop.f32.mrb[167].mxu1  ;;  %v4679_v40 = vrot.slane %v4544_v45, 7  ;;  %v10177_v43 = vsel %vm12291_vm13, %v4544_v45, %v10080_v1  ;;  %v4738_v49 = vrot.slane %v4544_v45, 1  ;;  %v4767_v2 = vrot.slane %v4544_v45, 2  ;;  %v3995_v34 = vpop.f32.mrb[140].mxu0 }
 0x313   : > { %v10181_v25 = vsel %vm12291_vm13, %v4563_v52, %v10039_v55  ;;  %v10185_v7 = vsel %vm12291_vm13, %v4592_v32, %v10043_v29  ;;  %v10189_v0 = vsel %vm12291_vm13, %v4621_v46, %v10047_v15  ;;  %v10193_v53 = vsel %vm12291_vm13, %v4650_v26, %v10051_v60  ;;  %v3996_v1 = vpop.f32.mrb[141].mxu0  ;;  %v2461_v29 = vld [vmem:[#allocation3 + $0x700] sm:$0xff] }
 0x314   : > { %3807 = vmatmul.mubr.bf16.gmra.mrb[244].mxu1 %v2459_v8  ;;  %v10197_v48 = vsel %vm12291_vm13, %v4679_v40, %v10035_v33  ;;  %v5616_v55 = vrot.slane %v5597_v5, 3  ;;  %v5645_v58 = vrot.slane %v5597_v5, 4  ;;  %v5674_v20 = vrot.slane %v5597_v5, 5  ;;  %v3997_v22 = vpop.f32.mrb[142].mxu0  ;;  %v12378_v8 = vld [vmem:[#allocation20_spill] sm:$0xff]  ;;  %v12379_v32 = vld [vmem:[#allocation21_spill] sm:$0xff] }
 0x315   : > { %3812 = vmatprep.mubr.bf16.mxu1 %v2465_v28  ;;  %v5703_v54 = vrot.slane %v5597_v5, 6  ;;  %v5732_v56 = vrot.slane %v5597_v5, 7  ;;  %v10201_v15 = vsel %vm12291_vm13, %v5597_v5, %v10084_v47  ;;  %v5791_v60 = vrot.slane %v5597_v5, 1  ;;  %v3998_v10 = vpop.f32.mrb[143].mxu0 }
 0x316   : > { %v10205_v62 = vsel %vm12291_vm13, %v5616_v55, %v10063_v30  ;;  %v10209_v33 = vsel %vm12291_vm13, %v5645_v58, %v10067_v18  ;;  %v10213_v13 = vsel %vm12291_vm13, %v5674_v20, %v10071_v51  ;;  %v5820_v45 = vrot.slane %v5597_v5, 2  ;;  %v2464_v51 = vld [vmem:[#allocation3 + $0x718] sm:$0xff]  ;;  %v12377_v5 = vld [vmem:[#allocation19_spill] sm:$0xff] }
 0x317   : > { %v10217_v27 = vsel %vm12291_vm13, %v5703_v54, %v10075_v11  ;;  %v10221_v47 = vsel %vm12291_vm13, %v5732_v56, %v10059_v12  ;;  %6595 = vmatmul.mubr.msk.bf16.gmra.mrb[240].mxu0 %vm353_vm0, %v2461_v29  ;;  %v10226_v30 = vsel %vm12291_vm13, %v4738_v49, %v10088_v16  ;;  %v10230_v18 = vsel %vm12291_vm13, %v5791_v60, %v10097_v41  ;;  %v2470_v16 = vld [vmem:[#allocation3 + $0x748] sm:$0xff] }
 0x318   : > { %4197 = vmatprep.mubr.bf16.mxu0 %v12334_v61  ;;  %v10235_v11 = vsel %vm12291_vm13, %v4767_v2, %v10055_v59  ;;  %v10239_v12 = vsel %vm12291_vm13, %v5820_v45, %v10092_v21  ;;  %v3232_v23 = vadd.f32 %v12377_v5, %v9392_v19  ;;  %v3234_v52 = vadd.f32 %v12378_v8, %v9395_v24  ;;  %v12380_v59 = vld [vmem:[#allocation22_spill] sm:$0xff]  ;;  %v2469_v45 = vld [vmem:[#allocation3 + $0x740] sm:$0xff]  ;;  %vm10429_vm13 = vmand %vm5155_vm15, %vm6208_vm1 }
 0x319   : > { %v3236_v46 = vadd.f32 %v12379_v32, %v9392_v19  ;;  %v3238_v28 = vadd.f32 %v12380_v59, %v9395_v24  ;;  %v2466_v49 = vld [vmem:[#allocation3 + $0x728] sm:$0xff]  ;;  %vm5174_vm15 = vsmask.f32 5376  ;;  %vm6219_vm1 = vsmask.f32 7954 }
 0x31a   : > { %v4001_v41 = vpop.f32.mrb[72].mxu0 }
 0x31b   : > { %v6751_v26 = vadd.f32 %v4001_v41, %v3232_v23  ;;  %v4003_v9 = vpop.f32.mrb[73].mxu0 }
 0x31c   : > { %3813 = vmatmul.mubr.bf16.gmra.mrb[180].mxu1 %v2464_v51  ;;  %v6753_v40 = vadd.f32 %v4003_v9, %v3234_v52  ;;  %v4005_v21 = vpop.f32.mrb[74].mxu0  ;;  %v2475_v52 = vld [vmem:[#allocation3 + $0x770] sm:$0xff] }
 0x31d   : > { %3822 = vmatprep.mubr.bf16.mxu1 %v2470_v16  ;;  %v4226_v2 = vpack.c.bf16 %v6751_v26, %v6751_v26  ;;  %v6755_v34 = vadd.f32 %v4005_v21, %v3236_v46  ;;  %v4007_v1 = vpop.f32.mrb[75].mxu0 }
 0x31e   : > { %v5286_v55 = vpack.c.bf16 %v6753_v40, %v6753_v40  ;;  %v6757_v58 = vadd.f32 %v4007_v1, %v3238_v28  ;;  %v2471_v1 = vld [vmem:[#allocation3 + $0x750] sm:$0xff] }
 0x31f   : > { %v3417_v20 = vpop.f32.mrb[172].mxu1  ;;  %v4274_v22 = vunpack.c.l.b16 %v4226_v2  ;;  %6596 = vmatmul.mubr.msk.bf16.gmra.mrb[244].mxu0 %vm353_vm0, %v2466_v49  ;;  %v4242_v56 = vpack.c.bf16 %v6755_v34, %v6755_v34 }
 0x320   : > { %v3418_v29 = vpop.f32.mrb[173].mxu1  ;;  %v5334_v54 = vunpack.c.l.b16 %v5286_v55  ;;  %v5302_v60 = vpack.c.bf16 %v6757_v58, %v6757_v58  ;;  %4207 = vmatprep.mubr.bf16.mxu0 %v12334_v61 }
 0x321   : > { %v3419_v10 = vpop.f32.mrb[174].mxu1  ;;  %v4299_v51 = vrot.slane %v4274_v22, 2  ;;  %v4330_v5 = vrot.slane %v4274_v22, 3  ;;  %v4359_v23 = vrot.slane %v4274_v22, 4  ;;  %v4388_v16 = vrot.slane %v4274_v22, 5 }
 0x322   : > { %v3420_v8 = vpop.f32.mrb[175].mxu1  ;;  %v4417_v41 = vrot.slane %v4274_v22, 6  ;;  %v4446_v32 = vrot.slane %v4274_v22, 7  ;;  %v10253_v46 = vsel %vm12290_vm14, %v4274_v22, %v10161_v6  ;;  %v4505_v26 = vrot.slane %v4274_v22, 1  ;;  %v4011_v9 = vpop.f32.mrb[144].mxu0 }
 0x323   : > { %v10257_v59 = vsel %vm12290_vm14, %v4299_v51, %v10115_v57  ;;  %v10261_v28 = vsel %vm12290_vm14, %v4330_v5, %v10119_v37  ;;  %v10265_v40 = vsel %vm12290_vm14, %v4359_v23, %v10123_v44  ;;  %v10269_v21 = vsel %vm12290_vm14, %v4388_v16, %v10127_v35  ;;  %v4012_v6 = vpop.f32.mrb[145].mxu0 }
 0x324   : > { %3823 = vmatmul.mubr.bf16.gmra.mrb[248].mxu1 %v2469_v45  ;;  %v10273_v49 = vsel %vm12290_vm14, %v4417_v41, %v10131_v39  ;;  %v10277_v57 = vsel %vm12290_vm14, %v4446_v32, %v10111_v14  ;;  %v5354_v37 = vrot.slane %v5334_v54, 2  ;;  %v5383_v2 = vrot.slane %v5334_v54, 3  ;;  %v4013_v34 = vpop.f32.mrb[146].mxu0 }
 0x325   : > { %3828 = vmatprep.mubr.bf16.mxu1 %v2475_v52  ;;  %v5412_v44 = vrot.slane %v5334_v54, 4  ;;  %v5441_v55 = vrot.slane %v5334_v54, 5  ;;  %v5470_v58 = vrot.slane %v5334_v54, 6  ;;  %v5499_v35 = vrot.slane %v5334_v54, 7  ;;  %v4014_v20 = vpop.f32.mrb[147].mxu0 }
 0x326   : > { %v10281_v22 = vsel %vm12290_vm14, %v5354_v37, %v10139_v42  ;;  %v10285_v39 = vsel %vm12290_vm14, %v5383_v2, %v10143_v36  ;;  %v10289_v14 = vsel %vm12290_vm14, %v5334_v54, %v10165_v3  ;;  %v5558_v29 = vrot.slane %v5334_v54, 1 }
 0x327   : > { %v3423_v10 = vpop.f32.mrb[176].mxu1  ;;  %v10293_v45 = vsel %vm12290_vm14, %v5412_v44, %v10147_v4  ;;  %v10297_v51 = vsel %vm12290_vm14, %v5441_v55, %v10151_v50  ;;  %v10301_v42 = vsel %vm12290_vm14, %v5470_v58, %v10155_v17  ;;  %v10305_v36 = vsel %vm12290_vm14, %v5499_v35, %v10135_v31  ;;  %6597 = vmatmul.mubr.msk.bf16.gmra.mrb[248].mxu0 %vm353_vm0, %v2471_v1  ;;  %v2474_v17 = vld [vmem:[#allocation3 + $0x768] sm:$0xff] }
 0x328   : > { %v3424_v3 = vpop.f32.mrb[177].mxu1  ;;  %v4545_v54 = vunpack.c.l.b16 %v4242_v56  ;;  %v10310_v4 = vsel %vm12290_vm14, %v4505_v26, %v10169_v63  ;;  %v10314_v50 = vsel %vm12290_vm14, %v5558_v29, %v10173_v38  ;;  %4213 = vmatprep.mubr.bf16.mxu0 %v12334_v61  ;;  %v5598_v23 = vunpack.c.l.b16 %v5302_v60 }
 0x329   : > { %v3425_v5 = vpop.f32.mrb[178].mxu1  ;;  %v7267_v16 = vmov 1966171168  }
 0x32a   : > { %v3426_v31 = vpop.f32.mrb[179].mxu1  ;;  %v10317_v8 = vunpack.c.l.s4 %v7267_v16  ;;  %v4565_v56 = vrot.slane %v4545_v54, 2  ;;  %v4594_v52 = vrot.slane %v4545_v54, 3  ;;  %v4623_v41 = vrot.slane %v4545_v54, 4  ;;  %v4017_v63 = vpop.f32.mrb[148].mxu0  ;;  %v12387_v16 = vld [vmem:[#allocation25_spill] sm:$0xff] }
 0x32b   : > { %v4652_v32 = vrot.slane %v4545_v54, 5  ;;  %v4681_v26 = vrot.slane %v4545_v54, 6  ;;  %v4710_v9 = vrot.slane %v4545_v54, 7  ;;  %v10321_v38 = vsel %vm12290_vm14, %v4545_v54, %v10226_v30  ;;  %v4018_v6 = vpop.f32.mrb[149].mxu0 }
 0x32c   : > { %v4769_v61 = vrot.slane %v4545_v54, 1  ;;  %3829 = vmatmul.mubr.bf16.gmra.mrb[252].mxu1 %v2474_v17  ;;  %v10325_v60 = vsel %vm12290_vm14, %v4565_v56, %v10181_v25  ;;  %v10329_v37 = vsel %vm12290_vm14, %v4594_v52, %v10185_v7  ;;  %v10333_v2 = vsel %vm12290_vm14, %v4623_v41, %v10189_v0  ;;  %v4019_v30 = vpop.f32.mrb[150].mxu0  ;;  %v2476_v25 = vld [vmem:[#allocation3 + $0x778] sm:$0xff] }
 0x32d   : > { %v10337_v34 = vsel %vm12290_vm14, %v4652_v32, %v10193_v53  ;;  %v10347_v7 = vsel %vm12290_vm14, %v4681_v26, %v10197_v48  ;;  %v10351_v0 = vsel %vm12290_vm14, %v4710_v9, %v10177_v43  ;;  %v5618_v44 = vrot.slane %v5598_v23, 2  ;;  %v4020_v53 = vpop.f32.mrb[151].mxu0 }
 0x32e   : > { %v5647_v55 = vrot.slane %v5598_v23, 3  ;;  %v5676_v35 = vrot.slane %v5598_v23, 4  ;;  %v5705_v20 = vrot.slane %v5598_v23, 5  ;;  %v5734_v29 = vrot.slane %v5598_v23, 6 }
 0x32f   : > { %v5763_v10 = vrot.slane %v5598_v23, 7  ;;  %v10361_v48 = vsel %vm12290_vm14, %v5618_v44, %v10205_v62  ;;  %v10369_v3 = vsel %vm12290_vm14, %v5598_v23, %v10230_v18  ;;  %v5822_v54 = vrot.slane %v5598_v23, 1  ;;  %6598 = vmatmul.mubr.msk.bf16.gmra.mrb[252].mxu0 %vm353_vm0, %v2476_v25  ;;  %vm5160_vm0 = vmor %vm10355_vm6, %vm10341_vm5 }
 0x330   : > { %v10365_v43 = vsel %vm12290_vm14, %v5647_v55, %v10209_v33  ;;  %v10374_v5 = vsel %vm12290_vm14, %v5676_v35, %v10213_v13  ;;  %v10378_v17 = vsel %vm12290_vm14, %v5705_v20, %v10217_v27  ;;  %v10382_v62 = vsel %vm12290_vm14, %v5734_v29, %v10221_v47  ;;  %v12385_v13 = vld [vmem:[#allocation23_spill] sm:$0xff]  ;;  %vm10416_vm2 = vmor %vm5163_vm4, %vm5160_vm0 }
 0x331   : > { %v10386_v33 = vsel %vm12290_vm14, %v5763_v10, %v10201_v15  ;;  %v3254_v18 = vadd.f32 %v12385_v13, %v9392_v19  ;;  %v10398_v27 = vsel %vm12290_vm14, %v4769_v61, %v10235_v11  ;;  %v10402_v47 = vsel %vm12290_vm14, %v5822_v54, %v10239_v12  ;;  %v12386_v15 = vld [vmem:[#allocation24_spill] sm:$0xff]  ;;  %v12388_v11 = vld [vmem:[#allocation26_spill] sm:$0xff]  ;;  %vm10421_vm14 = vmand %vm4291_vm11, %vm5166_vm8 }
 0x332   : > { %v3256_v23 = vadd.f32 %v12386_v15, %v9395_v24  ;;  %v4023_v31 = vpop.f32.mrb[84].mxu0  ;;  %v3258_v56 = vadd.f32 %v12387_v16, %v9392_v19  ;;  %v4797_v41 = vunpack.c.0.s8 %v10317_v8  ;;  %v3260_v63 = vadd.f32 %v12388_v11, %v9395_v24  ;;  %vm10437_vm0 = vmand %vm12292_vm9, %vm6210_vm3  ;;  %v12397_v35 = vld [vmem:[#allocation27_spill] sm:$0xff] }
 0x333   : > { %v6759_v52 = vadd.f32 %v4023_v31, %v3254_v18  ;;  %v4025_v32 = vpop.f32.mrb[85].mxu0  ;;  %vm6213_vm5 = vsmask.f32 7946  ;;  %vm5170_vm6 = vsmask.f32 4352  ;;  %vm5168_vm8 = vmor %vm10421_vm14, %vm10416_vm2 }
 0x334   : > { %v6761_v26 = vadd.f32 %v4025_v32, %v3256_v23  ;;  %v4027_v9 = vpop.f32.mrb[86].mxu0  ;;  %vm6216_vm4 = vsmask.f32 7950  ;;  %v10442_v20 = vsub.s32 %v4797_v41, %v12397_v35  ;;  %vm10456_vm3 = vmand %vm12294_vm12, %vm5170_vm6  ;;  %vm12412_vm14 = vsmask.f32 6400 }
 0x335   : > { %v4227_v61 = vpack.c.bf16 %v6759_v52, %v6759_v52  ;;  %v10425_v6 = vadd.f32 %v4027_v9, %v3258_v56  ;;  %v4029_v30 = vpop.f32.mrb[87].mxu0  ;;  %vm6212_vm9 = vmor %vm10437_vm0, %vm10429_vm13  ;;  %vm6222_vm13 = vsmask.f32 7958  ;;  %vm12413_vm0 = vcmask 1046534  }
 0x336   : > { %v5287_v25 = vpack.c.bf16 %v6761_v26, %v6761_v26  ;;  %v10433_v44 = vadd.f32 %v4029_v30, %v3260_v63  ;;  %12398 = vst [vmem:[#allocation18_spill] sm:$0xff] %v10442_v20  ;;  %vm10468_vm6 = vmand %vm12293_vm10, %vm6213_vm5  ;;  %vm12405_vm10 = vcmask 1045509  }
 0x337   : > { %v3439_v55 = vpop.f32.mrb[184].mxu1  ;;  %v4275_v58 = vunpack.c.l.b16 %v4227_v61  ;;  %v4243_v54 = vpack.c.bf16 %v10425_v6, %v10425_v6  ;;  %vm10493_vm5 = vmor %vm10456_vm3, %vm5168_vm8  ;;  %vm6225_vm8 = vsmask.f32 7962  ;;  %vm12416_vm3 = vsmask.f32 7424 }
 0x338   : > { %v3440_v29 = vpop.f32.mrb[185].mxu1  ;;  %v10448_v10 = vunpack.c.l.b16 %v5287_v25  ;;  %v5303_v13 = vpack.c.bf16 %v10433_v44, %v10433_v44  ;;  %vm10499_vm12 = vmand %vm12405_vm10, %vm5174_vm15 }
 0x339   : > { %v3441_v18 = vpop.f32.mrb[186].mxu1  ;;  %v4302_v15 = vrot.slane %v4275_v58, 1  ;;  %v4332_v23 = vrot.slane %v4275_v58, 2  ;;  %v4361_v31 = vrot.slane %v4275_v58, 3  ;;  %v4390_v16 = vrot.slane %v4275_v58, 4  ;;  %vm10511_vm2 = vmor %vm10468_vm6, %vm6212_vm9 }
 0x33a   : > { %v3442_v52 = vpop.f32.mrb[187].mxu1  ;;  %v4419_v41 = vrot.slane %v4275_v58, 5  ;;  %v4448_v32 = vrot.slane %v4275_v58, 6  ;;  %v4477_v11 = vrot.slane %v4275_v58, 7  ;;  %v4507_v63 = vsel %vm4303_vm7, %v4275_v58, %v10310_v4  ;;  %v4033_v26 = vpop.f32.mrb[152].mxu0  ;;  %vm10521_vm10 = vmand %vm4291_vm11, %vm6216_vm4 }
 0x33b   : > { %v4304_v61 = vsel %vm4303_vm7, %v4302_v15, %v10257_v59  ;;  %v4333_v30 = vsel %vm4303_vm7, %v4332_v23, %v10261_v28  ;;  %v4362_v25 = vsel %vm4303_vm7, %v4361_v31, %v10265_v40  ;;  %v4391_v55 = vsel %vm4303_vm7, %v4390_v16, %v10269_v21  ;;  %v4034_v4 = vpop.f32.mrb[153].mxu0  ;;  %vm5176_vm9 = vmor %vm10499_vm12, %vm10493_vm5 }
 0x33c   : > { %v4420_v58 = vsel %vm4303_vm7, %v4419_v41, %v10273_v49  ;;  %v4449_v35 = vsel %vm4303_vm7, %v4448_v32, %v10277_v57  ;;  %v4478_v29 = vsel %vm4303_vm7, %v4477_v11, %v10253_v46  ;;  %v6599_v59 = vpack.c.b16 %v4333_v30, %v4304_v61  ;;  %v4035_v40 = vpop.f32.mrb[154].mxu0  ;;  %vm10544_vm4 = vmand %vm12413_vm0, %vm12412_vm14 }
 0x33d   : > { %v6601_v21 = vpack.c.b16 %v4391_v55, %v4362_v25  ;;  %v6603_v49 = vpack.c.b16 %v4449_v35, %v4420_v58  ;;  %v6605_v18 = vpack.c.b16 %v4507_v63, %v4478_v29  ;;  %v5356_v57 = vrot.slane %v10448_v10, 1  ;;  %v4036_v12 = vpop.f32.mrb[155].mxu0  ;;  %vm6218_vm15 = vmor %vm10521_vm10, %vm10511_vm2  ;;  %v5220_v58 = vld [vmem:[%s10596_s10 + $0x60] sm:$0xff] }
 0x33e   : > { %v4801_v15 = vrot.slane %v6599_v59, %v10442_v20  ;;  %v5385_v23 = vrot.slane %v10448_v10, 2  ;;  %v5414_v31 = vrot.slane %v10448_v10, 3  ;;  %v5443_v16 = vrot.slane %v10448_v10, 4  ;;  %vm10569_vm6 = vmand %vm4303_vm7, %vm12416_vm3 }
 0x33f   : > { %v3445_v56 = vpop.f32.mrb[188].mxu1  ;;  %v4815_v53 = vrot.slane %v6601_v21, %v10442_v20  ;;  %v4829_v52 = vrot.slane %v6603_v49, %v10442_v20  ;;  %v4843_v41 = vrot.slane %v6605_v18, %v10442_v20  ;;  %v5357_v32 = vsel %vm4303_vm7, %v5356_v57, %v10281_v22  ;;  %vm10580_vm14 = vmor %vm10544_vm4, %vm5176_vm9 }
 0x340   : > { %v3446_v11 = vpop.f32.mrb[189].mxu1  ;;  %v5386_v63 = vsel %vm4303_vm7, %v5385_v23, %v10285_v39  ;;  %v5415_v26 = vsel %vm4303_vm7, %v5414_v31, %v10293_v45  ;;  %v5444_v9 = vsel %vm4303_vm7, %v5443_v16, %v10297_v51  ;;  %v5472_v61 = vrot.slane %v10448_v10, 5  ;;  %vm10611_vm12 = vmor %vm10569_vm6, %vm10580_vm14 }
 0x341   : > { %v3447_v30 = vpop.f32.mrb[190].mxu1  ;;  %v4851_v22 = vcombine.low %v4801_v15, %v4815_v53  ;;  %v4852_v25 = vcombine.high %v4801_v15, %v4815_v53  ;;  %v4855_v55 = vcombine.low %v4829_v52, %v4843_v41  ;;  %v4856_v4 = vcombine.high %v4829_v52, %v4843_v41  ;;  %v5196_v41 = vld [vmem:[%s10596_s10 + $0x20] sm:$0xff] }
 0x342   : > { %v3448_v39 = vpop.f32.mrb[191].mxu1  ;;  %v10554_v45 = vsel %vm4303_vm7, %v5472_v61, %v10301_v42  ;;  %v5501_v51 = vrot.slane %v10448_v10, 6  ;;  %v5530_v35 = vrot.slane %v10448_v10, 7  ;;  %v10561_v29 = vsel %vm4303_vm7, %v10448_v10, %v10314_v50  ;;  %v4039_v59 = vpop.f32.mrb[156].mxu0 }
 0x343   : > { %v4865_v40 = vrot.slane %v4851_v22, %v10442_v20  ;;  %v4879_v21 = vrot.slane %v4852_v25, %v10442_v20  ;;  %v4893_v49 = vrot.slane %v4855_v55, %v10442_v20  ;;  %v4907_v42 = vrot.slane %v4856_v4, %v10442_v20  ;;  %v4040_v57 = vpop.f32.mrb[157].mxu0  ;;  %v5208_v4 = vld [vmem:[%s10596_s10 + $0x40] sm:$0xff]  ;;  %v10618_v59 = vld [vmem:[%s10596_s10 + $0x30] sm:$0xff] }
 0x344   : > { %v5502_v10 = vsel %vm4303_vm7, %v5501_v51, %v10305_v36  ;;  %v5531_v12 = vsel %vm4303_vm7, %v5530_v35, %v10289_v14  ;;  %v6631_v15 = vpack.c.b16 %v5386_v63, %v5357_v32  ;;  %v6633_v23 = vpack.c.b16 %v5444_v9, %v5415_v26  ;;  %v4041_v31 = vpop.f32.mrb[158].mxu0  ;;  %v5184_v14 = vld [vmem:[%s10596_s10] sm:$0xff]  ;;  %v10600_v36 = vld [vmem:[%s10596_s10 + $0x10] sm:$0xff] }
 0x345   : > { %vm12421_vm0 = vcmask 1044484   ;;  %v4915_v46 = vcombine.low %v4865_v40, %v4893_v49  ;;  %v4916_v16 = vcombine.high %v4865_v40, %v4893_v49  ;;  %v4919_v56 = vcombine.low %v4879_v21, %v4907_v42  ;;  %v4042_v52 = vpop.f32.mrb[159].mxu0  ;;  %v10621_v40 = vld [vmem:[%s10596_s10 + $0x50] sm:$0xff] }
 0x346   : > { %vm10590_vm3 = vmand %vm12421_vm0, %vm6219_vm1  ;;  %v4920_v53 = vcombine.high %v4879_v21, %v4907_v42  ;;  %v6635_v32 = vpack.c.b16 %v5502_v10, %v10554_v45  ;;  %v6637_v11 = vpack.c.b16 %v10561_v29, %v5531_v12  ;;  %v5854_v63 = vrot.slane %v6631_v15, %v10442_v20  ;;  %v10624_v21 = vld [vmem:[%s10596_s10 + $0x70] sm:$0xff] }
 0x347   : > { %v5868_v26 = vrot.slane %v6633_v23, %v10442_v20  ;;  %v3660_v9 = vpop.f32.mrb[96].mxu1  ;;  %v5061_v61 = vunpack.i.h.s16 %v4915_v46  ;;  %v5065_v30 = vunpack.i.h.s16 %v4919_v56  ;;  %v5069_v22 = vunpack.i.h.s16 %v4916_v16  ;;  %vm10635_vm1 = vmor %vm10590_vm3, %vm6218_vm15 }
 0x348   : > { %v5073_v25 = vunpack.i.h.s16 %v4920_v53  ;;  %v12424_v55 = vmov 0  ;;  %v3662_v39 = vpop.f32.mrb[97].mxu1  ;;  %v6615_v45 = vpack.i.b16 %v4915_v46, %v4915_v46  ;;  %v6617_v51 = vpack.i.b16 %v4919_v56, %v4919_v56 }
 0x349   : > { %v12425_v55 = vsel %vm10611_vm12, 4294967295, %v12424_v55  ;;  %v6619_v35 = vpack.i.b16 %v4916_v16, %v4916_v16  ;;  %v6621_v29 = vpack.i.b16 %v4920_v53, %v4920_v53  ;;  %v10626_v49 = vpop.f32.mrb[98].mxu1  ;;  %v10639_v18 = vpack.i.b16 %v5061_v61, %v5061_v61 }
 0x34a   : > { %12426 = vst [vmem:[#allocation13_spill] sm:$0xff] %v12425_v55  ;;  %v10641_v57 = vpack.i.b16 %v5065_v30, %v5065_v30  ;;  %v10643_v50 = vpack.i.b16 %v5069_v22, %v5069_v22  ;;  %v10645_v10 = vpack.i.b16 %v5073_v25, %v5073_v25  ;;  %v10647_v12 = vpop.f32.mrb[99].mxu1  ;;  %vm12429_vm5 = vcmask 1045509   ;;  %v10671_v28 = vpop.f32.mrb[160].mxu0 }
 0x34b   : > { %vm10651_vm9 = vmand %vm12429_vm5, %vm6222_vm13  ;;  %v10657_v1 = vsel %vm10611_vm12, %v6615_v45, %v5184_v14  ;;  %v10661_v15 = vsel %vm10611_vm12, %v6617_v51, %v5196_v41  ;;  %v10665_v23 = vsel %vm10611_vm12, %v6619_v35, %v5208_v4  ;;  %v10669_v31 = vsel %vm10611_vm12, %v6621_v29, %v5220_v58  ;;  %v10689_v52 = vpop.f32.mrb[161].mxu0 }
 0x34c   : > { %v5882_v14 = vrot.slane %v6635_v32, %v10442_v20  ;;  %v5896_v41 = vrot.slane %v6637_v11, %v10442_v20  ;;  %v5904_v61 = vcombine.low %v5854_v63, %v5868_v26  ;;  %v5905_v30 = vcombine.high %v5854_v63, %v5868_v26  ;;  %v10693_v22 = vpop.f32.mrb[162].mxu0  ;;  %vm6224_vm2 = vmor %vm10651_vm9, %vm10635_vm1 }
 0x34d   : > { %v10702_v25 = vunpack.c.l.b16 %v4243_v54  ;;  %v10707_v32 = vunpack.c.l.b16 %v5303_v13  ;;  %v10710_v11 = vadd.f32 %v3660_v9, %v9392_v19  ;;  %v10713_v63 = vadd.f32 %v3662_v39, %v9395_v24  ;;  %v10715_v26 = vpop.f32.mrb[163].mxu0 }
 0x34e   : > { %12432 = vst [vmem:[#allocation14_spill] sm:$0xff] %v10715_v26  ;;  %vm12433_vm10 = vcmask 1046534   ;;  %v5908_v6 = vcombine.low %v5882_v14, %v5896_v41  ;;  %v5909_v54 = vcombine.high %v5882_v14, %v5896_v41  ;;  %v5918_v44 = vrot.slane %v5904_v61, %v10442_v20 }
 0x34f   : > { %vm10719_vm13 = vmand %vm12433_vm10, %vm6225_vm8  ;;  %v5932_v13 = vrot.slane %v5905_v30, %v10442_v20  ;;  %v3670_v58 = vpop.f32.mrb[192].mxu1  ;;  %v4567_v9 = vrot.slane %v10702_v25, 1  ;;  %v4596_v39 = vrot.slane %v10702_v25, 2  ;;  %v4625_v45 = vrot.slane %v10702_v25, 3 }
 0x350   : > { %v4654_v51 = vrot.slane %v10702_v25, 4  ;;  %v3671_v35 = vpop.f32.mrb[193].mxu1  ;;  %vm12436_vm4 = vsmask.f32 7966  ;;  %v5946_v14 = vrot.slane %v5908_v6, %v10442_v20  ;;  %v5960_v41 = vrot.slane %v5909_v54, %v10442_v20  ;;  %vm10746_vm8 = vmor %vm10719_vm13, %vm6224_vm2 }
 0x351   : > { %vm10731_vm15 = vmand %vm4303_vm7, %vm12436_vm4  ;;  %v4683_v61 = vrot.slane %v10702_v25, 5  ;;  %v4712_v30 = vrot.slane %v10702_v25, 6  ;;  %v3672_v58 = vpop.f32.mrb[194].mxu1  ;;  %v4568_v6 = vsel %vm4303_vm7, %v4567_v9, %v10325_v60  ;;  %v4597_v54 = vsel %vm4303_vm7, %v4596_v39, %v10329_v37 }
 0x352   : > { %v4626_v58 = vsel %vm4303_vm7, %v4625_v45, %v10333_v2  ;;  %v4655_v8 = vsel %vm4303_vm7, %v4654_v51, %v10337_v34  ;;  %v3673_v42 = vpop.f32.mrb[195].mxu1  ;;  %v5968_v53 = vcombine.low %v5918_v44, %v5946_v14  ;;  %v5969_v56 = vcombine.high %v5918_v44, %v5946_v14  ;;  %v4055_v46 = vpop.f32.mrb[164].mxu0  ;;  %vm10770_vm6 = vmor %vm10731_vm15, %vm10746_vm8 }
 0x353   : > { %v5972_v4 = vcombine.low %v5932_v13, %v5960_v41  ;;  %v5973_v16 = vcombine.high %v5932_v13, %v5960_v41  ;;  %v4684_v26 = vsel %vm4303_vm7, %v4683_v61, %v10347_v7  ;;  %v4713_v60 = vsel %vm4303_vm7, %v4712_v30, %v10351_v0  ;;  %v4056_v9 = vpop.f32.mrb[165].mxu0 }
 0x354   : > { %v4741_v37 = vrot.slane %v10702_v25, 7  ;;  %v4771_v2 = vsel %vm4303_vm7, %v10702_v25, %v10398_v27  ;;  %v12441_v34 = vmov 0  ;;  %v6114_v46 = vunpack.i.h.s16 %v5968_v53  ;;  %v4057_v0 = vpop.f32.mrb[166].mxu0 }
 0x355   : > { %v12442_v34 = vsel %vm10770_vm6, 4294967295, %v12441_v34  ;;  %v6118_v7 = vunpack.i.h.s16 %v5972_v4  ;;  %v6122_v44 = vunpack.i.h.s16 %v5969_v56  ;;  %v6126_v13 = vunpack.i.h.s16 %v5973_v16  ;;  %v4058_v25 = vpop.f32.mrb[167].mxu0 }
 0x356   : > { %12443 = vst [vmem:[#allocation15_spill] sm:$0xff] %v12442_v34  ;;  %v6647_v39 = vpack.i.b16 %v5968_v53, %v5968_v53  ;;  %v6649_v45 = vpack.i.b16 %v5972_v4, %v5972_v4  ;;  %v6651_v51 = vpack.i.b16 %v5969_v56, %v5969_v56  ;;  %v6653_v27 = vpack.i.b16 %v5973_v16, %v5973_v16 }
 0x357   : > { %v6146_v14 = vpack.i.b16 %v6114_v46, %v6114_v46  ;;  %v6150_v29 = vpack.i.b16 %v6118_v7, %v6118_v7  ;;  %v6154_v41 = vpack.i.b16 %v6122_v44, %v6122_v44  ;;  %v6158_v61 = vpack.i.b16 %v6126_v13, %v6126_v13  ;;  %v3676_v30 = vpop.f32.mrb[196].mxu1 }
 0x358   : > { %v6231_v35 = vsel %vm10770_vm6, %v6647_v39, %v10657_v1  ;;  %v6243_v56 = vsel %vm10770_vm6, %v6649_v45, %v10661_v15  ;;  %v6255_v16 = vsel %vm10770_vm6, %v6651_v51, %v10665_v23  ;;  %v6267_v53 = vsel %vm10770_vm6, %v6653_v27, %v10669_v31  ;;  %v3677_v42 = vpop.f32.mrb[197].mxu1 }
 0x359   : > { %6232 = vst [vmem:[%s10596_s10] sm:$0xff] %v6231_v35  ;;  %v12444_v1 = vsel %vm10611_vm12, %v10639_v18, %v10600_v36  ;;  %6244 = vst [vmem:[%s10596_s10 + $0x20] sm:$0xff] %v6243_v56  ;;  %v12445_v15 = vsel %vm10611_vm12, %v10641_v57, %v10618_v59  ;;  %v12446_v31 = vsel %vm10611_vm12, %v10643_v50, %v10621_v40  ;;  %v3678_v57 = vpop.f32.mrb[198].mxu1  ;;  %v5620_v13 = vrot.slane %v10707_v32, 1 }
 0x35a   : > { %v6237_v4 = vsel %vm10770_vm6, %v6146_v14, %v12444_v1  ;;  %v6249_v23 = vsel %vm10770_vm6, %v6150_v29, %v12445_v15  ;;  %6256 = vst [vmem:[%s10596_s10 + $0x40] sm:$0xff] %v6255_v16  ;;  %v6261_v36 = vsel %vm10770_vm6, %v6154_v41, %v12446_v31  ;;  %6268 = vst [vmem:[%s10596_s10 + $0x60] sm:$0xff] %v6267_v53  ;;  %v3679_v7 = vpop.f32.mrb[199].mxu1  ;;  %v4061_v0 = vpop.f32.mrb[168].mxu0  ;;  %v5736_v25 = vrot.slane %v10707_v32, 5 }
 0x35b   : > { %v12447_v18 = vsel %vm10611_vm12, %v10645_v10, %v10624_v21  ;;  %6238 = vst [vmem:[%s10596_s10 + $0x10] sm:$0xff] %v6237_v4  ;;  %6250 = vst [vmem:[%s10596_s10 + $0x30] sm:$0xff] %v6249_v23  ;;  %v4742_v40 = vsel %vm4303_vm7, %v4741_v37, %v10321_v38  ;;  %v6607_v50 = vpack.c.b16 %v4597_v54, %v4568_v6  ;;  %v5649_v21 = vrot.slane %v10707_v32, 2  ;;  %v4062_v6 = vpop.f32.mrb[169].mxu0  ;;  %v10875_v0 = vld [vmem:[%s10596_s10 + $0x18] sm:$0xff] }
 0x35c   : > { %v6273_v59 = vsel %vm10770_vm6, %v6158_v61, %v12447_v18  ;;  %6262 = vst [vmem:[%s10596_s10 + $0x50] sm:$0xff] %v6261_v36  ;;  %v6609_v9 = vpack.c.b16 %v4655_v8, %v4626_v58  ;;  %v6611_v46 = vpack.c.b16 %v4713_v60, %v4684_v26  ;;  %v6613_v44 = vpack.c.b16 %v4771_v2, %v4742_v40  ;;  %v4063_v60 = vpop.f32.mrb[170].mxu0  ;;  %v5199_v40 = vld [vmem:[%s10596_s10 + $0x28] sm:$0xff] }
 0x35d   : > { %6274 = vst [vmem:[%s10596_s10 + $0x70] sm:$0xff] %v6273_v59  ;;  %v5678_v10 = vrot.slane %v10707_v32, 3  ;;  %v4937_v39 = vrot.slane %v6607_v50, %v10442_v20  ;;  %v5707_v38 = vrot.slane %v10707_v32, 4  ;;  %v5621_v54 = vsel %vm4303_vm7, %v5620_v13, %v10361_v48  ;;  %v4064_v14 = vpop.f32.mrb[171].mxu0  ;;  %v10888_v60 = vld [vmem:[%s10596_s10 + $0x78] sm:$0xff] }
 0x35e   : > { %v4951_v45 = vrot.slane %v6609_v9, %v10442_v20  ;;  %v4965_v51 = vrot.slane %v6611_v46, %v10442_v20  ;;  %v4979_v26 = vrot.slane %v6613_v44, %v10442_v20  ;;  %v5650_v58 = vsel %vm4303_vm7, %v5649_v21, %v10365_v43 }
 0x35f   : > { %v5679_v8 = vsel %vm4303_vm7, %v5678_v10, %v10374_v5  ;;  %v5708_v27 = vsel %vm4303_vm7, %v5707_v38, %v10378_v17  ;;  %v5765_v61 = vrot.slane %v10707_v32, 6  ;;  %v5794_v48 = vrot.slane %v10707_v32, 7  ;;  %v10843_v30 = vpop.f32.mrb[108].mxu1 }
 0x360   : > { %v4987_v37 = vcombine.low %v4937_v39, %v4951_v45  ;;  %v4988_v2 = vcombine.high %v4937_v39, %v4951_v45  ;;  %v4991_v29 = vcombine.low %v4965_v51, %v4979_v26  ;;  %v4992_v41 = vcombine.high %v4965_v51, %v4979_v26  ;;  %v10852_v56 = vpop.f32.mrb[109].mxu1  ;;  %v5211_v39 = vld [vmem:[%s10596_s10 + $0x48] sm:$0xff] }
 0x361   : > { %v5737_v35 = vsel %vm4303_vm7, %v5736_v25, %v10382_v62  ;;  %v5824_v17 = vsel %vm4303_vm7, %v10707_v32, %v10402_v47  ;;  %v5766_v42 = vsel %vm4303_vm7, %v5765_v61, %v10386_v33  ;;  %v5795_v1 = vsel %vm4303_vm7, %v5794_v48, %v10369_v3  ;;  %v10860_v4 = vpop.f32.mrb[110].mxu1  ;;  %v5187_v33 = vld [vmem:[%s10596_s10 + $0x8] sm:$0xff] }
 0x362   : > { %v5001_v43 = vrot.slane %v4987_v37, %v10442_v20  ;;  %v5015_v5 = vrot.slane %v4988_v2, %v10442_v20  ;;  %v5029_v16 = vrot.slane %v4991_v29, %v10442_v20  ;;  %v5043_v53 = vrot.slane %v4992_v41, %v10442_v20  ;;  %v10862_v32 = vpop.f32.mrb[111].mxu1  ;;  %v10864_v57 = vpop.f32.mrb[172].mxu0  ;;  %v5223_v45 = vld [vmem:[%s10596_s10 + $0x68] sm:$0xff] }
 0x363   : > { %v6639_v62 = vpack.c.b16 %v5650_v58, %v5621_v54  ;;  %v6641_v15 = vpack.c.b16 %v5708_v27, %v5679_v8  ;;  %v6643_v23 = vpack.c.b16 %v5766_v42, %v5737_v35  ;;  %v6645_v47 = vpack.c.b16 %v5824_v17, %v5795_v1  ;;  %v10872_v7 = vpop.f32.mrb[173].mxu0  ;;  %v10882_v58 = vld [vmem:[%s10596_s10 + $0x38] sm:$0xff] }
 0x364   : > { %v5051_v31 = vcombine.low %v5001_v43, %v5029_v16  ;;  %v5052_v36 = vcombine.high %v5001_v43, %v5029_v16  ;;  %v5055_v18 = vcombine.low %v5015_v5, %v5043_v53  ;;  %v5056_v59 = vcombine.high %v5015_v5, %v5043_v53  ;;  %v10879_v51 = vpop.f32.mrb[174].mxu0  ;;  %v10885_v8 = vld [vmem:[%s10596_s10 + $0x58] sm:$0xff] }
 0x365   : > { %v5990_v3 = vrot.slane %v6639_v62, %v10442_v20  ;;  %v6004_v50 = vrot.slane %v6641_v15, %v10442_v20  ;;  %v6018_v9 = vrot.slane %v6643_v23, %v10442_v20  ;;  %v6032_v46 = vrot.slane %v6645_v47, %v10442_v20  ;;  %v10890_v37 = vpop.f32.mrb[175].mxu0 }
 0x366   : > { %v5062_v44 = vunpack.i.h.s16 %v5051_v31  ;;  %v5066_v13 = vunpack.i.h.s16 %v5055_v18  ;;  %v5070_v21 = vunpack.i.h.s16 %v5052_v36  ;;  %v5074_v10 = vunpack.i.h.s16 %v5056_v59 }
 0x367   : > { %v6616_v38 = vpack.i.b16 %v5051_v31, %v5051_v31  ;;  %v6618_v6 = vpack.i.b16 %v5055_v18, %v5055_v18  ;;  %v6620_v26 = vpack.i.b16 %v5052_v36, %v5052_v36  ;;  %v6622_v54 = vpack.i.b16 %v5056_v59, %v5056_v59  ;;  %v3692_v29 = vpop.f32.mrb[200].mxu1 }
 0x368   : > { %v10892_v2 = vpack.i.b16 %v5062_v44, %v5062_v44  ;;  %v10894_v27 = vpack.i.b16 %v5066_v13, %v5066_v13  ;;  %v10896_v25 = vpack.i.b16 %v5070_v21, %v5070_v21  ;;  %v10898_v14 = vpack.i.b16 %v5074_v10, %v5074_v10  ;;  %v3693_v5 = vpop.f32.mrb[201].mxu1  ;;  %v12448_v44 = vld [vmem:[#allocation14_spill] sm:$0xff] }
 0x369   : > { %v5188_v41 = vsel %vm10611_vm12, %v6616_v38, %v5187_v33  ;;  %v5200_v61 = vsel %vm10611_vm12, %v6618_v6, %v5199_v40  ;;  %v5212_v48 = vsel %vm10611_vm12, %v6620_v26, %v5211_v39  ;;  %v5224_v43 = vsel %vm10611_vm12, %v6622_v54, %v5223_v45  ;;  %v3694_v42 = vpop.f32.mrb[202].mxu1 }
 0x36a   : > { %v5194_v35 = vsel %vm10611_vm12, %v10892_v2, %v10875_v0  ;;  %v5206_v17 = vsel %vm10611_vm12, %v10894_v27, %v10882_v58  ;;  %v5218_v16 = vsel %vm10611_vm12, %v10896_v25, %v10885_v8  ;;  %v5230_v53 = vsel %vm10611_vm12, %v10898_v14, %v10888_v60  ;;  %v3695_v47 = vpop.f32.mrb[203].mxu1  ;;  %v4077_v33 = vpop.f32.mrb[176].mxu0 }
 0x36b   : > { %v6040_v1 = vcombine.low %v5990_v3, %v6004_v50  ;;  %v6041_v62 = vcombine.high %v5990_v3, %v6004_v50  ;;  %v6044_v15 = vcombine.low %v6018_v9, %v6032_v46  ;;  %v6045_v23 = vcombine.high %v6018_v9, %v6032_v46  ;;  %v4078_v46 = vpop.f32.mrb[177].mxu0 }
 0x36c   : > { %v6767_v31 = vadd.f32 %v10710_v11, %v10671_v28  ;;  %v6770_v36 = vadd.f32 %v10626_v49, %v9392_v19  ;;  %v6769_v18 = vadd.f32 %v10713_v63, %v10689_v52  ;;  %v6772_v59 = vadd.f32 %v10647_v12, %v9395_v24  ;;  %v4079_v63 = vpop.f32.mrb[178].mxu0 }
 0x36d   : > { %v6054_v40 = vrot.slane %v6040_v1, %v10442_v20  ;;  %v6068_v3 = vrot.slane %v6041_v62, %v10442_v20  ;;  %v6082_v50 = vrot.slane %v6044_v15, %v10442_v20  ;;  %v6096_v9 = vrot.slane %v6045_v23, %v10442_v20  ;;  %v4080_v0 = vpop.f32.mrb[179].mxu0 }
 0x36e   : > { %v4228_v28 = vpack.c.bf16 %v6767_v31, %v6767_v31  ;;  %v5288_v11 = vpack.c.bf16 %v6769_v18, %v6769_v18  ;;  %v10937_v49 = vadd.f32 %v6770_v36, %v10693_v22  ;;  %v10940_v52 = vadd.f32 %v6772_v59, %v12448_v44 }
 0x36f   : > { %v6104_v12 = vcombine.low %v6054_v40, %v6082_v50  ;;  %v6105_v13 = vcombine.high %v6054_v40, %v6082_v50  ;;  %v6108_v21 = vcombine.low %v6068_v3, %v6096_v9  ;;  %v6109_v10 = vcombine.high %v6068_v3, %v6096_v9  ;;  %v3698_v6 = vpop.f32.mrb[204].mxu1 }
 0x370   : > { %v10942_v39 = vunpack.c.l.b16 %v4228_v28  ;;  %v10944_v45 = vunpack.c.l.b16 %v5288_v11  ;;  %v4244_v38 = vpack.c.bf16 %v10937_v49, %v10937_v49  ;;  %v5304_v22 = vpack.c.bf16 %v10940_v52, %v10940_v52  ;;  %v3699_v60 = vpop.f32.mrb[205].mxu1 }
 0x371   : > { %v6115_v26 = vunpack.i.h.s16 %v6104_v12  ;;  %v6119_v54 = vunpack.i.h.s16 %v6108_v21  ;;  %v6123_v58 = vunpack.i.h.s16 %v6105_v13  ;;  %v6127_v8 = vunpack.i.h.s16 %v6109_v10  ;;  %v3700_v29 = vpop.f32.mrb[206].mxu1 }
 0x372   : > { %v6648_v2 = vpack.i.b16 %v6104_v12, %v6104_v12  ;;  %v6650_v27 = vpack.i.b16 %v6108_v21, %v6108_v21  ;;  %v6652_v25 = vpack.i.b16 %v6105_v13, %v6105_v13  ;;  %v6654_v14 = vpack.i.b16 %v6109_v10, %v6109_v10  ;;  %v3701_v15 = vpop.f32.mrb[207].mxu1  ;;  %v4083_v18 = vpop.f32.mrb[180].mxu0 }
 0x373   : > { %v6147_v5 = vpack.i.b16 %v6115_v26, %v6115_v26  ;;  %v6151_v42 = vpack.i.b16 %v6119_v54, %v6119_v54  ;;  %v6155_v1 = vpack.i.b16 %v6123_v58, %v6123_v58  ;;  %v6159_v62 = vpack.i.b16 %v6127_v8, %v6127_v8  ;;  %v4084_v33 = vpop.f32.mrb[181].mxu0 }
 0x374   : > { %v6234_v23 = vsel %vm10770_vm6, %v6648_v2, %v5188_v41  ;;  %v6246_v47 = vsel %vm10770_vm6, %v6650_v27, %v5200_v61  ;;  %v6258_v31 = vsel %vm10770_vm6, %v6652_v25, %v5212_v48  ;;  %v6270_v36 = vsel %vm10770_vm6, %v6654_v14, %v5224_v43  ;;  %v4085_v3 = vpop.f32.mrb[182].mxu0 }
 0x375   : > { %6235 = vst [vmem:[%s10596_s10 + $0x8] sm:$0xff] %v6234_v23  ;;  %v6240_v59 = vsel %vm10770_vm6, %v6147_v5, %v5194_v35  ;;  %6247 = vst [vmem:[%s10596_s10 + $0x28] sm:$0xff] %v6246_v47  ;;  %v6252_v41 = vsel %vm10770_vm6, %v6151_v42, %v5206_v17  ;;  %v6264_v61 = vsel %vm10770_vm6, %v6155_v1, %v5218_v16  ;;  %v4334_v43 = vrot.slane %v10942_v39, 1  ;;  %v4086_v46 = vpop.f32.mrb[183].mxu0 }
 0x376   : > { %6259 = vst [vmem:[%s10596_s10 + $0x48] sm:$0xff] %v6258_v31  ;;  %6271 = vst [vmem:[%s10596_s10 + $0x68] sm:$0xff] %v6270_v36  ;;  %v6276_v48 = vsel %vm10770_vm6, %v6159_v62, %v5230_v53  ;;  %v4363_v35 = vrot.slane %v10942_v39, 2  ;;  %v4421_v17 = vrot.slane %v10942_v39, 4  ;;  %v4450_v16 = vrot.slane %v10942_v39, 5 }
 0x377   : > { %6241 = vst [vmem:[%s10596_s10 + $0x18] sm:$0xff] %v6240_v59  ;;  %6253 = vst [vmem:[%s10596_s10 + $0x38] sm:$0xff] %v6252_v41  ;;  %v4479_v50 = vrot.slane %v10942_v39, 6  ;;  %v4508_v53 = vrot.slane %v10942_v39, 7  ;;  %v5387_v9 = vrot.slane %v10944_v45, 1  ;;  %v5416_v28 = vrot.slane %v10944_v45, 2 }
 0x378   : > { %6265 = vst [vmem:[%s10596_s10 + $0x58] sm:$0xff] %v6264_v61  ;;  %6277 = vst [vmem:[%s10596_s10 + $0x78] sm:$0xff] %v6276_v48  ;;  %v5474_v49 = vrot.slane %v10944_v45, 4  ;;  %v5503_v44 = vrot.slane %v10944_v45, 5  ;;  %v3704_v52 = vpop.f32.mrb[120].mxu1  ;;  %v5532_v63 = vrot.slane %v10944_v45, 6  ;;  %v10988_v13 = vunpack.c.l.b16 %v4244_v38 }
 0x379   : > { %v5561_v12 = vrot.slane %v10944_v45, 7  ;;  %v10990_v21 = vunpack.c.l.b16 %v5304_v22  ;;  %v3706_v10 = vpop.f32.mrb[121].mxu1  ;;  %v6774_v0 = vadd.f32 %v10843_v30, %v9392_v19  ;;  %v6776_v6 = vadd.f32 %v10852_v56, %v9395_v24 }
 0x37a   : > { %v6778_v26 = vadd.f32 %v10860_v4, %v9392_v19  ;;  %v6780_v54 = vadd.f32 %v10862_v32, %v9395_v24  ;;  %v3708_v58 = vpop.f32.mrb[122].mxu1  ;;  %v4598_v8 = vrot.slane %v10988_v13, 1  ;;  %v4627_v38 = vrot.slane %v10988_v13, 2  ;;  %v4089_v25 = vpop.f32.mrb[184].mxu0 }
 0x37b   : > { %v4685_v60 = vrot.slane %v10988_v13, 4  ;;  %v3710_v2 = vpop.f32.mrb[123].mxu1  ;;  %v4714_v30 = vrot.slane %v10988_v13, 5  ;;  %v4743_v56 = vrot.slane %v10988_v13, 6  ;;  %v4772_v27 = vrot.slane %v10988_v13, 7  ;;  %v4091_v42 = vpop.f32.mrb[185].mxu0 }
 0x37c   : > { %v5651_v4 = vrot.slane %v10990_v21, 1  ;;  %v5680_v32 = vrot.slane %v10990_v21, 2  ;;  %v5738_v29 = vrot.slane %v10990_v21, 4  ;;  %v5767_v5 = vrot.slane %v10990_v21, 5  ;;  %v4093_v47 = vpop.f32.mrb[186].mxu0 }
 0x37d   : > { %v5796_v1 = vrot.slane %v10990_v21, 6  ;;  %v5825_v62 = vrot.slane %v10990_v21, 7  ;;  %v6775_v15 = vadd.f32 %v6774_v0, %v10864_v57  ;;  %v6777_v23 = vadd.f32 %v6776_v6, %v10872_v7  ;;  %v4095_v41 = vpop.f32.mrb[187].mxu0 }
 0x37e   : > { %v6779_v31 = vadd.f32 %v6778_v26, %v10879_v51  ;;  %v6781_v36 = vadd.f32 %v6780_v54, %v10890_v37  ;;  %v6782_v18 = vadd.f32 %v3704_v52, %v9392_v19  ;;  %v6784_v59 = vadd.f32 %v3706_v10, %v9395_v24 }
 0x37f   : > { %v4229_v61 = vpack.c.bf16 %v6775_v15, %v6775_v15  ;;  %v5289_v48 = vpack.c.bf16 %v6777_v23, %v6777_v23  ;;  %v6786_v33 = vadd.f32 %v3708_v58, %v9392_v19  ;;  %v6788_v3 = vadd.f32 %v3710_v2, %v9395_v24  ;;  %v3714_v46 = vpop.f32.mrb[208].mxu1 }
 0x380   : > { %v4245_v57 = vpack.c.bf16 %v6779_v31, %v6779_v31  ;;  %v5305_v0 = vpack.c.bf16 %v6781_v36, %v6781_v36  ;;  %v11022_v7 = vadd.f32 %v6782_v18, %v4089_v25  ;;  %v11024_v6 = vadd.f32 %v6784_v59, %v4091_v42  ;;  %v3715_v51 = vpop.f32.mrb[209].mxu1 }
 0x381   : > { %v11026_v37 = vunpack.c.l.b16 %v4229_v61  ;;  %v11028_v52 = vunpack.c.l.b16 %v5289_v48  ;;  %v11030_v10 = vadd.f32 %v6786_v33, %v4093_v47  ;;  %v11032_v26 = vadd.f32 %v6788_v3, %v4095_v41  ;;  %v3716_v54 = vpop.f32.mrb[210].mxu1 }
 0x382   : > { %v11034_v58 = vunpack.c.l.b16 %v4245_v57  ;;  %v11036_v2 = vunpack.c.l.b16 %v5305_v0  ;;  %v4230_v25 = vpack.c.bf16 %v11022_v7, %v11022_v7  ;;  %v5290_v42 = vpack.c.bf16 %v11024_v6, %v11024_v6  ;;  %v3717_v15 = vpop.f32.mrb[211].mxu1  ;;  %v4099_v18 = vpop.f32.mrb[188].mxu0 }
 0x383   : > { %v4305_v23 = vrot.slane %v11026_v37, 7  ;;  %vm12449_vm14 = vcmask 1041409   ;;  %v4364_v31 = vrot.slane %v11026_v37, 1  ;;  %v4422_v59 = vrot.slane %v11026_v37, 3  ;;  %v4100_v33 = vpop.f32.mrb[189].mxu0 }
 0x384   : > { %v11047_v47 = vsel %vm12449_vm14, %v11026_v37, %v4334_v43  ;;  %v4451_v41 = vrot.slane %v11026_v37, 4  ;;  %v4480_v61 = vrot.slane %v11026_v37, 5  ;;  %v4509_v48 = vrot.slane %v11026_v37, 6  ;;  %vm12450_vm0 = vmmov %vm12449_vm14  ;;  %v4101_v0 = vpop.f32.mrb[190].mxu0 }
 0x385   : > { %v11057_v3 = vsel %vm12450_vm0, %v4305_v23, %v10942_v39  ;;  %v5358_v43 = vrot.slane %v11028_v52, 7  ;;  %vm12451_vm3 = vmmov %vm12450_vm0  ;;  %v5417_v57 = vrot.slane %v11028_v52, 1  ;;  %v4102_v15 = vpop.f32.mrb[191].mxu0  ;;  %v5504_v18 = vrot.slane %v11028_v52, 4 }
 0x386   : > { %v11064_v46 = vsel %vm12451_vm3, %v11028_v52, %v5387_v9  ;;  %vm12452_vm1 = vmmov %vm12450_vm0  ;;  %v4628_v0 = vrot.slane %v11034_v58, 1  ;;  %v4773_v14 = vrot.slane %v11034_v58, 6  ;;  %v5826_v22 = vrot.slane %v11036_v2, 6 }
 0x387   : > { %v11070_v7 = vsel %vm12452_vm1, %v4422_v59, %v4421_v17  ;;  %vm12453_vm5 = vmmov %vm12450_vm0  ;;  %v3720_v59 = vpop.f32.mrb[212].mxu1 }
 0x388   : > { %v11075_v51 = vsel %vm12453_vm5, %v4451_v41, %v4450_v16  ;;  %vm12454_vm9 = vmmov %vm12450_vm0  ;;  %v5475_v16 = vrot.slane %v11028_v52, 3  ;;  %v5562_v41 = vrot.slane %v11028_v52, 6 }
 0x389   : > { %v11080_v54 = vsel %vm12454_vm9, %v4480_v61, %v4479_v50  ;;  %vm12455_vm2 = vmmov %vm12450_vm0  ;;  %v5533_v50 = vrot.slane %v11028_v52, 5  ;;  %v4569_v61 = vrot.slane %v11034_v58, 7 }
 0x38a   : > { %v11085_v9 = vsel %vm12455_vm2, %v4509_v48, %v4508_v53  ;;  %vm12456_vm10 = vmmov %vm12450_vm0  ;;  %v3721_v48 = vpop.f32.mrb[213].mxu1 }
 0x38b   : > { %v11089_v17 = vsel %vm12456_vm10, %v5358_v43, %v10944_v45  ;;  %vm12457_vm13 = vmmov %vm12450_vm0  ;;  %v3722_v59 = vpop.f32.mrb[214].mxu1  ;;  %v4715_v48 = vrot.slane %v11034_v58, 4 }
 0x38c   : > { %v11101_v53 = vsel %vm12457_vm13, %v11034_v58, %v4598_v8  ;;  %vm12458_vm4 = vmmov %vm12450_vm0  ;;  %v4744_v59 = vrot.slane %v11034_v58, 5 }
 0x38d   : > { %v11106_v33 = vsel %vm12458_vm4, %v5475_v16, %v5474_v49  ;;  %vm12459_vm15 = vmmov %vm12450_vm0  ;;  %v11127_v16 = vsel %vm12450_vm0, %v4569_v61, %v10988_v13  ;;  %v5681_v61 = vrot.slane %v11036_v2, 1 }
 0x38e   : > { %v11111_v43 = vsel %vm12459_vm15, %v5504_v18, %v5503_v44  ;;  %vm12460_vm8 = vmmov %vm12450_vm0  ;;  %v4686_v44 = vrot.slane %v11034_v58, 3  ;;  %v3723_v18 = vpop.f32.mrb[215].mxu1 }
 0x38f   : > { %v11118_v8 = vsel %vm12460_vm8, %v5533_v50, %v5532_v63  ;;  %vm12461_vm14 = vmmov %vm12450_vm0  ;;  %v5622_v63 = vrot.slane %v11036_v2, 7  ;;  %v4105_v50 = vpop.f32.mrb[192].mxu0  ;;  %v5739_v18 = vrot.slane %v11036_v2, 3 }
 0x390   : > { %v11123_v49 = vsel %vm12461_vm14, %v5562_v41, %v5561_v12  ;;  %vm12462_vm3 = vmmov %vm12450_vm0  ;;  %v4106_v15 = vpop.f32.mrb[193].mxu0 }
 0x391   : > { %v11137_v12 = vsel %vm12462_vm3, %v4686_v44, %v4685_v60  ;;  %vm12463_vm1 = vmmov %vm12450_vm0  ;;  %v4107_v15 = vpop.f32.mrb[194].mxu0  ;;  %vm12473_vm3 = vcmask 1042434  }
 0x392   : > { %v11143_v41 = vsel %vm12463_vm1, %v11036_v2, %v5651_v4  ;;  %vm12464_vm5 = vmmov %vm12450_vm0  ;;  %v3726_v15 = vpop.f32.mrb[132].mxu1 }
 0x393   : > { %v11150_v50 = vsel %vm12464_vm5, %v4715_v48, %v4714_v30  ;;  %vm12465_vm9 = vmmov %vm12450_vm0  ;;  %v5768_v30 = vrot.slane %v11036_v2, 4  ;;  %v5797_v48 = vrot.slane %v11036_v2, 5  ;;  %v3728_v6 = vpop.f32.mrb[133].mxu1 }
 0x394   : > { %v11155_v60 = vsel %vm12465_vm9, %v4744_v59, %v4743_v56  ;;  %vm12466_vm2 = vmmov %vm12450_vm0  ;;  %v4108_v56 = vpop.f32.mrb[195].mxu0  ;;  %v11170_v59 = vunpack.c.l.b16 %v4230_v25 }
 0x395   : > { %v11160_v4 = vsel %vm12466_vm2, %v4773_v14, %v4772_v27  ;;  %vm12467_vm10 = vmmov %vm12450_vm0  ;;  %v11178_v14 = vunpack.c.l.b16 %v5290_v42  ;;  %v4111_v11 = vpop.f32.mrb[196].mxu0 }
 0x396   : > { %v11164_v44 = vsel %vm12467_vm10, %v5622_v63, %v10990_v21  ;;  %vm12468_vm13 = vmmov %vm12450_vm0  ;;  %v4307_v42 = vrot.slane %v11170_v59, 6 }
 0x397   : > { %v4365_v27 = vsel %vm12468_vm13, %v4364_v31, %v4363_v35  ;;  %vm12469_vm4 = vmmov %vm12450_vm0  ;;  %v5360_v23 = vrot.slane %v11178_v14, 6 }
 0x398   : > { %v5418_v63 = vsel %vm12469_vm4, %v5417_v57, %v5416_v28  ;;  %vm12470_vm15 = vmmov %vm12450_vm0  ;;  %v11201_v28 = vsel %vm12450_vm0, %v5826_v22, %v5825_v62  ;;  %v11207_v31 = vsel %vm12473_vm3, %v11170_v59, %v4365_v27  ;;  %v11210_v57 = vpop.f32.mrb[134].mxu1  ;;  %v4482_v22 = vrot.slane %v11170_v59, 4 }
 0x399   : > { %v11186_v56 = vsel %vm12470_vm15, %v5739_v18, %v5738_v29  ;;  %vm12471_vm8 = vmmov %vm12450_vm0  ;;  %v4336_v29 = vrot.slane %v11170_v59, 7  ;;  %v4453_v18 = vrot.slane %v11170_v59, 3  ;;  %v4511_v62 = vrot.slane %v11170_v59, 5 }
 0x39a   : > { %v11191_v25 = vsel %vm12471_vm8, %v5768_v30, %v5767_v5  ;;  %vm12472_vm14 = vmmov %vm12450_vm0  ;;  %v11216_v30 = vpop.f32.mrb[135].mxu1 }
 0x39b   : > { %v11196_v35 = vsel %vm12472_vm14, %v5797_v48, %v5796_v1  ;;  %vm12474_vm1 = vmmov %vm12473_vm3  ;;  %v5389_v1 = vrot.slane %v11178_v14, 7  ;;  %v3736_v40 = vpop.f32.mrb[216].mxu1 }
 0x39c   : > { %v11220_v48 = vsel %vm12474_vm1, %v4307_v42, %v11057_v3  ;;  %vm12475_vm5 = vmmov %vm12474_vm1  ;;  %v4113_v42 = vpop.f32.mrb[197].mxu0 }
 0x39d   : > { %v11224_v27 = vsel %vm12475_vm5, %v4336_v29, %v11047_v47  ;;  %vm12476_vm9 = vmmov %vm12474_vm1 }
 0x39e   : > { %v11230_v5 = vsel %vm12476_vm9, %v4453_v18, %v11075_v51  ;;  %vm12477_vm2 = vmmov %vm12474_vm1 }
 0x39f   : > { %v11234_v36 = vsel %vm12477_vm2, %v4482_v22, %v11080_v54  ;;  %vm12478_vm10 = vmmov %vm12474_vm1  ;;  %v11254_v22 = vpop.f32.mrb[198].mxu0  ;;  %v6790_v54 = vadd.f32 %v3726_v15, %v9392_v19 }
 0x3a0   : > { %v11238_v3 = vsel %vm12478_vm10, %v4511_v62, %v11085_v9  ;;  %vm12479_vm13 = vmmov %vm12474_vm1  ;;  %v5506_v9 = vrot.slane %v11178_v14, 3  ;;  %v5564_v62 = vrot.slane %v11178_v14, 5 }
 0x3a1   : > { %v11242_v47 = vsel %vm12479_vm13, %v11178_v14, %v5418_v63  ;;  %vm12480_vm4 = vmmov %vm12474_vm1  ;;  %v5535_v63 = vrot.slane %v11178_v14, 4  ;;  %v6791_v40 = vadd.f32 %v6790_v54, %v4111_v11 }
 0x3a2   : > { %v11246_v29 = vsel %vm12480_vm4, %v5360_v23, %v11089_v17  ;;  %vm12481_vm15 = vmmov %vm12474_vm1  ;;  %v4246_v17 = vpack.c.bf16 %v11030_v10, %v11030_v10  ;;  %v11261_v23 = vpop.f32.mrb[199].mxu0 }
 0x3a3   : > { %v11250_v51 = vsel %vm12481_vm15, %v5389_v1, %v11064_v46  ;;  %vm12482_vm8 = vmmov %vm12450_vm0  ;;  %v5306_v1 = vpack.c.bf16 %v11032_v26, %v11032_v26  ;;  %v4121_v54 = vpop.f32.mrb[200].mxu0 }
 0x3a4   : > { %v4629_v46 = vsel %vm12482_vm8, %v4628_v0, %v4627_v38  ;;  %vm12483_vm14 = vmmov %vm12450_vm0  ;;  %v11286_v26 = vunpack.c.l.b16 %v4246_v17  ;;  %v3737_v0 = vpop.f32.mrb[217].mxu1  ;;  %v4231_v54 = vpack.c.bf16 %v6791_v40, %v6791_v40 }
 0x3a5   : > { %v5682_v18 = vsel %vm12483_vm14, %v5681_v61, %v5680_v32  ;;  %vm12484_vm0 = vmmov %vm12474_vm1  ;;  %v11288_v55 = vunpack.c.l.b16 %v5306_v1  ;;  %v6792_v32 = vadd.f32 %v3728_v6, %v9395_v24  ;;  %v12487_v61 = vrot.slane %v10942_v39, 3 }
 0x3a6   : > { %v11276_v10 = vsel %vm12484_vm0, %v5506_v9, %v11111_v43  ;;  %vm12485_vm3 = vmmov %vm12484_vm0  ;;  %v12488_v43 = vrot.slane %v11026_v37, 2  ;;  %v4571_v9 = vrot.slane %v11286_v26, 6  ;;  %v4717_v39 = vrot.slane %v11286_v26, 3 }
 0x3a7   : > { %v11280_v34 = vsel %vm12485_vm3, %v5535_v63, %v11118_v8  ;;  %vm12486_vm1 = vmmov %vm12484_vm0  ;;  %v3738_v8 = vpop.f32.mrb[218].mxu1  ;;  %v4746_v37 = vrot.slane %v11286_v26, 4  ;;  %v4775_v6 = vrot.slane %v11286_v26, 5  ;;  %v5624_v0 = vrot.slane %v11288_v55, 6 }
 0x3a8   : > { %v11284_v38 = vsel %vm12486_vm1, %v5564_v62, %v11123_v49  ;;  %vm12489_vm5 = vmmov %vm12482_vm8  ;;  %v4600_v49 = vrot.slane %v11286_v26, 7  ;;  %v4659_v62 = vrot.slane %v11286_v26, 1  ;;  %v3739_v17 = vpop.f32.mrb[219].mxu1 }
 0x3a9   : > { %v4394_v15 = vsel %vm12489_vm5, %v12488_v43, %v12487_v61  ;;  %vm12490_vm9 = vmmov %vm12484_vm0  ;;  %v5653_v61 = vrot.slane %v11288_v55, 7  ;;  %v4122_v43 = vpop.f32.mrb[201].mxu0 }
 0x3aa   : > { %v11300_v63 = vsel %vm12490_vm9, %v11286_v26, %v4629_v46  ;;  %vm12491_vm2 = vmmov %vm12484_vm0  ;;  %v3742_v43 = vpop.f32.mrb[220].mxu1 }
 0x3ab   : > { %v11309_v1 = vsel %vm12491_vm2, %v4571_v9, %v11127_v16  ;;  %vm12492_vm10 = vmmov %vm12484_vm0  ;;  %v4123_v9 = vpop.f32.mrb[202].mxu0  ;;  %v3743_v11 = vpop.f32.mrb[221].mxu1 }
 0x3ac   : > { %v11313_v46 = vsel %vm12492_vm10, %v4600_v49, %v11101_v53  ;;  %vm12493_vm13 = vmmov %vm12484_vm0  ;;  %v12500_v9 = vrot.slane %v10944_v45, 3  ;;  %v3744_v45 = vpop.f32.mrb[222].mxu1 }
 0x3ad   : > { %v11319_v8 = vsel %vm12493_vm13, %v4717_v39, %v11150_v50  ;;  %vm12494_vm4 = vmmov %vm12484_vm0  ;;  %v11339_v50 = vsel %vm12484_vm0, %v5653_v61, %v11143_v41  ;;  %v6794_v41 = vadd.f32 %v11210_v57, %v9392_v19  ;;  %v6793_v61 = vadd.f32 %v6792_v32, %v4113_v42 }
 0x3ae   : > { %v11323_v17 = vsel %vm12494_vm4, %v4746_v37, %v11155_v60  ;;  %vm12495_vm15 = vmmov %vm12484_vm0  ;;  %v4124_v37 = vpop.f32.mrb[203].mxu0  ;;  %v11368_v57 = vunpack.c.l.b16 %v4231_v54 }
 0x3af   : > { %v11327_v16 = vsel %vm12495_vm15, %v4775_v6, %v11160_v4  ;;  %vm12496_vm8 = vmmov %vm12484_vm0  ;;  %v5770_v4 = vrot.slane %v11288_v55, 3  ;;  %v5799_v6 = vrot.slane %v11288_v55, 4  ;;  %v12501_v37 = vrot.slane %v11028_v52, 2  ;;  %v4127_v54 = vpop.f32.mrb[204].mxu0 }
 0x3b0   : > { %v11331_v53 = vsel %vm12496_vm8, %v11288_v55, %v5682_v18  ;;  %vm12497_vm14 = vmmov %vm12484_vm0  ;;  %v5828_v18 = vrot.slane %v11288_v55, 5  ;;  %v5291_v42 = vpack.c.bf16 %v6793_v61, %v6793_v61  ;;  %v12506_v52 = vrot.slane %v11178_v14, 1 }
 0x3b1   : > { %v11335_v49 = vsel %vm12497_vm14, %v5624_v0, %v11164_v44  ;;  %v12498_v44 = vrot.slane %v11170_v59, 1  ;;  %vm12499_vm3 = vmmov %vm12484_vm0  ;;  %v6795_v11 = vadd.f32 %v6794_v41, %v11254_v22  ;;  %v4426_v43 = vrot.slane %v11368_v57, 1 }
 0x3b2   : > { %vm12502_vm1 = vmmov %vm12489_vm5  ;;  %v4513_v22 = vrot.slane %v11368_v57, 4 }
 0x3b3   : > { %v4396_v0 = vsel %vm12499_vm3, %v12498_v44, %v4394_v15  ;;  %v5447_v39 = vsel %vm12502_vm1, %v12501_v37, %v12500_v9  ;;  %vm12503_vm5 = vmmov %vm12484_vm0  ;;  %v4128_v44 = vpop.f32.mrb[205].mxu0  ;;  %v11399_v9 = vunpack.c.l.b16 %v5291_v42 }
 0x3b4   : > { %v11358_v60 = vsel %vm12503_vm5, %v5770_v4, %v11191_v25  ;;  %vm12504_vm9 = vmmov %vm12484_vm0  ;;  %v6796_v25 = vadd.f32 %v11216_v30, %v9395_v24  ;;  %v3745_v4 = vpop.f32.mrb[223].mxu1  ;;  %v4484_v30 = vrot.slane %v11368_v57, 3  ;;  %v4129_v37 = vpop.f32.mrb[206].mxu0  ;;  %vm12526_vm5 = vcmask 1044484  }
 0x3b5   : > { %v11362_v40 = vsel %vm12504_vm9, %v5799_v6, %v11196_v35  ;;  %vm12505_vm2 = vmmov %vm12484_vm0  ;;  %v4309_v35 = vrot.slane %v11368_v57, 5  ;;  %v4338_v6 = vrot.slane %v11368_v57, 6  ;;  %v12508_v4 = vrot.slane %v10988_v13, 3 }
 0x3b6   : > { %v11366_v15 = vsel %vm12505_vm2, %v5828_v18, %v11201_v28  ;;  %vm12507_vm10 = vmmov %vm12484_vm0  ;;  %v4367_v28 = vrot.slane %v11368_v57, 7  ;;  %v11381_v18 = vsel %vm4291_vm11, %v11368_v57, %v4396_v0  ;;  %v11403_v45 = vsel %vm4291_vm11, %v4484_v30, %v11234_v36 }
 0x3b7   : > { %v5449_v32 = vsel %vm12507_vm10, %v12506_v52, %v5447_v39  ;;  %v11389_v41 = vsel %vm4291_vm11, %v4309_v35, %v11220_v48  ;;  %v11393_v61 = vsel %vm4291_vm11, %v4338_v6, %v11224_v27  ;;  %v11407_v52 = vsel %vm4291_vm11, %v4513_v22, %v11238_v3  ;;  %vm12510_vm13 = vmmov %vm12502_vm1  ;;  %v3748_v3 = vpop.f32.mrb[144].mxu1 }
 0x3b8   : > { %v11397_v0 = vsel %vm4291_vm11, %v4367_v28, %v11207_v31  ;;  %v4247_v48 = vpack.c.bf16 %v6795_v11, %v6795_v11  ;;  %v12509_v27 = vrot.slane %v11034_v58, 2  ;;  %v4130_v31 = vpop.f32.mrb[207].mxu0  ;;  %v5362_v42 = vrot.slane %v11399_v9, 5  ;;  %v3750_v30 = vpop.f32.mrb[145].mxu1  ;;  %vm12511_vm4 = vmmov %vm12484_vm0 }
 0x3b9   : > { %v5391_v6 = vrot.slane %v11399_v9, 6  ;;  %v5420_v28 = vrot.slane %v11399_v9, 7  ;;  %v11419_v36 = vsel %vm4291_vm11, %v11399_v9, %v5449_v32  ;;  %v5537_v58 = vrot.slane %v11399_v9, 3  ;;  %vm12514_vm15 = vmmov %vm12502_vm1 }
 0x3ba   : > { %v4658_v35 = vsel %vm12510_vm13, %v12509_v27, %v12508_v4  ;;  %v5566_v54 = vrot.slane %v11399_v9, 4  ;;  %v11427_v22 = vsel %vm4291_vm11, %v5362_v42, %v11246_v29  ;;  %v11437_v37 = vunpack.c.l.b16 %v4247_v48  ;;  %v3752_v4 = vpop.f32.mrb[146].mxu1  ;;  %vm12516_vm8 = vmmov %vm12484_vm0 }
 0x3bb   : > { %v11431_v44 = vsel %vm4291_vm11, %v5391_v6, %v11250_v51  ;;  %v11435_v32 = vsel %vm4291_vm11, %v5420_v28, %v11242_v47  ;;  %v11441_v27 = vsel %vm4291_vm11, %v5537_v58, %v11280_v34  ;;  %v4660_v29 = vsel %vm12511_vm4, %v4659_v62, %v4658_v35  ;;  %v3754_v42 = vpop.f32.mrb[147].mxu1  ;;  %v4133_v28 = vpop.f32.mrb[208].mxu0  ;;  %vm12518_vm14 = vmmov %vm12484_vm0 }
 0x3bc   : > { %v11445_v31 = vsel %vm4291_vm11, %v5566_v54, %v11284_v38  ;;  %v6797_v51 = vadd.f32 %v6796_v25, %v11261_v23  ;;  %v4573_v47 = vrot.slane %v11437_v37, 5  ;;  %v4602_v48 = vrot.slane %v11437_v37, 6  ;;  %v4135_v25 = vpop.f32.mrb[209].mxu0  ;;  %vm12522_vm3 = vmmov %vm12484_vm0 }
 0x3bd   : > { %v4631_v6 = vrot.slane %v11437_v37, 7  ;;  %v11456_v34 = vsel %vm4291_vm11, %v11437_v37, %v4660_v29  ;;  %v4690_v38 = vrot.slane %v11437_v37, 1  ;;  %v4748_v62 = vrot.slane %v11437_v37, 3  ;;  %v4137_v39 = vpop.f32.mrb[210].mxu0  ;;  %vm12524_vm1 = vmmov %vm12484_vm0 }
 0x3be   : > { %v4777_v23 = vrot.slane %v11437_v37, 4  ;;  %v11464_v35 = vsel %vm4291_vm11, %v4573_v47, %v11309_v1  ;;  %v11468_v54 = vsel %vm4291_vm11, %v4602_v48, %v11313_v46  ;;  %v5307_v13 = vpack.c.bf16 %v6797_v51, %v6797_v51  ;;  %vm12527_vm9 = vmmov %vm12526_vm5 }
 0x3bf   : > { %v11472_v29 = vsel %vm4291_vm11, %v4631_v6, %v11300_v63  ;;  %v11476_v58 = vsel %vm4291_vm11, %v4748_v62, %v11323_v17  ;;  %v12512_v1 = vrot.slane %v10990_v21, 3  ;;  %v12513_v47 = vrot.slane %v11036_v2, 2  ;;  %v4139_v63 = vpop.f32.mrb[211].mxu0  ;;  %vm12528_vm2 = vmmov %vm12526_vm5 }
 0x3c0   : > { %v11480_v11 = vsel %vm4291_vm11, %v4777_v23, %v11327_v16  ;;  %v6798_v48 = vadd.f32 %v3748_v3, %v9392_v19  ;;  %v11488_v6 = vunpack.c.l.b16 %v5307_v13  ;;  %v12515_v51 = vrot.slane %v11288_v55, 1  ;;  %v3758_v23 = vpop.f32.mrb[224].mxu1  ;;  %vm12529_vm10 = vmmov %vm12528_vm2 }
 0x3c1   : > { %v5711_v46 = vsel %vm12514_vm15, %v12513_v47, %v12512_v1  ;;  %v6800_v62 = vadd.f32 %v3750_v30, %v9395_v24  ;;  %v12517_v16 = vrot.slane %v11170_v59, 2  ;;  %v6802_v3 = vadd.f32 %v3752_v4, %v9392_v19  ;;  %v3759_v20 = vpop.f32.mrb[225].mxu1  ;;  %vm12530_vm13 = vmmov %vm12528_vm2 }
 0x3c2   : > { %v5713_v17 = vsel %vm12516_vm8, %v12515_v51, %v5711_v46  ;;  %v6799_v2 = vadd.f32 %v6798_v48, %v4133_v28  ;;  %v12519_v13 = vrot.slane %v11178_v14, 2  ;;  %v5626_v46 = vrot.slane %v11488_v6, 5  ;;  %v3760_v28 = vpop.f32.mrb[226].mxu1  ;;  %vm12531_vm4 = vmmov %vm12528_vm2 }
 0x3c3   : > { %v4425_v21 = vsel %vm12518_vm14, %v12517_v16, %v11070_v7  ;;  %v5655_v30 = vrot.slane %v11488_v6, 6  ;;  %v5684_v59 = vrot.slane %v11488_v6, 7  ;;  %v11509_v7 = vsel %vm4291_vm11, %v11488_v6, %v5713_v17  ;;  %v3761_v20 = vpop.f32.mrb[227].mxu1  ;;  %vm12532_vm15 = vmmov %vm12528_vm2 }
 0x3c4   : > { %v4427_v1 = vsel %vm4291_vm11, %v4426_v43, %v4425_v21  ;;  %v5478_v47 = vsel %vm12484_vm0, %v12519_v13, %v11106_v33  ;;  %v5743_v43 = vrot.slane %v11488_v6, 1  ;;  %v5772_v4 = vrot.slane %v11488_v6, 2  ;;  %v4143_v21 = vpop.f32.mrb[212].mxu0  ;;  %vm12535_vm8 = vmmov %vm12528_vm2 }
 0x3c5   : > { %v5801_v14 = vrot.slane %v11488_v6, 3  ;;  %v5830_v33 = vrot.slane %v11488_v6, 4  ;;  %v11517_v48 = vsel %vm4291_vm11, %v5626_v46, %v11335_v49  ;;  %v11521_v51 = vsel %vm4291_vm11, %v5655_v30, %v11339_v50  ;;  %v4144_v30 = vpop.f32.mrb[213].mxu0  ;;  %vm12536_vm14 = vmmov %vm12528_vm2 }
 0x3c6   : > { %v11525_v17 = vsel %vm4291_vm11, %v5684_v59, %v11331_v53  ;;  %v4232_v16 = vpack.c.bf16 %v6799_v2, %v6799_v2  ;;  %v6801_v49 = vadd.f32 %v6800_v62, %v4135_v25  ;;  %v12520_v46 = vrot.slane %v11399_v9, 1  ;;  %vm12537_vm0 = vmmov %vm12528_vm2 }
 0x3c7   : > { %v11529_v23 = vsel %vm4291_vm11, %v5801_v14, %v11362_v40  ;;  %v11533_v13 = vsel %vm4291_vm11, %v5830_v33, %v11366_v15  ;;  %v6804_v53 = vadd.f32 %v3754_v42, %v9395_v24  ;;  %v6803_v59 = vadd.f32 %v6802_v3, %v4137_v39  ;;  %v4145_v14 = vpop.f32.mrb[214].mxu0 }
 0x3c8   : > { %v5480_v50 = vsel %vm4291_vm11, %v12520_v46, %v5478_v47  ;;  %v4280_v28 = vunpack.c.l.b16 %v4232_v16  ;;  %v12521_v2 = vrot.slane %v11286_v26, 2  ;;  %v5292_v20 = vpack.c.bf16 %v6801_v49, %v6801_v49  ;;  %v4146_v47 = vpop.f32.mrb[215].mxu0 }
 0x3c9   : > { %v12523_v25 = vrot.slane %v11288_v55, 2  ;;  %v12525_v33 = vrot.slane %v11368_v57, 2 }
 0x3ca   : > { %v4689_v40 = vsel %vm12522_vm3, %v12521_v2, %v11137_v12  ;;  %v4311_v42 = vrot.slane %v4280_v28, 4  ;;  %v4340_v3 = vrot.slane %v4280_v28, 5  ;;  %v4369_v26 = vrot.slane %v4280_v28, 6  ;;  %v3764_v12 = vpop.f32.mrb[228].mxu1  ;;  %vm12538_vm3 = vmmov %vm12537_vm0 }
 0x3cb   : > { %v4691_v15 = vsel %vm4291_vm11, %v4690_v38, %v4689_v40  ;;  %v5742_v62 = vsel %vm12524_vm1, %v12523_v25, %v11186_v56  ;;  %v4456_v39 = vsel %vm4291_vm11, %v12525_v33, %v11230_v5  ;;  %v4398_v16 = vrot.slane %v4280_v28, 7  ;;  %v3765_v55 = vpop.f32.mrb[229].mxu1  ;;  %v4149_v25 = vpop.f32.mrb[216].mxu0  ;;  %vm12539_vm1 = vmmov %vm12537_vm0 }
 0x3cc   : > { %v11553_v21 = vsel %vm12526_vm5, %v4280_v28, %v4427_v1  ;;  %v4457_v38 = vrot.slane %v4280_v28, 1  ;;  %v4486_v49 = vrot.slane %v4280_v28, 2  ;;  %v4515_v46 = vrot.slane %v4280_v28, 3  ;;  %v3766_v30 = vpop.f32.mrb[230].mxu1  ;;  %vm12540_vm5 = vmmov %vm12537_vm0 }
 0x3cd   : > { %v11557_v56 = vsel %vm12527_vm9, %v4311_v42, %v11389_v41  ;;  %v11561_v57 = vsel %vm12528_vm2, %v4340_v3, %v11393_v61  ;;  %v11565_v5 = vsel %vm12529_vm10, %v4369_v26, %v11397_v0  ;;  %v11569_v1 = vsel %vm12530_vm13, %v4398_v16, %v11381_v18  ;;  %v3767_v14 = vpop.f32.mrb[231].mxu1  ;;  %v4150_v42 = vpop.f32.mrb[217].mxu0  ;;  %vm12541_vm9 = vmmov %vm12537_vm0 }
 0x3ce   : > { %v11573_v28 = vsel %vm12531_vm4, %v4515_v46, %v11407_v52  ;;  %v5340_v2 = vunpack.c.l.b16 %v5292_v20  ;;  %v4248_v41 = vpack.c.bf16 %v6803_v59, %v6803_v59  ;;  %v6805_v40 = vadd.f32 %v6804_v53, %v4139_v63  ;;  %v4151_v26 = vpop.f32.mrb[218].mxu0  ;;  %vm12542_vm2 = vmmov %vm12537_vm0 }
 0x3cf   : > { %v5744_v61 = vsel %vm4291_vm11, %v5743_v43, %v5742_v62  ;;  %v11577_v47 = vsel %vm12532_vm15, %v4457_v38, %v4456_v39  ;;  %v12533_v0 = vrot.slane %v11399_v9, 2  ;;  %v12534_v33 = vrot.slane %v11437_v37, 2  ;;  %v3770_v38 = vpop.f32.mrb[156].mxu1  ;;  %vm12543_vm10 = vmmov %vm12537_vm0 }
 0x3d0   : > { %v5364_v20 = vrot.slane %v5340_v2, 4  ;;  %v5393_v59 = vrot.slane %v5340_v2, 5  ;;  %v5422_v63 = vrot.slane %v5340_v2, 6  ;;  %v5451_v53 = vrot.slane %v5340_v2, 7  ;;  %v3772_v55 = vpop.f32.mrb[157].mxu1  ;;  %vm12544_vm13 = vmmov %vm12537_vm0 }
 0x3d1   : > { %v5509_v18 = vsel %vm4291_vm11, %v12533_v0, %v11276_v10  ;;  %v4720_v52 = vsel %vm4291_vm11, %v12534_v33, %v11319_v8  ;;  %v11588_v43 = vsel %vm12535_vm8, %v5340_v2, %v5480_v50  ;;  %v5510_v62 = vrot.slane %v5340_v2, 1  ;;  %v4152_v50 = vpop.f32.mrb[219].mxu0  ;;  %v3774_v14 = vpop.f32.mrb[158].mxu1  ;;  %vm12546_vm4 = vmmov %vm12537_vm0 }
 0x3d2   : > { %v5539_v39 = vrot.slane %v5340_v2, 2  ;;  %v5568_v3 = vrot.slane %v5340_v2, 3  ;;  %v11592_v10 = vsel %vm12536_vm14, %v5364_v20, %v11427_v22  ;;  %v11596_v9 = vsel %vm12537_vm0, %v5393_v59, %v11431_v44  ;;  %vm12547_vm15 = vmmov %vm12537_vm0 }
 0x3d3   : > { %v11600_v8 = vsel %vm12538_vm3, %v5422_v63, %v11435_v32  ;;  %v11604_v37 = vsel %vm12539_vm1, %v5451_v53, %v11419_v36  ;;  %v4551_v12 = vunpack.c.l.b16 %v4248_v41  ;;  %v5308_v22 = vpack.c.bf16 %v6805_v40, %v6805_v40  ;;  %vm12548_vm8 = vmmov %vm12537_vm0 }
 0x3d4   : > { %v11608_v16 = vsel %vm12540_vm5, %v5568_v3, %v11445_v31  ;;  %v11611_v46 = vsel %vm12541_vm9, %v5510_v62, %v5509_v18  ;;  %v6806_v44 = vadd.f32 %v3770_v38, %v9392_v19  ;;  %v5773_v36 = vsel %vm4291_vm11, %v5772_v4, %v11358_v60  ;;  %v3776_v60 = vpop.f32.mrb[159].mxu1  ;;  %vm12545_vm11 = vmmov %vm12537_vm0 }
 0x3d5   : > { %v11620_v32 = vsel %vm12542_vm2, %v4486_v49, %v11403_v45  ;;  %v11624_v31 = vsel %vm12543_vm10, %v5539_v39, %v11441_v27  ;;  %v4575_v30 = vrot.slane %v4551_v12, 4  ;;  %v4604_v2 = vrot.slane %v4551_v12, 5  ;;  %v4155_v49 = vpop.f32.mrb[220].mxu0  ;;  %vm12549_vm14 = vmmov %vm12537_vm0 }
 0x3d6   : > { %v4633_v41 = vrot.slane %v4551_v12, 6  ;;  %v4662_v40 = vrot.slane %v4551_v12, 7  ;;  %v11627_v25 = vsel %vm12544_vm13, %v4551_v12, %v4691_v15  ;;  %v4721_v0 = vrot.slane %v4551_v12, 1  ;;  %v4157_v63 = vpop.f32.mrb[221].mxu0  ;;  %vm12550_vm3 = vmmov %vm12537_vm0 }
 0x3d7   : > { %v4750_v6 = vrot.slane %v4551_v12, 2  ;;  %v4779_v18 = vrot.slane %v4551_v12, 3  ;;  %v11631_v45 = vsel %vm12545_vm11, %v4575_v30, %v11464_v35  ;;  %v11635_v27 = vsel %vm12546_vm4, %v4604_v2, %v11468_v54  ;;  %vm12551_vm1 = vmmov %vm12537_vm0 }
 0x3d8   : > { %v11639_v4 = vsel %vm12547_vm15, %v4633_v41, %v11472_v29  ;;  %v11643_v15 = vsel %vm12548_vm8, %v4662_v40, %v11456_v34  ;;  %v5604_v20 = vunpack.c.l.b16 %v5308_v22  ;;  %v6808_v35 = vadd.f32 %v3772_v55, %v9395_v24  ;;  %v4159_v29 = vpop.f32.mrb[222].mxu0  ;;  %vm12552_vm5 = vmmov %vm12537_vm0 }
 0x3d9   : > { %v11647_v33 = vsel %vm12549_vm14, %v4779_v18, %v11480_v11  ;;  %v6807_v59 = vadd.f32 %v6806_v44, %v4155_v49  ;;  %v6810_v54 = vadd.f32 %v3774_v14, %v9392_v19  ;;  %v6812_v53 = vadd.f32 %v3776_v60, %v9395_v24  ;;  %v4161_v26 = vpop.f32.mrb[223].mxu0  ;;  %v3780_v44 = vpop.f32.mrb[232].mxu1  ;;  %vm12553_vm9 = vmmov %vm12537_vm0 }
 0x3da   : > { %v11653_v42 = vsel %vm12537_vm0, %v4721_v0, %v4720_v52  ;;  %v11657_v34 = vsel %vm12550_vm3, %v4750_v6, %v11476_v58  ;;  %v5628_v62 = vrot.slane %v5604_v20, 4  ;;  %v5657_v11 = vrot.slane %v5604_v20, 5  ;;  %vm12554_vm2 = vmmov %vm12537_vm0  ;;  %v3781_v30 = vpop.f32.mrb[233].mxu1  ;;  %v4165_v18 = vpop.f32.mrb[224].mxu0 }
 0x3db   : > { %v5686_v39 = vrot.slane %v5604_v20, 6  ;;  %v5715_v3 = vrot.slane %v5604_v20, 7  ;;  %v11660_v50 = vsel %vm12551_vm1, %v5604_v20, %v5744_v61  ;;  %v5774_v12 = vrot.slane %v5604_v20, 1  ;;  %vm12555_vm10 = vmmov %vm12537_vm0  ;;  %v3782_v14 = vpop.f32.mrb[234].mxu1 }
 0x3dc   : > { %v5803_v22 = vrot.slane %v5604_v20, 2  ;;  %v5832_v38 = vrot.slane %v5604_v20, 3  ;;  %v11664_v52 = vsel %vm12552_vm5, %v5628_v62, %v11517_v48  ;;  %v11668_v58 = vsel %vm12553_vm9, %v5657_v11, %v11521_v51  ;;  %vm12556_vm13 = vmmov %vm12537_vm0  ;;  %v3783_v6 = vpop.f32.mrb[235].mxu1 }
 0x3dd   : > { %v11672_v55 = vsel %vm12554_vm2, %v5686_v39, %v11525_v17  ;;  %v11676_v61 = vsel %vm12555_vm10, %v5715_v3, %v11509_v7  ;;  %v4233_v41 = vpack.c.bf16 %v6807_v59, %v6807_v59  ;;  %v6809_v48 = vadd.f32 %v6808_v35, %v4157_v63  ;;  %vm12557_vm11 = vmmov %vm12537_vm0 }
 0x3de   : > { %v11680_v2 = vsel %vm12556_vm13, %v5832_v38, %v11533_v13  ;;  %v6811_v40 = vadd.f32 %v6810_v54, %v4159_v29  ;;  %v6813_v0 = vadd.f32 %v6812_v53, %v4161_v26  ;;  %v11683_v51 = vsel %vm12557_vm11, %v5774_v12, %v5773_v36  ;;  %vm12558_vm4 = vmmov %vm12537_vm0  ;;  %v4166_v13 = vpop.f32.mrb[225].mxu0 }
 0x3df   : > { %v11687_v17 = vsel %vm12558_vm4, %v5803_v22, %v11529_v23  ;;  %v4281_v7 = vunpack.c.l.b16 %v4233_v41  ;;  %v5293_v60 = vpack.c.bf16 %v6809_v48, %v6809_v48  ;;  %v4167_v54 = vpop.f32.mrb[226].mxu0  ;;  %vm12559_vm15 = vcmask 1045509  }
 0x3e0   : > { %v4249_v49 = vpack.c.bf16 %v6811_v40, %v6811_v40  ;;  %v5309_v20 = vpack.c.bf16 %v6813_v0, %v6813_v0  ;;  %v4168_v23 = vpop.f32.mrb[227].mxu0  ;;  %vm12560_vm8 = vmmov %vm12559_vm15 }
 0x3e1   : > { %v4313_v62 = vrot.slane %v4281_v7, 3  ;;  %v4342_v59 = vrot.slane %v4281_v7, 4  ;;  %v4371_v35 = vrot.slane %v4281_v7, 5  ;;  %v4400_v63 = vrot.slane %v4281_v7, 6  ;;  %vm12561_vm14 = vmmov %vm12560_vm8 }
 0x3e2   : > { %v4429_v53 = vrot.slane %v4281_v7, 7  ;;  %v11691_v36 = vsel %vm12559_vm15, %v4281_v7, %v11577_v47  ;;  %v4488_v29 = vrot.slane %v4281_v7, 1  ;;  %v4517_v11 = vrot.slane %v4281_v7, 2  ;;  %vm12562_vm0 = vmmov %vm12560_vm8  ;;  %v3786_v47 = vpop.f32.mrb[236].mxu1  ;;  %v4171_v7 = vpop.f32.mrb[228].mxu0 }
 0x3e3   : > { %v11695_v39 = vsel %vm12560_vm8, %v4313_v62, %v11557_v56  ;;  %v11699_v3 = vsel %vm12561_vm14, %v4342_v59, %v11561_v57  ;;  %v11703_v26 = vsel %vm12562_vm0, %v4371_v35, %v11565_v5  ;;  %vm12563_vm3 = vmmov %vm12562_vm0  ;;  %v11713_v38 = vunpack.c.l.b16 %v5293_v60  ;;  %v3787_v56 = vpop.f32.mrb[237].mxu1 }
 0x3e4   : > { %v11707_v12 = vsel %vm12563_vm3, %v4400_v63, %v11569_v1  ;;  %vm12564_vm1 = vmmov %vm12562_vm0  ;;  %v11715_v44 = vunpack.c.l.b16 %v4249_v49  ;;  %v11717_v57 = vunpack.c.l.b16 %v5309_v20  ;;  %v3788_v30 = vpop.f32.mrb[238].mxu1  ;;  %v4172_v20 = vpop.f32.mrb[229].mxu0 }
 0x3e5   : > { %v11711_v22 = vsel %vm12564_vm1, %v4429_v53, %v11553_v21  ;;  %vm12565_vm5 = vmmov %vm12562_vm0  ;;  %v5366_v41 = vrot.slane %v11713_v38, 3  ;;  %v5395_v21 = vrot.slane %v11713_v38, 4  ;;  %v5424_v48 = vrot.slane %v11713_v38, 5  ;;  %v3789_v14 = vpop.f32.mrb[239].mxu1  ;;  %v4173_v59 = vpop.f32.mrb[230].mxu0 }
 0x3e6   : > { %v11721_v5 = vsel %vm12565_vm5, %v4488_v29, %v11620_v32  ;;  %vm12566_vm9 = vmmov %vm12562_vm0  ;;  %v5453_v40 = vrot.slane %v11713_v38, 6  ;;  %v5482_v0 = vrot.slane %v11713_v38, 7  ;;  %v5541_v6 = vrot.slane %v11713_v38, 1  ;;  %v3792_v23 = vpop.f32.mrb[168].mxu1 }
 0x3e7   : > { %v11725_v1 = vsel %vm12566_vm9, %v4517_v11, %v11573_v28  ;;  %vm12567_vm2 = vmmov %vm12562_vm0  ;;  %v5570_v28 = vrot.slane %v11713_v38, 2  ;;  %v4606_v62 = vrot.slane %v11715_v44, 4  ;;  %v4664_v35 = vrot.slane %v11715_v44, 6 }
 0x3e8   : > { %v11735_v32 = vsel %vm12567_vm2, %v11713_v38, %v11611_v46  ;;  %vm12568_vm10 = vmmov %vm12562_vm0  ;;  %v4752_v63 = vrot.slane %v11715_v44, 1  ;;  %v4781_v11 = vrot.slane %v11715_v44, 2  ;;  %v3794_v38 = vpop.f32.mrb[169].mxu1  ;;  %v5688_v56 = vrot.slane %v11717_v57, 5 }
 0x3e9   : > { %v11741_v18 = vsel %vm12568_vm10, %v5366_v41, %v11592_v10  ;;  %vm12569_vm13 = vmmov %vm12562_vm0  ;;  %v4577_v10 = vrot.slane %v11715_v44, 3  ;;  %v11776_v53 = vsel %vm12562_vm0, %v4606_v62, %v11635_v27  ;;  %v5659_v27 = vrot.slane %v11717_v57, 4  ;;  %v3796_v30 = vpop.f32.mrb[170].mxu1 }
 0x3ea   : > { %v11745_v60 = vsel %vm12569_vm13, %v5395_v21, %v11596_v9  ;;  %vm12570_vm11 = vmmov %vm12562_vm0  ;;  %v4635_v9 = vrot.slane %v11715_v44, 5  ;;  %v5805_v21 = vrot.slane %v11717_v57, 1  ;;  %v6816_v7 = vadd.f32 %v3794_v38, %v9395_v24 }
 0x3eb   : > { %v11749_v49 = vsel %vm12570_vm11, %v5424_v48, %v11600_v8  ;;  %vm12571_vm4 = vmmov %vm12562_vm0  ;;  %v4693_v8 = vrot.slane %v11715_v44, 7  ;;  %v5834_v48 = vrot.slane %v11717_v57, 2  ;;  %v11839_v59 = vsel %vm12562_vm0, %v5570_v28, %v11608_v16 }
 0x3ec   : > { %v11753_v46 = vsel %vm12571_vm4, %v5453_v40, %v11604_v37  ;;  %vm12572_vm15 = vmmov %vm12562_vm0  ;;  %v3798_v40 = vpop.f32.mrb[171].mxu1 }
 0x3ed   : > { %v11757_v13 = vsel %vm12572_vm15, %v5482_v0, %v11588_v43  ;;  %vm12573_vm8 = vmmov %vm12562_vm0  ;;  %v4174_v43 = vpop.f32.mrb[231].mxu0 }
 0x3ee   : > { %v11767_v37 = vsel %vm12573_vm8, %v11715_v44, %v11653_v42  ;;  %vm12574_vm14 = vmmov %vm12562_vm0  ;;  %v5746_v44 = vrot.slane %v11717_v57, 7  ;;  %v4177_v0 = vpop.f32.mrb[232].mxu0 }
 0x3ef   : > { %v11772_v54 = vsel %vm12574_vm14, %v4577_v10, %v11631_v45  ;;  %vm12575_vm3 = vmmov %vm12562_vm0  ;;  %v5630_v45 = vrot.slane %v11717_v57, 3  ;;  %v4179_v20 = vpop.f32.mrb[233].mxu0  ;;  %v6820_v10 = vadd.f32 %v3798_v40, %v9395_v24 }
 0x3f0   : > { %v11780_v29 = vsel %vm12575_vm3, %v4635_v9, %v11639_v4  ;;  %vm12576_vm1 = vmmov %vm12562_vm0  ;;  %v5717_v4 = vrot.slane %v11717_v57, 6 }
 0x3f1   : > { %v11785_v42 = vsel %vm12576_vm1, %v4664_v35, %v11643_v15  ;;  %vm12577_vm5 = vmmov %vm12562_vm0  ;;  %v6817_v35 = vadd.f32 %v6816_v7, %v4179_v20 }
 0x3f2   : > { %v11789_v47 = vsel %vm12577_vm5, %v4693_v8, %v11627_v25  ;;  %vm12578_vm9 = vmmov %vm12562_vm0  ;;  %vm12589_vm5 = vcmask 1046534  }
 0x3f3   : > { %v11799_v15 = vsel %vm12578_vm9, %v11717_v57, %v11683_v51  ;;  %vm12579_vm2 = vmmov %vm12562_vm0  ;;  %v6818_v57 = vadd.f32 %v3796_v30, %v9392_v19 }
 0x3f4   : > { %v11803_v25 = vsel %vm12579_vm2, %v5630_v45, %v11664_v52  ;;  %vm12580_vm10 = vmmov %vm12562_vm0 }
 0x3f5   : > { %v11807_v41 = vsel %vm12580_vm10, %v5659_v27, %v11668_v58  ;;  %vm12581_vm13 = vmmov %vm12562_vm0  ;;  %v6814_v58 = vadd.f32 %v3792_v23, %v9392_v19  ;;  %v5294_v23 = vpack.c.bf16 %v6817_v35, %v6817_v35 }
 0x3f6   : > { %v11813_v14 = vsel %vm12581_vm13, %v5688_v56, %v11672_v55  ;;  %vm12582_vm11 = vmmov %vm12562_vm0 }
 0x3f7   : > { %v11817_v51 = vsel %vm12582_vm11, %v5717_v4, %v11676_v61  ;;  %vm12583_vm4 = vmmov %vm12562_vm0  ;;  %v6815_v62 = vadd.f32 %v6814_v58, %v4177_v0  ;;  %v4181_v61 = vpop.f32.mrb[234].mxu0  ;;  %v5342_v38 = vunpack.c.l.b16 %v5294_v23 }
 0x3f8   : > { %v11821_v52 = vsel %vm12583_vm4, %v5746_v44, %v11660_v50  ;;  %vm12584_vm15 = vmmov %vm12562_vm0  ;;  %v6819_v8 = vadd.f32 %v6818_v57, %v4181_v61  ;;  %v4183_v43 = vpop.f32.mrb[235].mxu0 }
 0x3f9   : > { %v5542_v55 = vsel %vm12584_vm15, %v5541_v6, %v11624_v31  ;;  %vm12585_vm8 = vmmov %vm12562_vm0  ;;  %v5368_v35 = vrot.slane %v5342_v38, 2 }
 0x3fa   : > { %v11831_v9 = vsel %vm12585_vm8, %v4752_v63, %v11657_v34  ;;  %vm12586_vm14 = vmmov %vm12562_vm0  ;;  %v4234_v34 = vpack.c.bf16 %v6815_v62, %v6815_v62  ;;  %v11849_v63 = vadd.f32 %v6820_v10, %v4183_v43  ;;  %v4250_v45 = vpack.c.bf16 %v6819_v8, %v6819_v8 }
 0x3fb   : > { %v11835_v50 = vsel %vm12586_vm14, %v5805_v21, %v11687_v17  ;;  %vm12587_vm3 = vmmov %vm12562_vm0  ;;  %v3802_v17 = vpop.f32.mrb[240].mxu1  ;;  %v4187_v21 = vpop.f32.mrb[236].mxu0  ;;  %v5426_v43 = vrot.slane %v5342_v38, 4 }
 0x3fc   : > { %v11843_v31 = vsel %vm12587_vm3, %v4781_v11, %v11647_v33  ;;  %vm12588_vm1 = vmmov %vm12562_vm0  ;;  %v3803_v27 = vpop.f32.mrb[241].mxu1  ;;  %v4282_v16 = vunpack.c.l.b16 %v4234_v34  ;;  %v4553_v56 = vunpack.c.l.b16 %v4250_v45  ;;  %v5310_v4 = vpack.c.bf16 %v11849_v63, %v11849_v63  ;;  %v4188_v7 = vpop.f32.mrb[237].mxu0 }
 0x3fd   : > { %v11847_v6 = vsel %vm12588_vm1, %v5834_v48, %v11680_v2  ;;  %v3804_v28 = vpop.f32.mrb[242].mxu1  ;;  %vm12590_vm9 = vmmov %vm12589_vm5  ;;  %v5455_v34 = vrot.slane %v5342_v38, 5  ;;  %v5513_v63 = vrot.slane %v5342_v38, 7 }
 0x3fe   : > { %v3805_v33 = vpop.f32.mrb[243].mxu1  ;;  %v4315_v11 = vrot.slane %v4282_v16, 2  ;;  %v4344_v44 = vrot.slane %v4282_v16, 3  ;;  %v4373_v30 = vrot.slane %v4282_v16, 4  ;;  %v4402_v2 = vrot.slane %v4282_v16, 5  ;;  %vm12591_vm2 = vmmov %vm12589_vm5 }
 0x3ff   : > { %v4431_v48 = vrot.slane %v4282_v16, 6  ;;  %v4460_v40 = vrot.slane %v4282_v16, 7  ;;  %v11855_v58 = vsel %vm12589_vm5, %v4282_v16, %v11721_v5  ;;  %v4519_v0 = vrot.slane %v4282_v16, 1  ;;  %vm12592_vm10 = vmmov %vm12591_vm2  ;;  %v4189_v5 = vpop.f32.mrb[238].mxu0  ;;  %v3808_v17 = vpop.f32.mrb[244].mxu1 }
 0x400   : > { %v11859_v57 = vsel %vm12590_vm9, %v4315_v11, %v11695_v39  ;;  %v11863_v20 = vsel %vm12591_vm2, %v4344_v44, %v11699_v3  ;;  %v11867_v10 = vsel %vm12592_vm10, %v4373_v30, %v11703_v26  ;;  %vm12593_vm13 = vmmov %vm12591_vm2  ;;  %v5397_v3 = vrot.slane %v5342_v38, 3  ;;  %v4190_v8 = vpop.f32.mrb[239].mxu0  ;;  %v3809_v45 = vpop.f32.mrb[245].mxu1 }
 0x401   : > { %v11871_v62 = vsel %vm12593_vm13, %v4402_v2, %v11707_v12  ;;  %vm12594_vm11 = vmmov %vm12591_vm2  ;;  %v5484_v26 = vrot.slane %v5342_v38, 6  ;;  %v4579_v28 = vrot.slane %v4553_v56, 2  ;;  %v4637_v33 = vrot.slane %v4553_v56, 4  ;;  %v4193_v21 = vpop.f32.mrb[240].mxu0 }
 0x402   : > { %v11875_v61 = vsel %vm12594_vm11, %v4431_v48, %v11711_v22  ;;  %vm12595_vm4 = vmmov %vm12591_vm2  ;;  %v4666_v11 = vrot.slane %v4553_v56, 5  ;;  %v4724_v30 = vrot.slane %v4553_v56, 7  ;;  %v4783_v2 = vrot.slane %v4553_v56, 1 }
 0x403   : > { %v11879_v39 = vsel %vm12595_vm4, %v4460_v40, %v11691_v36  ;;  %vm12596_vm15 = vmmov %vm12591_vm2  ;;  %v5572_v36 = vrot.slane %v5342_v38, 1  ;;  %v5606_v7 = vunpack.c.l.b16 %v5310_v4 }
 0x404   : > { %v11883_v12 = vsel %vm12596_vm15, %v5368_v35, %v11741_v18  ;;  %vm12597_vm8 = vmmov %vm12591_vm2 }
 0x405   : > { %v11887_v22 = vsel %vm12597_vm8, %v5397_v3, %v11745_v60  ;;  %vm12598_vm14 = vmmov %vm12591_vm2  ;;  %v5661_v3 = vrot.slane %v5606_v7, 3  ;;  %v5690_v8 = vrot.slane %v5606_v7, 4  ;;  %v5777_v4 = vrot.slane %v5606_v7, 7 }
 0x406   : > { %v11890_v23 = vsel %vm12598_vm14, %v5342_v38, %v5542_v55  ;;  %vm12599_vm0 = vmmov %vm12591_vm2  ;;  %v3810_v55 = vpop.f32.mrb[246].mxu1  ;;  %v4608_v38 = vrot.slane %v4553_v56, 3 }
 0x407   : > { %v11894_v27 = vsel %vm12599_vm0, %v5426_v43, %v11749_v49  ;;  %vm12600_vm3 = vmmov %vm12599_vm0  ;;  %v3811_v44 = vpop.f32.mrb[247].mxu1  ;;  %v4695_v49 = vrot.slane %v4553_v56, 6  ;;  %v5719_v43 = vrot.slane %v5606_v7, 5 }
 0x408   : > { %v11898_v16 = vsel %vm12600_vm3, %v5455_v34, %v11753_v46  ;;  %vm12601_vm1 = vmmov %vm12599_vm0  ;;  %v5748_v34 = vrot.slane %v5606_v7, 6 }
 0x409   : > { %v11902_v18 = vsel %vm12601_vm1, %v5484_v26, %v11757_v13  ;;  %vm12602_vm5 = vmmov %vm12599_vm0 }
 0x40a   : > { %v11906_v60 = vsel %vm12602_vm5, %v5513_v63, %v11735_v32  ;;  %vm12603_vm9 = vmmov %vm12599_vm0 }
 0x40b   : > { %v11910_v46 = vsel %vm12603_vm9, %v4553_v56, %v11831_v9  ;;  %vm12604_vm2 = vmmov %vm12599_vm0  ;;  %v4194_v9 = vpop.f32.mrb[241].mxu0 }
 0x40c   : > { %v11914_v13 = vsel %vm12604_vm2, %v4579_v28, %v11772_v54  ;;  %vm12605_vm10 = vmmov %vm12599_vm0 }
 0x40d   : > { %v11918_v32 = vsel %vm12605_vm10, %v4608_v38, %v11776_v53  ;;  %vm12606_vm13 = vmmov %vm12599_vm0  ;;  %v4195_v53 = vpop.f32.mrb[242].mxu0 }
 0x40e   : > { %v11922_v48 = vsel %vm12606_vm13, %v4637_v33, %v11780_v29  ;;  %vm12607_vm11 = vmmov %vm12599_vm0  ;;  %v4196_v29 = vpop.f32.mrb[243].mxu0 }
 0x40f   : > { %v11926_v40 = vsel %vm12607_vm11, %v4666_v11, %v11785_v42  ;;  %vm12608_vm4 = vmmov %vm12599_vm0  ;;  %v11944_v42 = vsel %vm12599_vm0, %v4783_v2, %v11843_v31 }
 0x410   : > { %v11930_v56 = vsel %vm12608_vm4, %v4695_v49, %v11789_v47  ;;  %vm12609_vm15 = vmmov %vm12599_vm0  ;;  %v5632_v47 = vrot.slane %v5606_v7, 2 }
 0x411   : > { %v11934_v54 = vsel %vm12609_vm15, %v4724_v30, %v11767_v37  ;;  %vm12610_vm8 = vmmov %vm12599_vm0  ;;  %v3814_v37 = vpop.f32.mrb[180].mxu1 }
 0x412   : > { %v4520_v5 = vsel %vm12610_vm8, %v4519_v0, %v11725_v1  ;;  %vm12611_vm14 = vmmov %vm12599_vm0  ;;  %v5836_v1 = vrot.slane %v5606_v7, 1  ;;  %v3816_v0 = vpop.f32.mrb[181].mxu1 }
 0x413   : > { %v11940_v35 = vsel %vm12611_vm14, %v5572_v36, %v11839_v59  ;;  %vm12612_vm3 = vmmov %vm12599_vm0  ;;  %v6824_v45 = vadd.f32 %v3816_v0, %v9395_v24 }
 0x414   : > { %v11948_v26 = vsel %vm12612_vm3, %v5606_v7, %v11835_v50  ;;  %vm12613_vm1 = vmmov %vm12599_vm0  ;;  %v3818_v50 = vpop.f32.mrb[182].mxu1 }
 0x415   : > { %v11952_v59 = vsel %vm12613_vm1, %v5632_v47, %v11803_v25  ;;  %vm12614_vm5 = vmmov %vm12599_vm0  ;;  %v3820_v55 = vpop.f32.mrb[183].mxu1  ;;  %v6826_v28 = vadd.f32 %v3818_v50, %v9392_v19 }
 0x416   : > { %v11956_v31 = vsel %vm12614_vm5, %v5661_v3, %v11807_v41  ;;  %vm12615_vm9 = vmmov %vm12599_vm0  ;;  %v6822_v41 = vadd.f32 %v3814_v37, %v9392_v19  ;;  %v3824_v9 = vpop.f32.mrb[248].mxu1 }
 0x417   : > { %v11960_v63 = vsel %vm12615_vm9, %v5690_v8, %v11813_v14  ;;  %vm12616_vm2 = vmmov %vm12599_vm0  ;;  %v4199_v14 = vpop.f32.mrb[244].mxu0  ;;  %v3825_v19 = vpop.f32.mrb[249].mxu1 }
 0x418   : > { %v11964_v17 = vsel %vm12616_vm2, %v5719_v43, %v11817_v51  ;;  %vm12617_vm10 = vmmov %vm12599_vm0  ;;  %v6828_v51 = vadd.f32 %v3820_v55, %v9395_v24  ;;  %v4201_v33 = vpop.f32.mrb[245].mxu0  ;;  %v3826_v29 = vpop.f32.mrb[250].mxu1 }
 0x419   : > { %v11968_v36 = vsel %vm12617_vm10, %v5748_v34, %v11821_v52  ;;  %vm12618_vm13 = vmmov %vm12599_vm0  ;;  %v6823_v52 = vadd.f32 %v6822_v41, %v4199_v14  ;;  %v6825_v11 = vadd.f32 %v6824_v45, %v4201_v33  ;;  %v4203_v44 = vpop.f32.mrb[246].mxu0  ;;  %v3827_v37 = vpop.f32.mrb[251].mxu1 }
 0x41a   : > { %v11972_v25 = vsel %vm12618_vm13, %v5777_v4, %v11799_v15  ;;  %vm12619_vm11 = vmmov %vm12599_vm0  ;;  %v11982_v49 = vadd.f32 %v6826_v28, %v4203_v44  ;;  %v4205_v30 = vpop.f32.mrb[247].mxu0  ;;  %v3830_v19 = vpop.f32.mrb[252].mxu1 }
 0x41b   : > { %v11980_v38 = vsel %vm12619_vm11, %v5836_v1, %v11847_v6  ;;  %v4235_v15 = vpack.c.bf16 %v6823_v52, %v6823_v52  ;;  %v5295_v2 = vpack.c.bf16 %v6825_v11, %v6825_v11  ;;  %v11984_v21 = vadd.f32 %v6828_v51, %v4205_v30  ;;  %v4209_v50 = vpop.f32.mrb[248].mxu0  ;;  %v12620_v30 = vld [vmem:[#allocation18_spill] sm:$0xff] }
 0x41c   : > { %v4251_v24 = vpack.c.bf16 %v11982_v49, %v11982_v49  ;;  %v4210_v28 = vpop.f32.mrb[249].mxu0 }
 0x41d   : > { %v4283_v7 = vunpack.c.l.b16 %v4235_v15  ;;  %v5343_v53 = vunpack.c.l.b16 %v5295_v2  ;;  %v5311_v6 = vpack.c.bf16 %v11984_v21, %v11984_v21  ;;  %v4211_v33 = vpop.f32.mrb[250].mxu0 }
 0x41f   : > { %v4317_v47 = vrot.slane %v4283_v7, 1  ;;  %v4346_v3 = vrot.slane %v4283_v7, 2  ;;  %v4375_v8 = vrot.slane %v4283_v7, 3  ;;  %v4404_v43 = vrot.slane %v4283_v7, 4 }
 0x420   : > { %v4433_v34 = vrot.slane %v4283_v7, 5  ;;  %v4462_v4 = vrot.slane %v4283_v7, 6  ;;  %v4491_v1 = vrot.slane %v4283_v7, 7  ;;  %v4521_v0 = vsel %vm4303_vm7, %v4283_v7, %v4520_v5 }
 0x421   : > { %v4318_v41 = vsel %vm4303_vm7, %v4317_v47, %v11859_v57  ;;  %v4347_v45 = vsel %vm4303_vm7, %v4346_v3, %v11863_v20  ;;  %v4376_v55 = vsel %vm4303_vm7, %v4375_v8, %v11867_v10  ;;  %v4405_v14 = vsel %vm4303_vm7, %v4404_v43, %v11871_v62  ;;  %v4212_v10 = vpop.f32.mrb[251].mxu0  ;;  %v3831_v47 = vpop.f32.mrb[253].mxu1 }
 0x422   : > { %v4434_v51 = vsel %vm4303_vm7, %v4433_v34, %v11875_v61  ;;  %v4463_v5 = vsel %vm4303_vm7, %v4462_v4, %v11879_v39  ;;  %v4492_v52 = vsel %vm4303_vm7, %v4491_v1, %v11855_v58  ;;  %v6600_v57 = vpack.c.b16 %v4347_v45, %v4318_v41  ;;  %v3832_v34 = vpop.f32.mrb[254].mxu1 }
 0x423   : > { %v6602_v11 = vpack.c.b16 %v4405_v14, %v4376_v55  ;;  %v6604_v20 = vpack.c.b16 %v4463_v5, %v4434_v51  ;;  %v6606_v44 = vpack.c.b16 %v4521_v0, %v4492_v52  ;;  %v5370_v15 = vrot.slane %v5343_v53, 1  ;;  %v3833_v41 = vpop.f32.mrb[255].mxu1  ;;  %v4215_v14 = vpop.f32.mrb[252].mxu0  ;;  %v5268_v34 = vld [vmem:[%s10596_s10 + $0xe0] sm:$0xff] }
 0x424   : > { %v4808_v2 = vrot.slane %v6600_v57, %v12620_v30  ;;  %v5399_v62 = vrot.slane %v5343_v53, 2  ;;  %v5428_v9 = vrot.slane %v5343_v53, 3  ;;  %v5457_v7 = vrot.slane %v5343_v53, 4  ;;  %v4216_v5 = vpop.f32.mrb[253].mxu0 }
 0x425   : > { %v4822_v61 = vrot.slane %v6602_v11, %v12620_v30  ;;  %v4836_v39 = vrot.slane %v6604_v20, %v12620_v30  ;;  %v4850_v29 = vrot.slane %v6606_v44, %v12620_v30  ;;  %v5371_v58 = vsel %vm4303_vm7, %v5370_v15, %v11883_v12 }
 0x426   : > { %v5400_v3 = vsel %vm4303_vm7, %v5399_v62, %v11887_v22  ;;  %v5429_v8 = vsel %vm4303_vm7, %v5428_v9, %v11894_v27  ;;  %v5458_v43 = vsel %vm4303_vm7, %v5457_v7, %v11898_v16  ;;  %v5486_v37 = vrot.slane %v5343_v53, 5 }
 0x427   : > { %v4853_v4 = vcombine.low %v4808_v2, %v4822_v61  ;;  %v4854_v1 = vcombine.high %v4808_v2, %v4822_v61  ;;  %v4857_v0 = vcombine.low %v4836_v39, %v4850_v29  ;;  %v4858_v50 = vcombine.high %v4836_v39, %v4850_v29  ;;  %v5232_v61 = vld [vmem:[%s10596_s10 + $0x80] sm:$0xff]  ;;  %v12033_v39 = vld [vmem:[%s10596_s10 + $0x90] sm:$0xff] }
 0x428   : > { %v5487_v12 = vsel %vm4303_vm7, %v5486_v37, %v11902_v18  ;;  %v5515_v45 = vrot.slane %v5343_v53, 6  ;;  %v5544_v55 = vrot.slane %v5343_v53, 7  ;;  %v5574_v22 = vsel %vm4303_vm7, %v5343_v53, %v11940_v35  ;;  %v4217_v35 = vpop.f32.mrb[254].mxu0  ;;  %v5244_v29 = vld [vmem:[%s10596_s10 + $0xa0] sm:$0xff] }
 0x429   : > { %v4872_v27 = vrot.slane %v4853_v4, %v12620_v30  ;;  %v4886_v16 = vrot.slane %v4854_v1, %v12620_v30  ;;  %v4900_v28 = vrot.slane %v4857_v0, %v12620_v30  ;;  %v4914_v51 = vrot.slane %v4858_v50, %v12620_v30  ;;  %v4218_v15 = vpop.f32.mrb[255].mxu0  ;;  %v5256_v37 = vld [vmem:[%s10596_s10 + $0xc0] sm:$0xff] }
 0x42a   : > { %v5516_v52 = vsel %vm4303_vm7, %v5515_v45, %v11906_v60  ;;  %v5545_v18 = vsel %vm4303_vm7, %v5544_v55, %v11890_v23  ;;  %v6632_v57 = vpack.c.b16 %v5400_v3, %v5371_v58  ;;  %v6634_v33 = vpack.c.b16 %v5458_v43, %v5429_v8  ;;  %v12037_v43 = vld [vmem:[%s10596_s10 + $0xb0] sm:$0xff] }
 0x42b   : > { %v4917_v53 = vcombine.low %v4872_v27, %v4900_v28  ;;  %v4918_v11 = vcombine.high %v4872_v27, %v4900_v28  ;;  %v4921_v20 = vcombine.low %v4886_v16, %v4914_v51  ;;  %v4922_v44 = vcombine.high %v4886_v16, %v4914_v51  ;;  %v5262_v55 = vld [vmem:[%s10596_s10 + $0xd0] sm:$0xff] }
 0x42c   : > { %v6636_v10 = vpack.c.b16 %v5516_v52, %v5487_v12  ;;  %v6638_v2 = vpack.c.b16 %v5574_v22, %v5545_v18  ;;  %v5861_v60 = vrot.slane %v6632_v57, %v12620_v30  ;;  %v5875_v23 = vrot.slane %v6634_v33, %v12620_v30  ;;  %v5274_v22 = vld [vmem:[%s10596_s10 + $0xf0] sm:$0xff] }
 0x42d   : > { %v5077_v62 = vunpack.i.h.s16 %v4917_v53  ;;  %v5081_v9 = vunpack.i.h.s16 %v4921_v20  ;;  %v5085_v7 = vunpack.i.h.s16 %v4918_v11  ;;  %v5089_v19 = vunpack.i.h.s16 %v4922_v44 }
 0x42e   : > { %v6623_v58 = vpack.i.b16 %v4917_v53, %v4917_v53  ;;  %v6625_v47 = vpack.i.b16 %v4921_v20, %v4921_v20  ;;  %v6627_v3 = vpack.i.b16 %v4918_v11, %v4918_v11  ;;  %v6629_v8 = vpack.i.b16 %v4922_v44, %v4922_v44 }
 0x42f   : > { %v12041_v4 = vpack.i.b16 %v5077_v62, %v5077_v62  ;;  %v12043_v1 = vpack.i.b16 %v5081_v9, %v5081_v9  ;;  %v12045_v0 = vpack.i.b16 %v5085_v7, %v5085_v7  ;;  %v12047_v50 = vpack.i.b16 %v5089_v19, %v5089_v19 }
 0x430   : > { %v5233_v12 = vsel %vm10611_vm12, %v6623_v58, %v5232_v61  ;;  %v5245_v45 = vsel %vm10611_vm12, %v6625_v47, %v5244_v29  ;;  %v5257_v16 = vsel %vm10611_vm12, %v6627_v3, %v5256_v37  ;;  %v5269_v28 = vsel %vm10611_vm12, %v6629_v8, %v5268_v34 }
 0x431   : > { %v5239_v14 = vsel %vm10611_vm12, %v12041_v4, %v12033_v39  ;;  %v5251_v27 = vsel %vm10611_vm12, %v12043_v1, %v12037_v43  ;;  %v5889_v51 = vrot.slane %v6636_v10, %v12620_v30  ;;  %v5903_v5 = vrot.slane %v6638_v2, %v12620_v30 }
 0x432   : > { %v5906_v52 = vcombine.low %v5861_v60, %v5875_v23  ;;  %v5907_v18 = vcombine.high %v5861_v60, %v5875_v23  ;;  %v5263_v57 = vsel %vm10611_vm12, %v12045_v0, %v5262_v55  ;;  %v5275_v33 = vsel %vm10611_vm12, %v12047_v50, %v5274_v22 }
 0x433   : > { %v4554_v35 = vunpack.c.l.b16 %v4251_v24  ;;  %v12081_v53 = vunpack.c.l.b16 %v5311_v6  ;;  %v5910_v11 = vcombine.low %v5889_v51, %v5903_v5  ;;  %v5911_v20 = vcombine.high %v5889_v51, %v5903_v5 }
 0x434   : > { %v5925_v44 = vrot.slane %v5906_v52, %v12620_v30  ;;  %v5939_v15 = vrot.slane %v5907_v18, %v12620_v30 }
 0x435   : > { %v4581_v10 = vrot.slane %v4554_v35, 1  ;;  %v4610_v2 = vrot.slane %v4554_v35, 2  ;;  %v4639_v60 = vrot.slane %v4554_v35, 3  ;;  %v4668_v23 = vrot.slane %v4554_v35, 4 }
 0x436   : > { %v5953_v62 = vrot.slane %v5910_v11, %v12620_v30  ;;  %v5967_v49 = vrot.slane %v5911_v20, %v12620_v30  ;;  %v4697_v24 = vrot.slane %v4554_v35, 5  ;;  %v4726_v9 = vrot.slane %v4554_v35, 6 }
 0x437   : > { %v4582_v21 = vsel %vm4303_vm7, %v4581_v10, %v11914_v13  ;;  %v4611_v6 = vsel %vm4303_vm7, %v4610_v2, %v11918_v32  ;;  %v4640_v7 = vsel %vm4303_vm7, %v4639_v60, %v11922_v48  ;;  %v4669_v19 = vsel %vm4303_vm7, %v4668_v23, %v11926_v40 }
 0x438   : > { %v5970_v61 = vcombine.low %v5925_v44, %v5953_v62  ;;  %v5971_v39 = vcombine.high %v5925_v44, %v5953_v62  ;;  %v5974_v29 = vcombine.low %v5939_v15, %v5967_v49  ;;  %v5975_v58 = vcombine.high %v5939_v15, %v5967_v49 }
 0x439   : > { %v4698_v47 = vsel %vm4303_vm7, %v4697_v24, %v11930_v56  ;;  %v4727_v3 = vsel %vm4303_vm7, %v4726_v9, %v11934_v54  ;;  %v4755_v13 = vrot.slane %v4554_v35, 7  ;;  %v4785_v32 = vsel %vm4303_vm7, %v4554_v35, %v11944_v42 }
 0x43a   : > { %v6130_v8 = vunpack.i.h.s16 %v5970_v61  ;;  %v6134_v48 = vunpack.i.h.s16 %v5974_v29  ;;  %v6138_v43 = vunpack.i.h.s16 %v5971_v39  ;;  %v6142_v40 = vunpack.i.h.s16 %v5975_v58 }
 0x43b   : > { %v6655_v37 = vpack.i.b16 %v5970_v61, %v5970_v61  ;;  %v6657_v34 = vpack.i.b16 %v5974_v29, %v5974_v29  ;;  %v6659_v4 = vpack.i.b16 %v5971_v39, %v5971_v39  ;;  %v6661_v1 = vpack.i.b16 %v5975_v58, %v5975_v58 }
 0x43c   : > { %v6162_v56 = vpack.i.b16 %v6130_v8, %v6130_v8  ;;  %v6166_v0 = vpack.i.b16 %v6134_v48, %v6134_v48  ;;  %v6170_v54 = vpack.i.b16 %v6138_v43, %v6138_v43  ;;  %v6174_v50 = vpack.i.b16 %v6142_v40, %v6142_v40 }
 0x43d   : > { %v6279_v55 = vsel %vm10770_vm6, %v6655_v37, %v5233_v12  ;;  %v6291_v22 = vsel %vm10770_vm6, %v6657_v34, %v5245_v45  ;;  %v6303_v51 = vsel %vm10770_vm6, %v6659_v4, %v5257_v16  ;;  %v6315_v5 = vsel %vm10770_vm6, %v6661_v1, %v5269_v28 }
 0x43e   : > { %6280 = vst [vmem:[%s10596_s10 + $0x80] sm:$0xff] %v6279_v55  ;;  %v6285_v52 = vsel %vm10770_vm6, %v6162_v56, %v5239_v14  ;;  %6292 = vst [vmem:[%s10596_s10 + $0xa0] sm:$0xff] %v6291_v22  ;;  %v6297_v18 = vsel %vm10770_vm6, %v6166_v0, %v5251_v27  ;;  %v6309_v12 = vsel %vm10770_vm6, %v6170_v54, %v5263_v57  ;;  %v5634_v27 = vrot.slane %v12081_v53, 1  ;;  %v5247_v55 = vld [vmem:[%s10596_s10 + $0xa8] sm:$0xff] }
 0x43f   : > { %6304 = vst [vmem:[%s10596_s10 + $0xc0] sm:$0xff] %v6303_v51  ;;  %6316 = vst [vmem:[%s10596_s10 + $0xe0] sm:$0xff] %v6315_v5  ;;  %v6321_v45 = vsel %vm10770_vm6, %v6174_v50, %v5275_v33  ;;  %v4756_v16 = vsel %vm4303_vm7, %v4755_v13, %v11910_v46  ;;  %v6608_v14 = vpack.c.b16 %v4611_v6, %v4582_v21  ;;  %v5663_v20 = vrot.slane %v12081_v53, 2  ;;  %v5235_v50 = vld [vmem:[%s10596_s10 + $0x88] sm:$0xff] }
 0x440   : > { %6286 = vst [vmem:[%s10596_s10 + $0x90] sm:$0xff] %v6285_v52  ;;  %6298 = vst [vmem:[%s10596_s10 + $0xb0] sm:$0xff] %v6297_v18  ;;  %v6610_v28 = vpack.c.b16 %v4669_v19, %v4640_v7  ;;  %v6612_v35 = vpack.c.b16 %v4727_v3, %v4698_v47  ;;  %v6614_v11 = vpack.c.b16 %v4785_v32, %v4756_v16  ;;  %v5692_v57 = vrot.slane %v12081_v53, 3  ;;  %v5259_v22 = vld [vmem:[%s10596_s10 + $0xc8] sm:$0xff] }
 0x441   : > { %6310 = vst [vmem:[%s10596_s10 + $0xd0] sm:$0xff] %v6309_v12  ;;  %6322 = vst [vmem:[%s10596_s10 + $0xf0] sm:$0xff] %v6321_v45  ;;  %v4944_v44 = vrot.slane %v6608_v14, %v12620_v30  ;;  %v5721_v10 = vrot.slane %v12081_v53, 4  ;;  %v5635_v2 = vsel %vm4303_vm7, %v5634_v27, %v11952_v59  ;;  %v5664_v60 = vsel %vm4303_vm7, %v5663_v20, %v11956_v31  ;;  %v5271_v51 = vld [vmem:[%s10596_s10 + $0xe8] sm:$0xff]  ;;  %v5265_v27 = vld [vmem:[%s10596_s10 + $0xd8] sm:$0xff] }
 0x442   : > { %v4958_v33 = vrot.slane %v6610_v28, %v12620_v30  ;;  %v4972_v15 = vrot.slane %v6612_v35, %v12620_v30  ;;  %v4986_v46 = vrot.slane %v6614_v11, %v12620_v30  ;;  %v5693_v23 = vsel %vm4303_vm7, %v5692_v57, %v11960_v63  ;;  %v5241_v35 = vld [vmem:[%s10596_s10 + $0x98] sm:$0xff] }
 0x443   : > { %v5722_v24 = vsel %vm4303_vm7, %v5721_v10, %v11964_v17  ;;  %v5750_v9 = vrot.slane %v12081_v53, 5  ;;  %v5779_v7 = vrot.slane %v12081_v53, 6  ;;  %v5808_v19 = vrot.slane %v12081_v53, 7  ;;  %v5253_v11 = vld [vmem:[%s10596_s10 + $0xb8] sm:$0xff] }
 0x444   : > { %v4989_v62 = vcombine.low %v4944_v44, %v4958_v33  ;;  %v4990_v49 = vcombine.high %v4944_v44, %v4958_v33  ;;  %v4993_v21 = vcombine.low %v4972_v15, %v4986_v46  ;;  %v4994_v6 = vcombine.high %v4972_v15, %v4986_v46  ;;  %v5277_v20 = vld [vmem:[%s10596_s10 + $0xf8] sm:$0xff] }
 0x445   : > { %v5751_v63 = vsel %vm4303_vm7, %v5750_v9, %v11968_v36  ;;  %v5838_v61 = vsel %vm4303_vm7, %v12081_v53, %v11980_v38  ;;  %v5780_v29 = vsel %vm4303_vm7, %v5779_v7, %v11972_v25  ;;  %v5809_v58 = vsel %vm4303_vm7, %v5808_v19, %v11948_v26 }
 0x446   : > { %v5008_v59 = vrot.slane %v4989_v62, %v12620_v30  ;;  %v5022_v31 = vrot.slane %v4990_v49, %v12620_v30  ;;  %v5036_v17 = vrot.slane %v4993_v21, %v12620_v30  ;;  %v5050_v39 = vrot.slane %v4994_v6, %v12620_v30 }
 0x447   : > { %v6640_v47 = vpack.c.b16 %v5664_v60, %v5635_v2  ;;  %v6642_v3 = vpack.c.b16 %v5722_v24, %v5693_v23  ;;  %v6644_v13 = vpack.c.b16 %v5780_v29, %v5751_v63  ;;  %v6646_v32 = vpack.c.b16 %v5838_v61, %v5809_v58 }
 0x448   : > { %v5053_v8 = vcombine.low %v5008_v59, %v5036_v17  ;;  %v5054_v36 = vcombine.high %v5008_v59, %v5036_v17  ;;  %v5057_v48 = vcombine.low %v5022_v31, %v5050_v39  ;;  %v5058_v38 = vcombine.high %v5022_v31, %v5050_v39 }
 0x449   : > { %v5997_v53 = vrot.slane %v6640_v47, %v12620_v30  ;;  %v6011_v43 = vrot.slane %v6642_v3, %v12620_v30  ;;  %v6025_v25 = vrot.slane %v6644_v13, %v12620_v30  ;;  %v6039_v26 = vrot.slane %v6646_v32, %v12620_v30 }
 0x44a   : > { %v5078_v40 = vunpack.i.h.s16 %v5053_v8  ;;  %v5082_v37 = vunpack.i.h.s16 %v5057_v48  ;;  %v5086_v34 = vunpack.i.h.s16 %v5054_v36  ;;  %v5090_v4 = vunpack.i.h.s16 %v5058_v38 }
 0x44b   : > { %v6624_v1 = vpack.i.b16 %v5053_v8, %v5053_v8  ;;  %v6626_v56 = vpack.i.b16 %v5057_v48, %v5057_v48  ;;  %v6628_v0 = vpack.i.b16 %v5054_v36, %v5054_v36  ;;  %v6630_v54 = vpack.i.b16 %v5058_v38, %v5058_v38 }
 0x44c   : > { %v6042_v5 = vcombine.low %v5997_v53, %v6011_v43  ;;  %v6043_v52 = vcombine.high %v5997_v53, %v6011_v43  ;;  %v6046_v18 = vcombine.low %v6025_v25, %v6039_v26  ;;  %v6047_v12 = vcombine.high %v6025_v25, %v6039_v26 }
 0x44d   : > { %v5110_v45 = vpack.i.b16 %v5078_v40, %v5078_v40  ;;  %v5114_v16 = vpack.i.b16 %v5082_v37, %v5082_v37  ;;  %v5118_v14 = vpack.i.b16 %v5086_v34, %v5086_v34  ;;  %v5122_v28 = vpack.i.b16 %v5090_v4, %v5090_v4 }
 0x44e   : > { %v6061_v57 = vrot.slane %v6042_v5, %v12620_v30  ;;  %v6075_v44 = vrot.slane %v6043_v52, %v12620_v30  ;;  %v6089_v33 = vrot.slane %v6046_v18, %v12620_v30  ;;  %v6103_v15 = vrot.slane %v6047_v12, %v12620_v30 }
 0x44f   : > { %v5236_v10 = vsel %vm10611_vm12, %v6624_v1, %v5235_v50  ;;  %v5248_v46 = vsel %vm10611_vm12, %v6626_v56, %v5247_v55  ;;  %v5260_v2 = vsel %vm10611_vm12, %v6628_v0, %v5259_v22  ;;  %v5272_v60 = vsel %vm10611_vm12, %v6630_v54, %v5271_v51 }
 0x450   : > { %v6106_v23 = vcombine.low %v6061_v57, %v6089_v33  ;;  %v6107_v62 = vcombine.high %v6061_v57, %v6089_v33  ;;  %v6110_v49 = vcombine.low %v6075_v44, %v6103_v15  ;;  %v6111_v24 = vcombine.high %v6075_v44, %v6103_v15 }
 0x451   : > { %v5242_v9 = vsel %vm10611_vm12, %v5110_v45, %v5241_v35  ;;  %v5254_v30 = vsel %vm10611_vm12, %v5114_v16, %v5253_v11  ;;  %v5266_v21 = vsel %vm10611_vm12, %v5118_v14, %v5265_v27  ;;  %v5278_v6 = vsel %vm10611_vm12, %v5122_v28, %v5277_v20 }
 0x452   : > { %v6131_v7 = vunpack.i.h.s16 %v6106_v23  ;;  %v6135_v19 = vunpack.i.h.s16 %v6110_v49  ;;  %v6139_v59 = vunpack.i.h.s16 %v6107_v62  ;;  %v6143_v31 = vunpack.i.h.s16 %v6111_v24 }
 0x453   : > { %v6656_v63 = vpack.i.b16 %v6106_v23, %v6106_v23  ;;  %v6658_v61 = vpack.i.b16 %v6110_v49, %v6110_v49  ;;  %v6660_v17 = vpack.i.b16 %v6107_v62, %v6107_v62  ;;  %v6662_v39 = vpack.i.b16 %v6111_v24, %v6111_v24 }
 0x454   : > { %v6163_v29 = vpack.i.b16 %v6131_v7, %v6131_v7  ;;  %v6167_v58 = vpack.i.b16 %v6135_v19, %v6135_v19  ;;  %v6171_v47 = vpack.i.b16 %v6139_v59, %v6139_v59  ;;  %v6175_v41 = vpack.i.b16 %v6143_v31, %v6143_v31 }
 0x455   : > { %v6282_v3 = vsel %vm10770_vm6, %v6656_v63, %v5236_v10  ;;  %v6294_v13 = vsel %vm10770_vm6, %v6658_v61, %v5248_v46  ;;  %v6306_v32 = vsel %vm10770_vm6, %v6660_v17, %v5260_v2  ;;  %v6318_v8 = vsel %vm10770_vm6, %v6662_v39, %v5272_v60 }
 0x456   : > { %6283 = vst [vmem:[%s10596_s10 + $0x88] sm:$0xff] %v6282_v3  ;;  %v6288_v36 = vsel %vm10770_vm6, %v6163_v29, %v5242_v9  ;;  %6295 = vst [vmem:[%s10596_s10 + $0xa8] sm:$0xff] %v6294_v13  ;;  %v6300_v48 = vsel %vm10770_vm6, %v6167_v58, %v5254_v30  ;;  %v6312_v38 = vsel %vm10770_vm6, %v6171_v47, %v5266_v21 }
 0x457   : > { %6307 = vst [vmem:[%s10596_s10 + $0xc8] sm:$0xff] %v6306_v32  ;;  %6319 = vst [vmem:[%s10596_s10 + $0xe8] sm:$0xff] %v6318_v8  ;;  %v6324_v53 = vsel %vm10770_vm6, %v6175_v41, %v5278_v6 }
 0x458   : > { %6289 = vst [vmem:[%s10596_s10 + $0x98] sm:$0xff] %v6288_v36  ;;  %6301 = vst [vmem:[%s10596_s10 + $0xb8] sm:$0xff] %v6300_v48 }
 0x459   : > { %6313 = vst [vmem:[%s10596_s10 + $0xd8] sm:$0xff] %v6312_v38  ;;  %6325 = vst [vmem:[%s10596_s10 + $0xf8] sm:$0xff] %v6324_v53 }
 0x45a   : > { %7184 = shalt.err (!%p7181_p5)
}
 0x45b   : > { %s7185_s4 = scalar_lea.hbm %s12196_s7, 4096  ;;  %s7189_s22 = scalar_lea.hbm %s12274_s3, 8192 }
 0x45c   : > { %p7186_p9 = scmp.ne.s32.totalorder %s12196_s7, %s7185_s4  ;;  %p7190_p3 = scmp.lt.u32.totalorder %s12196_s7, %s12274_s3 }
 0x45d   : > { %p7191_p7 = scmp.lt.u32.totalorder %s7189_s22, %s7185_s4  ;;  %p7193_p4 = scmp.lt.u32.totalorder %s7185_s4, %s12196_s7 }
 0x45e   : > { %p7187_p1 = pnand %p7186_p9, %p7387_p10 }
 0x45f   : > { %p7192_p13 = por %p7191_p7, %p7190_p3 }
 0x460   : > { %p7188_p2 = pneg %p7187_p1 }
 0x461   : > { %p7194_p6 = por %p7193_p4, %p7192_p13 }
 0x463   : > { %p7195_p8 = pnand %p7194_p6, %p7188_p2 }
 0x465   : > { %7198 = shalt.err (!%p7195_p8)
}
 0x466   : > { %s7269_s10 = smov 256   ;;  %s7270_s11 = smov 16  }
 0x467   : > { %6900 = dma.vmem_to_hbm [thread:$0]  (%p7387_p10), %s12198_s18, 4096, %s12196_s7, %s6327_s8, %s7269_s10, %s7269_s10, %s7270_s11  }
 0x468 PF: > { %s6358_s26 = sand.u32 1, %s7237_s12   ;;  %p12623_p12 = scmp.ne.s32.totalorder %s12304_s23, 0 }
 0x469   : > { %p12624_p11 = scmp.ge.s32.totalorder %s7257_s17, 2  ;;  %s6359_s15 = scalar_lea.sflag [#allocation6], %s6358_s26 }
 0x46b   : > { %p6911_p0 = pnand %p12624_p11, %p12623_p12 }
 0x46d   : > { %7232 = dma.done.wait (!%p6911_p0), %s6359_s15, 4096  }
 0x46e   : > { %7234 = vsyncadd (!%p6911_p0), %s6359_s15, 4294963200  ;;  %s20_s17 = sadd.s32 1, %s7257_s17   ;;  %s12625_s12 = smov %s7241_s13 }
 0x46f   : > { %p17_p5 = scmp.ge.s32.totalorder %s20_s17, 4   ;;  %s12626_s13 = smov %s7245_s14 }
 0x470   : > { %s12627_s14 = smov %s7396_s5  ;;  %s12628_s15 = smov %s7253_s16 }
 0x471   : > { %s12629_s16 = smov %s12631_s28  ;;  %19 = sbr.rel (!%p17_p5) target bundleno = 7 (0x7), region = 103 }
 0x478   :  { %6364 = vsyncpa [#allocation5], 1 }
 0x479   :  { %6366 = vsyncpa [#allocation5 + $0x1], 1 }
 0x47a   :  { %6367 = vsyncpa [#allocation8], 1 }
 0x47b   :  { %6368 = vsyncpa [#allocation6], 1 }
 0x47c   :  { %6370 = vsyncpa [#allocation6 + $0x1], 1 }

</bundles_post_ra>
